<compile_context>
chip_gen: v7x
topology: tpu7x:2x2x1
jax: 0.10.0
libtpu: 0.0.40
codegen_flags: <defaults>
</compile_context>

<pallas_src>
import functools
import math

import jax
import jax.numpy as jnp
from jax.experimental import pallas as pl
from jax.experimental.pallas import tpu as pltpu

LANE = 128          # pad the unfolded K (contraction) dims to this multiple
_EPS = 1e-5         # InstanceNorm2d default eps

_CPARAMS = pltpu.CompilerParams(
    dimension_semantics=("parallel",),          # grid over batch blocks
    vmem_limit_bytes=32 * 1024 * 1024,          # blocks here are tiny; raise when scaling
)


def _round_up(x, m):
    return -(-x // m) * m


def _pick_block_b(n, hw, m_target=256):
    """Images per grid step: fill the MXU M dim (~256) but keep >= 2 grid
    steps whenever possible so both v7x TensorCores get work."""
    cap = max(1, m_target // max(hw, 1))
    best = 1
    for d in range(1, n + 1):
        if n % d or d > cap:
            continue
        if n >= 2 and n // d < 2:
            continue
        best = d
    return best


# ----------------------------------------------------------------------------
# In-kernel helpers
# ----------------------------------------------------------------------------
def _in_lrelu(y2, bb, hw):
    """InstanceNorm2d(affine=False, eps=1e-5) per image + LeakyReLU(0.1).

    y2: (bb*hw, c) float32; statistics are over the spatial axis of each image.
    Two-pass variance for a closer match to PyTorch.
    """
    c = y2.shape[-1]
    y = y2.reshape(bb, hw, c)
    mean = jnp.mean(y, axis=1, keepdims=True)
    yc = y - mean
    var = jnp.mean(yc * yc, axis=1, keepdims=True)
    out = yc * jax.lax.rsqrt(var + _EPS)
    out = jnp.maximum(out, 0.1 * out)                  # LeakyReLU(0.1)
    return out.reshape(bb * hw, c)


def _make_dot_stage_kernel(bb, ho, wo, kp, cout):
    """Conv (pre-unfolded -> one MXU dot) -> InstanceNorm -> LeakyReLU."""
    hw = ho * wo

    def kernel(x_ref, w_ref, o_ref):
        # x_ref: (bb, ho, wo, kp) bf16   w_ref: (kp, cout) bf16
        x = x_ref[...].reshape(bb * hw, kp)
        y = jnp.dot(x, w_ref[...], preferred_element_type=jnp.float32)
        y = _in_lrelu(y, bb, hw)
        o_ref[...] = y.astype(o_ref.dtype).reshape(bb, ho, wo, cout)

    return kernel


def _make_tail_kernel(bb, ho, wo, in_last, c, n_blocks, has_conv):
    """Fused tail: [last stride-2 conv] -> IN -> LReLU -> all ResnetBlocks
    (1x1 -> 3x3 -> 1x1 + residual, each with IN+LReLU) -> global spatial mean.
    All intermediates stay on-chip."""
    hw = ho * wo

    def kernel(*refs):
        i = 0
        x_ref = refs[i]; i += 1
        cw_ref = None
        if has_conv:
            cw_ref = refs[i]; i += 1
        bws = []
        for _ in range(n_blocks):
            bws.append((refs[i], refs[i + 1], refs[i + 2]))
            i += 3
        o_ref = refs[i]; i += 1
        pad_ref = refs[i] if n_blocks else None        # bf16 halo scratch

        if has_conv:
            xin = x_ref[...].reshape(bb * hw, in_last)
            y = jnp.dot(xin, cw_ref[...], preferred_element_type=jnp.float32)
            x = _in_lrelu(y, bb, hw)                   # (bb*hw, c) f32
        else:
            x = x_ref[...].reshape(bb * hw, c).astype(jnp.float32)

        if n_blocks:
            # Zero only the 1-wide halo; interior is always written before it
            # is read.  Per-step (not @pl.when(pid==0)) for megacore safety.
            zr = jnp.zeros((bb, 1, wo + 2, c), jnp.bfloat16)
            zc = jnp.zeros((bb, ho, 1, c), jnp.bfloat16)
            pad_ref[:, 0:1, :, :] = zr
            pad_ref[:, ho + 1:ho + 2, :, :] = zr
            pad_ref[:, 1:1 + ho, 0:1, :] = zc
            pad_ref[:, 1:1 + ho, wo + 1:wo + 2, :] = zc

        for (w1_ref, w2_ref, w3_ref) in bws:
            # conv1 (1x1)
            y = jnp.dot(x.astype(jnp.bfloat16), w1_ref[...],
                        preferred_element_type=jnp.float32)
            y = _in_lrelu(y, bb, hw)

            # conv2 (3x3, pad=1): bf16 halo slab in VMEM, 9 tap dots.
            # (Tap slabs here are tiny -- 8x8xC -- so the flatten copies are
            # negligible; the big convs are already single-dot unfolds.)
            pad_ref[:, 1:1 + ho, 1:1 + wo, :] = (
                y.astype(jnp.bfloat16).reshape(bb, ho, wo, c))
            acc = jnp.zeros((bb * hw, c), jnp.float32)
            for ki in range(3):
                for kj in range(3):
                    win = pad_ref[:, ki:ki + ho, kj:kj + wo, :]
                    acc = acc + jnp.dot(win.reshape(bb * hw, c), w2_ref[ki, kj],
                                        preferred_element_type=jnp.float32)
            y = _in_lrelu(acc, bb, hw)

            # conv3 (1x1)
            y = jnp.dot(y.astype(jnp.bfloat16), w3_ref[...],
                        preferred_element_type=jnp.float32)
            y = _in_lrelu(y, bb, hw)

            x = x + y                                  # residual (f32)

        # global spatial mean per image -> (bb, 1, c) f32
        o_ref[...] = jnp.mean(x.reshape(bb, hw, c), axis=1, keepdims=True)

    return kernel


# ----------------------------------------------------------------------------
# Host-side glue (cheap XLA relayout: tap unfold into the K dim, no lane pad)
# ----------------------------------------------------------------------------
def _unfold(x, k, pad, stride):
    """NHWC -> (N, Ho, Wo, k*k*C) patches; tap order (ki, kj, c)."""
    n, h, w, c = x.shape
    xp = jnp.pad(x, ((0, 0), (pad, pad), (pad, pad), (0, 0)))
    ho = (h + 2 * pad - k) // stride + 1
    wo = (w + 2 * pad - k) // stride + 1
    cols = []
    for ki in range(k):
        for kj in range(k):
            cols.append(xp[:, ki:ki + stride * ho:stride,
                           kj:kj + stride * wo:stride, :])
    return jnp.concatenate(cols, axis=-1)


def _conv_stage(x, w_kp, k, pad, stride):
    """Conv(k, stride, pad) + InstanceNorm + LeakyReLU as one dot per block."""
    n, _, _, cin = x.shape
    kp, cout = w_kp.shape
    patches = _unfold(x, k, pad, stride)                        # (n, ho, wo, k*k*cin)
    ho, wo = patches.shape[1], patches.shape[2]
    kreal = k * k * cin
    if kp > kreal:
        patches = jnp.pad(patches, ((0, 0), (0, 0), (0, 0), (0, kp - kreal)))
    bb = _pick_block_b(n, ho * wo)
    return pl.pallas_call(
        _make_dot_stage_kernel(bb, ho, wo, kp, cout),
        out_shape=jax.ShapeDtypeStruct((n, ho, wo, cout), jnp.bfloat16),
        grid=(n // bb,),
        in_specs=[pl.BlockSpec((bb, ho, wo, kp), lambda i: (i, 0, 0, 0)),
                  pl.BlockSpec((kp, cout), lambda i: (0, 0))],
        out_specs=pl.BlockSpec((bb, ho, wo, cout), lambda i: (i, 0, 0, 0)),
        compiler_params=_CPARAMS,
    )(patches, w_kp)


def _tail_stage(x, down_w, block_ws):
    """[last stride-2 conv] + all ResnetBlocks + spatial mean in ONE call."""
    n, h, wd, cin = x.shape
    if down_w is not None:
        kp, c = down_w.shape
        patches = _unfold(x, 3, 1, 2)
        ho, wo = patches.shape[1], patches.shape[2]
        kreal = 9 * cin
        if kp > kreal:
            patches = jnp.pad(patches, ((0, 0), (0, 0), (0, 0), (0, kp - kreal)))
        xin, in_last = patches, kp
    else:
        c, ho, wo = cin, h, wd
        xin, in_last = x, cin

    n_blocks = len(block_ws)
    bb = _pick_block_b(n, ho * wo)

    in_specs = [pl.BlockSpec((bb, ho, wo, in_last), lambda i: (i, 0, 0, 0))]
    args = [xin]
    if down_w is not None:
        in_specs.append(pl.BlockSpec((in_last, c), lambda i: (0, 0)))
        args.append(down_w)
    for (w1, w2, w3) in block_ws:
        in_specs += [pl.BlockSpec((c, c), lambda i: (0, 0)),
                     pl.BlockSpec((3, 3, c, c), lambda i: (0, 0, 0, 0)),
                     pl.BlockSpec((c, c), lambda i: (0, 0))]
        args += [w1, w2, w3]
    scratch = ([pltpu.VMEM((bb, ho + 2, wo + 2, c), jnp.bfloat16)]
               if n_blocks else [])

    out = pl.pallas_call(
        _make_tail_kernel(bb, ho, wo, in_last, c, n_blocks, down_w is not None),
        out_shape=jax.ShapeDtypeStruct((n, 1, c), jnp.float32),
        grid=(n // bb,),
        in_specs=in_specs,
        out_specs=pl.BlockSpec((bb, 1, c), lambda i: (i, 0, 0)),
        scratch_shapes=scratch,
        compiler_params=_CPARAMS,
    )(*args)
    return out[:, 0, :]                                          # (n, c) f32


# ----------------------------------------------------------------------------
# Parameters (deterministic init; InstanceNorm has no affine params).
# Conv bias intentionally omitted: before InstanceNorm2d(affine=False) it is
# cancelled exactly by the mean subtraction (same as the PyTorch module).
# ----------------------------------------------------------------------------
def _he(key, shape, fan_in):
    return jax.random.normal(key, shape, jnp.float32) / math.sqrt(fan_in)


def init_backbone_params(key, input_nc, init_nc, n_downsampling, n_blocks):
    n_keys = 1 + n_downsampling + 3 * n_blocks
    keys = iter(jax.random.split(key, max(n_keys, 2)))

    def conv_unfolded(k_, cin, cout, ksz):
        w = _he(k_, (ksz, ksz, cin, cout), cin * ksz * ksz)      # (k,k,cin,cout)
        kreal = ksz * ksz * cin
        kp = _round_up(kreal, LANE)
        wf = jnp.pad(w.reshape(kreal, cout), ((0, kp - kreal), (0, 0)))
        return wf.astype(jnp.bfloat16)                           # (Kp, cout)

    dim = init_nc
    stem_w = conv_unfolded(next(keys), input_nc, dim, 7)
    down_ws = []
    for _ in range(n_downsampling):
        down_ws.append(conv_unfolded(next(keys), dim, 2 * dim, 3))
        dim *= 2
    block_ws = []
    for _ in range(n_blocks):
        w1 = _he(next(keys), (dim, dim), dim).astype(jnp.bfloat16)
        w2 = _he(next(keys), (3, 3, dim, dim), 9 * dim).astype(jnp.bfloat16)
        w3 = _he(next(keys), (dim, dim), dim).astype(jnp.bfloat16)
        block_ws.append((w1, w2, w3))
    return dict(stem_w=stem_w, down_ws=down_ws, block_ws=block_ws,
                input_nc=input_nc, c_out=dim)


# ----------------------------------------------------------------------------
# Forward pass (matches DownsamplingBackbone.forward semantics, eval mode)
# ----------------------------------------------------------------------------
def downsampling_backbone_forward(x_nchw, params):
    n = x_nchw.shape[0]
    x = jnp.transpose(x_nchw, (0, 2, 3, 1)).astype(jnp.bfloat16)  # NHWC bf16
    x = _conv_stage(x, params["stem_w"], k=7, pad=3, stride=1)    # stem 7x7
    down_ws = params["down_ws"]
    for wd in down_ws[:-1]:                                       # all but last
        x = _conv_stage(x, wd, k=3, pad=1, stride=2)
    last_w = down_ws[-1] if down_ws else None
    out = _tail_stage(x, last_w, params["block_ws"])              # fused tail
    return out.reshape(n, params["c_out"], 1, 1)                  # (N, C, 1, 1)


# ----------------------------------------------------------------------------
# Demo
# ----------------------------------------------------------------------------
if __name__ == "__main__":
    # Small config consistent with the module (norm_type='instance', no dropout).
    N, INPUT_NC, H, W = 2, 4, 32, 32
    INIT_NC, N_DOWN, N_BLOCKS = 8, 2, 2

    key = jax.random.PRNGKey(0)
    k_params, k_x = jax.random.split(key)

    params = init_backbone_params(k_params, INPUT_NC, INIT_NC, N_DOWN, N_BLOCKS)
    x = jax.random.normal(k_x, (N, INPUT_NC, H, W), jnp.float32)

    fwd = jax.jit(functools.partial(downsampling_backbone_forward, params=params))
    out = fwd(x)
    jax.block_until_ready(out)

    expected_c = INIT_NC * (2 ** N_DOWN)
    assert out.shape == (N, expected_c, 1, 1), out.shape
    assert bool(jnp.all(jnp.isfinite(out)))
    print("KERNEL_OK")
</pallas_src>

<mosaic_0001>
module attributes {stable_mosaic.version = 11 : i64} {
  func.func @kernel(%arg0: i32, %arg1: memref<1x32x32x256xbf16, #tpu.memory_space<vmem>>, %arg2: memref<256x8xbf16, #tpu.memory_space<vmem>>, %arg3: memref<1x32x32x8xbf16, #tpu.memory_space<vmem>>) attributes {dimension_semantics = [#tpu.dimension_semantics<parallel>], iteration_bounds = array<i64: 2>, scalar_prefetch = 0 : i64, scratch_operands = 0 : i64, tpu.core_type = #tpu.core_type<tc>, window_params = [{transform_indices = @transform_0, window_bounds = array<i64: 1, 32, 32, 256>}, {pipeline_mode = #tpu.pipeline_mode<synchronous>, transform_indices = @transform_1, window_bounds = array<i64: 256, 8>}, {transform_indices = @transform_2, window_bounds = array<i64: 1, 32, 32, 8>}]} {
    %c0 = arith.constant 0 : index
    %c0_0 = arith.constant 0 : index
    %c0_1 = arith.constant 0 : index
    %c0_2 = arith.constant 0 : index
    %0 = vector.load %arg1[%c0, %c0_0, %c0_1, %c0_2] : memref<1x32x32x256xbf16, #tpu.memory_space<vmem>>, vector<1x32x32x256xbf16>
    %1 = vector.shape_cast %0 : vector<1x32x32x256xbf16> to vector<1024x256xbf16>
    %c0_3 = arith.constant 0 : index
    %c0_4 = arith.constant 0 : index
    %2 = vector.load %arg2[%c0_3, %c0_4] : memref<256x8xbf16, #tpu.memory_space<vmem>>, vector<256x8xbf16>
    %cst = arith.constant dense<0.000000e+00> : vector<1024x8xf32>
    %3 = tpu.matmul %1, %2, %cst {dimension_numbers = #tpu.dot_dimension_numbers<[1], [0], [0], [1], [0, 0, 1, 1], [], []>} : vector<1024x256xbf16>, vector<256x8xbf16>, vector<1024x8xf32> -> vector<1024x8xf32>
    %4 = vector.shape_cast %3 : vector<1024x8xf32> to vector<1x1024x8xf32>
    %cst_5 = arith.constant dense<0.000000e+00> : vector<1x8xf32>
    %5 = vector.multi_reduction <add>, %4, %cst_5 [1] : vector<1x1024x8xf32> to vector<1x8xf32>
    %6 = vector.shape_cast %5 : vector<1x8xf32> to vector<1x1x8xf32>
    %cst_6 = arith.constant 1.024000e+03 : f32
    %7 = vector.broadcast %cst_6 : f32 to vector<1x1x8xf32>
    %8 = arith.divf %6, %7 : vector<1x1x8xf32>
    %9 = vector.broadcast %8 : vector<1x1x8xf32> to vector<1x1024x8xf32>
    %10 = arith.subf %4, %9 : vector<1x1024x8xf32>
    %11 = arith.mulf %10, %10 : vector<1x1024x8xf32>
    %cst_7 = arith.constant dense<0.000000e+00> : vector<1x8xf32>
    %12 = vector.multi_reduction <add>, %11, %cst_7 [1] : vector<1x1024x8xf32> to vector<1x8xf32>
    %13 = vector.shape_cast %12 : vector<1x8xf32> to vector<1x1x8xf32>
    %cst_8 = arith.constant 1.024000e+03 : f32
    %14 = vector.broadcast %cst_8 : f32 to vector<1x1x8xf32>
    %15 = arith.divf %13, %14 : vector<1x1x8xf32>
    %cst_9 = arith.constant 9.99999974E-6 : f32
    %16 = vector.broadcast %cst_9 : f32 to vector<1x1x8xf32>
    %17 = arith.addf %15, %16 : vector<1x1x8xf32>
    %18 = math.rsqrt %17 : vector<1x1x8xf32>
    %19 = vector.broadcast %18 : vector<1x1x8xf32> to vector<1x1024x8xf32>
    %20 = arith.mulf %10, %19 : vector<1x1024x8xf32>
    %cst_10 = arith.constant 1.000000e-01 : f32
    %21 = vector.broadcast %cst_10 : f32 to vector<1x1024x8xf32>
    %22 = arith.mulf %21, %20 : vector<1x1024x8xf32>
    %23 = arith.maximumf %20, %22 : vector<1x1024x8xf32>
    %24 = vector.shape_cast %23 : vector<1x1024x8xf32> to vector<1024x8xf32>
    %25 = arith.truncf %24 : vector<1024x8xf32> to vector<1024x8xbf16>
    %26 = vector.shape_cast %25 : vector<1024x8xbf16> to vector<1x32x32x8xbf16>
    %c0_11 = arith.constant 0 : index
    %c0_12 = arith.constant 0 : index
    %c0_13 = arith.constant 0 : index
    %c0_14 = arith.constant 0 : index
    %27 = vector.load %arg3[%c0_11, %c0_12, %c0_13, %c0_14] : memref<1x32x32x8xbf16, #tpu.memory_space<vmem>>, vector<1x32x32x8xbf16>
    tpu.vector_store %arg3[%c0_11, %c0_12, %c0_13, %c0_14], %26 {strides = array<i32>} : memref<1x32x32x8xbf16, #tpu.memory_space<vmem>>, vector<1x32x32x8xbf16>,
    return
  }
  func.func @transform_0(%arg0: i32) -> (i32, i32, i32, i32) {
    %c0_i32 = arith.constant 0 : i32
    %c0_i32_0 = arith.constant 0 : i32
    %c0_i32_1 = arith.constant 0 : i32
    %c0_i32_2 = arith.constant 0 : i32
    return %arg0, %c0_i32, %c0_i32_0, %c0_i32_1 : i32, i32, i32, i32
  }
  func.func @transform_1(%arg0: i32) -> (i32, i32) {
    %c0_i32 = arith.constant 0 : i32
    %c0_i32_0 = arith.constant 0 : i32
    %c0_i32_1 = arith.constant 0 : i32
    return %c0_i32, %c0_i32_0 : i32, i32
  }
  func.func @transform_2(%arg0: i32) -> (i32, i32, i32, i32) {
    %c0_i32 = arith.constant 0 : i32
    %c0_i32_0 = arith.constant 0 : i32
    %c0_i32_1 = arith.constant 0 : i32
    %c0_i32_2 = arith.constant 0 : i32
    return %arg0, %c0_i32, %c0_i32_0, %c0_i32_1 : i32, i32, i32, i32
  }
}

module attributes {stable_mosaic.version = 11 : i64} {
  func.func @kernel(%arg0: i32, %arg1: memref<1x16x16x128xbf16, #tpu.memory_space<vmem>>, %arg2: memref<128x16xbf16, #tpu.memory_space<vmem>>, %arg3: memref<1x16x16x16xbf16, #tpu.memory_space<vmem>>) attributes {dimension_semantics = [#tpu.dimension_semantics<parallel>], iteration_bounds = array<i64: 2>, scalar_prefetch = 0 : i64, scratch_operands = 0 : i64, tpu.core_type = #tpu.core_type<tc>, window_params = [{transform_indices = @transform_0, window_bounds = array<i64: 1, 16, 16, 128>}, {pipeline_mode = #tpu.pipeline_mode<synchronous>, transform_indices = @transform_1, window_bounds = array<i64: 128, 16>}, {transform_indices = @transform_2, window_bounds = array<i64: 1, 16, 16, 16>}]} {
    %c0 = arith.constant 0 : index
    %c0_0 = arith.constant 0 : index
    %c0_1 = arith.constant 0 : index
    %c0_2 = arith.constant 0 : index
    %0 = vector.load %arg1[%c0, %c0_0, %c0_1, %c0_2] : memref<1x16x16x128xbf16, #tpu.memory_space<vmem>>, vector<1x16x16x128xbf16>
    %1 = vector.shape_cast %0 : vector<1x16x16x128xbf16> to vector<256x128xbf16>
    %c0_3 = arith.constant 0 : index
    %c0_4 = arith.constant 0 : index
    %2 = vector.load %arg2[%c0_3, %c0_4] : memref<128x16xbf16, #tpu.memory_space<vmem>>, vector<128x16xbf16>
    %cst = arith.constant dense<0.000000e+00> : vector<256x16xf32>
    %3 = tpu.matmul %1, %2, %cst {dimension_numbers = #tpu.dot_dimension_numbers<[1], [0], [0], [1], [0, 0, 1, 1], [], []>} : vector<256x128xbf16>, vector<128x16xbf16>, vector<256x16xf32> -> vector<256x16xf32>
    %4 = vector.shape_cast %3 : vector<256x16xf32> to vector<1x256x16xf32>
    %cst_5 = arith.constant dense<0.000000e+00> : vector<1x16xf32>
    %5 = vector.multi_reduction <add>, %4, %cst_5 [1] : vector<1x256x16xf32> to vector<1x16xf32>
    %6 = vector.shape_cast %5 : vector<1x16xf32> to vector<1x1x16xf32>
    %cst_6 = arith.constant 2.560000e+02 : f32
    %7 = vector.broadcast %cst_6 : f32 to vector<1x1x16xf32>
    %8 = arith.divf %6, %7 : vector<1x1x16xf32>
    %9 = vector.broadcast %8 : vector<1x1x16xf32> to vector<1x256x16xf32>
    %10 = arith.subf %4, %9 : vector<1x256x16xf32>
    %11 = arith.mulf %10, %10 : vector<1x256x16xf32>
    %cst_7 = arith.constant dense<0.000000e+00> : vector<1x16xf32>
    %12 = vector.multi_reduction <add>, %11, %cst_7 [1] : vector<1x256x16xf32> to vector<1x16xf32>
    %13 = vector.shape_cast %12 : vector<1x16xf32> to vector<1x1x16xf32>
    %cst_8 = arith.constant 2.560000e+02 : f32
    %14 = vector.broadcast %cst_8 : f32 to vector<1x1x16xf32>
    %15 = arith.divf %13, %14 : vector<1x1x16xf32>
    %cst_9 = arith.constant 9.99999974E-6 : f32
    %16 = vector.broadcast %cst_9 : f32 to vector<1x1x16xf32>
    %17 = arith.addf %15, %16 : vector<1x1x16xf32>
    %18 = math.rsqrt %17 : vector<1x1x16xf32>
    %19 = vector.broadcast %18 : vector<1x1x16xf32> to vector<1x256x16xf32>
    %20 = arith.mulf %10, %19 : vector<1x256x16xf32>
    %cst_10 = arith.constant 1.000000e-01 : f32
    %21 = vector.broadcast %cst_10 : f32 to vector<1x256x16xf32>
    %22 = arith.mulf %21, %20 : vector<1x256x16xf32>
    %23 = arith.maximumf %20, %22 : vector<1x256x16xf32>
    %24 = vector.shape_cast %23 : vector<1x256x16xf32> to vector<256x16xf32>
    %25 = arith.truncf %24 : vector<256x16xf32> to vector<256x16xbf16>
    %26 = vector.shape_cast %25 : vector<256x16xbf16> to vector<1x16x16x16xbf16>
    %c0_11 = arith.constant 0 : index
    %c0_12 = arith.constant 0 : index
    %c0_13 = arith.constant 0 : index
    %c0_14 = arith.constant 0 : index
    %27 = vector.load %arg3[%c0_11, %c0_12, %c0_13, %c0_14] : memref<1x16x16x16xbf16, #tpu.memory_space<vmem>>, vector<1x16x16x16xbf16>
    tpu.vector_store %arg3[%c0_11, %c0_12, %c0_13, %c0_14], %26 {strides = array<i32>} : memref<1x16x16x16xbf16, #tpu.memory_space<vmem>>, vector<1x16x16x16xbf16>,
    return
  }
  func.func @transform_0(%arg0: i32) -> (i32, i32, i32, i32) {
    %c0_i32 = arith.constant 0 : i32
    %c0_i32_0 = arith.constant 0 : i32
    %c0_i32_1 = arith.constant 0 : i32
    %c0_i32_2 = arith.constant 0 : i32
    return %arg0, %c0_i32, %c0_i32_0, %c0_i32_1 : i32, i32, i32, i32
  }
  func.func @transform_1(%arg0: i32) -> (i32, i32) {
    %c0_i32 = arith.constant 0 : i32
    %c0_i32_0 = arith.constant 0 : i32
    %c0_i32_1 = arith.constant 0 : i32
    return %c0_i32, %c0_i32_0 : i32, i32
  }
  func.func @transform_2(%arg0: i32) -> (i32, i32, i32, i32) {
    %c0_i32 = arith.constant 0 : i32
    %c0_i32_0 = arith.constant 0 : i32
    %c0_i32_1 = arith.constant 0 : i32
    %c0_i32_2 = arith.constant 0 : i32
    return %arg0, %c0_i32, %c0_i32_0, %c0_i32_1 : i32, i32, i32, i32
  }
}

module attributes {stable_mosaic.version = 11 : i64} {
  func.func @kernel(%arg0: i32, %arg1: memref<1x8x8x256xbf16, #tpu.memory_space<vmem>>, %arg2: memref<256x32xbf16, #tpu.memory_space<vmem>>, %arg3: memref<32x32xbf16, #tpu.memory_space<vmem>>, %arg4: memref<3x3x32x32xbf16, #tpu.memory_space<vmem>>, %arg5: memref<32x32xbf16, #tpu.memory_space<vmem>>, %arg6: memref<32x32xbf16, #tpu.memory_space<vmem>>, %arg7: memref<3x3x32x32xbf16, #tpu.memory_space<vmem>>, %arg8: memref<32x32xbf16, #tpu.memory_space<vmem>>, %arg9: memref<1x1x32xf32, #tpu.memory_space<vmem>>, %arg10: memref<1x10x10x32xbf16, #tpu.memory_space<vmem>>) attributes {dimension_semantics = [#tpu.dimension_semantics<parallel>], iteration_bounds = array<i64: 2>, scalar_prefetch = 0 : i64, scratch_operands = 1 : i64, tpu.core_type = #tpu.core_type<tc>, window_params = [{transform_indices = @transform_0, window_bounds = array<i64: 1, 8, 8, 256>}, {pipeline_mode = #tpu.pipeline_mode<synchronous>, transform_indices = @transform_1, window_bounds = array<i64: 256, 32>}, {pipeline_mode = #tpu.pipeline_mode<synchronous>, transform_indices = @transform_2, window_bounds = array<i64: 32, 32>}, {pipeline_mode = #tpu.pipeline_mode<synchronous>, transform_indices = @transform_3, window_bounds = array<i64: 3, 3, 32, 32>}, {pipeline_mode = #tpu.pipeline_mode<synchronous>, transform_indices = @transform_4, window_bounds = array<i64: 32, 32>}, {pipeline_mode = #tpu.pipeline_mode<synchronous>, transform_indices = @transform_5, window_bounds = array<i64: 32, 32>}, {pipeline_mode = #tpu.pipeline_mode<synchronous>, transform_indices = @transform_6, window_bounds = array<i64: 3, 3, 32, 32>}, {pipeline_mode = #tpu.pipeline_mode<synchronous>, transform_indices = @transform_7, window_bounds = array<i64: 32, 32>}, {transform_indices = @transform_8, window_bounds = array<i64: 1, 1, 32>}]} {
    %c0 = arith.constant 0 : index
    %c0_0 = arith.constant 0 : index
    %c0_1 = arith.constant 0 : index
    %c0_2 = arith.constant 0 : index
    %0 = vector.load %arg1[%c0, %c0_0, %c0_1, %c0_2] : memref<1x8x8x256xbf16, #tpu.memory_space<vmem>>, vector<1x8x8x256xbf16>
    %1 = vector.shape_cast %0 : vector<1x8x8x256xbf16> to vector<64x256xbf16>
    %c0_3 = arith.constant 0 : index
    %c0_4 = arith.constant 0 : index
    %2 = vector.load %arg2[%c0_3, %c0_4] : memref<256x32xbf16, #tpu.memory_space<vmem>>, vector<256x32xbf16>
    %cst = arith.constant dense<0.000000e+00> : vector<64x32xf32>
    %3 = tpu.matmul %1, %2, %cst {dimension_numbers = #tpu.dot_dimension_numbers<[1], [0], [0], [1], [0, 0, 1, 1], [], []>} : vector<64x256xbf16>, vector<256x32xbf16>, vector<64x32xf32> -> vector<64x32xf32>
    %4 = vector.shape_cast %3 : vector<64x32xf32> to vector<1x64x32xf32>
    %cst_5 = arith.constant dense<0.000000e+00> : vector<1x32xf32>
    %5 = vector.multi_reduction <add>, %4, %cst_5 [1] : vector<1x64x32xf32> to vector<1x32xf32>
    %6 = vector.shape_cast %5 : vector<1x32xf32> to vector<1x1x32xf32>
    %cst_6 = arith.constant 6.400000e+01 : f32
    %7 = vector.broadcast %cst_6 : f32 to vector<1x1x32xf32>
    %8 = arith.divf %6, %7 : vector<1x1x32xf32>
    %9 = vector.broadcast %8 : vector<1x1x32xf32> to vector<1x64x32xf32>
    %10 = arith.subf %4, %9 : vector<1x64x32xf32>
    %11 = arith.mulf %10, %10 : vector<1x64x32xf32>
    %cst_7 = arith.constant dense<0.000000e+00> : vector<1x32xf32>
    %12 = vector.multi_reduction <add>, %11, %cst_7 [1] : vector<1x64x32xf32> to vector<1x32xf32>
    %13 = vector.shape_cast %12 : vector<1x32xf32> to vector<1x1x32xf32>
    %cst_8 = arith.constant 6.400000e+01 : f32
    %14 = vector.broadcast %cst_8 : f32 to vector<1x1x32xf32>
    %15 = arith.divf %13, %14 : vector<1x1x32xf32>
    %cst_9 = arith.constant 9.99999974E-6 : f32
    %16 = vector.broadcast %cst_9 : f32 to vector<1x1x32xf32>
    %17 = arith.addf %15, %16 : vector<1x1x32xf32>
    %18 = math.rsqrt %17 : vector<1x1x32xf32>
    %19 = vector.broadcast %18 : vector<1x1x32xf32> to vector<1x64x32xf32>
    %20 = arith.mulf %10, %19 : vector<1x64x32xf32>
    %cst_10 = arith.constant 1.000000e-01 : f32
    %21 = vector.broadcast %cst_10 : f32 to vector<1x64x32xf32>
    %22 = arith.mulf %21, %20 : vector<1x64x32xf32>
    %23 = arith.maximumf %20, %22 : vector<1x64x32xf32>
    %24 = vector.shape_cast %23 : vector<1x64x32xf32> to vector<64x32xf32>
    %cst_11 = arith.constant 0.000000e+00 : bf16
    %25 = vector.broadcast %cst_11 : bf16 to vector<1x1x10x32xbf16>
    %cst_12 = arith.constant 0.000000e+00 : bf16
    %26 = vector.broadcast %cst_12 : bf16 to vector<1x8x1x32xbf16>
    %c0_13 = arith.constant 0 : index
    %c0_14 = arith.constant 0 : index
    %c0_15 = arith.constant 0 : index
    %c0_16 = arith.constant 0 : index
    %27 = vector.load %arg10[%c0_13, %c0_14, %c0_15, %c0_16] : memref<1x10x10x32xbf16, #tpu.memory_space<vmem>>, vector<1x1x10x32xbf16>
    tpu.vector_store %arg10[%c0_13, %c0_14, %c0_15, %c0_16], %25 {strides = array<i32>} : memref<1x10x10x32xbf16, #tpu.memory_space<vmem>>, vector<1x1x10x32xbf16>,
    %c0_17 = arith.constant 0 : index
    %c9 = arith.constant 9 : index
    %c0_18 = arith.constant 0 : index
    %c0_19 = arith.constant 0 : index
    %28 = vector.load %arg10[%c0_17, %c9, %c0_18, %c0_19] : memref<1x10x10x32xbf16, #tpu.memory_space<vmem>>, vector<1x1x10x32xbf16>
    tpu.vector_store %arg10[%c0_17, %c9, %c0_18, %c0_19], %25 {strides = array<i32>} : memref<1x10x10x32xbf16, #tpu.memory_space<vmem>>, vector<1x1x10x32xbf16>,
    %c0_20 = arith.constant 0 : index
    %c1 = arith.constant 1 : index
    %c0_21 = arith.constant 0 : index
    %c0_22 = arith.constant 0 : index
    %29 = vector.load %arg10[%c0_20, %c1, %c0_21, %c0_22] : memref<1x10x10x32xbf16, #tpu.memory_space<vmem>>, vector<1x8x1x32xbf16>
    tpu.vector_store %arg10[%c0_20, %c1, %c0_21, %c0_22], %26 {strides = array<i32>} : memref<1x10x10x32xbf16, #tpu.memory_space<vmem>>, vector<1x8x1x32xbf16>,
    %c0_23 = arith.constant 0 : index
    %c1_24 = arith.constant 1 : index
    %c9_25 = arith.constant 9 : index
    %c0_26 = arith.constant 0 : index
    %30 = vector.load %arg10[%c0_23, %c1_24, %c9_25, %c0_26] : memref<1x10x10x32xbf16, #tpu.memory_space<vmem>>, vector<1x8x1x32xbf16>
    tpu.vector_store %arg10[%c0_23, %c1_24, %c9_25, %c0_26], %26 {strides = array<i32>} : memref<1x10x10x32xbf16, #tpu.memory_space<vmem>>, vector<1x8x1x32xbf16>,
    %31 = arith.truncf %24 : vector<64x32xf32> to vector<64x32xbf16>
    %c0_27 = arith.constant 0 : index
    %c0_28 = arith.constant 0 : index
    %32 = vector.load %arg3[%c0_27, %c0_28] : memref<32x32xbf16, #tpu.memory_space<vmem>>, vector<32x32xbf16>
    %cst_29 = arith.constant dense<0.000000e+00> : vector<64x32xf32>
    %33 = tpu.matmul %31, %32, %cst_29 {dimension_numbers = #tpu.dot_dimension_numbers<[1], [0], [0], [1], [0, 0, 1, 1], [], []>} : vector<64x32xbf16>, vector<32x32xbf16>, vector<64x32xf32> -> vector<64x32xf32>
    %34 = vector.shape_cast %33 : vector<64x32xf32> to vector<1x64x32xf32>
    %cst_30 = arith.constant dense<0.000000e+00> : vector<1x32xf32>
    %35 = vector.multi_reduction <add>, %34, %cst_30 [1] : vector<1x64x32xf32> to vector<1x32xf32>
    %36 = vector.shape_cast %35 : vector<1x32xf32> to vector<1x1x32xf32>
    %cst_31 = arith.constant 6.400000e+01 : f32
    %37 = vector.broadcast %cst_31 : f32 to vector<1x1x32xf32>
    %38 = arith.divf %36, %37 : vector<1x1x32xf32>
    %39 = vector.broadcast %38 : vector<1x1x32xf32> to vector<1x64x32xf32>
    %40 = arith.subf %34, %39 : vector<1x64x32xf32>
    %41 = arith.mulf %40, %40 : vector<1x64x32xf32>
    %cst_32 = arith.constant dense<0.000000e+00> : vector<1x32xf32>
    %42 = vector.multi_reduction <add>, %41, %cst_32 [1] : vector<1x64x32xf32> to vector<1x32xf32>
    %43 = vector.shape_cast %42 : vector<1x32xf32> to vector<1x1x32xf32>
    %cst_33 = arith.constant 6.400000e+01 : f32
    %44 = vector.broadcast %cst_33 : f32 to vector<1x1x32xf32>
    %45 = arith.divf %43, %44 : vector<1x1x32xf32>
    %cst_34 = arith.constant 9.99999974E-6 : f32
    %46 = vector.broadcast %cst_34 : f32 to vector<1x1x32xf32>
    %47 = arith.addf %45, %46 : vector<1x1x32xf32>
    %48 = math.rsqrt %47 : vector<1x1x32xf32>
    %49 = vector.broadcast %48 : vector<1x1x32xf32> to vector<1x64x32xf32>
    %50 = arith.mulf %40, %49 : vector<1x64x32xf32>
    %cst_35 = arith.constant 1.000000e-01 : f32
    %51 = vector.broadcast %cst_35 : f32 to vector<1x64x32xf32>
    %52 = arith.mulf %51, %50 : vector<1x64x32xf32>
    %53 = arith.maximumf %50, %52 : vector<1x64x32xf32>
    %54 = vector.shape_cast %53 : vector<1x64x32xf32> to vector<64x32xf32>
    %55 = arith.truncf %54 : vector<64x32xf32> to vector<64x32xbf16>
    %56 = vector.shape_cast %55 : vector<64x32xbf16> to vector<1x8x8x32xbf16>
    %c0_36 = arith.constant 0 : index
    %c1_37 = arith.constant 1 : index
    %c1_38 = arith.constant 1 : index
    %c0_39 = arith.constant 0 : index
    %57 = vector.load %arg10[%c0_36, %c1_37, %c1_38, %c0_39] : memref<1x10x10x32xbf16, #tpu.memory_space<vmem>>, vector<1x8x8x32xbf16>
    tpu.vector_store %arg10[%c0_36, %c1_37, %c1_38, %c0_39], %56 {strides = array<i32>} : memref<1x10x10x32xbf16, #tpu.memory_space<vmem>>, vector<1x8x8x32xbf16>,
    %cst_40 = arith.constant 0.000000e+00 : f32
    %58 = vector.broadcast %cst_40 : f32 to vector<64x32xf32>
    %c0_41 = arith.constant 0 : index
    %c0_42 = arith.constant 0 : index
    %c0_43 = arith.constant 0 : index
    %c0_44 = arith.constant 0 : index
    %59 = vector.load %arg10[%c0_41, %c0_42, %c0_43, %c0_44] : memref<1x10x10x32xbf16, #tpu.memory_space<vmem>>, vector<1x8x8x32xbf16>
    %60 = vector.shape_cast %59 : vector<1x8x8x32xbf16> to vector<64x32xbf16>
    %c0_45 = arith.constant 0 : index
    %c0_46 = arith.constant 0 : index
    %c0_47 = arith.constant 0 : index
    %c0_48 = arith.constant 0 : index
    %61 = vector.load %arg4[%c0_45, %c0_46, %c0_47, %c0_48] : memref<3x3x32x32xbf16, #tpu.memory_space<vmem>>, vector<1x1x32x32xbf16>
    %62 = vector.shape_cast %61 : vector<1x1x32x32xbf16> to vector<32x32xbf16>
    %cst_49 = arith.constant dense<0.000000e+00> : vector<64x32xf32>
    %63 = tpu.matmul %60, %62, %cst_49 {dimension_numbers = #tpu.dot_dimension_numbers<[1], [0], [0], [1], [0, 0, 1, 1], [], []>} : vector<64x32xbf16>, vector<32x32xbf16>, vector<64x32xf32> -> vector<64x32xf32>
    %64 = arith.addf %58, %63 : vector<64x32xf32>
    %c0_50 = arith.constant 0 : index
    %c0_51 = arith.constant 0 : index
    %c1_52 = arith.constant 1 : index
    %c0_53 = arith.constant 0 : index
    %65 = vector.load %arg10[%c0_50, %c0_51, %c1_52, %c0_53] : memref<1x10x10x32xbf16, #tpu.memory_space<vmem>>, vector<1x8x8x32xbf16>
    %66 = vector.shape_cast %65 : vector<1x8x8x32xbf16> to vector<64x32xbf16>
    %c0_54 = arith.constant 0 : index
    %c1_55 = arith.constant 1 : index
    %c0_56 = arith.constant 0 : index
    %c0_57 = arith.constant 0 : index
    %67 = vector.load %arg4[%c0_54, %c1_55, %c0_56, %c0_57] : memref<3x3x32x32xbf16, #tpu.memory_space<vmem>>, vector<1x1x32x32xbf16>
    %68 = vector.shape_cast %67 : vector<1x1x32x32xbf16> to vector<32x32xbf16>
    %cst_58 = arith.constant dense<0.000000e+00> : vector<64x32xf32>
    %69 = tpu.matmul %66, %68, %cst_58 {dimension_numbers = #tpu.dot_dimension_numbers<[1], [0], [0], [1], [0, 0, 1, 1], [], []>} : vector<64x32xbf16>, vector<32x32xbf16>, vector<64x32xf32> -> vector<64x32xf32>
    %70 = arith.addf %64, %69 : vector<64x32xf32>
    %c0_59 = arith.constant 0 : index
    %c0_60 = arith.constant 0 : index
    %c2 = arith.constant 2 : index
    %c0_61 = arith.constant 0 : index
    %71 = vector.load %arg10[%c0_59, %c0_60, %c2, %c0_61] : memref<1x10x10x32xbf16, #tpu.memory_space<vmem>>, vector<1x8x8x32xbf16>
    %72 = vector.shape_cast %71 : vector<1x8x8x32xbf16> to vector<64x32xbf16>
    %c0_62 = arith.constant 0 : index
    %c2_63 = arith.constant 2 : index
    %c0_64 = arith.constant 0 : index
    %c0_65 = arith.constant 0 : index
    %73 = vector.load %arg4[%c0_62, %c2_63, %c0_64, %c0_65] : memref<3x3x32x32xbf16, #tpu.memory_space<vmem>>, vector<1x1x32x32xbf16>
    %74 = vector.shape_cast %73 : vector<1x1x32x32xbf16> to vector<32x32xbf16>
    %cst_66 = arith.constant dense<0.000000e+00> : vector<64x32xf32>
    %75 = tpu.matmul %72, %74, %cst_66 {dimension_numbers = #tpu.dot_dimension_numbers<[1], [0], [0], [1], [0, 0, 1, 1], [], []>} : vector<64x32xbf16>, vector<32x32xbf16>, vector<64x32xf32> -> vector<64x32xf32>
    %76 = arith.addf %70, %75 : vector<64x32xf32>
    %c0_67 = arith.constant 0 : index
    %c1_68 = arith.constant 1 : index
    %c0_69 = arith.constant 0 : index
    %c0_70 = arith.constant 0 : index
    %77 = vector.load %arg10[%c0_67, %c1_68, %c0_69, %c0_70] : memref<1x10x10x32xbf16, #tpu.memory_space<vmem>>, vector<1x8x8x32xbf16>
    %78 = vector.shape_cast %77 : vector<1x8x8x32xbf16> to vector<64x32xbf16>
    %c1_71 = arith.constant 1 : index
    %c0_72 = arith.constant 0 : index
    %c0_73 = arith.constant 0 : index
    %c0_74 = arith.constant 0 : index
    %79 = vector.load %arg4[%c1_71, %c0_72, %c0_73, %c0_74] : memref<3x3x32x32xbf16, #tpu.memory_space<vmem>>, vector<1x1x32x32xbf16>
    %80 = vector.shape_cast %79 : vector<1x1x32x32xbf16> to vector<32x32xbf16>
    %cst_75 = arith.constant dense<0.000000e+00> : vector<64x32xf32>
    %81 = tpu.matmul %78, %80, %cst_75 {dimension_numbers = #tpu.dot_dimension_numbers<[1], [0], [0], [1], [0, 0, 1, 1], [], []>} : vector<64x32xbf16>, vector<32x32xbf16>, vector<64x32xf32> -> vector<64x32xf32>
    %82 = arith.addf %76, %81 : vector<64x32xf32>
    %c0_76 = arith.constant 0 : index
    %c1_77 = arith.constant 1 : index
    %c1_78 = arith.constant 1 : index
    %c0_79 = arith.constant 0 : index
    %83 = vector.load %arg10[%c0_76, %c1_77, %c1_78, %c0_79] : memref<1x10x10x32xbf16, #tpu.memory_space<vmem>>, vector<1x8x8x32xbf16>
    %84 = vector.shape_cast %83 : vector<1x8x8x32xbf16> to vector<64x32xbf16>
    %c1_80 = arith.constant 1 : index
    %c1_81 = arith.constant 1 : index
    %c0_82 = arith.constant 0 : index
    %c0_83 = arith.constant 0 : index
    %85 = vector.load %arg4[%c1_80, %c1_81, %c0_82, %c0_83] : memref<3x3x32x32xbf16, #tpu.memory_space<vmem>>, vector<1x1x32x32xbf16>
    %86 = vector.shape_cast %85 : vector<1x1x32x32xbf16> to vector<32x32xbf16>
    %cst_84 = arith.constant dense<0.000000e+00> : vector<64x32xf32>
    %87 = tpu.matmul %84, %86, %cst_84 {dimension_numbers = #tpu.dot_dimension_numbers<[1], [0], [0], [1], [0, 0, 1, 1], [], []>} : vector<64x32xbf16>, vector<32x32xbf16>, vector<64x32xf32> -> vector<64x32xf32>
    %88 = arith.addf %82, %87 : vector<64x32xf32>
    %c0_85 = arith.constant 0 : index
    %c1_86 = arith.constant 1 : index
    %c2_87 = arith.constant 2 : index
    %c0_88 = arith.constant 0 : index
    %89 = vector.load %arg10[%c0_85, %c1_86, %c2_87, %c0_88] : memref<1x10x10x32xbf16, #tpu.memory_space<vmem>>, vector<1x8x8x32xbf16>
    %90 = vector.shape_cast %89 : vector<1x8x8x32xbf16> to vector<64x32xbf16>
    %c1_89 = arith.constant 1 : index
    %c2_90 = arith.constant 2 : index
    %c0_91 = arith.constant 0 : index
    %c0_92 = arith.constant 0 : index
    %91 = vector.load %arg4[%c1_89, %c2_90, %c0_91, %c0_92] : memref<3x3x32x32xbf16, #tpu.memory_space<vmem>>, vector<1x1x32x32xbf16>
    %92 = vector.shape_cast %91 : vector<1x1x32x32xbf16> to vector<32x32xbf16>
    %cst_93 = arith.constant dense<0.000000e+00> : vector<64x32xf32>
    %93 = tpu.matmul %90, %92, %cst_93 {dimension_numbers = #tpu.dot_dimension_numbers<[1], [0], [0], [1], [0, 0, 1, 1], [], []>} : vector<64x32xbf16>, vector<32x32xbf16>, vector<64x32xf32> -> vector<64x32xf32>
    %94 = arith.addf %88, %93 : vector<64x32xf32>
    %c0_94 = arith.constant 0 : index
    %c2_95 = arith.constant 2 : index
    %c0_96 = arith.constant 0 : index
    %c0_97 = arith.constant 0 : index
    %95 = vector.load %arg10[%c0_94, %c2_95, %c0_96, %c0_97] : memref<1x10x10x32xbf16, #tpu.memory_space<vmem>>, vector<1x8x8x32xbf16>
    %96 = vector.shape_cast %95 : vector<1x8x8x32xbf16> to vector<64x32xbf16>
    %c2_98 = arith.constant 2 : index
    %c0_99 = arith.constant 0 : index
    %c0_100 = arith.constant 0 : index
    %c0_101 = arith.constant 0 : index
    %97 = vector.load %arg4[%c2_98, %c0_99, %c0_100, %c0_101] : memref<3x3x32x32xbf16, #tpu.memory_space<vmem>>, vector<1x1x32x32xbf16>
    %98 = vector.shape_cast %97 : vector<1x1x32x32xbf16> to vector<32x32xbf16>
    %cst_102 = arith.constant dense<0.000000e+00> : vector<64x32xf32>
    %99 = tpu.matmul %96, %98, %cst_102 {dimension_numbers = #tpu.dot_dimension_numbers<[1], [0], [0], [1], [0, 0, 1, 1], [], []>} : vector<64x32xbf16>, vector<32x32xbf16>, vector<64x32xf32> -> vector<64x32xf32>
    %100 = arith.addf %94, %99 : vector<64x32xf32>
    %c0_103 = arith.constant 0 : index
    %c2_104 = arith.constant 2 : index
    %c1_105 = arith.constant 1 : index
    %c0_106 = arith.constant 0 : index
    %101 = vector.load %arg10[%c0_103, %c2_104, %c1_105, %c0_106] : memref<1x10x10x32xbf16, #tpu.memory_space<vmem>>, vector<1x8x8x32xbf16>
    %102 = vector.shape_cast %101 : vector<1x8x8x32xbf16> to vector<64x32xbf16>
    %c2_107 = arith.constant 2 : index
    %c1_108 = arith.constant 1 : index
    %c0_109 = arith.constant 0 : index
    %c0_110 = arith.constant 0 : index
    %103 = vector.load %arg4[%c2_107, %c1_108, %c0_109, %c0_110] : memref<3x3x32x32xbf16, #tpu.memory_space<vmem>>, vector<1x1x32x32xbf16>
    %104 = vector.shape_cast %103 : vector<1x1x32x32xbf16> to vector<32x32xbf16>
    %cst_111 = arith.constant dense<0.000000e+00> : vector<64x32xf32>
    %105 = tpu.matmul %102, %104, %cst_111 {dimension_numbers = #tpu.dot_dimension_numbers<[1], [0], [0], [1], [0, 0, 1, 1], [], []>} : vector<64x32xbf16>, vector<32x32xbf16>, vector<64x32xf32> -> vector<64x32xf32>
    %106 = arith.addf %100, %105 : vector<64x32xf32>
    %c0_112 = arith.constant 0 : index
    %c2_113 = arith.constant 2 : index
    %c2_114 = arith.constant 2 : index
    %c0_115 = arith.constant 0 : index
    %107 = vector.load %arg10[%c0_112, %c2_113, %c2_114, %c0_115] : memref<1x10x10x32xbf16, #tpu.memory_space<vmem>>, vector<1x8x8x32xbf16>
    %108 = vector.shape_cast %107 : vector<1x8x8x32xbf16> to vector<64x32xbf16>
    %c2_116 = arith.constant 2 : index
    %c2_117 = arith.constant 2 : index
    %c0_118 = arith.constant 0 : index
    %c0_119 = arith.constant 0 : index
    %109 = vector.load %arg4[%c2_116, %c2_117, %c0_118, %c0_119] : memref<3x3x32x32xbf16, #tpu.memory_space<vmem>>, vector<1x1x32x32xbf16>
    %110 = vector.shape_cast %109 : vector<1x1x32x32xbf16> to vector<32x32xbf16>
    %cst_120 = arith.constant dense<0.000000e+00> : vector<64x32xf32>
    %111 = tpu.matmul %108, %110, %cst_120 {dimension_numbers = #tpu.dot_dimension_numbers<[1], [0], [0], [1], [0, 0, 1, 1], [], []>} : vector<64x32xbf16>, vector<32x32xbf16>, vector<64x32xf32> -> vector<64x32xf32>
    %112 = arith.addf %106, %111 : vector<64x32xf32>
    %113 = vector.shape_cast %112 : vector<64x32xf32> to vector<1x64x32xf32>
    %cst_121 = arith.constant dense<0.000000e+00> : vector<1x32xf32>
    %114 = vector.multi_reduction <add>, %113, %cst_121 [1] : vector<1x64x32xf32> to vector<1x32xf32>
    %115 = vector.shape_cast %114 : vector<1x32xf32> to vector<1x1x32xf32>
    %cst_122 = arith.constant 6.400000e+01 : f32
    %116 = vector.broadcast %cst_122 : f32 to vector<1x1x32xf32>
    %117 = arith.divf %115, %116 : vector<1x1x32xf32>
    %118 = vector.broadcast %117 : vector<1x1x32xf32> to vector<1x64x32xf32>
    %119 = arith.subf %113, %118 : vector<1x64x32xf32>
    %120 = arith.mulf %119, %119 : vector<1x64x32xf32>
    %cst_123 = arith.constant dense<0.000000e+00> : vector<1x32xf32>
    %121 = vector.multi_reduction <add>, %120, %cst_123 [1] : vector<1x64x32xf32> to vector<1x32xf32>
    %122 = vector.shape_cast %121 : vector<1x32xf32> to vector<1x1x32xf32>
    %cst_124 = arith.constant 6.400000e+01 : f32
    %123 = vector.broadcast %cst_124 : f32 to vector<1x1x32xf32>
    %124 = arith.divf %122, %123 : vector<1x1x32xf32>
    %cst_125 = arith.constant 9.99999974E-6 : f32
    %125 = vector.broadcast %cst_125 : f32 to vector<1x1x32xf32>
    %126 = arith.addf %124, %125 : vector<1x1x32xf32>
    %127 = math.rsqrt %126 : vector<1x1x32xf32>
    %128 = vector.broadcast %127 : vector<1x1x32xf32> to vector<1x64x32xf32>
    %129 = arith.mulf %119, %128 : vector<1x64x32xf32>
    %cst_126 = arith.constant 1.000000e-01 : f32
    %130 = vector.broadcast %cst_126 : f32 to vector<1x64x32xf32>
    %131 = arith.mulf %130, %129 : vector<1x64x32xf32>
    %132 = arith.maximumf %129, %131 : vector<1x64x32xf32>
    %133 = vector.shape_cast %132 : vector<1x64x32xf32> to vector<64x32xf32>
    %134 = arith.truncf %133 : vector<64x32xf32> to vector<64x32xbf16>
    %c0_127 = arith.constant 0 : index
    %c0_128 = arith.constant 0 : index
    %135 = vector.load %arg5[%c0_127, %c0_128] : memref<32x32xbf16, #tpu.memory_space<vmem>>, vector<32x32xbf16>
    %cst_129 = arith.constant dense<0.000000e+00> : vector<64x32xf32>
    %136 = tpu.matmul %134, %135, %cst_129 {dimension_numbers = #tpu.dot_dimension_numbers<[1], [0], [0], [1], [0, 0, 1, 1], [], []>} : vector<64x32xbf16>, vector<32x32xbf16>, vector<64x32xf32> -> vector<64x32xf32>
    %137 = vector.shape_cast %136 : vector<64x32xf32> to vector<1x64x32xf32>
    %cst_130 = arith.constant dense<0.000000e+00> : vector<1x32xf32>
    %138 = vector.multi_reduction <add>, %137, %cst_130 [1] : vector<1x64x32xf32> to vector<1x32xf32>
    %139 = vector.shape_cast %138 : vector<1x32xf32> to vector<1x1x32xf32>
    %cst_131 = arith.constant 6.400000e+01 : f32
    %140 = vector.broadcast %cst_131 : f32 to vector<1x1x32xf32>
    %141 = arith.divf %139, %140 : vector<1x1x32xf32>
    %142 = vector.broadcast %141 : vector<1x1x32xf32> to vector<1x64x32xf32>
    %143 = arith.subf %137, %142 : vector<1x64x32xf32>
    %144 = arith.mulf %143, %143 : vector<1x64x32xf32>
    %cst_132 = arith.constant dense<0.000000e+00> : vector<1x32xf32>
    %145 = vector.multi_reduction <add>, %144, %cst_132 [1] : vector<1x64x32xf32> to vector<1x32xf32>
    %146 = vector.shape_cast %145 : vector<1x32xf32> to vector<1x1x32xf32>
    %cst_133 = arith.constant 6.400000e+01 : f32
    %147 = vector.broadcast %cst_133 : f32 to vector<1x1x32xf32>
    %148 = arith.divf %146, %147 : vector<1x1x32xf32>
    %cst_134 = arith.constant 9.99999974E-6 : f32
    %149 = vector.broadcast %cst_134 : f32 to vector<1x1x32xf32>
    %150 = arith.addf %148, %149 : vector<1x1x32xf32>
    %151 = math.rsqrt %150 : vector<1x1x32xf32>
    %152 = vector.broadcast %151 : vector<1x1x32xf32> to vector<1x64x32xf32>
    %153 = arith.mulf %143, %152 : vector<1x64x32xf32>
    %cst_135 = arith.constant 1.000000e-01 : f32
    %154 = vector.broadcast %cst_135 : f32 to vector<1x64x32xf32>
    %155 = arith.mulf %154, %153 : vector<1x64x32xf32>
    %156 = arith.maximumf %153, %155 : vector<1x64x32xf32>
    %157 = vector.shape_cast %156 : vector<1x64x32xf32> to vector<64x32xf32>
    %158 = arith.addf %24, %157 : vector<64x32xf32>
    %159 = arith.truncf %158 : vector<64x32xf32> to vector<64x32xbf16>
    %c0_136 = arith.constant 0 : index
    %c0_137 = arith.constant 0 : index
    %160 = vector.load %arg6[%c0_136, %c0_137] : memref<32x32xbf16, #tpu.memory_space<vmem>>, vector<32x32xbf16>
    %cst_138 = arith.constant dense<0.000000e+00> : vector<64x32xf32>
    %161 = tpu.matmul %159, %160, %cst_138 {dimension_numbers = #tpu.dot_dimension_numbers<[1], [0], [0], [1], [0, 0, 1, 1], [], []>} : vector<64x32xbf16>, vector<32x32xbf16>, vector<64x32xf32> -> vector<64x32xf32>
    %162 = vector.shape_cast %161 : vector<64x32xf32> to vector<1x64x32xf32>
    %cst_139 = arith.constant dense<0.000000e+00> : vector<1x32xf32>
    %163 = vector.multi_reduction <add>, %162, %cst_139 [1] : vector<1x64x32xf32> to vector<1x32xf32>
    %164 = vector.shape_cast %163 : vector<1x32xf32> to vector<1x1x32xf32>
    %cst_140 = arith.constant 6.400000e+01 : f32
    %165 = vector.broadcast %cst_140 : f32 to vector<1x1x32xf32>
    %166 = arith.divf %164, %165 : vector<1x1x32xf32>
    %167 = vector.broadcast %166 : vector<1x1x32xf32> to vector<1x64x32xf32>
    %168 = arith.subf %162, %167 : vector<1x64x32xf32>
    %169 = arith.mulf %168, %168 : vector<1x64x32xf32>
    %cst_141 = arith.constant dense<0.000000e+00> : vector<1x32xf32>
    %170 = vector.multi_reduction <add>, %169, %cst_141 [1] : vector<1x64x32xf32> to vector<1x32xf32>
    %171 = vector.shape_cast %170 : vector<1x32xf32> to vector<1x1x32xf32>
    %cst_142 = arith.constant 6.400000e+01 : f32
    %172 = vector.broadcast %cst_142 : f32 to vector<1x1x32xf32>
    %173 = arith.divf %171, %172 : vector<1x1x32xf32>
    %cst_143 = arith.constant 9.99999974E-6 : f32
    %174 = vector.broadcast %cst_143 : f32 to vector<1x1x32xf32>
    %175 = arith.addf %173, %174 : vector<1x1x32xf32>
    %176 = math.rsqrt %175 : vector<1x1x32xf32>
    %177 = vector.broadcast %176 : vector<1x1x32xf32> to vector<1x64x32xf32>
    %178 = arith.mulf %168, %177 : vector<1x64x32xf32>
    %cst_144 = arith.constant 1.000000e-01 : f32
    %179 = vector.broadcast %cst_144 : f32 to vector<1x64x32xf32>
    %180 = arith.mulf %179, %178 : vector<1x64x32xf32>
    %181 = arith.maximumf %178, %180 : vector<1x64x32xf32>
    %182 = vector.shape_cast %181 : vector<1x64x32xf32> to vector<64x32xf32>
    %183 = arith.truncf %182 : vector<64x32xf32> to vector<64x32xbf16>
    %184 = vector.shape_cast %183 : vector<64x32xbf16> to vector<1x8x8x32xbf16>
    %c0_145 = arith.constant 0 : index
    %c1_146 = arith.constant 1 : index
    %c1_147 = arith.constant 1 : index
    %c0_148 = arith.constant 0 : index
    %185 = vector.load %arg10[%c0_145, %c1_146, %c1_147, %c0_148] : memref<1x10x10x32xbf16, #tpu.memory_space<vmem>>, vector<1x8x8x32xbf16>
    tpu.vector_store %arg10[%c0_145, %c1_146, %c1_147, %c0_148], %184 {strides = array<i32>} : memref<1x10x10x32xbf16, #tpu.memory_space<vmem>>, vector<1x8x8x32xbf16>,
    %cst_149 = arith.constant 0.000000e+00 : f32
    %186 = vector.broadcast %cst_149 : f32 to vector<64x32xf32>
    %c0_150 = arith.constant 0 : index
    %c0_151 = arith.constant 0 : index
    %c0_152 = arith.constant 0 : index
    %c0_153 = arith.constant 0 : index
    %187 = vector.load %arg10[%c0_150, %c0_151, %c0_152, %c0_153] : memref<1x10x10x32xbf16, #tpu.memory_space<vmem>>, vector<1x8x8x32xbf16>
    %188 = vector.shape_cast %187 : vector<1x8x8x32xbf16> to vector<64x32xbf16>
    %c0_154 = arith.constant 0 : index
    %c0_155 = arith.constant 0 : index
    %c0_156 = arith.constant 0 : index
    %c0_157 = arith.constant 0 : index
    %189 = vector.load %arg7[%c0_154, %c0_155, %c0_156, %c0_157] : memref<3x3x32x32xbf16, #tpu.memory_space<vmem>>, vector<1x1x32x32xbf16>
    %190 = vector.shape_cast %189 : vector<1x1x32x32xbf16> to vector<32x32xbf16>
    %cst_158 = arith.constant dense<0.000000e+00> : vector<64x32xf32>
    %191 = tpu.matmul %188, %190, %cst_158 {dimension_numbers = #tpu.dot_dimension_numbers<[1], [0], [0], [1], [0, 0, 1, 1], [], []>} : vector<64x32xbf16>, vector<32x32xbf16>, vector<64x32xf32> -> vector<64x32xf32>
    %192 = arith.addf %186, %191 : vector<64x32xf32>
    %c0_159 = arith.constant 0 : index
    %c0_160 = arith.constant 0 : index
    %c1_161 = arith.constant 1 : index
    %c0_162 = arith.constant 0 : index
    %193 = vector.load %arg10[%c0_159, %c0_160, %c1_161, %c0_162] : memref<1x10x10x32xbf16, #tpu.memory_space<vmem>>, vector<1x8x8x32xbf16>
    %194 = vector.shape_cast %193 : vector<1x8x8x32xbf16> to vector<64x32xbf16>
    %c0_163 = arith.constant 0 : index
    %c1_164 = arith.constant 1 : index
    %c0_165 = arith.constant 0 : index
    %c0_166 = arith.constant 0 : index
    %195 = vector.load %arg7[%c0_163, %c1_164, %c0_165, %c0_166] : memref<3x3x32x32xbf16, #tpu.memory_space<vmem>>, vector<1x1x32x32xbf16>
    %196 = vector.shape_cast %195 : vector<1x1x32x32xbf16> to vector<32x32xbf16>
    %cst_167 = arith.constant dense<0.000000e+00> : vector<64x32xf32>
    %197 = tpu.matmul %194, %196, %cst_167 {dimension_numbers = #tpu.dot_dimension_numbers<[1], [0], [0], [1], [0, 0, 1, 1], [], []>} : vector<64x32xbf16>, vector<32x32xbf16>, vector<64x32xf32> -> vector<64x32xf32>
    %198 = arith.addf %192, %197 : vector<64x32xf32>
    %c0_168 = arith.constant 0 : index
    %c0_169 = arith.constant 0 : index
    %c2_170 = arith.constant 2 : index
    %c0_171 = arith.constant 0 : index
    %199 = vector.load %arg10[%c0_168, %c0_169, %c2_170, %c0_171] : memref<1x10x10x32xbf16, #tpu.memory_space<vmem>>, vector<1x8x8x32xbf16>
    %200 = vector.shape_cast %199 : vector<1x8x8x32xbf16> to vector<64x32xbf16>
    %c0_172 = arith.constant 0 : index
    %c2_173 = arith.constant 2 : index
    %c0_174 = arith.constant 0 : index
    %c0_175 = arith.constant 0 : index
    %201 = vector.load %arg7[%c0_172, %c2_173, %c0_174, %c0_175] : memref<3x3x32x32xbf16, #tpu.memory_space<vmem>>, vector<1x1x32x32xbf16>
    %202 = vector.shape_cast %201 : vector<1x1x32x32xbf16> to vector<32x32xbf16>
    %cst_176 = arith.constant dense<0.000000e+00> : vector<64x32xf32>
    %203 = tpu.matmul %200, %202, %cst_176 {dimension_numbers = #tpu.dot_dimension_numbers<[1], [0], [0], [1], [0, 0, 1, 1], [], []>} : vector<64x32xbf16>, vector<32x32xbf16>, vector<64x32xf32> -> vector<64x32xf32>
    %204 = arith.addf %198, %203 : vector<64x32xf32>
    %c0_177 = arith.constant 0 : index
    %c1_178 = arith.constant 1 : index
    %c0_179 = arith.constant 0 : index
    %c0_180 = arith.constant 0 : index
    %205 = vector.load %arg10[%c0_177, %c1_178, %c0_179, %c0_180] : memref<1x10x10x32xbf16, #tpu.memory_space<vmem>>, vector<1x8x8x32xbf16>
    %206 = vector.shape_cast %205 : vector<1x8x8x32xbf16> to vector<64x32xbf16>
    %c1_181 = arith.constant 1 : index
    %c0_182 = arith.constant 0 : index
    %c0_183 = arith.constant 0 : index
    %c0_184 = arith.constant 0 : index
    %207 = vector.load %arg7[%c1_181, %c0_182, %c0_183, %c0_184] : memref<3x3x32x32xbf16, #tpu.memory_space<vmem>>, vector<1x1x32x32xbf16>
    %208 = vector.shape_cast %207 : vector<1x1x32x32xbf16> to vector<32x32xbf16>
    %cst_185 = arith.constant dense<0.000000e+00> : vector<64x32xf32>
    %209 = tpu.matmul %206, %208, %cst_185 {dimension_numbers = #tpu.dot_dimension_numbers<[1], [0], [0], [1], [0, 0, 1, 1], [], []>} : vector<64x32xbf16>, vector<32x32xbf16>, vector<64x32xf32> -> vector<64x32xf32>
    %210 = arith.addf %204, %209 : vector<64x32xf32>
    %c0_186 = arith.constant 0 : index
    %c1_187 = arith.constant 1 : index
    %c1_188 = arith.constant 1 : index
    %c0_189 = arith.constant 0 : index
    %211 = vector.load %arg10[%c0_186, %c1_187, %c1_188, %c0_189] : memref<1x10x10x32xbf16, #tpu.memory_space<vmem>>, vector<1x8x8x32xbf16>
    %212 = vector.shape_cast %211 : vector<1x8x8x32xbf16> to vector<64x32xbf16>
    %c1_190 = arith.constant 1 : index
    %c1_191 = arith.constant 1 : index
    %c0_192 = arith.constant 0 : index
    %c0_193 = arith.constant 0 : index
    %213 = vector.load %arg7[%c1_190, %c1_191, %c0_192, %c0_193] : memref<3x3x32x32xbf16, #tpu.memory_space<vmem>>, vector<1x1x32x32xbf16>
    %214 = vector.shape_cast %213 : vector<1x1x32x32xbf16> to vector<32x32xbf16>
    %cst_194 = arith.constant dense<0.000000e+00> : vector<64x32xf32>
    %215 = tpu.matmul %212, %214, %cst_194 {dimension_numbers = #tpu.dot_dimension_numbers<[1], [0], [0], [1], [0, 0, 1, 1], [], []>} : vector<64x32xbf16>, vector<32x32xbf16>, vector<64x32xf32> -> vector<64x32xf32>
    %216 = arith.addf %210, %215 : vector<64x32xf32>
    %c0_195 = arith.constant 0 : index
    %c1_196 = arith.constant 1 : index
    %c2_197 = arith.constant 2 : index
    %c0_198 = arith.constant 0 : index
    %217 = vector.load %arg10[%c0_195, %c1_196, %c2_197, %c0_198] : memref<1x10x10x32xbf16, #tpu.memory_space<vmem>>, vector<1x8x8x32xbf16>
    %218 = vector.shape_cast %217 : vector<1x8x8x32xbf16> to vector<64x32xbf16>
    %c1_199 = arith.constant 1 : index
    %c2_200 = arith.constant 2 : index
    %c0_201 = arith.constant 0 : index
    %c0_202 = arith.constant 0 : index
    %219 = vector.load %arg7[%c1_199, %c2_200, %c0_201, %c0_202] : memref<3x3x32x32xbf16, #tpu.memory_space<vmem>>, vector<1x1x32x32xbf16>
    %220 = vector.shape_cast %219 : vector<1x1x32x32xbf16> to vector<32x32xbf16>
    %cst_203 = arith.constant dense<0.000000e+00> : vector<64x32xf32>
    %221 = tpu.matmul %218, %220, %cst_203 {dimension_numbers = #tpu.dot_dimension_numbers<[1], [0], [0], [1], [0, 0, 1, 1], [], []>} : vector<64x32xbf16>, vector<32x32xbf16>, vector<64x32xf32> -> vector<64x32xf32>
    %222 = arith.addf %216, %221 : vector<64x32xf32>
    %c0_204 = arith.constant 0 : index
    %c2_205 = arith.constant 2 : index
    %c0_206 = arith.constant 0 : index
    %c0_207 = arith.constant 0 : index
    %223 = vector.load %arg10[%c0_204, %c2_205, %c0_206, %c0_207] : memref<1x10x10x32xbf16, #tpu.memory_space<vmem>>, vector<1x8x8x32xbf16>
    %224 = vector.shape_cast %223 : vector<1x8x8x32xbf16> to vector<64x32xbf16>
    %c2_208 = arith.constant 2 : index
    %c0_209 = arith.constant 0 : index
    %c0_210 = arith.constant 0 : index
    %c0_211 = arith.constant 0 : index
    %225 = vector.load %arg7[%c2_208, %c0_209, %c0_210, %c0_211] : memref<3x3x32x32xbf16, #tpu.memory_space<vmem>>, vector<1x1x32x32xbf16>
    %226 = vector.shape_cast %225 : vector<1x1x32x32xbf16> to vector<32x32xbf16>
    %cst_212 = arith.constant dense<0.000000e+00> : vector<64x32xf32>
    %227 = tpu.matmul %224, %226, %cst_212 {dimension_numbers = #tpu.dot_dimension_numbers<[1], [0], [0], [1], [0, 0, 1, 1], [], []>} : vector<64x32xbf16>, vector<32x32xbf16>, vector<64x32xf32> -> vector<64x32xf32>
    %228 = arith.addf %222, %227 : vector<64x32xf32>
    %c0_213 = arith.constant 0 : index
    %c2_214 = arith.constant 2 : index
    %c1_215 = arith.constant 1 : index
    %c0_216 = arith.constant 0 : index
    %229 = vector.load %arg10[%c0_213, %c2_214, %c1_215, %c0_216] : memref<1x10x10x32xbf16, #tpu.memory_space<vmem>>, vector<1x8x8x32xbf16>
    %230 = vector.shape_cast %229 : vector<1x8x8x32xbf16> to vector<64x32xbf16>
    %c2_217 = arith.constant 2 : index
    %c1_218 = arith.constant 1 : index
    %c0_219 = arith.constant 0 : index
    %c0_220 = arith.constant 0 : index
    %231 = vector.load %arg7[%c2_217, %c1_218, %c0_219, %c0_220] : memref<3x3x32x32xbf16, #tpu.memory_space<vmem>>, vector<1x1x32x32xbf16>
    %232 = vector.shape_cast %231 : vector<1x1x32x32xbf16> to vector<32x32xbf16>
    %cst_221 = arith.constant dense<0.000000e+00> : vector<64x32xf32>
    %233 = tpu.matmul %230, %232, %cst_221 {dimension_numbers = #tpu.dot_dimension_numbers<[1], [0], [0], [1], [0, 0, 1, 1], [], []>} : vector<64x32xbf16>, vector<32x32xbf16>, vector<64x32xf32> -> vector<64x32xf32>
    %234 = arith.addf %228, %233 : vector<64x32xf32>
    %c0_222 = arith.constant 0 : index
    %c2_223 = arith.constant 2 : index
    %c2_224 = arith.constant 2 : index
    %c0_225 = arith.constant 0 : index
    %235 = vector.load %arg10[%c0_222, %c2_223, %c2_224, %c0_225] : memref<1x10x10x32xbf16, #tpu.memory_space<vmem>>, vector<1x8x8x32xbf16>
    %236 = vector.shape_cast %235 : vector<1x8x8x32xbf16> to vector<64x32xbf16>
    %c2_226 = arith.constant 2 : index
    %c2_227 = arith.constant 2 : index
    %c0_228 = arith.constant 0 : index
    %c0_229 = arith.constant 0 : index
    %237 = vector.load %arg7[%c2_226, %c2_227, %c0_228, %c0_229] : memref<3x3x32x32xbf16, #tpu.memory_space<vmem>>, vector<1x1x32x32xbf16>
    %238 = vector.shape_cast %237 : vector<1x1x32x32xbf16> to vector<32x32xbf16>
    %cst_230 = arith.constant dense<0.000000e+00> : vector<64x32xf32>
    %239 = tpu.matmul %236, %238, %cst_230 {dimension_numbers = #tpu.dot_dimension_numbers<[1], [0], [0], [1], [0, 0, 1, 1], [], []>} : vector<64x32xbf16>, vector<32x32xbf16>, vector<64x32xf32> -> vector<64x32xf32>
    %240 = arith.addf %234, %239 : vector<64x32xf32>
    %241 = vector.shape_cast %240 : vector<64x32xf32> to vector<1x64x32xf32>
    %cst_231 = arith.constant dense<0.000000e+00> : vector<1x32xf32>
    %242 = vector.multi_reduction <add>, %241, %cst_231 [1] : vector<1x64x32xf32> to vector<1x32xf32>
    %243 = vector.shape_cast %242 : vector<1x32xf32> to vector<1x1x32xf32>
    %cst_232 = arith.constant 6.400000e+01 : f32
    %244 = vector.broadcast %cst_232 : f32 to vector<1x1x32xf32>
    %245 = arith.divf %243, %244 : vector<1x1x32xf32>
    %246 = vector.broadcast %245 : vector<1x1x32xf32> to vector<1x64x32xf32>
    %247 = arith.subf %241, %246 : vector<1x64x32xf32>
    %248 = arith.mulf %247, %247 : vector<1x64x32xf32>
    %cst_233 = arith.constant dense<0.000000e+00> : vector<1x32xf32>
    %249 = vector.multi_reduction <add>, %248, %cst_233 [1] : vector<1x64x32xf32> to vector<1x32xf32>
    %250 = vector.shape_cast %249 : vector<1x32xf32> to vector<1x1x32xf32>
    %cst_234 = arith.constant 6.400000e+01 : f32
    %251 = vector.broadcast %cst_234 : f32 to vector<1x1x32xf32>
    %252 = arith.divf %250, %251 : vector<1x1x32xf32>
    %cst_235 = arith.constant 9.99999974E-6 : f32
    %253 = vector.broadcast %cst_235 : f32 to vector<1x1x32xf32>
    %254 = arith.addf %252, %253 : vector<1x1x32xf32>
    %255 = math.rsqrt %254 : vector<1x1x32xf32>
    %256 = vector.broadcast %255 : vector<1x1x32xf32> to vector<1x64x32xf32>
    %257 = arith.mulf %247, %256 : vector<1x64x32xf32>
    %cst_236 = arith.constant 1.000000e-01 : f32
    %258 = vector.broadcast %cst_236 : f32 to vector<1x64x32xf32>
    %259 = arith.mulf %258, %257 : vector<1x64x32xf32>
    %260 = arith.maximumf %257, %259 : vector<1x64x32xf32>
    %261 = vector.shape_cast %260 : vector<1x64x32xf32> to vector<64x32xf32>
    %262 = arith.truncf %261 : vector<64x32xf32> to vector<64x32xbf16>
    %c0_237 = arith.constant 0 : index
    %c0_238 = arith.constant 0 : index
    %263 = vector.load %arg8[%c0_237, %c0_238] : memref<32x32xbf16, #tpu.memory_space<vmem>>, vector<32x32xbf16>
    %cst_239 = arith.constant dense<0.000000e+00> : vector<64x32xf32>
    %264 = tpu.matmul %262, %263, %cst_239 {dimension_numbers = #tpu.dot_dimension_numbers<[1], [0], [0], [1], [0, 0, 1, 1], [], []>} : vector<64x32xbf16>, vector<32x32xbf16>, vector<64x32xf32> -> vector<64x32xf32>
    %265 = vector.shape_cast %264 : vector<64x32xf32> to vector<1x64x32xf32>
    %cst_240 = arith.constant dense<0.000000e+00> : vector<1x32xf32>
    %266 = vector.multi_reduction <add>, %265, %cst_240 [1] : vector<1x64x32xf32> to vector<1x32xf32>
    %267 = vector.shape_cast %266 : vector<1x32xf32> to vector<1x1x32xf32>
    %cst_241 = arith.constant 6.400000e+01 : f32
    %268 = vector.broadcast %cst_241 : f32 to vector<1x1x32xf32>
    %269 = arith.divf %267, %268 : vector<1x1x32xf32>
    %270 = vector.broadcast %269 : vector<1x1x32xf32> to vector<1x64x32xf32>
    %271 = arith.subf %265, %270 : vector<1x64x32xf32>
    %272 = arith.mulf %271, %271 : vector<1x64x32xf32>
    %cst_242 = arith.constant dense<0.000000e+00> : vector<1x32xf32>
    %273 = vector.multi_reduction <add>, %272, %cst_242 [1] : vector<1x64x32xf32> to vector<1x32xf32>
    %274 = vector.shape_cast %273 : vector<1x32xf32> to vector<1x1x32xf32>
    %cst_243 = arith.constant 6.400000e+01 : f32
    %275 = vector.broadcast %cst_243 : f32 to vector<1x1x32xf32>
    %276 = arith.divf %274, %275 : vector<1x1x32xf32>
    %cst_244 = arith.constant 9.99999974E-6 : f32
    %277 = vector.broadcast %cst_244 : f32 to vector<1x1x32xf32>
    %278 = arith.addf %276, %277 : vector<1x1x32xf32>
    %279 = math.rsqrt %278 : vector<1x1x32xf32>
    %280 = vector.broadcast %279 : vector<1x1x32xf32> to vector<1x64x32xf32>
    %281 = arith.mulf %271, %280 : vector<1x64x32xf32>
    %cst_245 = arith.constant 1.000000e-01 : f32
    %282 = vector.broadcast %cst_245 : f32 to vector<1x64x32xf32>
    %283 = arith.mulf %282, %281 : vector<1x64x32xf32>
    %284 = arith.maximumf %281, %283 : vector<1x64x32xf32>
    %285 = vector.shape_cast %284 : vector<1x64x32xf32> to vector<64x32xf32>
    %286 = arith.addf %158, %285 : vector<64x32xf32>
    %287 = vector.shape_cast %286 : vector<64x32xf32> to vector<1x64x32xf32>
    %cst_246 = arith.constant dense<0.000000e+00> : vector<1x32xf32>
    %288 = vector.multi_reduction <add>, %287, %cst_246 [1] : vector<1x64x32xf32> to vector<1x32xf32>
    %289 = vector.shape_cast %288 : vector<1x32xf32> to vector<1x1x32xf32>
    %cst_247 = arith.constant 6.400000e+01 : f32
    %290 = vector.broadcast %cst_247 : f32 to vector<1x1x32xf32>
    %291 = arith.divf %289, %290 : vector<1x1x32xf32>
    %c0_248 = arith.constant 0 : index
    %c0_249 = arith.constant 0 : index
    %c0_250 = arith.constant 0 : index
    %292 = vector.load %arg9[%c0_248, %c0_249, %c0_250] : memref<1x1x32xf32, #tpu.memory_space<vmem>>, vector<1x1x32xf32>
    tpu.vector_store %arg9[%c0_248, %c0_249, %c0_250], %291 {strides = array<i32>} : memref<1x1x32xf32, #tpu.memory_space<vmem>>, vector<1x1x32xf32>,
    return
  }
  func.func @transform_0(%arg0: i32) -> (i32, i32, i32, i32) {
    %c0_i32 = arith.constant 0 : i32
    %c0_i32_0 = arith.constant 0 : i32
    %c0_i32_1 = arith.constant 0 : i32
    %c0_i32_2 = arith.constant 0 : i32
    return %arg0, %c0_i32, %c0_i32_0, %c0_i32_1 : i32, i32, i32, i32
  }
  func.func @transform_1(%arg0: i32) -> (i32, i32) {
    %c0_i32 = arith.constant 0 : i32
    %c0_i32_0 = arith.constant 0 : i32
    %c0_i32_1 = arith.constant 0 : i32
    return %c0_i32, %c0_i32_0 : i32, i32
  }
  func.func @transform_2(%arg0: i32) -> (i32, i32) {
    %c0_i32 = arith.constant 0 : i32
    %c0_i32_0 = arith.constant 0 : i32
    %c0_i32_1 = arith.constant 0 : i32
    return %c0_i32, %c0_i32_0 : i32, i32
  }
  func.func @transform_3(%arg0: i32) -> (i32, i32, i32, i32) {
    %c0_i32 = arith.constant 0 : i32
    %c0_i32_0 = arith.constant 0 : i32
    %c0_i32_1 = arith.constant 0 : i32
    %c0_i32_2 = arith.constant 0 : i32
    %c0_i32_3 = arith.constant 0 : i32
    return %c0_i32, %c0_i32_0, %c0_i32_1, %c0_i32_2 : i32, i32, i32, i32
  }
  func.func @transform_4(%arg0: i32) -> (i32, i32) {
    %c0_i32 = arith.constant 0 : i32
    %c0_i32_0 = arith.constant 0 : i32
    %c0_i32_1 = arith.constant 0 : i32
    return %c0_i32, %c0_i32_0 : i32, i32
  }
  func.func @transform_5(%arg0: i32) -> (i32, i32) {
    %c0_i32 = arith.constant 0 : i32
    %c0_i32_0 = arith.constant 0 : i32
    %c0_i32_1 = arith.constant 0 : i32
    return %c0_i32, %c0_i32_0 : i32, i32
  }
  func.func @transform_6(%arg0: i32) -> (i32, i32, i32, i32) {
    %c0_i32 = arith.constant 0 : i32
    %c0_i32_0 = arith.constant 0 : i32
    %c0_i32_1 = arith.constant 0 : i32
    %c0_i32_2 = arith.constant 0 : i32
    %c0_i32_3 = arith.constant 0 : i32
    return %c0_i32, %c0_i32_0, %c0_i32_1, %c0_i32_2 : i32, i32, i32, i32
  }
  func.func @transform_7(%arg0: i32) -> (i32, i32) {
    %c0_i32 = arith.constant 0 : i32
    %c0_i32_0 = arith.constant 0 : i32
    %c0_i32_1 = arith.constant 0 : i32
    return %c0_i32, %c0_i32_0 : i32, i32
  }
  func.func @transform_8(%arg0: i32) -> (i32, i32, i32) {
    %c0_i32 = arith.constant 0 : i32
    %c0_i32_0 = arith.constant 0 : i32
    %c0_i32_1 = arith.constant 0 : i32
    return %arg0, %c0_i32, %c0_i32_0 : i32, i32, i32
  }
}

</mosaic_0001>

<bundles_post_ra>
// kernel: downsampling_backbone_forward.3
= control target key start
LH: loop header
LB: loop body
LE: loop exit
PB: predicated region body
PF: predicated region fallthrough
CT: control target
= control target key end

     0   :  { %s4138_s9 = smov 0   ;;  %s8027_s0 = inlined_call_operand.vmem [shape: bf16[2,32,32,256], index: 0, kind: input, shape index: {}]   ;;  %s8028_s1 = inlined_call_operand.vmem [shape: bf16[256,8], index: 1, kind: input, shape index: {}]   ;;  %s8029_s2 = inlined_call_operand.vmem [shape: bf16[2,32,32,8], index: 2, kind: output, shape index: {}]  }
   0x1 LB: > { %s3450_s10 = sadd.s32 4294967295, %s4120_s9   ;;  %p3454_p0 = scmp.ge.s32.totalorder %s4120_s9, 1  ;;  %s4120_s9 = sphi %s4138_s9, %s12_s9  }
   0x2   : > { %p112_p1 = scmp.lt.s32.totalorder %s4120_s9, 3 }
   0x4   : > { %p113_p2 = pnand %p3454_p0, %p112_p1 }
   0x6   : > { %116 = sbr.rel (%p113_p2) target bundleno = 1280 (0x500), region = 28 }
   0xd   : > { %v3904_v0 = vld [vmem:[%s8028_s1] sm:$0xff]   ;;  %v4122_v1 = vmov 0   ;;  %v3905_v2 = vld [vmem:[%s8028_s1 + $0x8] sm:$0xff]   ;;  %p134_p3 = scmp.lt.s32.totalorder %s3450_s10, 1  ;;  %v3906_v3 = vld [vmem:[%s8028_s1 + $0x10] sm:$0xff]   ;;  %vm1586_vm0 = vcmask 64512  }
   0xe   : > { %1041 = vmatprep.subr.bf16.mxu0 %v4122_v1  ;;  %3863 = vmatprep.subr.bf16.mxu1 %v4122_v1  ;;  %v3907_v4 = vld [vmem:[%s8028_s1 + $0x18] sm:$0xff]   ;;  %v3908_v5 = vld [vmem:[%s8028_s1 + $0x20] sm:$0xff]   ;;  %v3909_v7 = vld [vmem:[%s8028_s1 + $0x28] sm:$0xff]   ;;  %vm3266_vm1 = vcmask 60416  }
   0xf   : > { %1042 = vmatpush1.bf16.msra.mxu0 %v3904_v0  ;;  %3879 = vmatpush1.bf16.msra.mxu1 %v3904_v0  ;;  %s9640_s10 = smov (!%p134_p3, %s3450_s10), 1  ;;  %v3910_v8 = vld [vmem:[%s8028_s1 + $0x30] sm:$0xff]   ;;  %v3911_v9 = vld [vmem:[%s8028_s1 + $0x38] sm:$0xff]   ;;  %v3912_v10 = vld [vmem:[%s8028_s1 + $0x40] sm:$0xff]  }
  0x10   : > { %1043 = vmatprep.subr.bf16.mxu0 %v4122_v1  ;;  %3864 = vmatprep.subr.bf16.mxu1 %v4122_v1  ;;  %s3733_s19 = sshll.u32 %s9640_s10, 10  ;;  %v3913_v11 = vld [vmem:[%s8028_s1 + $0x48] sm:$0xff]   ;;  %v3914_v12 = vld [vmem:[%s8028_s1 + $0x50] sm:$0xff]   ;;  %v3915_v13 = vld [vmem:[%s8028_s1 + $0x58] sm:$0xff]   ;;  %s3734_s21 = sshll.u32 %s9640_s10, 9 }
  0x11   : > { %s4175_s24 = scalar_lea.vmem %s8027_s0, %s3733_s19  ;;  %v3916_v14 = vld [vmem:[%s8028_s1 + $0x60] sm:$0xff]   ;;  %v3917_v15 = vld [vmem:[%s8028_s1 + $0x68] sm:$0xff]   ;;  %v3918_v16 = vld [vmem:[%s8028_s1 + $0x70] sm:$0xff]   ;;  %s7362_s23 = scalar_lea.vmem %s8029_s2, %s3734_s21 }
  0x12   : > { %v3922_v6 = vld [vmem:[%s4175_s24 + $0x4] ss:$8 sps:$4 sm:$0xff]   ;;  %v3919_v18 = vld [vmem:[%s8028_s1 + $0x78] sm:$0xff]   ;;  %v3920_v19 = vld [vmem:[%s4175_s24] ss:$8 sps:$4 sm:$0xff]  }
  0x13   : > { %1044 = vmatpush1.bf16.msra.mxu0 %v3905_v2  ;;  %3880 = vmatpush1.bf16.msra.mxu1 %v3905_v2  ;;  %v3970_v17 = vld [vmem:[%s4175_s24 + $0x204] ss:$8 sps:$4 sm:$0xff]   ;;  %v3968_v20 = vld [vmem:[%s4175_s24 + $0x200] ss:$8 sps:$4 sm:$0xff]   ;;  %v3923_v21 = vld [vmem:[%s4175_s24 + $0x14] ss:$8 sps:$4 sm:$0xff]  }
  0x14   : > { %1045 = vmatprep.subr.bf16.mxu0 %v4122_v1  ;;  %3865 = vmatprep.subr.bf16.mxu1 %v4122_v1  ;;  %v3974_v22 = vld [vmem:[%s4175_s24 + $0x214] ss:$8 sps:$4 sm:$0xff]   ;;  %v3925_v23 = vld [vmem:[%s4175_s24 + $0x10] ss:$8 sps:$4 sm:$0xff]   ;;  %v3926_v25 = vld [vmem:[%s4175_s24 + $0x24] ss:$8 sps:$4 sm:$0xff]  }
  0x15   : > { %1073 = vmatprep.mubr.bf16.mxu0 %v3922_v6  ;;  %1329 = vmatprep.mubr.bf16.mxu1 %v3970_v17  ;;  %v3976_v24 = vld [vmem:[%s4175_s24 + $0x210] ss:$8 sps:$4 sm:$0xff]   ;;  %v3980_v26 = vld [vmem:[%s4175_s24 + $0x224] ss:$8 sps:$4 sm:$0xff]   ;;  %v3928_v27 = vld [vmem:[%s4175_s24 + $0x20] ss:$8 sps:$4 sm:$0xff]  }
  0x16   : > { %v3982_v28 = vld [vmem:[%s4175_s24 + $0x220] ss:$8 sps:$4 sm:$0xff]   ;;  %v3929_v29 = vld [vmem:[%s4175_s24 + $0x34] ss:$8 sps:$4 sm:$0xff]   ;;  %v3931_v31 = vld [vmem:[%s4175_s24 + $0x30] ss:$8 sps:$4 sm:$0xff]  }
  0x17   : > { %1046 = vmatpush1.bf16.msra.mxu0 %v3906_v3  ;;  %3881 = vmatpush1.bf16.msra.mxu1 %v3906_v3  ;;  %v3986_v30 = vld [vmem:[%s4175_s24 + $0x234] ss:$8 sps:$4 sm:$0xff]   ;;  %v3988_v32 = vld [vmem:[%s4175_s24 + $0x230] ss:$8 sps:$4 sm:$0xff]   ;;  %v3932_v33 = vld [vmem:[%s4175_s24 + $0x44] ss:$8 sps:$4 sm:$0xff]  }
  0x18   : > { %1047 = vmatprep.subr.bf16.mxu0 %v4122_v1  ;;  %3866 = vmatprep.subr.bf16.mxu1 %v4122_v1  ;;  %v3992_v34 = vld [vmem:[%s4175_s24 + $0x244] ss:$8 sps:$4 sm:$0xff]   ;;  %v3934_v35 = vld [vmem:[%s4175_s24 + $0x40] ss:$8 sps:$4 sm:$0xff]   ;;  %v3935_v37 = vld [vmem:[%s4175_s24 + $0x54] ss:$8 sps:$4 sm:$0xff]  }
  0x19   : > { %v3994_v36 = vld [vmem:[%s4175_s24 + $0x240] ss:$8 sps:$4 sm:$0xff]   ;;  %v3998_v38 = vld [vmem:[%s4175_s24 + $0x254] ss:$8 sps:$4 sm:$0xff]   ;;  %v3937_v39 = vld [vmem:[%s4175_s24 + $0x50] ss:$8 sps:$4 sm:$0xff]  }
  0x1a   : > { %v4000_v40 = vld [vmem:[%s4175_s24 + $0x250] ss:$8 sps:$4 sm:$0xff]   ;;  %v3938_v41 = vld [vmem:[%s4175_s24 + $0x64] ss:$8 sps:$4 sm:$0xff]   ;;  %v3940_v43 = vld [vmem:[%s4175_s24 + $0x60] ss:$8 sps:$4 sm:$0xff]  }
  0x1b   : > { %1048 = vmatpush1.bf16.msra.mxu0 %v3907_v4  ;;  %3882 = vmatpush1.bf16.msra.mxu1 %v3907_v4  ;;  %v4004_v42 = vld [vmem:[%s4175_s24 + $0x264] ss:$8 sps:$4 sm:$0xff]   ;;  %v4006_v44 = vld [vmem:[%s4175_s24 + $0x260] ss:$8 sps:$4 sm:$0xff]   ;;  %v3941_v45 = vld [vmem:[%s4175_s24 + $0x74] ss:$8 sps:$4 sm:$0xff]  }
  0x1c   : > { %1049 = vmatprep.subr.bf16.mxu0 %v4122_v1  ;;  %3867 = vmatprep.subr.bf16.mxu1 %v4122_v1  ;;  %v4010_v46 = vld [vmem:[%s4175_s24 + $0x274] ss:$8 sps:$4 sm:$0xff]   ;;  %v3943_v47 = vld [vmem:[%s4175_s24 + $0x70] ss:$8 sps:$4 sm:$0xff]   ;;  %v3944_v49 = vld [vmem:[%s4175_s24 + $0x84] ss:$8 sps:$4 sm:$0xff]  }
  0x1d   : > { %v4012_v48 = vld [vmem:[%s4175_s24 + $0x270] ss:$8 sps:$4 sm:$0xff]   ;;  %v4016_v50 = vld [vmem:[%s4175_s24 + $0x284] ss:$8 sps:$4 sm:$0xff]   ;;  %v3946_v51 = vld [vmem:[%s4175_s24 + $0x80] ss:$8 sps:$4 sm:$0xff]  }
  0x1e   : > { %v4018_v52 = vld [vmem:[%s4175_s24 + $0x280] ss:$8 sps:$4 sm:$0xff]   ;;  %v3947_v53 = vld [vmem:[%s4175_s24 + $0x94] ss:$8 sps:$4 sm:$0xff]   ;;  %v3949_v55 = vld [vmem:[%s4175_s24 + $0x90] ss:$8 sps:$4 sm:$0xff]  }
  0x1f   : > { %1050 = vmatpush1.bf16.msra.mxu0 %v3908_v5  ;;  %3883 = vmatpush1.bf16.msra.mxu1 %v3908_v5  ;;  %v4022_v54 = vld [vmem:[%s4175_s24 + $0x294] ss:$8 sps:$4 sm:$0xff]   ;;  %v4024_v56 = vld [vmem:[%s4175_s24 + $0x290] ss:$8 sps:$4 sm:$0xff]   ;;  %v3950_v57 = vld [vmem:[%s4175_s24 + $0xa4] ss:$8 sps:$4 sm:$0xff]  }
  0x20   : > { %1051 = vmatprep.subr.bf16.mxu0 %v4122_v1  ;;  %3868 = vmatprep.subr.bf16.mxu1 %v4122_v1  ;;  %v4028_v58 = vld [vmem:[%s4175_s24 + $0x2a4] ss:$8 sps:$4 sm:$0xff]   ;;  %v3952_v59 = vld [vmem:[%s4175_s24 + $0xa0] ss:$8 sps:$4 sm:$0xff]   ;;  %v3953_v61 = vld [vmem:[%s4175_s24 + $0xb4] ss:$8 sps:$4 sm:$0xff]  }
  0x21   : > { %v4030_v60 = vld [vmem:[%s4175_s24 + $0x2a0] ss:$8 sps:$4 sm:$0xff]   ;;  %v4034_v62 = vld [vmem:[%s4175_s24 + $0x2b4] ss:$8 sps:$4 sm:$0xff]   ;;  %v3955_v63 = vld [vmem:[%s4175_s24 + $0xb0] ss:$8 sps:$4 sm:$0xff]  }
  0x22   : > { %v4036_v0 = vld [vmem:[%s4175_s24 + $0x2b0] ss:$8 sps:$4 sm:$0xff]   ;;  %v4040_v2 = vld [vmem:[%s4175_s24 + $0x2c4] ss:$8 sps:$4 sm:$0xff]   ;;  %v3958_v3 = vld [vmem:[%s4175_s24 + $0xc0] ss:$8 sps:$4 sm:$0xff]  }
  0x23   : > { %1052 = vmatpush1.bf16.msra.mxu0 %v3909_v7  ;;  %3884 = vmatpush1.bf16.msra.mxu1 %v3909_v7  ;;  %v4042_v4 = vld [vmem:[%s4175_s24 + $0x2c0] ss:$8 sps:$4 sm:$0xff]   ;;  %v3959_v5 = vld [vmem:[%s4175_s24 + $0xd4] ss:$8 sps:$4 sm:$0xff]   ;;  %v3961_v7 = vld [vmem:[%s4175_s24 + $0xd0] ss:$8 sps:$4 sm:$0xff]  }
  0x24   : > { %1053 = vmatprep.subr.bf16.mxu0 %v4122_v1  ;;  %3869 = vmatprep.subr.bf16.mxu1 %v4122_v1  ;;  %v4046_v6 = vld [vmem:[%s4175_s24 + $0x2d4] ss:$8 sps:$4 sm:$0xff]   ;;  %v3971_v17 = vld [vmem:[%s4175_s24 + $0x104] ss:$8 sps:$4 sm:$0xff]  }
  0x27   : > { %1054 = vmatpush1.bf16.msra.mxu0 %v3910_v8  ;;  %3885 = vmatpush1.bf16.msra.mxu1 %v3910_v8  ;;  %v4048_v8 = vld [vmem:[%s4175_s24 + $0x2d0] ss:$8 sps:$4 sm:$0xff]  }
  0x28   : > { %1055 = vmatprep.subr.bf16.mxu0 %v4122_v1  ;;  %3870 = vmatprep.subr.bf16.mxu1 %v4122_v1 }
  0x2b   : > { %1056 = vmatpush1.bf16.msra.mxu0 %v3911_v9  ;;  %3886 = vmatpush1.bf16.msra.mxu1 %v3911_v9  ;;  %v3962_v9 = vld [vmem:[%s4175_s24 + $0xe4] ss:$8 sps:$4 sm:$0xff]  }
  0x2c   : > { %1057 = vmatprep.subr.bf16.mxu0 %v4122_v1  ;;  %3871 = vmatprep.subr.bf16.mxu1 %v4122_v1 }
  0x2f   : > { %1058 = vmatpush1.bf16.msra.mxu0 %v3912_v10  ;;  %3887 = vmatpush1.bf16.msra.mxu1 %v3912_v10  ;;  %v4052_v10 = vld [vmem:[%s4175_s24 + $0x2e4] ss:$8 sps:$4 sm:$0xff]  }
  0x30   : > { %1059 = vmatprep.subr.bf16.mxu0 %v4122_v1  ;;  %3872 = vmatprep.subr.bf16.mxu1 %v4122_v1 }
  0x33   : > { %1060 = vmatpush1.bf16.msra.mxu0 %v3913_v11  ;;  %3888 = vmatpush1.bf16.msra.mxu1 %v3913_v11  ;;  %v3964_v11 = vld [vmem:[%s4175_s24 + $0xe0] ss:$8 sps:$4 sm:$0xff]  }
  0x34   : > { %1061 = vmatprep.subr.bf16.mxu0 %v4122_v1  ;;  %3873 = vmatprep.subr.bf16.mxu1 %v4122_v1 }
  0x37   : > { %1062 = vmatpush1.bf16.msra.mxu0 %v3914_v12  ;;  %3889 = vmatpush1.bf16.msra.mxu1 %v3914_v12  ;;  %v4054_v12 = vld [vmem:[%s4175_s24 + $0x2e0] ss:$8 sps:$4 sm:$0xff]  }
  0x38   : > { %1063 = vmatprep.subr.bf16.mxu0 %v4122_v1  ;;  %3874 = vmatprep.subr.bf16.mxu1 %v4122_v1 }
  0x3b   : > { %1064 = vmatpush1.bf16.msra.mxu0 %v3915_v13  ;;  %3890 = vmatpush1.bf16.msra.mxu1 %v3915_v13  ;;  %v3965_v13 = vld [vmem:[%s4175_s24 + $0xf4] ss:$8 sps:$4 sm:$0xff]  }
  0x3c   : > { %1065 = vmatprep.subr.bf16.mxu0 %v4122_v1  ;;  %3875 = vmatprep.subr.bf16.mxu1 %v4122_v1 }
  0x3f   : > { %1066 = vmatpush1.bf16.msra.mxu0 %v3916_v14  ;;  %3891 = vmatpush1.bf16.msra.mxu1 %v3916_v14  ;;  %v4058_v14 = vld [vmem:[%s4175_s24 + $0x2f4] ss:$8 sps:$4 sm:$0xff]  }
  0x40   : > { %1067 = vmatprep.subr.bf16.mxu0 %v4122_v1  ;;  %3876 = vmatprep.subr.bf16.mxu1 %v4122_v1 }
  0x43   : > { %1068 = vmatpush1.bf16.msra.mxu0 %v3917_v15  ;;  %3892 = vmatpush1.bf16.msra.mxu1 %v3917_v15  ;;  %v3967_v15 = vld [vmem:[%s4175_s24 + $0xf0] ss:$8 sps:$4 sm:$0xff]  }
  0x44   : > { %1069 = vmatprep.subr.bf16.mxu0 %v4122_v1  ;;  %3877 = vmatprep.subr.bf16.mxu1 %v4122_v1 }
  0x47   : > { %1070 = vmatpush1.bf16.msra.mxu0 %v3918_v16  ;;  %3893 = vmatpush1.bf16.msra.mxu1 %v3918_v16  ;;  %v4060_v16 = vld [vmem:[%s4175_s24 + $0x2f0] ss:$8 sps:$4 sm:$0xff]  }
  0x48   : > { %1071 = vmatprep.subr.bf16.mxu0 %v4122_v1  ;;  %3878 = vmatprep.subr.bf16.mxu1 %v4122_v1  ;;  %v3956_v1 = vld [vmem:[%s4175_s24 + $0xc4] ss:$8 sps:$4 sm:$0xff]  }
  0x4b   : > { %1072 = vmatpush1.bf16.msra.mxu0 %v3919_v18  ;;  %3894 = vmatpush1.bf16.msra.mxu1 %v3919_v18  ;;  %v4064_v18 = vld [vmem:[%s4175_s24 + $0x304] ss:$8 sps:$4 sm:$0xff]  }
  0x4e   : > { %1074 = vmatmul.mubr.bf16.vlgmr.msra.gmra.mrb[0].mxu0 %v3920_v19  ;;  %1330 = vmatmul.mubr.bf16.vlgmr.msra.gmra.mrb[0].mxu1 %v3968_v20  ;;  %v3973_v19 = vld [vmem:[%s4175_s24 + $0x100] ss:$8 sps:$4 sm:$0xff]  }
  0x4f   : > { %1081 = vmatprep.mubr.bf16.mxu0 %v3923_v21  ;;  %1337 = vmatprep.mubr.bf16.mxu1 %v3974_v22  ;;  %v4066_v20 = vld [vmem:[%s4175_s24 + $0x300] ss:$8 sps:$4 sm:$0xff]   ;;  %v3977_v21 = vld [vmem:[%s4175_s24 + $0x114] ss:$8 sps:$4 sm:$0xff]  }
  0x50   : > { %v4067_v22 = vld [vmem:[%s4175_s24 + $0x314] ss:$8 sps:$4 sm:$0xff]  }
  0x56   : > { %1082 = vmatmul.mubr.bf16.gmra.mrb[4].mxu0 %v3925_v23  ;;  %1338 = vmatmul.mubr.bf16.gmra.mrb[4].mxu1 %v3976_v24  ;;  %v3979_v23 = vld [vmem:[%s4175_s24 + $0x110] ss:$8 sps:$4 sm:$0xff]  }
  0x57   : > { %1089 = vmatprep.mubr.bf16.mxu0 %v3926_v25  ;;  %1345 = vmatprep.mubr.bf16.mxu1 %v3980_v26  ;;  %v4069_v24 = vld [vmem:[%s4175_s24 + $0x310] ss:$8 sps:$4 sm:$0xff]   ;;  %v3983_v25 = vld [vmem:[%s4175_s24 + $0x124] ss:$8 sps:$4 sm:$0xff]  }
  0x58   : > { %v4070_v26 = vld [vmem:[%s4175_s24 + $0x324] ss:$8 sps:$4 sm:$0xff]  }
  0x5e   : > { %1090 = vmatmul.mubr.bf16.gmra.mrb[8].mxu0 %v3928_v27  ;;  %1346 = vmatmul.mubr.bf16.gmra.mrb[8].mxu1 %v3982_v28  ;;  %v3985_v27 = vld [vmem:[%s4175_s24 + $0x120] ss:$8 sps:$4 sm:$0xff]  }
  0x5f   : > { %1097 = vmatprep.mubr.bf16.mxu0 %v3929_v29  ;;  %1353 = vmatprep.mubr.bf16.mxu1 %v3986_v30  ;;  %v4072_v28 = vld [vmem:[%s4175_s24 + $0x320] ss:$8 sps:$4 sm:$0xff]   ;;  %v3989_v29 = vld [vmem:[%s4175_s24 + $0x134] ss:$8 sps:$4 sm:$0xff]  }
  0x60   : > { %v4073_v30 = vld [vmem:[%s4175_s24 + $0x334] ss:$8 sps:$4 sm:$0xff]  }
  0x66   : > { %1098 = vmatmul.mubr.bf16.gmra.mrb[12].mxu0 %v3931_v31  ;;  %1354 = vmatmul.mubr.bf16.gmra.mrb[12].mxu1 %v3988_v32  ;;  %v3991_v31 = vld [vmem:[%s4175_s24 + $0x130] ss:$8 sps:$4 sm:$0xff]  }
  0x67   : > { %1105 = vmatprep.mubr.bf16.mxu0 %v3932_v33  ;;  %1361 = vmatprep.mubr.bf16.mxu1 %v3992_v34  ;;  %v4075_v32 = vld [vmem:[%s4175_s24 + $0x330] ss:$8 sps:$4 sm:$0xff]   ;;  %v3995_v33 = vld [vmem:[%s4175_s24 + $0x144] ss:$8 sps:$4 sm:$0xff]  }
  0x68   : > { %v4076_v34 = vld [vmem:[%s4175_s24 + $0x344] ss:$8 sps:$4 sm:$0xff]  }
  0x6e   : > { %1106 = vmatmul.mubr.bf16.gmra.mrb[16].mxu0 %v3934_v35  ;;  %1362 = vmatmul.mubr.bf16.gmra.mrb[16].mxu1 %v3994_v36  ;;  %v3997_v35 = vld [vmem:[%s4175_s24 + $0x140] ss:$8 sps:$4 sm:$0xff]  }
  0x6f   : > { %1113 = vmatprep.mubr.bf16.mxu0 %v3935_v37  ;;  %1369 = vmatprep.mubr.bf16.mxu1 %v3998_v38  ;;  %v4078_v36 = vld [vmem:[%s4175_s24 + $0x340] ss:$8 sps:$4 sm:$0xff]   ;;  %v4001_v37 = vld [vmem:[%s4175_s24 + $0x154] ss:$8 sps:$4 sm:$0xff]  }
  0x70   : > { %v4079_v38 = vld [vmem:[%s4175_s24 + $0x354] ss:$8 sps:$4 sm:$0xff]  }
  0x76   : > { %1114 = vmatmul.mubr.bf16.gmra.mrb[20].mxu0 %v3937_v39  ;;  %1370 = vmatmul.mubr.bf16.gmra.mrb[20].mxu1 %v4000_v40  ;;  %v4003_v39 = vld [vmem:[%s4175_s24 + $0x150] ss:$8 sps:$4 sm:$0xff]  }
  0x77   : > { %1121 = vmatprep.mubr.bf16.mxu0 %v3938_v41  ;;  %1377 = vmatprep.mubr.bf16.mxu1 %v4004_v42  ;;  %v4081_v40 = vld [vmem:[%s4175_s24 + $0x350] ss:$8 sps:$4 sm:$0xff]   ;;  %v4007_v41 = vld [vmem:[%s4175_s24 + $0x164] ss:$8 sps:$4 sm:$0xff]  }
  0x78   : > { %v4082_v42 = vld [vmem:[%s4175_s24 + $0x364] ss:$8 sps:$4 sm:$0xff]  }
  0x7e   : > { %1122 = vmatmul.mubr.bf16.gmra.mrb[24].mxu0 %v3940_v43  ;;  %1378 = vmatmul.mubr.bf16.gmra.mrb[24].mxu1 %v4006_v44  ;;  %v4009_v43 = vld [vmem:[%s4175_s24 + $0x160] ss:$8 sps:$4 sm:$0xff]  }
  0x7f   : > { %1129 = vmatprep.mubr.bf16.mxu0 %v3941_v45  ;;  %1385 = vmatprep.mubr.bf16.mxu1 %v4010_v46  ;;  %v4084_v44 = vld [vmem:[%s4175_s24 + $0x360] ss:$8 sps:$4 sm:$0xff]   ;;  %v4013_v45 = vld [vmem:[%s4175_s24 + $0x174] ss:$8 sps:$4 sm:$0xff]  }
  0x80   : > { %v4085_v46 = vld [vmem:[%s4175_s24 + $0x374] ss:$8 sps:$4 sm:$0xff]  }
  0x86   : > { %1130 = vmatmul.mubr.bf16.gmra.mrb[28].mxu0 %v3943_v47  ;;  %1386 = vmatmul.mubr.bf16.gmra.mrb[28].mxu1 %v4012_v48  ;;  %v4015_v47 = vld [vmem:[%s4175_s24 + $0x170] ss:$8 sps:$4 sm:$0xff]  }
  0x87   : > { %1137 = vmatprep.mubr.bf16.mxu0 %v3944_v49  ;;  %1393 = vmatprep.mubr.bf16.mxu1 %v4016_v50  ;;  %v4087_v48 = vld [vmem:[%s4175_s24 + $0x370] ss:$8 sps:$4 sm:$0xff]   ;;  %v4019_v49 = vld [vmem:[%s4175_s24 + $0x184] ss:$8 sps:$4 sm:$0xff]  }
  0x88   : > { %v4088_v50 = vld [vmem:[%s4175_s24 + $0x384] ss:$8 sps:$4 sm:$0xff]  }
  0x8e   : > { %1138 = vmatmul.mubr.bf16.gmra.mrb[32].mxu0 %v3946_v51  ;;  %1394 = vmatmul.mubr.bf16.gmra.mrb[32].mxu1 %v4018_v52  ;;  %v4021_v51 = vld [vmem:[%s4175_s24 + $0x180] ss:$8 sps:$4 sm:$0xff]  }
  0x8f   : > { %1145 = vmatprep.mubr.bf16.mxu0 %v3947_v53  ;;  %1401 = vmatprep.mubr.bf16.mxu1 %v4022_v54  ;;  %v4090_v52 = vld [vmem:[%s4175_s24 + $0x380] ss:$8 sps:$4 sm:$0xff]   ;;  %v4025_v53 = vld [vmem:[%s4175_s24 + $0x194] ss:$8 sps:$4 sm:$0xff]  }
  0x90   : > { %v4091_v54 = vld [vmem:[%s4175_s24 + $0x394] ss:$8 sps:$4 sm:$0xff]  }
  0x96   : > { %1146 = vmatmul.mubr.bf16.gmra.mrb[36].mxu0 %v3949_v55  ;;  %1402 = vmatmul.mubr.bf16.gmra.mrb[36].mxu1 %v4024_v56  ;;  %v4027_v55 = vld [vmem:[%s4175_s24 + $0x190] ss:$8 sps:$4 sm:$0xff]  }
  0x97   : > { %1153 = vmatprep.mubr.bf16.mxu0 %v3950_v57  ;;  %1409 = vmatprep.mubr.bf16.mxu1 %v4028_v58  ;;  %v4093_v56 = vld [vmem:[%s4175_s24 + $0x390] ss:$8 sps:$4 sm:$0xff]   ;;  %v4031_v57 = vld [vmem:[%s4175_s24 + $0x1a4] ss:$8 sps:$4 sm:$0xff]  }
  0x98   : > { %v4094_v58 = vld [vmem:[%s4175_s24 + $0x3a4] ss:$8 sps:$4 sm:$0xff]  }
  0x9e   : > { %1154 = vmatmul.mubr.bf16.gmra.mrb[40].mxu0 %v3952_v59  ;;  %1410 = vmatmul.mubr.bf16.gmra.mrb[40].mxu1 %v4030_v60  ;;  %v4033_v59 = vld [vmem:[%s4175_s24 + $0x1a0] ss:$8 sps:$4 sm:$0xff]  }
  0x9f   : > { %1161 = vmatprep.mubr.bf16.mxu0 %v3953_v61  ;;  %1417 = vmatprep.mubr.bf16.mxu1 %v4034_v62  ;;  %v4096_v60 = vld [vmem:[%s4175_s24 + $0x3a0] ss:$8 sps:$4 sm:$0xff]   ;;  %v4037_v61 = vld [vmem:[%s4175_s24 + $0x1b4] ss:$8 sps:$4 sm:$0xff]  }
  0xa0   : > { %v4097_v62 = vld [vmem:[%s4175_s24 + $0x3b4] ss:$8 sps:$4 sm:$0xff]  }
  0xa6   : > { %1162 = vmatmul.mubr.bf16.gmra.mrb[44].mxu0 %v3955_v63  ;;  %1418 = vmatmul.mubr.bf16.gmra.mrb[44].mxu1 %v4036_v0 }
  0xa7   : > { %1169 = vmatprep.mubr.bf16.mxu0 %v3956_v1  ;;  %1425 = vmatprep.mubr.bf16.mxu1 %v4040_v2  ;;  %v4039_v2 = vld [vmem:[%s4175_s24 + $0x1b0] ss:$8 sps:$4 sm:$0xff]  }
  0xae   : > { %1170 = vmatmul.mubr.bf16.gmra.mrb[48].mxu0 %v3958_v3  ;;  %1426 = vmatmul.mubr.bf16.gmra.mrb[48].mxu1 %v4042_v4  ;;  %v4099_v4 = vld [vmem:[%s4175_s24 + $0x3b0] ss:$8 sps:$4 sm:$0xff]  }
  0xaf   : > { %1177 = vmatprep.mubr.bf16.mxu0 %v3959_v5  ;;  %1433 = vmatprep.mubr.bf16.mxu1 %v4046_v6  ;;  %v4043_v6 = vld [vmem:[%s4175_s24 + $0x1c4] ss:$8 sps:$4 sm:$0xff]  }
  0xb6   : > { %1178 = vmatmul.mubr.bf16.gmra.mrb[52].mxu0 %v3961_v7  ;;  %1434 = vmatmul.mubr.bf16.gmra.mrb[52].mxu1 %v4048_v8 }
  0xb7   : > { %1185 = vmatprep.mubr.bf16.mxu0 %v3962_v9  ;;  %1441 = vmatprep.mubr.bf16.mxu1 %v4052_v10 }
  0xbe   : > { %1186 = vmatmul.mubr.bf16.gmra.mrb[56].mxu0 %v3964_v11  ;;  %1442 = vmatmul.mubr.bf16.gmra.mrb[56].mxu1 %v4054_v12 }
  0xbf   : > { %1193 = vmatprep.mubr.bf16.mxu0 %v3965_v13  ;;  %1449 = vmatprep.mubr.bf16.mxu1 %v4058_v14  ;;  %v4100_v13 = vld [vmem:[%s4175_s24 + $0x3c4] ss:$8 sps:$4 sm:$0xff]  }
  0xc6   : > { %1194 = vmatmul.mubr.bf16.gmra.mrb[60].mxu0 %v3967_v15  ;;  %1450 = vmatmul.mubr.bf16.gmra.mrb[60].mxu1 %v4060_v16  ;;  %v4045_v15 = vld [vmem:[%s4175_s24 + $0x1c0] ss:$8 sps:$4 sm:$0xff]  }
  0xc7   : > { %1201 = vmatprep.mubr.bf16.mxu0 %v3971_v17  ;;  %1457 = vmatprep.mubr.bf16.mxu1 %v4064_v18 }
  0xce   : > { %1202 = vmatmul.mubr.bf16.gmra.mrb[64].mxu0 %v3973_v19  ;;  %1458 = vmatmul.mubr.bf16.gmra.mrb[64].mxu1 %v4066_v20  ;;  %v4102_v20 = vld [vmem:[%s4175_s24 + $0x3c0] ss:$8 sps:$4 sm:$0xff]  }
  0xcf   : > { %1209 = vmatprep.mubr.bf16.mxu0 %v3977_v21  ;;  %1465 = vmatprep.mubr.bf16.mxu1 %v4067_v22 }
  0xd6   : > { %1210 = vmatmul.mubr.bf16.gmra.mrb[68].mxu0 %v3979_v23  ;;  %1466 = vmatmul.mubr.bf16.gmra.mrb[68].mxu1 %v4069_v24  ;;  %v4049_v23 = vld [vmem:[%s4175_s24 + $0x1d4] ss:$8 sps:$4 sm:$0xff]  }
  0xd7   : > { %1217 = vmatprep.mubr.bf16.mxu0 %v3983_v25  ;;  %1473 = vmatprep.mubr.bf16.mxu1 %v4070_v26 }
  0xde   : > { %1218 = vmatmul.mubr.bf16.gmra.mrb[72].mxu0 %v3985_v27  ;;  %1474 = vmatmul.mubr.bf16.gmra.mrb[72].mxu1 %v4072_v28 }
  0xdf   : > { %1225 = vmatprep.mubr.bf16.mxu0 %v3989_v29  ;;  %1481 = vmatprep.mubr.bf16.mxu1 %v4073_v30  ;;  %v4103_v29 = vld [vmem:[%s4175_s24 + $0x3d4] ss:$8 sps:$4 sm:$0xff]  }
  0xe6   : > { %1226 = vmatmul.mubr.bf16.gmra.mrb[76].mxu0 %v3991_v31  ;;  %1482 = vmatmul.mubr.bf16.gmra.mrb[76].mxu1 %v4075_v32  ;;  %v4051_v31 = vld [vmem:[%s4175_s24 + $0x1d0] ss:$8 sps:$4 sm:$0xff]  }
  0xe7   : > { %1233 = vmatprep.mubr.bf16.mxu0 %v3995_v33  ;;  %1489 = vmatprep.mubr.bf16.mxu1 %v4076_v34 }
  0xee   : > { %1234 = vmatmul.mubr.bf16.gmra.mrb[80].mxu0 %v3997_v35  ;;  %1490 = vmatmul.mubr.bf16.gmra.mrb[80].mxu1 %v4078_v36  ;;  %v4105_v36 = vld [vmem:[%s4175_s24 + $0x3d0] ss:$8 sps:$4 sm:$0xff]  }
  0xef   : > { %1241 = vmatprep.mubr.bf16.mxu0 %v4001_v37  ;;  %1497 = vmatprep.mubr.bf16.mxu1 %v4079_v38 }
  0xf6   : > { %1242 = vmatmul.mubr.bf16.gmra.mrb[84].mxu0 %v4003_v39  ;;  %1498 = vmatmul.mubr.bf16.gmra.mrb[84].mxu1 %v4081_v40  ;;  %v4055_v39 = vld [vmem:[%s4175_s24 + $0x1e4] ss:$8 sps:$4 sm:$0xff]  }
  0xf7   : > { %1249 = vmatprep.mubr.bf16.mxu0 %v4007_v41  ;;  %1505 = vmatprep.mubr.bf16.mxu1 %v4082_v42 }
  0xfe   : > { %1250 = vmatmul.mubr.bf16.gmra.mrb[88].mxu0 %v4009_v43  ;;  %1506 = vmatmul.mubr.bf16.gmra.mrb[88].mxu1 %v4084_v44 }
  0xff   : > { %1257 = vmatprep.mubr.bf16.mxu0 %v4013_v45  ;;  %1513 = vmatprep.mubr.bf16.mxu1 %v4085_v46  ;;  %v4106_v45 = vld [vmem:[%s4175_s24 + $0x3e4] ss:$8 sps:$4 sm:$0xff]  }
 0x106   : > { %1258 = vmatmul.mubr.bf16.gmra.mrb[92].mxu0 %v4015_v47  ;;  %1514 = vmatmul.mubr.bf16.gmra.mrb[92].mxu1 %v4087_v48  ;;  %v4057_v47 = vld [vmem:[%s4175_s24 + $0x1e0] ss:$8 sps:$4 sm:$0xff]  }
 0x107   : > { %1265 = vmatprep.mubr.bf16.mxu0 %v4019_v49  ;;  %1521 = vmatprep.mubr.bf16.mxu1 %v4088_v50 }
 0x10e   : > { %1266 = vmatmul.mubr.bf16.gmra.mrb[96].mxu0 %v4021_v51  ;;  %1522 = vmatmul.mubr.bf16.gmra.mrb[96].mxu1 %v4090_v52  ;;  %v4108_v52 = vld [vmem:[%s4175_s24 + $0x3e0] ss:$8 sps:$4 sm:$0xff]  }
 0x10f   : > { %1273 = vmatprep.mubr.bf16.mxu0 %v4025_v53  ;;  %1529 = vmatprep.mubr.bf16.mxu1 %v4091_v54 }
 0x116   : > { %1274 = vmatmul.mubr.bf16.gmra.mrb[100].mxu0 %v4027_v55  ;;  %1530 = vmatmul.mubr.bf16.gmra.mrb[100].mxu1 %v4093_v56  ;;  %v4061_v55 = vld [vmem:[%s4175_s24 + $0x1f4] ss:$8 sps:$4 sm:$0xff]  }
 0x117   : > { %1281 = vmatprep.mubr.bf16.mxu0 %v4031_v57  ;;  %1537 = vmatprep.mubr.bf16.mxu1 %v4094_v58 }
 0x11e   : > { %1282 = vmatmul.mubr.bf16.gmra.mrb[104].mxu0 %v4033_v59  ;;  %1538 = vmatmul.mubr.bf16.gmra.mrb[104].mxu1 %v4096_v60 }
 0x11f   : > { %1289 = vmatprep.mubr.bf16.mxu0 %v4037_v61  ;;  %1545 = vmatprep.mubr.bf16.mxu1 %v4097_v62  ;;  %v4109_v61 = vld [vmem:[%s4175_s24 + $0x3f4] ss:$8 sps:$4 sm:$0xff]  }
 0x121   : > { %v4344_v63 = vpop.f32.mrb[0].mxu0  ;;  %v4346_v0 = vpop.f32.mrb[0].mxu1 }
 0x122   : > { %8415 = vst [vmem:[#allocation2_spill] sm:$0xff] %v4344_v63  ;;  %v1077_v1 = vpop.f32.mrb[1].mxu0  ;;  %v1333_v3 = vpop.f32.mrb[1].mxu1  ;;  %v1587_v8 = vsel %vm1586_vm0, %v4344_v63, 0.0 }
 0x123   : > { %v4350_v5 = vpop.f32.mrb[2].mxu0  ;;  %v4353_v7 = vpop.f32.mrb[2].mxu1  ;;  %v4063_v1 = vld [vmem:[%s4175_s24 + $0x1f0] ss:$8 sps:$4 sm:$0xff]  }
 0x124   : > { %8416 = vst [vmem:[#allocation3_spill] sm:$0xff] %v4350_v5  ;;  %v1588_v9 = vsel %vm1586_vm0, %v4350_v5, 0.0  ;;  %v1080_v10 = vpop.f32.mrb[3].mxu0  ;;  %v1336_v11 = vpop.f32.mrb[3].mxu1 }
 0x125   : > { %v1589_v12 = vadd.f32 %v1588_v9, %v1587_v8  ;;  %v4111_v8 = vld [vmem:[%s4175_s24 + $0x3f0] ss:$8 sps:$4 sm:$0xff]  }
 0x126   : > { %1290 = vmatmul.mubr.bf16.gmra.mrb[108].mxu0 %v4039_v2  ;;  %1546 = vmatmul.mubr.bf16.gmra.mrb[108].mxu1 %v4099_v4 }
 0x127   : > { %1297 = vmatprep.mubr.bf16.mxu0 %v4043_v6  ;;  %1553 = vmatprep.mubr.bf16.mxu1 %v4100_v13 }
 0x129   : > { %v4360_v14 = vpop.f32.mrb[4].mxu0  ;;  %v4363_v16 = vpop.f32.mrb[4].mxu1 }
 0x12a   : > { %8417 = vst [vmem:[#allocation4_spill] sm:$0xff] %v4360_v14  ;;  %v1590_v17 = vsel %vm1586_vm0, %v4360_v14, 0.0  ;;  %v1085_v18 = vpop.f32.mrb[5].mxu0  ;;  %v1341_v19 = vpop.f32.mrb[5].mxu1 }
 0x12b   : > { %v1591_v21 = vadd.f32 %v1590_v17, %v1589_v12  ;;  %v4368_v22 = vpop.f32.mrb[6].mxu0  ;;  %v4371_v24 = vpop.f32.mrb[6].mxu1 }
 0x12c   : > { %8418 = vst [vmem:[#allocation5_spill] sm:$0xff] %v4368_v22  ;;  %v1592_v25 = vsel %vm1586_vm0, %v4368_v22, 0.0  ;;  %v1088_v26 = vpop.f32.mrb[7].mxu0  ;;  %v1344_v27 = vpop.f32.mrb[7].mxu1 }
 0x12d   : > { %v1593_v28 = vadd.f32 %v1592_v25, %v1591_v21 }
 0x12e   : > { %1298 = vmatmul.mubr.bf16.gmra.mrb[112].mxu0 %v4045_v15  ;;  %1554 = vmatmul.mubr.bf16.gmra.mrb[112].mxu1 %v4102_v20 }
 0x12f   : > { %1305 = vmatprep.mubr.bf16.mxu0 %v4049_v23  ;;  %1561 = vmatprep.mubr.bf16.mxu1 %v4103_v29 }
 0x131   : > { %v4376_v30 = vpop.f32.mrb[8].mxu0  ;;  %v4379_v32 = vpop.f32.mrb[8].mxu1 }
 0x132   : > { %8419 = vst [vmem:[#allocation6_spill] sm:$0xff] %v4376_v30  ;;  %v1594_v33 = vsel %vm1586_vm0, %v4376_v30, 0.0  ;;  %v1093_v34 = vpop.f32.mrb[9].mxu0  ;;  %v1349_v35 = vpop.f32.mrb[9].mxu1 }
 0x133   : > { %v1595_v37 = vadd.f32 %v1594_v33, %v1593_v28  ;;  %v4384_v38 = vpop.f32.mrb[10].mxu0  ;;  %v4387_v40 = vpop.f32.mrb[10].mxu1 }
 0x134   : > { %8420 = vst [vmem:[#allocation7_spill] sm:$0xff] %v4384_v38  ;;  %v1596_v41 = vsel %vm1586_vm0, %v4384_v38, 0.0  ;;  %v1096_v42 = vpop.f32.mrb[11].mxu0  ;;  %v1352_v43 = vpop.f32.mrb[11].mxu1 }
 0x135   : > { %v1597_v44 = vadd.f32 %v1596_v41, %v1595_v37 }
 0x136   : > { %1306 = vmatmul.mubr.bf16.gmra.mrb[116].mxu0 %v4051_v31  ;;  %1562 = vmatmul.mubr.bf16.gmra.mrb[116].mxu1 %v4105_v36 }
 0x137   : > { %1313 = vmatprep.mubr.bf16.mxu0 %v4055_v39  ;;  %1569 = vmatprep.mubr.bf16.mxu1 %v4106_v45 }
 0x139   : > { %v4392_v46 = vpop.f32.mrb[12].mxu0  ;;  %v4395_v48 = vpop.f32.mrb[12].mxu1 }
 0x13a   : > { %8421 = vst [vmem:[#allocation8_spill] sm:$0xff] %v4392_v46  ;;  %v1598_v49 = vsel %vm1586_vm0, %v4392_v46, 0.0  ;;  %v1101_v50 = vpop.f32.mrb[13].mxu0  ;;  %v1357_v51 = vpop.f32.mrb[13].mxu1 }
 0x13b   : > { %v1599_v53 = vadd.f32 %v1598_v49, %v1597_v44  ;;  %v4400_v54 = vpop.f32.mrb[14].mxu0  ;;  %v4403_v56 = vpop.f32.mrb[14].mxu1 }
 0x13c   : > { %8422 = vst [vmem:[#allocation9_spill] sm:$0xff] %v4400_v54  ;;  %v1600_v57 = vsel %vm1586_vm0, %v4400_v54, 0.0  ;;  %v1104_v58 = vpop.f32.mrb[15].mxu0  ;;  %v1360_v59 = vpop.f32.mrb[15].mxu1 }
 0x13d   : > { %v1601_v60 = vadd.f32 %v1600_v57, %v1599_v53 }
 0x13e   : > { %1314 = vmatmul.mubr.bf16.gmra.mrb[120].mxu0 %v4057_v47  ;;  %1570 = vmatmul.mubr.bf16.gmra.mrb[120].mxu1 %v4108_v52 }
 0x13f   : > { %1321 = vmatprep.mubr.bf16.mxu0 %v4061_v55  ;;  %1577 = vmatprep.mubr.bf16.mxu1 %v4109_v61 }
 0x141   : > { %v4408_v62 = vpop.f32.mrb[16].mxu0  ;;  %v4411_v2 = vpop.f32.mrb[16].mxu1 }
 0x142   : > { %8423 = vst [vmem:[#allocation10_spill] sm:$0xff] %v4408_v62  ;;  %v1602_v3 = vsel %vm1586_vm0, %v4408_v62, 0.0  ;;  %v1109_v4 = vpop.f32.mrb[17].mxu0  ;;  %v1365_v6 = vpop.f32.mrb[17].mxu1 }
 0x143   : > { %v1603_v9 = vadd.f32 %v1602_v3, %v1601_v60  ;;  %v4416_v10 = vpop.f32.mrb[18].mxu0  ;;  %v4418_v11 = vpop.f32.mrb[18].mxu1 }
 0x144   : > { %8424 = vst [vmem:[#allocation11_spill] sm:$0xff] %v4416_v10  ;;  %v1604_v12 = vsel %vm1586_vm0, %v4416_v10, 0.0  ;;  %v1112_v13 = vpop.f32.mrb[19].mxu0  ;;  %v1368_v15 = vpop.f32.mrb[19].mxu1 }
 0x145   : > { %v1605_v17 = vadd.f32 %v1604_v12, %v1603_v9 }
 0x146   : > { %1322 = vmatmul.mubr.bf16.gmra.mrb[124].mxu0 %v4063_v1  ;;  %1578 = vmatmul.mubr.bf16.gmra.mrb[124].mxu1 %v4111_v8 }
 0x149   : > { %v4422_v18 = vpop.f32.mrb[20].mxu0  ;;  %v4424_v19 = vpop.f32.mrb[20].mxu1 }
 0x14a   : > { %8425 = vst [vmem:[#allocation12_spill] sm:$0xff] %v4422_v18  ;;  %v1606_v20 = vsel %vm1586_vm0, %v4422_v18, 0.0  ;;  %v1117_v21 = vpop.f32.mrb[21].mxu0  ;;  %v1373_v23 = vpop.f32.mrb[21].mxu1 }
 0x14b   : > { %v1607_v25 = vadd.f32 %v1606_v20, %v1605_v17  ;;  %v4428_v26 = vpop.f32.mrb[22].mxu0  ;;  %v4430_v27 = vpop.f32.mrb[22].mxu1 }
 0x14c   : > { %8426 = vst [vmem:[#allocation13_spill] sm:$0xff] %v4428_v26  ;;  %v1608_v28 = vsel %vm1586_vm0, %v4428_v26, 0.0  ;;  %v1120_v29 = vpop.f32.mrb[23].mxu0  ;;  %v1376_v31 = vpop.f32.mrb[23].mxu1 }
 0x14d   : > { %v1609_v33 = vadd.f32 %v1608_v28, %v1607_v25 }
 0x151   : > { %v4434_v34 = vpop.f32.mrb[24].mxu0  ;;  %v4436_v35 = vpop.f32.mrb[24].mxu1 }
 0x152   : > { %8427 = vst [vmem:[#allocation14_spill] sm:$0xff] %v4434_v34  ;;  %v1610_v36 = vsel %vm1586_vm0, %v4434_v34, 0.0  ;;  %v1125_v37 = vpop.f32.mrb[25].mxu0  ;;  %v1381_v39 = vpop.f32.mrb[25].mxu1 }
 0x153   : > { %v1611_v41 = vadd.f32 %v1610_v36, %v1609_v33  ;;  %v4440_v42 = vpop.f32.mrb[26].mxu0  ;;  %v4442_v43 = vpop.f32.mrb[26].mxu1 }
 0x154   : > { %8428 = vst [vmem:[#allocation15_spill] sm:$0xff] %v4440_v42  ;;  %v1612_v44 = vsel %vm1586_vm0, %v4440_v42, 0.0  ;;  %v1128_v45 = vpop.f32.mrb[27].mxu0  ;;  %v1384_v47 = vpop.f32.mrb[27].mxu1 }
 0x155   : > { %v1613_v49 = vadd.f32 %v1612_v44, %v1611_v41 }
 0x159   : > { %v4446_v50 = vpop.f32.mrb[28].mxu0  ;;  %v4448_v51 = vpop.f32.mrb[28].mxu1 }
 0x15a   : > { %8429 = vst [vmem:[#allocation16_spill] sm:$0xff] %v4446_v50  ;;  %v1614_v52 = vsel %vm1586_vm0, %v4446_v50, 0.0  ;;  %v1133_v53 = vpop.f32.mrb[29].mxu0  ;;  %v1389_v55 = vpop.f32.mrb[29].mxu1 }
 0x15b   : > { %v1615_v57 = vadd.f32 %v1614_v52, %v1613_v49  ;;  %v4452_v58 = vpop.f32.mrb[30].mxu0  ;;  %v4454_v59 = vpop.f32.mrb[30].mxu1 }
 0x15c   : > { %8430 = vst [vmem:[#allocation17_spill] sm:$0xff] %v4452_v58  ;;  %v1616_v60 = vsel %vm1586_vm0, %v4452_v58, 0.0  ;;  %v1136_v61 = vpop.f32.mrb[31].mxu0  ;;  %v1392_v1 = vpop.f32.mrb[31].mxu1 }
 0x15d   : > { %v1617_v3 = vadd.f32 %v1616_v60, %v1615_v57 }
 0x161   : > { %v4458_v4 = vpop.f32.mrb[32].mxu0  ;;  %v4460_v6 = vpop.f32.mrb[32].mxu1 }
 0x162   : > { %8431 = vst [vmem:[#allocation18_spill] sm:$0xff] %v4458_v4  ;;  %v1618_v8 = vsel %vm1586_vm0, %v4458_v4, 0.0  ;;  %v1141_v9 = vpop.f32.mrb[33].mxu0  ;;  %v1397_v12 = vpop.f32.mrb[33].mxu1 }
 0x163   : > { %v1619_v13 = vadd.f32 %v1618_v8, %v1617_v3  ;;  %v4464_v15 = vpop.f32.mrb[34].mxu0  ;;  %v4466_v17 = vpop.f32.mrb[34].mxu1 }
 0x164   : > { %8432 = vst [vmem:[#allocation19_spill] sm:$0xff] %v4464_v15  ;;  %v1620_v20 = vsel %vm1586_vm0, %v4464_v15, 0.0  ;;  %v1144_v21 = vpop.f32.mrb[35].mxu0  ;;  %v1400_v23 = vpop.f32.mrb[35].mxu1 }
 0x165   : > { %v1621_v25 = vadd.f32 %v1620_v20, %v1619_v13 }
 0x169   : > { %v4470_v28 = vpop.f32.mrb[36].mxu0  ;;  %v4472_v29 = vpop.f32.mrb[36].mxu1 }
 0x16a   : > { %8433 = vst [vmem:[#allocation20_spill] sm:$0xff] %v4470_v28  ;;  %v1622_v31 = vsel %vm1586_vm0, %v4470_v28, 0.0  ;;  %v1149_v33 = vpop.f32.mrb[37].mxu0  ;;  %v1405_v36 = vpop.f32.mrb[37].mxu1 }
 0x16b   : > { %v1623_v37 = vadd.f32 %v1622_v31, %v1621_v25  ;;  %v4476_v39 = vpop.f32.mrb[38].mxu0  ;;  %v4478_v41 = vpop.f32.mrb[38].mxu1 }
 0x16c   : > { %8434 = vst [vmem:[#allocation21_spill] sm:$0xff] %v4476_v39  ;;  %v1624_v44 = vsel %vm1586_vm0, %v4476_v39, 0.0  ;;  %v1152_v45 = vpop.f32.mrb[39].mxu0  ;;  %v1408_v47 = vpop.f32.mrb[39].mxu1 }
 0x16d   : > { %v1625_v49 = vadd.f32 %v1624_v44, %v1623_v37 }
 0x171   : > { %v4482_v52 = vpop.f32.mrb[40].mxu0  ;;  %v4484_v53 = vpop.f32.mrb[40].mxu1 }
 0x172   : > { %8435 = vst [vmem:[#allocation22_spill] sm:$0xff] %v4482_v52  ;;  %v1626_v55 = vsel %vm1586_vm0, %v4482_v52, 0.0  ;;  %v1157_v57 = vpop.f32.mrb[41].mxu0  ;;  %v1413_v60 = vpop.f32.mrb[41].mxu1 }
 0x173   : > { %v1627_v61 = vadd.f32 %v1626_v55, %v1625_v49  ;;  %v4488_v1 = vpop.f32.mrb[42].mxu0  ;;  %v4490_v3 = vpop.f32.mrb[42].mxu1 }
 0x174   : > { %8436 = vst [vmem:[#allocation23_spill] sm:$0xff] %v4488_v1  ;;  %v1628_v8 = vsel %vm1586_vm0, %v4488_v1, 0.0  ;;  %v1160_v9 = vpop.f32.mrb[43].mxu0  ;;  %v1416_v12 = vpop.f32.mrb[43].mxu1 }
 0x175   : > { %v1629_v13 = vadd.f32 %v1628_v8, %v1627_v61 }
 0x179   : > { %v4494_v20 = vpop.f32.mrb[44].mxu0  ;;  %v4496_v21 = vpop.f32.mrb[44].mxu1 }
 0x17a   : > { %8437 = vst [vmem:[#allocation24_spill] sm:$0xff] %v4494_v20  ;;  %v1630_v23 = vsel %vm1586_vm0, %v4494_v20, 0.0  ;;  %v1165_v25 = vpop.f32.mrb[45].mxu0  ;;  %v1421_v31 = vpop.f32.mrb[45].mxu1 }
 0x17b   : > { %v1631_v33 = vadd.f32 %v1630_v23, %v1629_v13  ;;  %v4500_v36 = vpop.f32.mrb[46].mxu0  ;;  %v4502_v37 = vpop.f32.mrb[46].mxu1 }
 0x17c   : > { %8438 = vst [vmem:[#allocation25_spill] sm:$0xff] %v4500_v36  ;;  %v1632_v44 = vsel %vm1586_vm0, %v4500_v36, 0.0  ;;  %v1168_v45 = vpop.f32.mrb[47].mxu0  ;;  %v1424_v47 = vpop.f32.mrb[47].mxu1 }
 0x17d   : > { %v1633_v49 = vadd.f32 %v1632_v44, %v1631_v33 }
 0x181   : > { %v4506_v55 = vpop.f32.mrb[48].mxu0  ;;  %v4508_v57 = vpop.f32.mrb[48].mxu1 }
 0x182   : > { %8439 = vst [vmem:[#allocation26_spill] sm:$0xff] %v4506_v55  ;;  %v1634_v60 = vsel %vm1586_vm0, %v4506_v55, 0.0  ;;  %v1173_v61 = vpop.f32.mrb[49].mxu0  ;;  %v1429_v8 = vpop.f32.mrb[49].mxu1 }
 0x183   : > { %v1635_v9 = vadd.f32 %v1634_v60, %v1633_v49  ;;  %v4512_v12 = vpop.f32.mrb[50].mxu0  ;;  %v4514_v13 = vpop.f32.mrb[50].mxu1 }
 0x184   : > { %8440 = vst [vmem:[#allocation27_spill] sm:$0xff] %v4512_v12  ;;  %v1636_v23 = vsel %vm1586_vm0, %v4512_v12, 0.0  ;;  %v1176_v25 = vpop.f32.mrb[51].mxu0  ;;  %v1432_v31 = vpop.f32.mrb[51].mxu1 }
 0x185   : > { %v1637_v33 = vadd.f32 %v1636_v23, %v1635_v9 }
 0x189   : > { %v4518_v44 = vpop.f32.mrb[52].mxu0  ;;  %v4520_v45 = vpop.f32.mrb[52].mxu1 }
 0x18a   : > { %8441 = vst [vmem:[#allocation28_spill] sm:$0xff] %v4518_v44  ;;  %v1638_v47 = vsel %vm1586_vm0, %v4518_v44, 0.0  ;;  %v1181_v61 = vpop.f32.mrb[53].mxu0  ;;  %v1437_v8 = vpop.f32.mrb[53].mxu1 }
 0x18b   : > { %v1639_v49 = vadd.f32 %v1638_v47, %v1637_v33  ;;  %v4524_v60 = vpop.f32.mrb[54].mxu0  ;;  %v4526_v55 = vpop.f32.mrb[54].mxu1 }
 0x18c   : > { %8442 = vst [vmem:[#allocation29_spill] sm:$0xff] %v4524_v60  ;;  %v1640_v12 = vsel %vm1586_vm0, %v4524_v60, 0.0  ;;  %v1184_v25 = vpop.f32.mrb[55].mxu0  ;;  %v1440_v31 = vpop.f32.mrb[55].mxu1 }
 0x18d   : > { %v1641_v9 = vadd.f32 %v1640_v12, %v1639_v49 }
 0x191   : > { %v4530_v23 = vpop.f32.mrb[56].mxu0  ;;  %v4532_v36 = vpop.f32.mrb[56].mxu1 }
 0x192   : > { %8443 = vst [vmem:[#allocation30_spill] sm:$0xff] %v4530_v23  ;;  %v1642_v44 = vsel %vm1586_vm0, %v4530_v23, 0.0  ;;  %v1189_v61 = vpop.f32.mrb[57].mxu0  ;;  %v1445_v8 = vpop.f32.mrb[57].mxu1 }
 0x193   : > { %v1643_v33 = vadd.f32 %v1642_v44, %v1641_v9  ;;  %v4536_v47 = vpop.f32.mrb[58].mxu0  ;;  %v4538_v20 = vpop.f32.mrb[58].mxu1 }
 0x194   : > { %8444 = vst [vmem:[#allocation31_spill] sm:$0xff] %v4536_v47  ;;  %v1644_v60 = vsel %vm1586_vm0, %v4536_v47, 0.0  ;;  %v1192_v25 = vpop.f32.mrb[59].mxu0  ;;  %v1448_v31 = vpop.f32.mrb[59].mxu1 }
 0x195   : > { %v1645_v12 = vadd.f32 %v1644_v60, %v1643_v33 }
 0x199   : > { %v4542_v49 = vpop.f32.mrb[60].mxu0  ;;  %v4544_v1 = vpop.f32.mrb[60].mxu1 }
 0x19a   : > { %8445 = vst [vmem:[#allocation32_spill] sm:$0xff] %v4542_v49  ;;  %v1646_v23 = vsel %vm1586_vm0, %v4542_v49, 0.0  ;;  %v1197_v61 = vpop.f32.mrb[61].mxu0  ;;  %v1453_v8 = vpop.f32.mrb[61].mxu1 }
 0x19b   : > { %v1647_v44 = vadd.f32 %v1646_v23, %v1645_v12  ;;  %v4548_v9 = vpop.f32.mrb[62].mxu0  ;;  %v4550_v52 = vpop.f32.mrb[62].mxu1 }
 0x19c   : > { %8446 = vst [vmem:[#allocation33_spill] sm:$0xff] %v4548_v9  ;;  %v1648_v47 = vsel %vm1586_vm0, %v4548_v9, 0.0  ;;  %v1200_v25 = vpop.f32.mrb[63].mxu0  ;;  %v1456_v31 = vpop.f32.mrb[63].mxu1 }
 0x19d   : > { %v1649_v60 = vadd.f32 %v1648_v47, %v1647_v44 }
 0x1a1   : > { %v4554_v33 = vpop.f32.mrb[64].mxu0  ;;  %v4556_v39 = vpop.f32.mrb[64].mxu1 }
 0x1a2   : > { %8447 = vst [vmem:[#allocation34_spill] sm:$0xff] %v4554_v33  ;;  %v1650_v49 = vsel %vm1586_vm0, %v4554_v33, 0.0  ;;  %v1205_v61 = vpop.f32.mrb[65].mxu0  ;;  %v1461_v8 = vpop.f32.mrb[65].mxu1 }
 0x1a3   : > { %v1651_v23 = vadd.f32 %v1650_v49, %v1649_v60  ;;  %v4560_v12 = vpop.f32.mrb[66].mxu0  ;;  %v4562_v28 = vpop.f32.mrb[66].mxu1 }
 0x1a4   : > { %8448 = vst [vmem:[#allocation35_spill] sm:$0xff] %v4560_v12  ;;  %v1652_v9 = vsel %vm1586_vm0, %v4560_v12, 0.0  ;;  %v1208_v25 = vpop.f32.mrb[67].mxu0  ;;  %v1464_v31 = vpop.f32.mrb[67].mxu1 }
 0x1a5   : > { %v1653_v47 = vadd.f32 %v1652_v9, %v1651_v23 }
 0x1a9   : > { %v4566_v44 = vpop.f32.mrb[68].mxu0  ;;  %v4568_v15 = vpop.f32.mrb[68].mxu1 }
 0x1aa   : > { %8449 = vst [vmem:[#allocation36_spill] sm:$0xff] %v4566_v44  ;;  %v1654_v33 = vsel %vm1586_vm0, %v4566_v44, 0.0  ;;  %v1213_v61 = vpop.f32.mrb[69].mxu0  ;;  %v1469_v8 = vpop.f32.mrb[69].mxu1 }
 0x1ab   : > { %v1655_v49 = vadd.f32 %v1654_v33, %v1653_v47  ;;  %v4572_v60 = vpop.f32.mrb[70].mxu0  ;;  %v4574_v4 = vpop.f32.mrb[70].mxu1 }
 0x1ac   : > { %8450 = vst [vmem:[#allocation37_spill] sm:$0xff] %v4572_v60  ;;  %v1656_v12 = vsel %vm1586_vm0, %v4572_v60, 0.0  ;;  %v1216_v25 = vpop.f32.mrb[71].mxu0  ;;  %v1472_v31 = vpop.f32.mrb[71].mxu1 }
 0x1ad   : > { %v1657_v9 = vadd.f32 %v1656_v12, %v1655_v49 }
 0x1b1   : > { %v4578_v23 = vpop.f32.mrb[72].mxu0  ;;  %v4580_v58 = vpop.f32.mrb[72].mxu1 }
 0x1b2   : > { %8451 = vst [vmem:[#allocation38_spill] sm:$0xff] %v4578_v23  ;;  %v1658_v44 = vsel %vm1586_vm0, %v4578_v23, 0.0  ;;  %v1221_v61 = vpop.f32.mrb[73].mxu0  ;;  %v1477_v8 = vpop.f32.mrb[73].mxu1 }
 0x1b3   : > { %v1659_v33 = vadd.f32 %v1658_v44, %v1657_v9  ;;  %v4584_v47 = vpop.f32.mrb[74].mxu0  ;;  %v4586_v50 = vpop.f32.mrb[74].mxu1 }
 0x1b4   : > { %8452 = vst [vmem:[#allocation39_spill] sm:$0xff] %v4584_v47  ;;  %v1660_v60 = vsel %vm1586_vm0, %v4584_v47, 0.0  ;;  %v1224_v25 = vpop.f32.mrb[75].mxu0  ;;  %v1480_v31 = vpop.f32.mrb[75].mxu1 }
 0x1b5   : > { %v1661_v12 = vadd.f32 %v1660_v60, %v1659_v33 }
 0x1b9   : > { %v4590_v49 = vpop.f32.mrb[76].mxu0  ;;  %v4592_v42 = vpop.f32.mrb[76].mxu1 }
 0x1ba   : > { %8453 = vst [vmem:[#allocation40_spill] sm:$0xff] %v4590_v49  ;;  %v1662_v23 = vsel %vm1586_vm0, %v4590_v49, 0.0  ;;  %v1229_v61 = vpop.f32.mrb[77].mxu0  ;;  %v1485_v8 = vpop.f32.mrb[77].mxu1 }
 0x1bb   : > { %v1663_v44 = vadd.f32 %v1662_v23, %v1661_v12  ;;  %v4596_v9 = vpop.f32.mrb[78].mxu0  ;;  %v4598_v34 = vpop.f32.mrb[78].mxu1 }
 0x1bc   : > { %8454 = vst [vmem:[#allocation41_spill] sm:$0xff] %v4596_v9  ;;  %v1664_v47 = vsel %vm1586_vm0, %v4596_v9, 0.0  ;;  %v1232_v25 = vpop.f32.mrb[79].mxu0  ;;  %v1488_v31 = vpop.f32.mrb[79].mxu1 }
 0x1bd   : > { %v1665_v60 = vadd.f32 %v1664_v47, %v1663_v44 }
 0x1c1   : > { %v4602_v33 = vpop.f32.mrb[80].mxu0  ;;  %v4604_v26 = vpop.f32.mrb[80].mxu1 }
 0x1c2   : > { %8455 = vst [vmem:[#allocation42_spill] sm:$0xff] %v4602_v33  ;;  %v1666_v49 = vsel %vm1586_vm0, %v4602_v33, 0.0  ;;  %v1237_v61 = vpop.f32.mrb[81].mxu0  ;;  %v1493_v8 = vpop.f32.mrb[81].mxu1 }
 0x1c3   : > { %v1667_v23 = vadd.f32 %v1666_v49, %v1665_v60  ;;  %v4608_v12 = vpop.f32.mrb[82].mxu0  ;;  %v4610_v18 = vpop.f32.mrb[82].mxu1 }
 0x1c4   : > { %8456 = vst [vmem:[#allocation43_spill] sm:$0xff] %v4608_v12  ;;  %v1668_v9 = vsel %vm1586_vm0, %v4608_v12, 0.0  ;;  %v1240_v25 = vpop.f32.mrb[83].mxu0  ;;  %v1496_v31 = vpop.f32.mrb[83].mxu1 }
 0x1c5   : > { %v1669_v47 = vadd.f32 %v1668_v9, %v1667_v23 }
 0x1c9   : > { %v4614_v44 = vpop.f32.mrb[84].mxu0  ;;  %v4616_v10 = vpop.f32.mrb[84].mxu1 }
 0x1ca   : > { %8457 = vst [vmem:[#allocation44_spill] sm:$0xff] %v4614_v44  ;;  %v1670_v33 = vsel %vm1586_vm0, %v4614_v44, 0.0  ;;  %v1245_v61 = vpop.f32.mrb[85].mxu0  ;;  %v1501_v8 = vpop.f32.mrb[85].mxu1 }
 0x1cb   : > { %v1671_v49 = vadd.f32 %v1670_v33, %v1669_v47  ;;  %v4620_v60 = vpop.f32.mrb[86].mxu0  ;;  %v4622_v62 = vpop.f32.mrb[86].mxu1 }
 0x1cc   : > { %8458 = vst [vmem:[#allocation45_spill] sm:$0xff] %v4620_v60  ;;  %v1672_v12 = vsel %vm1586_vm0, %v4620_v60, 0.0  ;;  %v1248_v25 = vpop.f32.mrb[87].mxu0  ;;  %v1504_v31 = vpop.f32.mrb[87].mxu1 }
 0x1cd   : > { %v1673_v9 = vadd.f32 %v1672_v12, %v1671_v49 }
 0x1d1   : > { %v4626_v23 = vpop.f32.mrb[88].mxu0  ;;  %v4628_v54 = vpop.f32.mrb[88].mxu1 }
 0x1d2   : > { %8459 = vst [vmem:[#allocation46_spill] sm:$0xff] %v4626_v23  ;;  %8460 = vst [vmem:[#allocation47_spill] sm:$0xff] %v4628_v54  ;;  %v1674_v44 = vsel %vm1586_vm0, %v4626_v23, 0.0  ;;  %v1253_v61 = vpop.f32.mrb[89].mxu0  ;;  %v1509_v8 = vpop.f32.mrb[89].mxu1 }
 0x1d3   : > { %v1675_v33 = vadd.f32 %v1674_v44, %v1673_v9  ;;  %v4632_v47 = vpop.f32.mrb[90].mxu0  ;;  %v4634_v46 = vpop.f32.mrb[90].mxu1 }
 0x1d4   : > { %8461 = vst [vmem:[#allocation48_spill] sm:$0xff] %v4632_v47  ;;  %8462 = vst [vmem:[#allocation49_spill] sm:$0xff] %v4634_v46  ;;  %v1676_v60 = vsel %vm1586_vm0, %v4632_v47, 0.0  ;;  %v1256_v25 = vpop.f32.mrb[91].mxu0  ;;  %v1512_v31 = vpop.f32.mrb[91].mxu1 }
 0x1d5   : > { %v1677_v12 = vadd.f32 %v1676_v60, %v1675_v33 }
 0x1d9   : > { %v4638_v49 = vpop.f32.mrb[92].mxu0  ;;  %v4640_v38 = vpop.f32.mrb[92].mxu1 }
 0x1da   : > { %8463 = vst [vmem:[#allocation50_spill] sm:$0xff] %v4638_v49  ;;  %8464 = vst [vmem:[#allocation51_spill] sm:$0xff] %v4640_v38  ;;  %v1678_v23 = vsel %vm1586_vm0, %v4638_v49, 0.0  ;;  %v1261_v61 = vpop.f32.mrb[93].mxu0  ;;  %v1517_v8 = vpop.f32.mrb[93].mxu1 }
 0x1db   : > { %v1679_v44 = vadd.f32 %v1678_v23, %v1677_v12  ;;  %v4644_v9 = vpop.f32.mrb[94].mxu0  ;;  %v4646_v30 = vpop.f32.mrb[94].mxu1 }
 0x1dc   : > { %8465 = vst [vmem:[#allocation52_spill] sm:$0xff] %v4644_v9  ;;  %8466 = vst [vmem:[#allocation53_spill] sm:$0xff] %v4646_v30  ;;  %v1680_v47 = vsel %vm1586_vm0, %v4644_v9, 0.0  ;;  %v1264_v25 = vpop.f32.mrb[95].mxu0  ;;  %v1520_v31 = vpop.f32.mrb[95].mxu1 }
 0x1dd   : > { %v1681_v60 = vadd.f32 %v1680_v47, %v1679_v44 }
 0x1e1   : > { %v4650_v33 = vpop.f32.mrb[96].mxu0  ;;  %v4652_v22 = vpop.f32.mrb[96].mxu1 }
 0x1e2   : > { %8467 = vst [vmem:[#allocation54_spill] sm:$0xff] %v4650_v33  ;;  %8468 = vst [vmem:[#allocation55_spill] sm:$0xff] %v4652_v22  ;;  %v1682_v49 = vsel %vm1586_vm0, %v4650_v33, 0.0  ;;  %v1269_v61 = vpop.f32.mrb[97].mxu0  ;;  %v1525_v8 = vpop.f32.mrb[97].mxu1 }
 0x1e3   : > { %v1683_v23 = vadd.f32 %v1682_v49, %v1681_v60  ;;  %v4656_v12 = vpop.f32.mrb[98].mxu0  ;;  %v4658_v14 = vpop.f32.mrb[98].mxu1 }
 0x1e4   : > { %8469 = vst [vmem:[#allocation56_spill] sm:$0xff] %v4656_v12  ;;  %8470 = vst [vmem:[#allocation57_spill] sm:$0xff] %v4658_v14  ;;  %v1684_v9 = vsel %vm1586_vm0, %v4656_v12, 0.0  ;;  %v1272_v25 = vpop.f32.mrb[99].mxu0  ;;  %v1528_v31 = vpop.f32.mrb[99].mxu1 }
 0x1e5   : > { %v1685_v47 = vadd.f32 %v1684_v9, %v1683_v23 }
 0x1e9   : > { %v4662_v44 = vpop.f32.mrb[100].mxu0  ;;  %v4664_v5 = vpop.f32.mrb[100].mxu1 }
 0x1ea   : > { %8471 = vst [vmem:[#allocation58_spill] sm:$0xff] %v4662_v44  ;;  %8472 = vst [vmem:[#allocation59_spill] sm:$0xff] %v4664_v5  ;;  %v1686_v33 = vsel %vm1586_vm0, %v4662_v44, 0.0  ;;  %v1277_v61 = vpop.f32.mrb[101].mxu0  ;;  %v1533_v8 = vpop.f32.mrb[101].mxu1 }
 0x1eb   : > { %v1687_v49 = vadd.f32 %v1686_v33, %v1685_v47  ;;  %v4668_v60 = vpop.f32.mrb[102].mxu0  ;;  %v4670_v63 = vpop.f32.mrb[102].mxu1 }
 0x1ec   : > { %8473 = vst [vmem:[#allocation60_spill] sm:$0xff] %v4668_v60  ;;  %8474 = vst [vmem:[#allocation61_spill] sm:$0xff] %v4670_v63  ;;  %v1688_v12 = vsel %vm1586_vm0, %v4668_v60, 0.0  ;;  %v1280_v25 = vpop.f32.mrb[103].mxu0  ;;  %v1536_v31 = vpop.f32.mrb[103].mxu1 }
 0x1ed   : > { %v1689_v9 = vadd.f32 %v1688_v12, %v1687_v49 }
 0x1f1   : > { %v4674_v23 = vpop.f32.mrb[104].mxu0  ;;  %v4676_v14 = vpop.f32.mrb[104].mxu1 }
 0x1f2   : > { %8475 = vst [vmem:[#allocation62_spill] sm:$0xff] %v4674_v23  ;;  %8476 = vst [vmem:[#allocation63_spill] sm:$0xff] %v4676_v14  ;;  %v1690_v44 = vsel %vm1586_vm0, %v4674_v23, 0.0  ;;  %v1285_v61 = vpop.f32.mrb[105].mxu0  ;;  %v1541_v8 = vpop.f32.mrb[105].mxu1 }
 0x1f3   : > { %v1691_v33 = vadd.f32 %v1690_v44, %v1689_v9  ;;  %v4680_v47 = vpop.f32.mrb[106].mxu0  ;;  %v4682_v5 = vpop.f32.mrb[106].mxu1 }
 0x1f4   : > { %8477 = vst [vmem:[#allocation64_spill] sm:$0xff] %v4680_v47  ;;  %8478 = vst [vmem:[#allocation65_spill] sm:$0xff] %v4682_v5  ;;  %v1692_v60 = vsel %vm1586_vm0, %v4680_v47, 0.0  ;;  %v1288_v25 = vpop.f32.mrb[107].mxu0  ;;  %v1544_v31 = vpop.f32.mrb[107].mxu1 }
 0x1f5   : > { %v1693_v12 = vadd.f32 %v1692_v60, %v1691_v33 }
 0x1f9   : > { %v4686_v49 = vpop.f32.mrb[108].mxu0  ;;  %v4688_v63 = vpop.f32.mrb[108].mxu1 }
 0x1fa   : > { %8479 = vst [vmem:[#allocation66_spill] sm:$0xff] %v4686_v49  ;;  %8480 = vst [vmem:[#allocation67_spill] sm:$0xff] %v4688_v63  ;;  %v1694_v23 = vsel %vm1586_vm0, %v4686_v49, 0.0  ;;  %v1293_v61 = vpop.f32.mrb[109].mxu0  ;;  %v1549_v8 = vpop.f32.mrb[109].mxu1 }
 0x1fb   : > { %v1695_v44 = vadd.f32 %v1694_v23, %v1693_v12  ;;  %v4692_v9 = vpop.f32.mrb[110].mxu0  ;;  %v4694_v14 = vpop.f32.mrb[110].mxu1 }
 0x1fc   : > { %8481 = vst [vmem:[#allocation68_spill] sm:$0xff] %v4692_v9  ;;  %8482 = vst [vmem:[#allocation69_spill] sm:$0xff] %v4694_v14  ;;  %v1696_v47 = vsel %vm1586_vm0, %v4692_v9, 0.0  ;;  %v1296_v25 = vpop.f32.mrb[111].mxu0  ;;  %v1552_v31 = vpop.f32.mrb[111].mxu1 }
 0x1fd   : > { %v1697_v60 = vadd.f32 %v1696_v47, %v1695_v44 }
 0x201   : > { %v4698_v33 = vpop.f32.mrb[112].mxu0  ;;  %v4700_v5 = vpop.f32.mrb[112].mxu1 }
 0x202   : > { %8483 = vst [vmem:[#allocation70_spill] sm:$0xff] %v4698_v33  ;;  %8484 = vst [vmem:[#allocation71_spill] sm:$0xff] %v4700_v5  ;;  %v1698_v49 = vsel %vm1586_vm0, %v4698_v33, 0.0  ;;  %v1301_v61 = vpop.f32.mrb[113].mxu0  ;;  %v1557_v8 = vpop.f32.mrb[113].mxu1 }
 0x203   : > { %v1699_v23 = vadd.f32 %v1698_v49, %v1697_v60  ;;  %v4704_v12 = vpop.f32.mrb[114].mxu0  ;;  %v4706_v63 = vpop.f32.mrb[114].mxu1 }
 0x204   : > { %8485 = vst [vmem:[#allocation72_spill] sm:$0xff] %v4704_v12  ;;  %8486 = vst [vmem:[#allocation73_spill] sm:$0xff] %v4706_v63  ;;  %v1700_v9 = vsel %vm1586_vm0, %v4704_v12, 0.0  ;;  %v1304_v25 = vpop.f32.mrb[115].mxu0  ;;  %v1560_v31 = vpop.f32.mrb[115].mxu1 }
 0x205   : > { %v1701_v47 = vadd.f32 %v1700_v9, %v1699_v23 }
 0x209   : > { %v4710_v44 = vpop.f32.mrb[116].mxu0  ;;  %v4712_v14 = vpop.f32.mrb[116].mxu1 }
 0x20a   : > { %8487 = vst [vmem:[#allocation74_spill] sm:$0xff] %v4710_v44  ;;  %8488 = vst [vmem:[#allocation75_spill] sm:$0xff] %v4712_v14  ;;  %v1702_v33 = vsel %vm1586_vm0, %v4710_v44, 0.0  ;;  %v1309_v61 = vpop.f32.mrb[117].mxu0  ;;  %v1565_v8 = vpop.f32.mrb[117].mxu1 }
 0x20b   : > { %v1703_v49 = vadd.f32 %v1702_v33, %v1701_v47  ;;  %v4716_v60 = vpop.f32.mrb[118].mxu0  ;;  %v4718_v5 = vpop.f32.mrb[118].mxu1 }
 0x20c   : > { %8489 = vst [vmem:[#allocation76_spill] sm:$0xff] %v4716_v60  ;;  %8490 = vst [vmem:[#allocation77_spill] sm:$0xff] %v4718_v5  ;;  %v1704_v12 = vsel %vm1586_vm0, %v4716_v60, 0.0  ;;  %v1312_v25 = vpop.f32.mrb[119].mxu0  ;;  %v1568_v31 = vpop.f32.mrb[119].mxu1 }
 0x20d   : > { %v1705_v9 = vadd.f32 %v1704_v12, %v1703_v49 }
 0x211   : > { %v4722_v23 = vpop.f32.mrb[120].mxu0  ;;  %v4724_v63 = vpop.f32.mrb[120].mxu1 }
 0x212   : > { %8491 = vst [vmem:[#allocation78_spill] sm:$0xff] %v4722_v23  ;;  %8492 = vst [vmem:[#allocation79_spill] sm:$0xff] %v4724_v63  ;;  %v1706_v44 = vsel %vm1586_vm0, %v4722_v23, 0.0  ;;  %v1317_v61 = vpop.f32.mrb[121].mxu0  ;;  %v1573_v8 = vpop.f32.mrb[121].mxu1 }
 0x213   : > { %v1707_v33 = vadd.f32 %v1706_v44, %v1705_v9  ;;  %v4728_v47 = vpop.f32.mrb[122].mxu0  ;;  %v4730_v14 = vpop.f32.mrb[122].mxu1 }
 0x214   : > { %8493 = vst [vmem:[#allocation80_spill] sm:$0xff] %v4728_v47  ;;  %v1708_v60 = vsel %vm1586_vm0, %v4728_v47, 0.0  ;;  %v1320_v25 = vpop.f32.mrb[123].mxu0  ;;  %v1576_v31 = vpop.f32.mrb[123].mxu1 }
 0x215   : > { %v1709_v12 = vadd.f32 %v1708_v60, %v1707_v33  ;;  %v1714_v33 = vsel %vm1586_vm0, %v4346_v0, 0.0 }
 0x219   : > { %v4734_v49 = vpop.f32.mrb[124].mxu0  ;;  %v4736_v5 = vpop.f32.mrb[124].mxu1 }
 0x21a   : > { %8494 = vst [vmem:[#allocation81_spill] sm:$0xff] %v4734_v49  ;;  %8495 = vst [vmem:[#allocation82_spill] sm:$0xff] %v4736_v5  ;;  %v1710_v23 = vsel %vm1586_vm0, %v4734_v49, 0.0  ;;  %v1325_v61 = vpop.f32.mrb[125].mxu0  ;;  %v1581_v8 = vpop.f32.mrb[125].mxu1  ;;  %v1716_v49 = vsel %vm1586_vm0, %v4353_v7, 0.0 }
 0x21b   : > { %v1711_v44 = vadd.f32 %v1710_v23, %v1709_v12  ;;  %v4740_v9 = vpop.f32.mrb[126].mxu0  ;;  %v4742_v63 = vpop.f32.mrb[126].mxu1  ;;  %v1718_v23 = vsel %vm1586_vm0, %v4363_v16, 0.0  ;;  %v1720_v8 = vsel %vm1586_vm0, %v4371_v24, 0.0 }
 0x21c   : > { %8496 = vst [vmem:[#allocation83_spill] sm:$0xff] %v4742_v63  ;;  %v1712_v47 = vsel %vm1586_vm0, %v4740_v9, 0.0  ;;  %v1328_v25 = vpop.f32.mrb[127].mxu0  ;;  %v1584_v31 = vpop.f32.mrb[127].mxu1 }
 0x21d   : > { %v1713_v60 = vadd.f32 %v1712_v47, %v1711_v44  ;;  %v1722_v25 = vsel %vm1586_vm0, %v4379_v32, 0.0  ;;  %v1724_v44 = vsel %vm1586_vm0, %v4387_v40, 0.0 }
 0x21f   : > { %v1715_v5 = vadd.f32 %v1714_v33, %v1713_v60  ;;  %v1726_v60 = vsel %vm1586_vm0, %v4395_v48, 0.0 }
 0x221   : > { %v1717_v61 = vadd.f32 %v1716_v49, %v1715_v5  ;;  %v1728_v49 = vsel %vm1586_vm0, %v4403_v56, 0.0 }
 0x223   : > { %v1719_v12 = vadd.f32 %v1718_v23, %v1717_v61  ;;  %v1730_v61 = vsel %vm1586_vm0, %v4411_v2, 0.0 }
 0x225   : > { %v1721_v63 = vadd.f32 %v1720_v8, %v1719_v12  ;;  %v1732_v12 = vsel %vm1586_vm0, %v4418_v11, 0.0  ;;  %v1734_v8 = vsel %vm1586_vm0, %v4424_v19, 0.0 }
 0x227   : > { %v1723_v47 = vadd.f32 %v1722_v25, %v1721_v63 }
 0x229   : > { %v1725_v31 = vadd.f32 %v1724_v44, %v1723_v47  ;;  %v1736_v47 = vsel %vm1586_vm0, %v4430_v27, 0.0 }
 0x22b   : > { %v1727_v5 = vadd.f32 %v1726_v60, %v1725_v31  ;;  %v1738_v31 = vsel %vm1586_vm0, %v4436_v35, 0.0 }
 0x22d   : > { %v1729_v33 = vadd.f32 %v1728_v49, %v1727_v5  ;;  %v1740_v5 = vsel %vm1586_vm0, %v4442_v43, 0.0 }
 0x22f   : > { %v1731_v23 = vadd.f32 %v1730_v61, %v1729_v33  ;;  %v1742_v33 = vsel %vm1586_vm0, %v4448_v51, 0.0 }
 0x231   : > { %v1733_v63 = vadd.f32 %v1732_v12, %v1731_v23  ;;  %v1744_v23 = vsel %vm1586_vm0, %v4454_v59, 0.0 }
 0x233   : > { %v1735_v25 = vadd.f32 %v1734_v8, %v1733_v63  ;;  %v1746_v63 = vsel %vm1586_vm0, %v4460_v6, 0.0 }
 0x235   : > { %v1737_v44 = vadd.f32 %v1736_v47, %v1735_v25  ;;  %v1748_v25 = vsel %vm1586_vm0, %v4466_v17, 0.0 }
 0x237   : > { %v1739_v60 = vadd.f32 %v1738_v31, %v1737_v44  ;;  %v1750_v44 = vsel %vm1586_vm0, %v4472_v29, 0.0 }
 0x239   : > { %v1741_v49 = vadd.f32 %v1740_v5, %v1739_v60  ;;  %v1752_v60 = vsel %vm1586_vm0, %v4478_v41, 0.0 }
 0x23b   : > { %v1743_v61 = vadd.f32 %v1742_v33, %v1741_v49  ;;  %v1754_v49 = vsel %vm1586_vm0, %v4484_v53, 0.0 }
 0x23d   : > { %v1745_v12 = vadd.f32 %v1744_v23, %v1743_v61  ;;  %v1756_v61 = vsel %vm1586_vm0, %v4490_v3, 0.0 }
 0x23f   : > { %v1747_v8 = vadd.f32 %v1746_v63, %v1745_v12  ;;  %v1758_v12 = vsel %vm1586_vm0, %v4496_v21, 0.0 }
 0x241   : > { %v1749_v47 = vadd.f32 %v1748_v25, %v1747_v8  ;;  %v1760_v8 = vsel %vm1586_vm0, %v4502_v37, 0.0 }
 0x243   : > { %v1751_v31 = vadd.f32 %v1750_v44, %v1749_v47  ;;  %v1762_v47 = vsel %vm1586_vm0, %v4508_v57, 0.0 }
 0x245   : > { %v1753_v5 = vadd.f32 %v1752_v60, %v1751_v31  ;;  %v1764_v31 = vsel %vm1586_vm0, %v4514_v13, 0.0 }
 0x247   : > { %v1755_v33 = vadd.f32 %v1754_v49, %v1753_v5  ;;  %v1766_v5 = vsel %vm1586_vm0, %v4520_v45, 0.0 }
 0x249   : > { %v1757_v23 = vadd.f32 %v1756_v61, %v1755_v33  ;;  %v1768_v33 = vsel %vm1586_vm0, %v4526_v55, 0.0 }
 0x24b   : > { %v1759_v63 = vadd.f32 %v1758_v12, %v1757_v23  ;;  %v1770_v23 = vsel %vm1586_vm0, %v4532_v36, 0.0 }
 0x24d   : > { %v1761_v25 = vadd.f32 %v1760_v8, %v1759_v63  ;;  %v1772_v63 = vsel %vm1586_vm0, %v4538_v20, 0.0 }
 0x24f   : > { %v1763_v44 = vadd.f32 %v1762_v47, %v1761_v25  ;;  %v1774_v25 = vsel %vm1586_vm0, %v4544_v1, 0.0 }
 0x251   : > { %v1765_v60 = vadd.f32 %v1764_v31, %v1763_v44  ;;  %v1776_v44 = vsel %vm1586_vm0, %v4550_v52, 0.0 }
 0x253   : > { %v1767_v49 = vadd.f32 %v1766_v5, %v1765_v60  ;;  %v1778_v60 = vsel %vm1586_vm0, %v4556_v39, 0.0 }
 0x255   : > { %v1769_v61 = vadd.f32 %v1768_v33, %v1767_v49  ;;  %v1780_v49 = vsel %vm1586_vm0, %v4562_v28, 0.0 }
 0x257   : > { %v1771_v12 = vadd.f32 %v1770_v23, %v1769_v61  ;;  %v1782_v61 = vsel %vm1586_vm0, %v4568_v15, 0.0 }
 0x259   : > { %v1773_v8 = vadd.f32 %v1772_v63, %v1771_v12  ;;  %v1784_v12 = vsel %vm1586_vm0, %v4574_v4, 0.0 }
 0x25b   : > { %v1775_v47 = vadd.f32 %v1774_v25, %v1773_v8  ;;  %v1786_v8 = vsel %vm1586_vm0, %v4580_v58, 0.0 }
 0x25d   : > { %v1777_v31 = vadd.f32 %v1776_v44, %v1775_v47  ;;  %v1788_v47 = vsel %vm1586_vm0, %v4586_v50, 0.0 }
 0x25f   : > { %v1779_v5 = vadd.f32 %v1778_v60, %v1777_v31  ;;  %v1790_v31 = vsel %vm1586_vm0, %v4592_v42, 0.0 }
 0x261   : > { %v1781_v33 = vadd.f32 %v1780_v49, %v1779_v5  ;;  %v1792_v5 = vsel %vm1586_vm0, %v4598_v34, 0.0 }
 0x263   : > { %v1783_v23 = vadd.f32 %v1782_v61, %v1781_v33  ;;  %v1794_v33 = vsel %vm1586_vm0, %v4604_v26, 0.0 }
 0x265   : > { %v1785_v63 = vadd.f32 %v1784_v12, %v1783_v23  ;;  %v1796_v23 = vsel %vm1586_vm0, %v4610_v18, 0.0 }
 0x267   : > { %v1787_v25 = vadd.f32 %v1786_v8, %v1785_v63  ;;  %v1798_v63 = vsel %vm1586_vm0, %v4616_v10, 0.0 }
 0x269   : > { %v1789_v44 = vadd.f32 %v1788_v47, %v1787_v25  ;;  %v1800_v25 = vsel %vm1586_vm0, %v4622_v62, 0.0 }
 0x26b   : > { %v1791_v60 = vadd.f32 %v1790_v31, %v1789_v44  ;;  %v1802_v44 = vsel %vm1586_vm0, %v4628_v54, 0.0 }
 0x26d   : > { %v1793_v49 = vadd.f32 %v1792_v5, %v1791_v60  ;;  %v1804_v60 = vsel %vm1586_vm0, %v4634_v46, 0.0 }
 0x26f   : > { %v1795_v61 = vadd.f32 %v1794_v33, %v1793_v49  ;;  %v1806_v49 = vsel %vm1586_vm0, %v4640_v38, 0.0 }
 0x271   : > { %v1797_v12 = vadd.f32 %v1796_v23, %v1795_v61  ;;  %v1808_v61 = vsel %vm1586_vm0, %v4646_v30, 0.0 }
 0x273   : > { %v1799_v8 = vadd.f32 %v1798_v63, %v1797_v12  ;;  %v1810_v12 = vsel %vm1586_vm0, %v4652_v22, 0.0 }
 0x275   : > { %v1801_v47 = vadd.f32 %v1800_v25, %v1799_v8  ;;  %v8497_v8 = vld [vmem:[#allocation57_spill] sm:$0xff] }
 0x276   : > { %v1812_v25 = vsel %vm1586_vm0, %v8497_v8, 0.0 }
 0x277   : > { %v1803_v31 = vadd.f32 %v1802_v44, %v1801_v47  ;;  %v8498_v44 = vld [vmem:[#allocation59_spill] sm:$0xff] }
 0x278   : > { %v1814_v46 = vsel %vm1586_vm0, %v8498_v44, 0.0 }
 0x279   : > { %v1805_v5 = vadd.f32 %v1804_v60, %v1803_v31  ;;  %v8499_v60 = vld [vmem:[#allocation61_spill] sm:$0xff] }
 0x27a   : > { %v1816_v38 = vsel %vm1586_vm0, %v8499_v60, 0.0 }
 0x27b   : > { %v1807_v33 = vadd.f32 %v1806_v49, %v1805_v5  ;;  %v8500_v49 = vld [vmem:[#allocation63_spill] sm:$0xff] }
 0x27c   : > { %v1818_v30 = vsel %vm1586_vm0, %v8500_v49, 0.0 }
 0x27d   : > { %v1809_v23 = vadd.f32 %v1808_v61, %v1807_v33  ;;  %v8501_v61 = vld [vmem:[#allocation65_spill] sm:$0xff] }
 0x27e   : > { %v1820_v22 = vsel %vm1586_vm0, %v8501_v61, 0.0 }
 0x27f   : > { %v1811_v63 = vadd.f32 %v1810_v12, %v1809_v23  ;;  %v8502_v12 = vld [vmem:[#allocation67_spill] sm:$0xff] }
 0x280   : > { %v1822_v8 = vsel %vm1586_vm0, %v8502_v12, 0.0 }
 0x281   : > { %v1813_v47 = vadd.f32 %v1812_v25, %v1811_v63  ;;  %v8503_v25 = vld [vmem:[#allocation69_spill] sm:$0xff] }
 0x282   : > { %v1824_v44 = vsel %vm1586_vm0, %v8503_v25, 0.0 }
 0x283   : > { %v1815_v31 = vadd.f32 %v1814_v46, %v1813_v47  ;;  %v8504_v47 = vld [vmem:[#allocation71_spill] sm:$0xff] }
 0x284   : > { %v1826_v60 = vsel %vm1586_vm0, %v8504_v47, 0.0 }
 0x285   : > { %v1817_v5 = vadd.f32 %v1816_v38, %v1815_v31  ;;  %v8505_v31 = vld [vmem:[#allocation73_spill] sm:$0xff] }
 0x286   : > { %v1828_v49 = vsel %vm1586_vm0, %v8505_v31, 0.0 }
 0x287   : > { %v1819_v33 = vadd.f32 %v1818_v30, %v1817_v5  ;;  %v8506_v5 = vld [vmem:[#allocation75_spill] sm:$0xff] }
 0x288   : > { %v1830_v61 = vsel %vm1586_vm0, %v8506_v5, 0.0 }
 0x289   : > { %v1821_v23 = vadd.f32 %v1820_v22, %v1819_v33  ;;  %v8507_v33 = vld [vmem:[#allocation77_spill] sm:$0xff] }
 0x28a   : > { %v1832_v12 = vsel %vm1586_vm0, %v8507_v33, 0.0 }
 0x28b   : > { %v1823_v63 = vadd.f32 %v1822_v8, %v1821_v23  ;;  %v8508_v23 = vld [vmem:[#allocation79_spill] sm:$0xff] }
 0x28c   : > { %v1834_v25 = vsel %vm1586_vm0, %v8508_v23, 0.0 }
 0x28d   : > { %v1825_v46 = vadd.f32 %v1824_v44, %v1823_v63  ;;  %v1836_v63 = vsel %vm1586_vm0, %v4730_v14, 0.0 }
 0x28f   : > { %v1827_v38 = vadd.f32 %v1826_v60, %v1825_v46  ;;  %v8509_v60 = vld [vmem:[#allocation82_spill] sm:$0xff] }
 0x290   : > { %v1838_v46 = vsel %vm1586_vm0, %v8509_v60, 0.0  ;;  %v8513_v60 = vld [vmem:[#allocation3_spill] sm:$0xff] }
 0x291   : > { %v1829_v30 = vadd.f32 %v1828_v49, %v1827_v38  ;;  %v8510_v38 = vld [vmem:[#allocation83_spill] sm:$0xff] }
 0x292   : > { %v1840_v5 = vsel %vm1586_vm0, %v8510_v38, 0.0 }
 0x293   : > { %v1831_v22 = vadd.f32 %v1830_v61, %v1829_v30 }
 0x295   : > { %v1833_v8 = vadd.f32 %v1832_v12, %v1831_v22 }
 0x297   : > { %v1835_v44 = vadd.f32 %v1834_v25, %v1833_v8  ;;  %v8511_v25 = vld [vmem:[#allocation2_spill] sm:$0xff] }
 0x299   : > { %v1837_v31 = vadd.f32 %v1836_v63, %v1835_v44 }
 0x29b   : > { %v1839_v49 = vadd.f32 %v1838_v46, %v1837_v31  ;;  %v8515_v31 = vld [vmem:[#allocation4_spill] sm:$0xff] }
 0x29d   : > { %v1841_v61 = vadd.f32 %v1840_v5, %v1839_v49  ;;  %v8517_v5 = vld [vmem:[#allocation5_spill] sm:$0xff] }
 0x29f   : > { %v1842_v30 = vrot.slane %v1841_v61, 4 }
 0x2a1   : > { %v1843_v47 = vadd.f32 %v1842_v30, %v1841_v61  ;;  %v8523_v61 = vld [vmem:[#allocation8_spill] sm:$0xff]  ;;  %v8525_v30 = vld [vmem:[#allocation9_spill] sm:$0xff] }
 0x2a3   : > { %v1844_v33 = vrot.slane %v1843_v47, 2 }
 0x2a5   : > { %v1845_v12 = vadd.f32 %v1844_v33, %v1843_v47  ;;  %v8519_v47 = vld [vmem:[#allocation6_spill] sm:$0xff]  ;;  %v8521_v33 = vld [vmem:[#allocation7_spill] sm:$0xff] }
 0x2a7   : > { %v1846_v22 = vrot.slane %v1845_v12, 1 }
 0x2a9   : > { %v1847_v54 = vadd.f32 %v1846_v22, %v1845_v12  ;;  %v8527_v22 = vld [vmem:[#allocation10_spill] sm:$0xff] }
 0x2ab   : > { %v4874_v23 = vmul.f32 0.0009765625, %v1847_v54 }
 0x2ad   : > { %v4878_v8 = vsub.f32 %v8511_v25, %v4874_v23  ;;  %v4882_v44 = vsub.f32 %v8513_v60, %v4874_v23  ;;  %v4886_v63 = vsub.f32 %v8515_v31, %v4874_v23  ;;  %v4890_v46 = vsub.f32 %v8517_v5, %v4874_v23  ;;  %v8529_v31 = vld [vmem:[#allocation11_spill] sm:$0xff] }
 0x2ae   : > { %v4894_v54 = vsub.f32 %v8519_v47, %v4874_v23  ;;  %v4898_v49 = vsub.f32 %v8521_v33, %v4874_v23  ;;  %v4902_v60 = vsub.f32 %v8523_v61, %v4874_v23  ;;  %v4906_v12 = vsub.f32 %v8525_v30, %v4874_v23  ;;  %v8531_v47 = vld [vmem:[#allocation12_spill] sm:$0xff] }
 0x2af   : > { %8512 = vst [vmem:[#allocation83_spill] sm:$0xff] %v4878_v8  ;;  %8514 = vst [vmem:[#allocation2_spill] sm:$0xff] %v4882_v44  ;;  %v4910_v25 = vsub.f32 %v8527_v22, %v4874_v23  ;;  %v4914_v5 = vsub.f32 %v8529_v31, %v4874_v23  ;;  %v4918_v33 = vsub.f32 %v8531_v47, %v4874_v23 }
 0x2b0   : > { %8516 = vst [vmem:[#allocation3_spill] sm:$0xff] %v4886_v63  ;;  %8518 = vst [vmem:[#allocation4_spill] sm:$0xff] %v4890_v46 }
 0x2b1   : > { %8520 = vst [vmem:[#allocation5_spill] sm:$0xff] %v4894_v54  ;;  %8522 = vst [vmem:[#allocation6_spill] sm:$0xff] %v4898_v49  ;;  %v8533_v49 = vld [vmem:[#allocation13_spill] sm:$0xff] }
 0x2b2   : > { %8524 = vst [vmem:[#allocation7_spill] sm:$0xff] %v4902_v60  ;;  %8526 = vst [vmem:[#allocation8_spill] sm:$0xff] %v4906_v12  ;;  %v4922_v61 = vsub.f32 %v8533_v49, %v4874_v23  ;;  %v8535_v60 = vld [vmem:[#allocation14_spill] sm:$0xff]  ;;  %v8537_v12 = vld [vmem:[#allocation15_spill] sm:$0xff] }
 0x2b3   : > { %8528 = vst [vmem:[#allocation9_spill] sm:$0xff] %v4910_v25  ;;  %8530 = vst [vmem:[#allocation10_spill] sm:$0xff] %v4914_v5  ;;  %v4926_v30 = vsub.f32 %v8535_v60, %v4874_v23  ;;  %v4930_v22 = vsub.f32 %v8537_v12, %v4874_v23  ;;  %v8539_v25 = vld [vmem:[#allocation16_spill] sm:$0xff]  ;;  %v8541_v5 = vld [vmem:[#allocation17_spill] sm:$0xff] }
 0x2b4   : > { %8532 = vst [vmem:[#allocation11_spill] sm:$0xff] %v4918_v33  ;;  %8534 = vst [vmem:[#allocation12_spill] sm:$0xff] %v4922_v61  ;;  %v4934_v31 = vsub.f32 %v8539_v25, %v4874_v23  ;;  %v4938_v47 = vsub.f32 %v8541_v5, %v4874_v23  ;;  %v8543_v33 = vld [vmem:[#allocation18_spill] sm:$0xff]  ;;  %v8545_v61 = vld [vmem:[#allocation19_spill] sm:$0xff] }
 0x2b5   : > { %8536 = vst [vmem:[#allocation13_spill] sm:$0xff] %v4926_v30  ;;  %8538 = vst [vmem:[#allocation14_spill] sm:$0xff] %v4930_v22  ;;  %v4942_v49 = vsub.f32 %v8543_v33, %v4874_v23  ;;  %v4946_v60 = vsub.f32 %v8545_v61, %v4874_v23  ;;  %v8547_v30 = vld [vmem:[#allocation20_spill] sm:$0xff]  ;;  %v8549_v22 = vld [vmem:[#allocation21_spill] sm:$0xff] }
 0x2b6   : > { %8540 = vst [vmem:[#allocation15_spill] sm:$0xff] %v4934_v31  ;;  %8542 = vst [vmem:[#allocation16_spill] sm:$0xff] %v4938_v47  ;;  %v4950_v12 = vsub.f32 %v8547_v30, %v4874_v23  ;;  %v4954_v25 = vsub.f32 %v8549_v22, %v4874_v23  ;;  %v8551_v31 = vld [vmem:[#allocation22_spill] sm:$0xff]  ;;  %v8553_v47 = vld [vmem:[#allocation23_spill] sm:$0xff] }
 0x2b7   : > { %8544 = vst [vmem:[#allocation17_spill] sm:$0xff] %v4942_v49  ;;  %8546 = vst [vmem:[#allocation18_spill] sm:$0xff] %v4946_v60  ;;  %v4958_v5 = vsub.f32 %v8551_v31, %v4874_v23  ;;  %v4962_v33 = vsub.f32 %v8553_v47, %v4874_v23  ;;  %v8555_v49 = vld [vmem:[#allocation24_spill] sm:$0xff]  ;;  %v8557_v60 = vld [vmem:[#allocation25_spill] sm:$0xff] }
 0x2b8   : > { %8548 = vst [vmem:[#allocation19_spill] sm:$0xff] %v4950_v12  ;;  %8550 = vst [vmem:[#allocation20_spill] sm:$0xff] %v4954_v25  ;;  %v4966_v61 = vsub.f32 %v8555_v49, %v4874_v23  ;;  %v4970_v30 = vsub.f32 %v8557_v60, %v4874_v23  ;;  %v8559_v12 = vld [vmem:[#allocation26_spill] sm:$0xff]  ;;  %v8561_v25 = vld [vmem:[#allocation27_spill] sm:$0xff] }
 0x2b9   : > { %8552 = vst [vmem:[#allocation21_spill] sm:$0xff] %v4958_v5  ;;  %8554 = vst [vmem:[#allocation22_spill] sm:$0xff] %v4962_v33  ;;  %v4974_v22 = vsub.f32 %v8559_v12, %v4874_v23  ;;  %v4978_v31 = vsub.f32 %v8561_v25, %v4874_v23  ;;  %v8563_v5 = vld [vmem:[#allocation28_spill] sm:$0xff]  ;;  %v8565_v33 = vld [vmem:[#allocation29_spill] sm:$0xff] }
 0x2ba   : > { %8556 = vst [vmem:[#allocation23_spill] sm:$0xff] %v4966_v61  ;;  %8558 = vst [vmem:[#allocation24_spill] sm:$0xff] %v4970_v30  ;;  %v4982_v47 = vsub.f32 %v8563_v5, %v4874_v23  ;;  %v4986_v49 = vsub.f32 %v8565_v33, %v4874_v23  ;;  %v8567_v61 = vld [vmem:[#allocation30_spill] sm:$0xff]  ;;  %v8569_v30 = vld [vmem:[#allocation31_spill] sm:$0xff] }
 0x2bb   : > { %8560 = vst [vmem:[#allocation25_spill] sm:$0xff] %v4974_v22  ;;  %8562 = vst [vmem:[#allocation26_spill] sm:$0xff] %v4978_v31  ;;  %v4990_v60 = vsub.f32 %v8567_v61, %v4874_v23  ;;  %v4994_v12 = vsub.f32 %v8569_v30, %v4874_v23  ;;  %v8571_v22 = vld [vmem:[#allocation32_spill] sm:$0xff]  ;;  %v8573_v31 = vld [vmem:[#allocation33_spill] sm:$0xff] }
 0x2bc   : > { %8564 = vst [vmem:[#allocation27_spill] sm:$0xff] %v4982_v47  ;;  %8566 = vst [vmem:[#allocation28_spill] sm:$0xff] %v4986_v49  ;;  %v4998_v25 = vsub.f32 %v8571_v22, %v4874_v23  ;;  %v5002_v5 = vsub.f32 %v8573_v31, %v4874_v23  ;;  %v8575_v47 = vld [vmem:[#allocation34_spill] sm:$0xff]  ;;  %v8577_v49 = vld [vmem:[#allocation35_spill] sm:$0xff] }
 0x2bd   : > { %8568 = vst [vmem:[#allocation29_spill] sm:$0xff] %v4990_v60  ;;  %8570 = vst [vmem:[#allocation30_spill] sm:$0xff] %v4994_v12  ;;  %v5006_v33 = vsub.f32 %v8575_v47, %v4874_v23  ;;  %v5010_v61 = vsub.f32 %v8577_v49, %v4874_v23  ;;  %v8579_v60 = vld [vmem:[#allocation36_spill] sm:$0xff]  ;;  %v8581_v12 = vld [vmem:[#allocation37_spill] sm:$0xff] }
 0x2be   : > { %8572 = vst [vmem:[#allocation31_spill] sm:$0xff] %v4998_v25  ;;  %8574 = vst [vmem:[#allocation32_spill] sm:$0xff] %v5002_v5  ;;  %v5014_v30 = vsub.f32 %v8579_v60, %v4874_v23  ;;  %v5018_v22 = vsub.f32 %v8581_v12, %v4874_v23  ;;  %v8583_v25 = vld [vmem:[#allocation38_spill] sm:$0xff]  ;;  %v8585_v5 = vld [vmem:[#allocation39_spill] sm:$0xff] }
 0x2bf   : > { %8576 = vst [vmem:[#allocation33_spill] sm:$0xff] %v5006_v33  ;;  %8578 = vst [vmem:[#allocation34_spill] sm:$0xff] %v5010_v61  ;;  %v5022_v31 = vsub.f32 %v8583_v25, %v4874_v23  ;;  %v5026_v47 = vsub.f32 %v8585_v5, %v4874_v23  ;;  %v8587_v33 = vld [vmem:[#allocation40_spill] sm:$0xff]  ;;  %v8589_v61 = vld [vmem:[#allocation41_spill] sm:$0xff] }
 0x2c0   : > { %8580 = vst [vmem:[#allocation35_spill] sm:$0xff] %v5014_v30  ;;  %8582 = vst [vmem:[#allocation36_spill] sm:$0xff] %v5018_v22  ;;  %v5030_v49 = vsub.f32 %v8587_v33, %v4874_v23  ;;  %v5034_v60 = vsub.f32 %v8589_v61, %v4874_v23  ;;  %v8591_v30 = vld [vmem:[#allocation42_spill] sm:$0xff]  ;;  %v8593_v22 = vld [vmem:[#allocation43_spill] sm:$0xff] }
 0x2c1   : > { %8584 = vst [vmem:[#allocation37_spill] sm:$0xff] %v5022_v31  ;;  %8586 = vst [vmem:[#allocation38_spill] sm:$0xff] %v5026_v47  ;;  %v5038_v12 = vsub.f32 %v8591_v30, %v4874_v23  ;;  %v5042_v25 = vsub.f32 %v8593_v22, %v4874_v23  ;;  %v8595_v31 = vld [vmem:[#allocation44_spill] sm:$0xff]  ;;  %v8597_v47 = vld [vmem:[#allocation45_spill] sm:$0xff] }
 0x2c2   : > { %8588 = vst [vmem:[#allocation39_spill] sm:$0xff] %v5030_v49  ;;  %8590 = vst [vmem:[#allocation40_spill] sm:$0xff] %v5034_v60  ;;  %v5046_v5 = vsub.f32 %v8595_v31, %v4874_v23  ;;  %v5050_v33 = vsub.f32 %v8597_v47, %v4874_v23  ;;  %v8599_v49 = vld [vmem:[#allocation46_spill] sm:$0xff]  ;;  %v8601_v60 = vld [vmem:[#allocation48_spill] sm:$0xff] }
 0x2c3   : > { %8592 = vst [vmem:[#allocation41_spill] sm:$0xff] %v5038_v12  ;;  %8594 = vst [vmem:[#allocation42_spill] sm:$0xff] %v5042_v25  ;;  %v5054_v61 = vsub.f32 %v8599_v49, %v4874_v23  ;;  %v5058_v30 = vsub.f32 %v8601_v60, %v4874_v23  ;;  %v8603_v12 = vld [vmem:[#allocation50_spill] sm:$0xff]  ;;  %v8605_v25 = vld [vmem:[#allocation52_spill] sm:$0xff] }
 0x2c4   : > { %8596 = vst [vmem:[#allocation43_spill] sm:$0xff] %v5046_v5  ;;  %8598 = vst [vmem:[#allocation44_spill] sm:$0xff] %v5050_v33  ;;  %v5062_v22 = vsub.f32 %v8603_v12, %v4874_v23  ;;  %v5066_v31 = vsub.f32 %v8605_v25, %v4874_v23  ;;  %v8607_v5 = vld [vmem:[#allocation54_spill] sm:$0xff]  ;;  %v8609_v33 = vld [vmem:[#allocation56_spill] sm:$0xff] }
 0x2c5   : > { %8600 = vst [vmem:[#allocation45_spill] sm:$0xff] %v5054_v61  ;;  %8602 = vst [vmem:[#allocation46_spill] sm:$0xff] %v5058_v30  ;;  %v5070_v47 = vsub.f32 %v8607_v5, %v4874_v23  ;;  %v5074_v49 = vsub.f32 %v8609_v33, %v4874_v23  ;;  %v8611_v61 = vld [vmem:[#allocation58_spill] sm:$0xff]  ;;  %v8613_v30 = vld [vmem:[#allocation60_spill] sm:$0xff] }
 0x2c6   : > { %8604 = vst [vmem:[#allocation48_spill] sm:$0xff] %v5062_v22  ;;  %8606 = vst [vmem:[#allocation50_spill] sm:$0xff] %v5066_v31  ;;  %v5078_v60 = vsub.f32 %v8611_v61, %v4874_v23  ;;  %v5082_v12 = vsub.f32 %v8613_v30, %v4874_v23  ;;  %v8615_v22 = vld [vmem:[#allocation62_spill] sm:$0xff]  ;;  %v8617_v31 = vld [vmem:[#allocation64_spill] sm:$0xff] }
 0x2c7   : > { %8608 = vst [vmem:[#allocation52_spill] sm:$0xff] %v5070_v47  ;;  %8610 = vst [vmem:[#allocation54_spill] sm:$0xff] %v5074_v49  ;;  %v5086_v25 = vsub.f32 %v8615_v22, %v4874_v23  ;;  %v5090_v5 = vsub.f32 %v8617_v31, %v4874_v23  ;;  %v8619_v47 = vld [vmem:[#allocation66_spill] sm:$0xff]  ;;  %v8621_v49 = vld [vmem:[#allocation68_spill] sm:$0xff] }
 0x2c8   : > { %8612 = vst [vmem:[#allocation56_spill] sm:$0xff] %v5078_v60  ;;  %8614 = vst [vmem:[#allocation58_spill] sm:$0xff] %v5082_v12  ;;  %v5094_v33 = vsub.f32 %v8619_v47, %v4874_v23  ;;  %v5098_v61 = vsub.f32 %v8621_v49, %v4874_v23  ;;  %v8623_v60 = vld [vmem:[#allocation70_spill] sm:$0xff]  ;;  %v8625_v12 = vld [vmem:[#allocation72_spill] sm:$0xff] }
 0x2c9   : > { %8616 = vst [vmem:[#allocation60_spill] sm:$0xff] %v5086_v25  ;;  %8618 = vst [vmem:[#allocation62_spill] sm:$0xff] %v5090_v5  ;;  %v5102_v30 = vsub.f32 %v8623_v60, %v4874_v23  ;;  %v5106_v22 = vsub.f32 %v8625_v12, %v4874_v23  ;;  %v8626_v25 = vld [vmem:[#allocation74_spill] sm:$0xff]  ;;  %v8627_v5 = vld [vmem:[#allocation76_spill] sm:$0xff] }
 0x2ca   : > { %8620 = vst [vmem:[#allocation64_spill] sm:$0xff] %v5094_v33  ;;  %8622 = vst [vmem:[#allocation66_spill] sm:$0xff] %v5098_v61  ;;  %v5110_v31 = vsub.f32 %v8626_v25, %v4874_v23  ;;  %v5114_v47 = vsub.f32 %v8627_v5, %v4874_v23  ;;  %v8628_v33 = vld [vmem:[#allocation78_spill] sm:$0xff]  ;;  %v8629_v61 = vld [vmem:[#allocation80_spill] sm:$0xff]  ;;  %v5130_v25 = vsub.f32 %v4740_v9, %v4874_v23 }
 0x2cb   : > { %8624 = vst [vmem:[#allocation68_spill] sm:$0xff] %v5102_v30  ;;  %v5118_v49 = vsub.f32 %v8628_v33, %v4874_v23  ;;  %v5122_v60 = vsub.f32 %v8629_v61, %v4874_v23  ;;  %v8630_v30 = vld [vmem:[#allocation81_spill] sm:$0xff]  ;;  %v5134_v5 = vsub.f32 %v4346_v0, %v4874_v23  ;;  %v5138_v33 = vsub.f32 %v4353_v7, %v4874_v23 }
 0x2cc   : > { %v5126_v12 = vsub.f32 %v8630_v30, %v4874_v23  ;;  %v5142_v61 = vsub.f32 %v4363_v16, %v4874_v23  ;;  %v5146_v30 = vsub.f32 %v4371_v24, %v4874_v23  ;;  %v5150_v9 = vsub.f32 %v4379_v32, %v4874_v23 }
 0x2cd   : > { %v5154_v0 = vsub.f32 %v4387_v40, %v4874_v23  ;;  %v5158_v7 = vsub.f32 %v4395_v48, %v4874_v23  ;;  %v5162_v16 = vsub.f32 %v4403_v56, %v4874_v23  ;;  %v5166_v24 = vsub.f32 %v4411_v2, %v4874_v23 }
 0x2ce   : > { %v5170_v32 = vsub.f32 %v4418_v11, %v4874_v23  ;;  %v5174_v40 = vsub.f32 %v4424_v19, %v4874_v23  ;;  %v5178_v48 = vsub.f32 %v4430_v27, %v4874_v23  ;;  %v5182_v56 = vsub.f32 %v4436_v35, %v4874_v23 }
 0x2cf   : > { %v5186_v2 = vsub.f32 %v4442_v43, %v4874_v23  ;;  %v5190_v11 = vsub.f32 %v4448_v51, %v4874_v23  ;;  %v5194_v19 = vsub.f32 %v4454_v59, %v4874_v23  ;;  %v5198_v27 = vsub.f32 %v4460_v6, %v4874_v23 }
 0x2d0   : > { %v5202_v35 = vsub.f32 %v4466_v17, %v4874_v23  ;;  %v5206_v43 = vsub.f32 %v4472_v29, %v4874_v23  ;;  %v5210_v51 = vsub.f32 %v4478_v41, %v4874_v23  ;;  %v5214_v59 = vsub.f32 %v4484_v53, %v4874_v23 }
 0x2d1   : > { %v5218_v6 = vsub.f32 %v4490_v3, %v4874_v23  ;;  %v5222_v17 = vsub.f32 %v4496_v21, %v4874_v23  ;;  %v5226_v29 = vsub.f32 %v4502_v37, %v4874_v23  ;;  %v5230_v41 = vsub.f32 %v4508_v57, %v4874_v23 }
 0x2d2   : > { %v5234_v53 = vsub.f32 %v4514_v13, %v4874_v23  ;;  %v5238_v3 = vsub.f32 %v4520_v45, %v4874_v23  ;;  %v5242_v21 = vsub.f32 %v4526_v55, %v4874_v23  ;;  %v5246_v37 = vsub.f32 %v4532_v36, %v4874_v23 }
 0x2d3   : > { %v5250_v57 = vsub.f32 %v4538_v20, %v4874_v23  ;;  %v5254_v13 = vsub.f32 %v4544_v1, %v4874_v23  ;;  %v5258_v45 = vsub.f32 %v4550_v52, %v4874_v23  ;;  %v5262_v55 = vsub.f32 %v4556_v39, %v4874_v23 }
 0x2d4   : > { %v5266_v36 = vsub.f32 %v4562_v28, %v4874_v23  ;;  %v5270_v20 = vsub.f32 %v4568_v15, %v4874_v23  ;;  %v5274_v1 = vsub.f32 %v4574_v4, %v4874_v23  ;;  %v5278_v52 = vsub.f32 %v4580_v58, %v4874_v23 }
 0x2d5   : > { %v5282_v39 = vsub.f32 %v4586_v50, %v4874_v23  ;;  %v5286_v28 = vsub.f32 %v4592_v42, %v4874_v23  ;;  %v5290_v15 = vsub.f32 %v4598_v34, %v4874_v23  ;;  %v5294_v4 = vsub.f32 %v4604_v26, %v4874_v23 }
 0x2d6   : > { %8631 = vst [vmem:[#allocation70_spill] sm:$0xff] %v5270_v20  ;;  %8632 = vst [vmem:[#allocation72_spill] sm:$0xff] %v5274_v1  ;;  %v5298_v58 = vsub.f32 %v4610_v18, %v4874_v23  ;;  %v5302_v50 = vsub.f32 %v4616_v10, %v4874_v23  ;;  %v5306_v42 = vsub.f32 %v4622_v62, %v4874_v23 }
 0x2d7   : > { %8633 = vst [vmem:[#allocation74_spill] sm:$0xff] %v5278_v52  ;;  %8634 = vst [vmem:[#allocation76_spill] sm:$0xff] %v5282_v39 }
 0x2d8   : > { %8635 = vst [vmem:[#allocation78_spill] sm:$0xff] %v5286_v28  ;;  %8636 = vst [vmem:[#allocation80_spill] sm:$0xff] %v5290_v15  ;;  %v8641_v28 = vld [vmem:[#allocation47_spill] sm:$0xff]  ;;  %v8643_v15 = vld [vmem:[#allocation49_spill] sm:$0xff] }
 0x2d9   : > { %8637 = vst [vmem:[#allocation81_spill] sm:$0xff] %v5294_v4  ;;  %8638 = vst [vmem:[#allocation84_spill] sm:$0xff] %v5298_v58  ;;  %v5310_v34 = vsub.f32 %v8641_v28, %v4874_v23  ;;  %v5314_v26 = vsub.f32 %v8643_v15, %v4874_v23  ;;  %v8645_v4 = vld [vmem:[#allocation51_spill] sm:$0xff]  ;;  %v8647_v58 = vld [vmem:[#allocation53_spill] sm:$0xff] }
 0x2da   : > { %8639 = vst [vmem:[#allocation85_spill] sm:$0xff] %v5302_v50  ;;  %8640 = vst [vmem:[#allocation86_spill] sm:$0xff] %v5306_v42  ;;  %v5318_v18 = vsub.f32 %v8645_v4, %v4874_v23  ;;  %v5322_v10 = vsub.f32 %v8647_v58, %v4874_v23  ;;  %v8649_v50 = vld [vmem:[#allocation55_spill] sm:$0xff]  ;;  %v8651_v42 = vld [vmem:[#allocation57_spill] sm:$0xff] }
 0x2db   : > { %8642 = vst [vmem:[#allocation47_spill] sm:$0xff] %v5310_v34  ;;  %8644 = vst [vmem:[#allocation49_spill] sm:$0xff] %v5314_v26  ;;  %v5326_v62 = vsub.f32 %v8649_v50, %v4874_v23  ;;  %v5330_v28 = vsub.f32 %v8651_v42, %v4874_v23  ;;  %v8653_v34 = vld [vmem:[#allocation59_spill] sm:$0xff]  ;;  %v8655_v26 = vld [vmem:[#allocation61_spill] sm:$0xff] }
 0x2dc   : > { %8646 = vst [vmem:[#allocation51_spill] sm:$0xff] %v5318_v18  ;;  %8648 = vst [vmem:[#allocation53_spill] sm:$0xff] %v5322_v10  ;;  %v5334_v15 = vsub.f32 %v8653_v34, %v4874_v23  ;;  %v5338_v4 = vsub.f32 %v8655_v26, %v4874_v23  ;;  %v8657_v18 = vld [vmem:[#allocation63_spill] sm:$0xff]  ;;  %v8659_v10 = vld [vmem:[#allocation65_spill] sm:$0xff] }
 0x2dd   : > { %8650 = vst [vmem:[#allocation55_spill] sm:$0xff] %v5326_v62  ;;  %8652 = vst [vmem:[#allocation57_spill] sm:$0xff] %v5330_v28  ;;  %v5342_v58 = vsub.f32 %v8657_v18, %v4874_v23  ;;  %v5346_v50 = vsub.f32 %v8659_v10, %v4874_v23  ;;  %v8661_v62 = vld [vmem:[#allocation67_spill] sm:$0xff]  ;;  %v8663_v28 = vld [vmem:[#allocation69_spill] sm:$0xff] }
 0x2de   : > { %8654 = vst [vmem:[#allocation59_spill] sm:$0xff] %v5334_v15  ;;  %8656 = vst [vmem:[#allocation61_spill] sm:$0xff] %v5338_v4  ;;  %v5350_v42 = vsub.f32 %v8661_v62, %v4874_v23  ;;  %v5354_v34 = vsub.f32 %v8663_v28, %v4874_v23  ;;  %v8665_v15 = vld [vmem:[#allocation71_spill] sm:$0xff]  ;;  %v8667_v4 = vld [vmem:[#allocation73_spill] sm:$0xff] }
 0x2df   : > { %8658 = vst [vmem:[#allocation63_spill] sm:$0xff] %v5342_v58  ;;  %8660 = vst [vmem:[#allocation65_spill] sm:$0xff] %v5346_v50  ;;  %v5358_v26 = vsub.f32 %v8665_v15, %v4874_v23  ;;  %v5362_v18 = vsub.f32 %v8667_v4, %v4874_v23  ;;  %v8669_v58 = vld [vmem:[#allocation75_spill] sm:$0xff]  ;;  %v8671_v50 = vld [vmem:[#allocation77_spill] sm:$0xff]  ;;  %v5378_v15 = vsub.f32 %v4730_v14, %v4874_v23 }
 0x2e0   : > { %8662 = vst [vmem:[#allocation67_spill] sm:$0xff] %v5350_v42  ;;  %8664 = vst [vmem:[#allocation69_spill] sm:$0xff] %v5354_v34  ;;  %v5366_v10 = vsub.f32 %v8669_v58, %v4874_v23  ;;  %v5370_v62 = vsub.f32 %v8671_v50, %v4874_v23  ;;  %v8673_v42 = vld [vmem:[#allocation79_spill] sm:$0xff]  ;;  %v5386_v58 = vsub.f32 %v8510_v38, %v4874_v23 }
 0x2e1   : > { %8666 = vst [vmem:[#allocation71_spill] sm:$0xff] %v5358_v26  ;;  %8668 = vst [vmem:[#allocation73_spill] sm:$0xff] %v5362_v18  ;;  %v5374_v28 = vsub.f32 %v8673_v42, %v4874_v23  ;;  %v8676_v26 = vld [vmem:[#allocation82_spill] sm:$0xff]  ;;  %v1978_v50 = vmul.f32 %v4878_v8, %v4878_v8  ;;  %v1980_v42 = vmul.f32 %v4886_v63, %v4886_v63 }
 0x2e2   : > { %8670 = vst [vmem:[#allocation75_spill] sm:$0xff] %v5366_v10  ;;  %8672 = vst [vmem:[#allocation77_spill] sm:$0xff] %v5370_v62  ;;  %v5382_v4 = vsub.f32 %v8676_v26, %v4874_v23  ;;  %v1979_v62 = vmul.f32 %v4882_v44, %v4882_v44  ;;  %v1981_v14 = vmul.f32 %v4890_v46, %v4890_v46  ;;  %v8680_v10 = vld [vmem:[#allocation7_spill] sm:$0xff] }
 0x2e3   : > { %8674 = vst [vmem:[#allocation79_spill] sm:$0xff] %v5374_v28  ;;  %8675 = vst [vmem:[#allocation87_spill] sm:$0xff] %v5378_v15  ;;  %v2106_v15 = vsel %vm1586_vm0, %v1978_v50, 0.0  ;;  %v1982_v23 = vmul.f32 %v4894_v54, %v4894_v54  ;;  %v2109_v38 = vsel %vm1586_vm0, %v1980_v42, 0.0  ;;  %v1984_v46 = vmul.f32 %v8680_v10, %v8680_v10  ;;  %v8682_v42 = vld [vmem:[#allocation9_spill] sm:$0xff] }
 0x2e4   : > { %8677 = vst [vmem:[#allocation82_spill] sm:$0xff] %v5382_v4  ;;  %8678 = vst [vmem:[#allocation88_spill] sm:$0xff] %v5386_v58  ;;  %v2107_v26 = vsel %vm1586_vm0, %v1979_v62, 0.0  ;;  %v8679_v58 = vld [vmem:[#allocation6_spill] sm:$0xff]  ;;  %v2111_v28 = vsel %vm1586_vm0, %v1981_v14, 0.0  ;;  %v8681_v62 = vld [vmem:[#allocation8_spill] sm:$0xff] }
 0x2e5   : > { %v2108_v4 = vadd.f32 %v2107_v26, %v2106_v15  ;;  %v1983_v44 = vmul.f32 %v8679_v58, %v8679_v58  ;;  %v2113_v50 = vsel %vm1586_vm0, %v1982_v23, 0.0  ;;  %v1985_v15 = vmul.f32 %v8681_v62, %v8681_v62  ;;  %v8683_v14 = vld [vmem:[#allocation10_spill] sm:$0xff]  ;;  %v8684_v23 = vld [vmem:[#allocation11_spill] sm:$0xff] }
 0x2e7   : > { %v2110_v8 = vadd.f32 %v2109_v38, %v2108_v4  ;;  %v2115_v26 = vsel %vm1586_vm0, %v1983_v44, 0.0  ;;  %v1986_v4 = vmul.f32 %v8682_v42, %v8682_v42  ;;  %v2117_v38 = vsel %vm1586_vm0, %v1984_v46, 0.0  ;;  %v8685_v44 = vld [vmem:[#allocation12_spill] sm:$0xff]  ;;  %v8686_v46 = vld [vmem:[#allocation13_spill] sm:$0xff] }
 0x2e9   : > { %v2112_v63 = vadd.f32 %v2111_v28, %v2110_v8  ;;  %v1987_v8 = vmul.f32 %v8683_v14, %v8683_v14  ;;  %v2119_v28 = vsel %vm1586_vm0, %v1985_v15, 0.0  ;;  %v8687_v15 = vld [vmem:[#allocation14_spill] sm:$0xff] }
 0x2eb   : > { %v2114_v18 = vadd.f32 %v2113_v50, %v2112_v63  ;;  %v1988_v63 = vmul.f32 %v8684_v23, %v8684_v23  ;;  %v2121_v50 = vsel %vm1586_vm0, %v1986_v4, 0.0  ;;  %v8688_v4 = vld [vmem:[#allocation15_spill] sm:$0xff] }
 0x2ed   : > { %v2116_v54 = vadd.f32 %v2115_v26, %v2114_v18  ;;  %v1989_v18 = vmul.f32 %v8685_v44, %v8685_v44  ;;  %v2123_v26 = vsel %vm1586_vm0, %v1987_v8, 0.0  ;;  %v8689_v8 = vld [vmem:[#allocation16_spill] sm:$0xff] }
 0x2ef   : > { %v2118_v58 = vadd.f32 %v2117_v38, %v2116_v54  ;;  %v1990_v54 = vmul.f32 %v8686_v46, %v8686_v46  ;;  %v2125_v38 = vsel %vm1586_vm0, %v1988_v63, 0.0  ;;  %v8690_v63 = vld [vmem:[#allocation17_spill] sm:$0xff] }
 0x2f1   : > { %v2120_v10 = vadd.f32 %v2119_v28, %v2118_v58  ;;  %v1991_v58 = vmul.f32 %v8687_v15, %v8687_v15  ;;  %v2127_v28 = vsel %vm1586_vm0, %v1989_v18, 0.0  ;;  %v8691_v18 = vld [vmem:[#allocation18_spill] sm:$0xff] }
 0x2f3   : > { %v2122_v62 = vadd.f32 %v2121_v50, %v2120_v10  ;;  %v1992_v10 = vmul.f32 %v8688_v4, %v8688_v4  ;;  %v2129_v50 = vsel %vm1586_vm0, %v1990_v54, 0.0  ;;  %v8692_v54 = vld [vmem:[#allocation19_spill] sm:$0xff] }
 0x2f5   : > { %v2124_v42 = vadd.f32 %v2123_v26, %v2122_v62  ;;  %v1993_v62 = vmul.f32 %v8689_v8, %v8689_v8  ;;  %v2131_v26 = vsel %vm1586_vm0, %v1991_v58, 0.0  ;;  %v8693_v58 = vld [vmem:[#allocation20_spill] sm:$0xff] }
 0x2f7   : > { %v2126_v14 = vadd.f32 %v2125_v38, %v2124_v42  ;;  %v1994_v42 = vmul.f32 %v8690_v63, %v8690_v63  ;;  %v2133_v38 = vsel %vm1586_vm0, %v1992_v10, 0.0  ;;  %v8694_v10 = vld [vmem:[#allocation21_spill] sm:$0xff] }
 0x2f9   : > { %v2128_v23 = vadd.f32 %v2127_v28, %v2126_v14  ;;  %v1995_v14 = vmul.f32 %v8691_v18, %v8691_v18  ;;  %v2135_v28 = vsel %vm1586_vm0, %v1993_v62, 0.0  ;;  %v8695_v62 = vld [vmem:[#allocation22_spill] sm:$0xff] }
 0x2fb   : > { %v2130_v44 = vadd.f32 %v2129_v50, %v2128_v23  ;;  %v1996_v23 = vmul.f32 %v8692_v54, %v8692_v54  ;;  %v2137_v50 = vsel %vm1586_vm0, %v1994_v42, 0.0  ;;  %v8696_v42 = vld [vmem:[#allocation23_spill] sm:$0xff] }
 0x2fd   : > { %v2132_v46 = vadd.f32 %v2131_v26, %v2130_v44  ;;  %v1997_v44 = vmul.f32 %v8693_v58, %v8693_v58  ;;  %v2139_v26 = vsel %vm1586_vm0, %v1995_v14, 0.0  ;;  %v8697_v14 = vld [vmem:[#allocation24_spill] sm:$0xff] }
 0x2ff   : > { %v2134_v15 = vadd.f32 %v2133_v38, %v2132_v46  ;;  %v1998_v46 = vmul.f32 %v8694_v10, %v8694_v10  ;;  %v2141_v38 = vsel %vm1586_vm0, %v1996_v23, 0.0  ;;  %v8698_v23 = vld [vmem:[#allocation25_spill] sm:$0xff] }
 0x301   : > { %v2136_v4 = vadd.f32 %v2135_v28, %v2134_v15  ;;  %v1999_v15 = vmul.f32 %v8695_v62, %v8695_v62  ;;  %v2143_v28 = vsel %vm1586_vm0, %v1997_v44, 0.0  ;;  %v8699_v44 = vld [vmem:[#allocation26_spill] sm:$0xff] }
 0x303   : > { %v2138_v8 = vadd.f32 %v2137_v50, %v2136_v4  ;;  %v2000_v4 = vmul.f32 %v8696_v42, %v8696_v42  ;;  %v2145_v50 = vsel %vm1586_vm0, %v1998_v46, 0.0  ;;  %v8700_v46 = vld [vmem:[#allocation27_spill] sm:$0xff] }
 0x305   : > { %v2140_v63 = vadd.f32 %v2139_v26, %v2138_v8  ;;  %v2001_v8 = vmul.f32 %v8697_v14, %v8697_v14  ;;  %v2147_v26 = vsel %vm1586_vm0, %v1999_v15, 0.0  ;;  %v8701_v15 = vld [vmem:[#allocation28_spill] sm:$0xff] }
 0x307   : > { %v2142_v18 = vadd.f32 %v2141_v38, %v2140_v63  ;;  %v2002_v63 = vmul.f32 %v8698_v23, %v8698_v23  ;;  %v2149_v38 = vsel %vm1586_vm0, %v2000_v4, 0.0  ;;  %v8702_v4 = vld [vmem:[#allocation29_spill] sm:$0xff] }
 0x309   : > { %v2144_v54 = vadd.f32 %v2143_v28, %v2142_v18  ;;  %v2003_v18 = vmul.f32 %v8699_v44, %v8699_v44  ;;  %v2151_v28 = vsel %vm1586_vm0, %v2001_v8, 0.0  ;;  %v8703_v8 = vld [vmem:[#allocation30_spill] sm:$0xff] }
 0x30b   : > { %v2146_v58 = vadd.f32 %v2145_v50, %v2144_v54  ;;  %v2004_v54 = vmul.f32 %v8700_v46, %v8700_v46  ;;  %v2153_v50 = vsel %vm1586_vm0, %v2002_v63, 0.0  ;;  %v8704_v63 = vld [vmem:[#allocation31_spill] sm:$0xff] }
 0x30d   : > { %v2148_v10 = vadd.f32 %v2147_v26, %v2146_v58  ;;  %v2005_v58 = vmul.f32 %v8701_v15, %v8701_v15  ;;  %v2155_v26 = vsel %vm1586_vm0, %v2003_v18, 0.0  ;;  %v8705_v18 = vld [vmem:[#allocation32_spill] sm:$0xff] }
 0x30f   : > { %v2150_v62 = vadd.f32 %v2149_v38, %v2148_v10  ;;  %v2006_v10 = vmul.f32 %v8702_v4, %v8702_v4  ;;  %v2157_v38 = vsel %vm1586_vm0, %v2004_v54, 0.0  ;;  %v8706_v54 = vld [vmem:[#allocation33_spill] sm:$0xff] }
 0x311   : > { %v2152_v42 = vadd.f32 %v2151_v28, %v2150_v62  ;;  %v2007_v62 = vmul.f32 %v8703_v8, %v8703_v8  ;;  %v2159_v28 = vsel %vm1586_vm0, %v2005_v58, 0.0  ;;  %v8707_v58 = vld [vmem:[#allocation34_spill] sm:$0xff] }
 0x313   : > { %v2154_v14 = vadd.f32 %v2153_v50, %v2152_v42  ;;  %v2008_v42 = vmul.f32 %v8704_v63, %v8704_v63  ;;  %v2161_v50 = vsel %vm1586_vm0, %v2006_v10, 0.0  ;;  %v8708_v10 = vld [vmem:[#allocation35_spill] sm:$0xff] }
 0x315   : > { %v2156_v23 = vadd.f32 %v2155_v26, %v2154_v14  ;;  %v2009_v14 = vmul.f32 %v8705_v18, %v8705_v18  ;;  %v2163_v26 = vsel %vm1586_vm0, %v2007_v62, 0.0  ;;  %v8709_v62 = vld [vmem:[#allocation36_spill] sm:$0xff] }
 0x317   : > { %v2158_v44 = vadd.f32 %v2157_v38, %v2156_v23  ;;  %v2010_v23 = vmul.f32 %v8706_v54, %v8706_v54  ;;  %v2165_v38 = vsel %vm1586_vm0, %v2008_v42, 0.0  ;;  %v8710_v42 = vld [vmem:[#allocation37_spill] sm:$0xff] }
 0x319   : > { %v2160_v46 = vadd.f32 %v2159_v28, %v2158_v44  ;;  %v2011_v44 = vmul.f32 %v8707_v58, %v8707_v58  ;;  %v2167_v28 = vsel %vm1586_vm0, %v2009_v14, 0.0  ;;  %v8711_v14 = vld [vmem:[#allocation38_spill] sm:$0xff] }
 0x31b   : > { %v2162_v15 = vadd.f32 %v2161_v50, %v2160_v46  ;;  %v2012_v46 = vmul.f32 %v8708_v10, %v8708_v10  ;;  %v2169_v50 = vsel %vm1586_vm0, %v2010_v23, 0.0  ;;  %v8712_v23 = vld [vmem:[#allocation39_spill] sm:$0xff] }
 0x31d   : > { %v2164_v4 = vadd.f32 %v2163_v26, %v2162_v15  ;;  %v2013_v15 = vmul.f32 %v8709_v62, %v8709_v62  ;;  %v2171_v26 = vsel %vm1586_vm0, %v2011_v44, 0.0  ;;  %v8713_v44 = vld [vmem:[#allocation40_spill] sm:$0xff] }
 0x31f   : > { %v2166_v8 = vadd.f32 %v2165_v38, %v2164_v4  ;;  %v2014_v4 = vmul.f32 %v8710_v42, %v8710_v42  ;;  %v2173_v38 = vsel %vm1586_vm0, %v2012_v46, 0.0  ;;  %v8714_v46 = vld [vmem:[#allocation41_spill] sm:$0xff] }
 0x321   : > { %v2168_v63 = vadd.f32 %v2167_v28, %v2166_v8  ;;  %v2015_v8 = vmul.f32 %v8711_v14, %v8711_v14  ;;  %v2175_v28 = vsel %vm1586_vm0, %v2013_v15, 0.0  ;;  %v8715_v15 = vld [vmem:[#allocation42_spill] sm:$0xff] }
 0x323   : > { %v2170_v18 = vadd.f32 %v2169_v50, %v2168_v63  ;;  %v2016_v63 = vmul.f32 %v8712_v23, %v8712_v23  ;;  %v2177_v50 = vsel %vm1586_vm0, %v2014_v4, 0.0  ;;  %v8716_v4 = vld [vmem:[#allocation43_spill] sm:$0xff] }
 0x325   : > { %v2172_v54 = vadd.f32 %v2171_v26, %v2170_v18  ;;  %v2017_v18 = vmul.f32 %v8713_v44, %v8713_v44  ;;  %v2179_v26 = vsel %vm1586_vm0, %v2015_v8, 0.0  ;;  %v8717_v8 = vld [vmem:[#allocation44_spill] sm:$0xff] }
 0x327   : > { %v2174_v58 = vadd.f32 %v2173_v38, %v2172_v54  ;;  %v2018_v54 = vmul.f32 %v8714_v46, %v8714_v46  ;;  %v2181_v38 = vsel %vm1586_vm0, %v2016_v63, 0.0  ;;  %v8718_v63 = vld [vmem:[#allocation45_spill] sm:$0xff] }
 0x329   : > { %v2176_v10 = vadd.f32 %v2175_v28, %v2174_v58  ;;  %v2019_v58 = vmul.f32 %v8715_v15, %v8715_v15  ;;  %v2183_v28 = vsel %vm1586_vm0, %v2017_v18, 0.0  ;;  %v8719_v18 = vld [vmem:[#allocation46_spill] sm:$0xff] }
 0x32b   : > { %v2178_v62 = vadd.f32 %v2177_v50, %v2176_v10  ;;  %v2020_v10 = vmul.f32 %v8716_v4, %v8716_v4  ;;  %v2185_v50 = vsel %vm1586_vm0, %v2018_v54, 0.0  ;;  %v8720_v54 = vld [vmem:[#allocation48_spill] sm:$0xff] }
 0x32d   : > { %v2180_v42 = vadd.f32 %v2179_v26, %v2178_v62  ;;  %v2021_v62 = vmul.f32 %v8717_v8, %v8717_v8  ;;  %v2187_v26 = vsel %vm1586_vm0, %v2019_v58, 0.0  ;;  %v8721_v58 = vld [vmem:[#allocation50_spill] sm:$0xff] }
 0x32f   : > { %v2182_v14 = vadd.f32 %v2181_v38, %v2180_v42  ;;  %v2022_v42 = vmul.f32 %v8718_v63, %v8718_v63  ;;  %v2189_v38 = vsel %vm1586_vm0, %v2020_v10, 0.0  ;;  %v8722_v10 = vld [vmem:[#allocation52_spill] sm:$0xff] }
 0x331   : > { %v2184_v23 = vadd.f32 %v2183_v28, %v2182_v14  ;;  %v2023_v14 = vmul.f32 %v8719_v18, %v8719_v18  ;;  %v2191_v28 = vsel %vm1586_vm0, %v2021_v62, 0.0  ;;  %v8723_v62 = vld [vmem:[#allocation54_spill] sm:$0xff] }
 0x333   : > { %v2186_v44 = vadd.f32 %v2185_v50, %v2184_v23  ;;  %v2024_v23 = vmul.f32 %v8720_v54, %v8720_v54  ;;  %v2193_v50 = vsel %vm1586_vm0, %v2022_v42, 0.0  ;;  %v8724_v42 = vld [vmem:[#allocation56_spill] sm:$0xff] }
 0x335   : > { %v2188_v46 = vadd.f32 %v2187_v26, %v2186_v44  ;;  %v2025_v44 = vmul.f32 %v8721_v58, %v8721_v58  ;;  %v2195_v26 = vsel %vm1586_vm0, %v2023_v14, 0.0  ;;  %v8725_v14 = vld [vmem:[#allocation58_spill] sm:$0xff] }
 0x337   : > { %v2190_v15 = vadd.f32 %v2189_v38, %v2188_v46  ;;  %v2026_v46 = vmul.f32 %v8722_v10, %v8722_v10  ;;  %v2197_v38 = vsel %vm1586_vm0, %v2024_v23, 0.0  ;;  %v8726_v23 = vld [vmem:[#allocation60_spill] sm:$0xff] }
 0x339   : > { %v2192_v4 = vadd.f32 %v2191_v28, %v2190_v15  ;;  %v2027_v15 = vmul.f32 %v8723_v62, %v8723_v62  ;;  %v2199_v28 = vsel %vm1586_vm0, %v2025_v44, 0.0  ;;  %v8727_v44 = vld [vmem:[#allocation62_spill] sm:$0xff] }
 0x33b   : > { %v2194_v8 = vadd.f32 %v2193_v50, %v2192_v4  ;;  %v2028_v4 = vmul.f32 %v8724_v42, %v8724_v42  ;;  %v2201_v50 = vsel %vm1586_vm0, %v2026_v46, 0.0  ;;  %v8728_v46 = vld [vmem:[#allocation64_spill] sm:$0xff] }
 0x33d   : > { %v2196_v63 = vadd.f32 %v2195_v26, %v2194_v8  ;;  %v2029_v8 = vmul.f32 %v8725_v14, %v8725_v14  ;;  %v2203_v26 = vsel %vm1586_vm0, %v2027_v15, 0.0  ;;  %v8729_v15 = vld [vmem:[#allocation66_spill] sm:$0xff] }
 0x33f   : > { %v2198_v18 = vadd.f32 %v2197_v38, %v2196_v63  ;;  %v2030_v63 = vmul.f32 %v8726_v23, %v8726_v23  ;;  %v2205_v38 = vsel %vm1586_vm0, %v2028_v4, 0.0  ;;  %v8730_v4 = vld [vmem:[#allocation68_spill] sm:$0xff] }
 0x341   : > { %v2200_v54 = vadd.f32 %v2199_v28, %v2198_v18  ;;  %v2031_v18 = vmul.f32 %v8727_v44, %v8727_v44  ;;  %v2207_v28 = vsel %vm1586_vm0, %v2029_v8, 0.0 }
 0x343   : > { %v2202_v58 = vadd.f32 %v2201_v50, %v2200_v54  ;;  %v2032_v54 = vmul.f32 %v8728_v46, %v8728_v46  ;;  %v2209_v50 = vsel %vm1586_vm0, %v2030_v63, 0.0 }
 0x345   : > { %v2204_v10 = vadd.f32 %v2203_v26, %v2202_v58  ;;  %v2033_v58 = vmul.f32 %v8729_v15, %v8729_v15  ;;  %v2211_v26 = vsel %vm1586_vm0, %v2031_v18, 0.0 }
 0x347   : > { %v2206_v62 = vadd.f32 %v2205_v38, %v2204_v10  ;;  %v2034_v10 = vmul.f32 %v8730_v4, %v8730_v4  ;;  %v2213_v38 = vsel %vm1586_vm0, %v2032_v54, 0.0  ;;  %v2215_v8 = vsel %vm1586_vm0, %v2033_v58, 0.0 }
 0x349   : > { %v2208_v42 = vadd.f32 %v2207_v28, %v2206_v62  ;;  %v2035_v62 = vmul.f32 %v5106_v22, %v5106_v22  ;;  %v2217_v63 = vsel %vm1586_vm0, %v2034_v10, 0.0  ;;  %v2040_v10 = vmul.f32 %v5126_v12, %v5126_v12 }
 0x34b   : > { %v2210_v14 = vadd.f32 %v2209_v50, %v2208_v42  ;;  %v2036_v42 = vmul.f32 %v5110_v31, %v5110_v31  ;;  %v2219_v18 = vsel %vm1586_vm0, %v2035_v62, 0.0  ;;  %v2041_v62 = vmul.f32 %v5130_v25, %v5130_v25 }
 0x34d   : > { %v2212_v23 = vadd.f32 %v2211_v26, %v2210_v14  ;;  %v2037_v14 = vmul.f32 %v5114_v47, %v5114_v47  ;;  %v2221_v54 = vsel %vm1586_vm0, %v2036_v42, 0.0  ;;  %v2042_v42 = vmul.f32 %v5134_v5, %v5134_v5 }
 0x34f   : > { %v2214_v44 = vadd.f32 %v2213_v38, %v2212_v23  ;;  %v2038_v23 = vmul.f32 %v5118_v49, %v5118_v49  ;;  %v2223_v58 = vsel %vm1586_vm0, %v2037_v14, 0.0  ;;  %v2043_v14 = vmul.f32 %v5138_v33, %v5138_v33 }
 0x351   : > { %v2216_v28 = vadd.f32 %v2215_v8, %v2214_v44  ;;  %v2039_v44 = vmul.f32 %v5122_v60, %v5122_v60 }
 0x353   : > { %v2218_v50 = vadd.f32 %v2217_v63, %v2216_v28  ;;  %v2225_v28 = vsel %vm1586_vm0, %v2038_v23, 0.0  ;;  %v2044_v23 = vmul.f32 %v5142_v61, %v5142_v61 }
 0x355   : > { %v2220_v26 = vadd.f32 %v2219_v18, %v2218_v50  ;;  %v2227_v50 = vsel %vm1586_vm0, %v2039_v44, 0.0  ;;  %v2045_v44 = vmul.f32 %v5146_v30, %v5146_v30 }
 0x357   : > { %v2222_v38 = vadd.f32 %v2221_v54, %v2220_v26  ;;  %v2229_v26 = vsel %vm1586_vm0, %v2040_v10, 0.0  ;;  %v2046_v10 = vmul.f32 %v5150_v9, %v5150_v9 }
 0x359   : > { %v2224_v8 = vadd.f32 %v2223_v58, %v2222_v38  ;;  %v2231_v38 = vsel %vm1586_vm0, %v2041_v62, 0.0  ;;  %v2047_v62 = vmul.f32 %v5154_v0, %v5154_v0 }
 0x35b   : > { %v2226_v63 = vadd.f32 %v2225_v28, %v2224_v8  ;;  %v2233_v8 = vsel %vm1586_vm0, %v2042_v42, 0.0  ;;  %v2048_v42 = vmul.f32 %v5158_v7, %v5158_v7 }
 0x35d   : > { %v2228_v18 = vadd.f32 %v2227_v50, %v2226_v63  ;;  %v2235_v63 = vsel %vm1586_vm0, %v2043_v14, 0.0  ;;  %v2049_v14 = vmul.f32 %v5162_v16, %v5162_v16 }
 0x35f   : > { %v2230_v54 = vadd.f32 %v2229_v26, %v2228_v18  ;;  %v2237_v18 = vsel %vm1586_vm0, %v2044_v23, 0.0  ;;  %v2050_v23 = vmul.f32 %v5166_v24, %v5166_v24 }
 0x361   : > { %v2232_v58 = vadd.f32 %v2231_v38, %v2230_v54  ;;  %v2239_v54 = vsel %vm1586_vm0, %v2045_v44, 0.0  ;;  %v2051_v44 = vmul.f32 %v5170_v32, %v5170_v32 }
 0x363   : > { %v2234_v28 = vadd.f32 %v2233_v8, %v2232_v58  ;;  %v2241_v58 = vsel %vm1586_vm0, %v2046_v10, 0.0  ;;  %v2052_v10 = vmul.f32 %v5174_v40, %v5174_v40 }
 0x365   : > { %v2236_v50 = vadd.f32 %v2235_v63, %v2234_v28  ;;  %v2243_v28 = vsel %vm1586_vm0, %v2047_v62, 0.0  ;;  %v2053_v62 = vmul.f32 %v5178_v48, %v5178_v48 }
 0x367   : > { %v2238_v26 = vadd.f32 %v2237_v18, %v2236_v50  ;;  %v2245_v50 = vsel %vm1586_vm0, %v2048_v42, 0.0  ;;  %v2054_v42 = vmul.f32 %v5182_v56, %v5182_v56 }
 0x369   : > { %v2240_v38 = vadd.f32 %v2239_v54, %v2238_v26  ;;  %v2247_v26 = vsel %vm1586_vm0, %v2049_v14, 0.0  ;;  %v2055_v14 = vmul.f32 %v5186_v2, %v5186_v2 }
 0x36b   : > { %v2242_v8 = vadd.f32 %v2241_v58, %v2240_v38  ;;  %v2249_v38 = vsel %vm1586_vm0, %v2050_v23, 0.0  ;;  %v2056_v23 = vmul.f32 %v5190_v11, %v5190_v11 }
 0x36d   : > { %v2244_v63 = vadd.f32 %v2243_v28, %v2242_v8  ;;  %v2251_v8 = vsel %vm1586_vm0, %v2051_v44, 0.0  ;;  %v2057_v44 = vmul.f32 %v5194_v19, %v5194_v19 }
 0x36f   : > { %v2246_v18 = vadd.f32 %v2245_v50, %v2244_v63  ;;  %v2253_v63 = vsel %vm1586_vm0, %v2052_v10, 0.0  ;;  %v2058_v10 = vmul.f32 %v5198_v27, %v5198_v27 }
 0x371   : > { %v2248_v54 = vadd.f32 %v2247_v26, %v2246_v18  ;;  %v2255_v18 = vsel %vm1586_vm0, %v2053_v62, 0.0  ;;  %v2059_v62 = vmul.f32 %v5202_v35, %v5202_v35 }
 0x373   : > { %v2250_v58 = vadd.f32 %v2249_v38, %v2248_v54  ;;  %v2257_v54 = vsel %vm1586_vm0, %v2054_v42, 0.0  ;;  %v2060_v42 = vmul.f32 %v5206_v43, %v5206_v43 }
 0x375   : > { %v2252_v28 = vadd.f32 %v2251_v8, %v2250_v58  ;;  %v2259_v58 = vsel %vm1586_vm0, %v2055_v14, 0.0  ;;  %v2061_v14 = vmul.f32 %v5210_v51, %v5210_v51 }
 0x377   : > { %v2254_v50 = vadd.f32 %v2253_v63, %v2252_v28  ;;  %v2261_v28 = vsel %vm1586_vm0, %v2056_v23, 0.0  ;;  %v2062_v23 = vmul.f32 %v5214_v59, %v5214_v59 }
 0x379   : > { %v2256_v26 = vadd.f32 %v2255_v18, %v2254_v50  ;;  %v2263_v50 = vsel %vm1586_vm0, %v2057_v44, 0.0  ;;  %v2063_v44 = vmul.f32 %v5218_v6, %v5218_v6 }
 0x37b   : > { %v2258_v38 = vadd.f32 %v2257_v54, %v2256_v26  ;;  %v2265_v26 = vsel %vm1586_vm0, %v2058_v10, 0.0  ;;  %v2064_v10 = vmul.f32 %v5222_v17, %v5222_v17 }
 0x37d   : > { %v2260_v8 = vadd.f32 %v2259_v58, %v2258_v38  ;;  %v2267_v38 = vsel %vm1586_vm0, %v2059_v62, 0.0  ;;  %v2065_v62 = vmul.f32 %v5226_v29, %v5226_v29 }
 0x37f   : > { %v2262_v63 = vadd.f32 %v2261_v28, %v2260_v8  ;;  %v2269_v8 = vsel %vm1586_vm0, %v2060_v42, 0.0  ;;  %v2066_v42 = vmul.f32 %v5230_v41, %v5230_v41 }
 0x381   : > { %v2264_v18 = vadd.f32 %v2263_v50, %v2262_v63  ;;  %v2271_v63 = vsel %vm1586_vm0, %v2061_v14, 0.0  ;;  %v2067_v14 = vmul.f32 %v5234_v53, %v5234_v53 }
 0x383   : > { %v2266_v54 = vadd.f32 %v2265_v26, %v2264_v18  ;;  %v2273_v18 = vsel %vm1586_vm0, %v2062_v23, 0.0  ;;  %v2068_v23 = vmul.f32 %v5238_v3, %v5238_v3 }
 0x385   : > { %v2268_v58 = vadd.f32 %v2267_v38, %v2266_v54  ;;  %v2275_v54 = vsel %vm1586_vm0, %v2063_v44, 0.0  ;;  %v2069_v44 = vmul.f32 %v5242_v21, %v5242_v21 }
 0x387   : > { %v2270_v28 = vadd.f32 %v2269_v8, %v2268_v58  ;;  %v2277_v58 = vsel %vm1586_vm0, %v2064_v10, 0.0  ;;  %v2070_v10 = vmul.f32 %v5246_v37, %v5246_v37 }
 0x389   : > { %v2272_v50 = vadd.f32 %v2271_v63, %v2270_v28  ;;  %v2279_v28 = vsel %vm1586_vm0, %v2065_v62, 0.0  ;;  %v2071_v62 = vmul.f32 %v5250_v57, %v5250_v57 }
 0x38b   : > { %v2274_v26 = vadd.f32 %v2273_v18, %v2272_v50  ;;  %v2281_v50 = vsel %vm1586_vm0, %v2066_v42, 0.0  ;;  %v2072_v42 = vmul.f32 %v5254_v13, %v5254_v13 }
 0x38d   : > { %v2276_v38 = vadd.f32 %v2275_v54, %v2274_v26  ;;  %v2283_v26 = vsel %vm1586_vm0, %v2067_v14, 0.0  ;;  %v2073_v14 = vmul.f32 %v5258_v45, %v5258_v45 }
 0x38f   : > { %v2278_v8 = vadd.f32 %v2277_v58, %v2276_v38  ;;  %v2285_v38 = vsel %vm1586_vm0, %v2068_v23, 0.0  ;;  %v2074_v23 = vmul.f32 %v5262_v55, %v5262_v55 }
 0x391   : > { %v2280_v63 = vadd.f32 %v2279_v28, %v2278_v8  ;;  %v2287_v8 = vsel %vm1586_vm0, %v2069_v44, 0.0  ;;  %v2075_v44 = vmul.f32 %v5266_v36, %v5266_v36 }
 0x393   : > { %v2282_v18 = vadd.f32 %v2281_v50, %v2280_v63  ;;  %v2289_v63 = vsel %vm1586_vm0, %v2070_v10, 0.0  ;;  %v2076_v10 = vmul.f32 %v5270_v20, %v5270_v20 }
 0x395   : > { %v2284_v54 = vadd.f32 %v2283_v26, %v2282_v18  ;;  %v2291_v18 = vsel %vm1586_vm0, %v2071_v62, 0.0  ;;  %v2077_v62 = vmul.f32 %v5274_v1, %v5274_v1 }
 0x397   : > { %v2286_v58 = vadd.f32 %v2285_v38, %v2284_v54  ;;  %v2293_v54 = vsel %vm1586_vm0, %v2072_v42, 0.0  ;;  %v2078_v42 = vmul.f32 %v5278_v52, %v5278_v52 }
 0x399   : > { %v2288_v28 = vadd.f32 %v2287_v8, %v2286_v58  ;;  %v2295_v58 = vsel %vm1586_vm0, %v2073_v14, 0.0  ;;  %v2079_v14 = vmul.f32 %v5282_v39, %v5282_v39 }
 0x39b   : > { %v2290_v50 = vadd.f32 %v2289_v63, %v2288_v28  ;;  %v2297_v28 = vsel %vm1586_vm0, %v2074_v23, 0.0  ;;  %v8731_v23 = vld [vmem:[#allocation78_spill] sm:$0xff] }
 0x39d   : > { %v2292_v26 = vadd.f32 %v2291_v18, %v2290_v50  ;;  %v2299_v50 = vsel %vm1586_vm0, %v2075_v44, 0.0  ;;  %v8732_v44 = vld [vmem:[#allocation80_spill] sm:$0xff] }
 0x39f   : > { %v2294_v38 = vadd.f32 %v2293_v54, %v2292_v26  ;;  %v2301_v26 = vsel %vm1586_vm0, %v2076_v10, 0.0  ;;  %v8733_v10 = vld [vmem:[#allocation81_spill] sm:$0xff] }
 0x3a1   : > { %v2296_v8 = vadd.f32 %v2295_v58, %v2294_v38  ;;  %v2303_v38 = vsel %vm1586_vm0, %v2077_v62, 0.0  ;;  %v8734_v62 = vld [vmem:[#allocation84_spill] sm:$0xff] }
 0x3a3   : > { %v2298_v63 = vadd.f32 %v2297_v28, %v2296_v8  ;;  %v2080_v8 = vmul.f32 %v8731_v23, %v8731_v23  ;;  %v2305_v28 = vsel %vm1586_vm0, %v2078_v42, 0.0  ;;  %v8735_v42 = vld [vmem:[#allocation85_spill] sm:$0xff] }
 0x3a5   : > { %v2300_v18 = vadd.f32 %v2299_v50, %v2298_v63  ;;  %v2081_v63 = vmul.f32 %v8732_v44, %v8732_v44  ;;  %v2307_v50 = vsel %vm1586_vm0, %v2079_v14, 0.0  ;;  %v8736_v14 = vld [vmem:[#allocation86_spill] sm:$0xff] }
 0x3a7   : > { %v2302_v54 = vadd.f32 %v2301_v26, %v2300_v18  ;;  %v2082_v18 = vmul.f32 %v8733_v10, %v8733_v10  ;;  %v2309_v26 = vsel %vm1586_vm0, %v2080_v8, 0.0  ;;  %v8737_v8 = vld [vmem:[#allocation47_spill] sm:$0xff] }
 0x3a9   : > { %v2304_v58 = vadd.f32 %v2303_v38, %v2302_v54  ;;  %v2083_v54 = vmul.f32 %v8734_v62, %v8734_v62  ;;  %v2311_v38 = vsel %vm1586_vm0, %v2081_v63, 0.0  ;;  %v8738_v63 = vld [vmem:[#allocation49_spill] sm:$0xff] }
 0x3ab   : > { %v2306_v1 = vadd.f32 %v2305_v28, %v2304_v58  ;;  %v2084_v58 = vmul.f32 %v8735_v42, %v8735_v42  ;;  %v2313_v28 = vsel %vm1586_vm0, %v2082_v18, 0.0  ;;  %v8739_v18 = vld [vmem:[#allocation51_spill] sm:$0xff] }
 0x3ad   : > { %v2308_v52 = vadd.f32 %v2307_v50, %v2306_v1  ;;  %v2085_v1 = vmul.f32 %v8736_v14, %v8736_v14  ;;  %v2315_v50 = vsel %vm1586_vm0, %v2083_v54, 0.0  ;;  %v8740_v54 = vld [vmem:[#allocation53_spill] sm:$0xff] }
 0x3af   : > { %v2310_v39 = vadd.f32 %v2309_v26, %v2308_v52  ;;  %v2086_v52 = vmul.f32 %v8737_v8, %v8737_v8  ;;  %v2317_v26 = vsel %vm1586_vm0, %v2084_v58, 0.0  ;;  %v8741_v58 = vld [vmem:[#allocation55_spill] sm:$0xff] }
 0x3b1   : > { %v2312_v23 = vadd.f32 %v2311_v38, %v2310_v39  ;;  %v2087_v39 = vmul.f32 %v8738_v63, %v8738_v63  ;;  %v2319_v38 = vsel %vm1586_vm0, %v2085_v1, 0.0  ;;  %v8742_v1 = vld [vmem:[#allocation57_spill] sm:$0xff] }
 0x3b3   : > { %v2314_v44 = vadd.f32 %v2313_v28, %v2312_v23  ;;  %v2088_v23 = vmul.f32 %v8739_v18, %v8739_v18  ;;  %v2321_v28 = vsel %vm1586_vm0, %v2086_v52, 0.0  ;;  %v8743_v52 = vld [vmem:[#allocation59_spill] sm:$0xff] }
 0x3b5   : > { %v2316_v10 = vadd.f32 %v2315_v50, %v2314_v44  ;;  %v2089_v44 = vmul.f32 %v8740_v54, %v8740_v54  ;;  %v2323_v50 = vsel %vm1586_vm0, %v2087_v39, 0.0  ;;  %v8744_v39 = vld [vmem:[#allocation61_spill] sm:$0xff] }
 0x3b7   : > { %v2318_v62 = vadd.f32 %v2317_v26, %v2316_v10  ;;  %v2090_v10 = vmul.f32 %v8741_v58, %v8741_v58  ;;  %v2325_v26 = vsel %vm1586_vm0, %v2088_v23, 0.0  ;;  %v8745_v23 = vld [vmem:[#allocation63_spill] sm:$0xff] }
 0x3b9   : > { %v2320_v42 = vadd.f32 %v2319_v38, %v2318_v62  ;;  %v2091_v62 = vmul.f32 %v8742_v1, %v8742_v1  ;;  %v2327_v38 = vsel %vm1586_vm0, %v2089_v44, 0.0  ;;  %v8746_v44 = vld [vmem:[#allocation65_spill] sm:$0xff] }
 0x3bb   : > { %v2322_v14 = vadd.f32 %v2321_v28, %v2320_v42  ;;  %v2092_v42 = vmul.f32 %v8743_v52, %v8743_v52  ;;  %v2329_v28 = vsel %vm1586_vm0, %v2090_v10, 0.0  ;;  %v8747_v10 = vld [vmem:[#allocation67_spill] sm:$0xff] }
 0x3bd   : > { %v2324_v8 = vadd.f32 %v2323_v50, %v2322_v14  ;;  %v2093_v14 = vmul.f32 %v8744_v39, %v8744_v39  ;;  %v2331_v50 = vsel %vm1586_vm0, %v2091_v62, 0.0 }
 0x3bf   : > { %v2326_v63 = vadd.f32 %v2325_v26, %v2324_v8  ;;  %v2094_v8 = vmul.f32 %v8745_v23, %v8745_v23  ;;  %v2333_v26 = vsel %vm1586_vm0, %v2092_v42, 0.0  ;;  %v8748_v42 = vld [vmem:[#allocation71_spill] sm:$0xff] }
 0x3c1   : > { %v2328_v18 = vadd.f32 %v2327_v38, %v2326_v63  ;;  %v2095_v63 = vmul.f32 %v8746_v44, %v8746_v44  ;;  %v2335_v38 = vsel %vm1586_vm0, %v2093_v14, 0.0  ;;  %v8749_v14 = vld [vmem:[#allocation73_spill] sm:$0xff] }
 0x3c3   : > { %v2330_v54 = vadd.f32 %v2329_v28, %v2328_v18  ;;  %v2096_v18 = vmul.f32 %v8747_v10, %v8747_v10  ;;  %v2337_v28 = vsel %vm1586_vm0, %v2094_v8, 0.0  ;;  %v2339_v62 = vsel %vm1586_vm0, %v2095_v63, 0.0  ;;  %v8750_v8 = vld [vmem:[#allocation75_spill] sm:$0xff]  ;;  %v8751_v63 = vld [vmem:[#allocation77_spill] sm:$0xff] }
 0x3c5   : > { %v2332_v58 = vadd.f32 %v2331_v50, %v2330_v54  ;;  %v2097_v54 = vmul.f32 %v5354_v34, %v5354_v34 }
 0x3c7   : > { %v2334_v1 = vadd.f32 %v2333_v26, %v2332_v58  ;;  %v2098_v58 = vmul.f32 %v8748_v42, %v8748_v42  ;;  %v2341_v26 = vsel %vm1586_vm0, %v2096_v18, 0.0  ;;  %v8752_v18 = vld [vmem:[#allocation79_spill] sm:$0xff] }
 0x3c9   : > { %v2336_v52 = vadd.f32 %v2335_v38, %v2334_v1  ;;  %v2099_v1 = vmul.f32 %v8749_v14, %v8749_v14  ;;  %v2343_v38 = vsel %vm1586_vm0, %v2097_v54, 0.0  ;;  %v8753_v54 = vld [vmem:[#allocation87_spill] sm:$0xff] }
 0x3cb   : > { %v2338_v39 = vadd.f32 %v2337_v28, %v2336_v52  ;;  %v2100_v52 = vmul.f32 %v8750_v8, %v8750_v8  ;;  %v2345_v28 = vsel %vm1586_vm0, %v2098_v58, 0.0  ;;  %v8754_v58 = vld [vmem:[#allocation82_spill] sm:$0xff] }
 0x3cd   : > { %v2340_v50 = vadd.f32 %v2339_v62, %v2338_v39  ;;  %v2101_v39 = vmul.f32 %v8751_v63, %v8751_v63  ;;  %v2347_v62 = vsel %vm1586_vm0, %v2099_v1, 0.0  ;;  %v8755_v1 = vld [vmem:[#allocation88_spill] sm:$0xff] }
 0x3cf   : > { %v2342_v44 = vadd.f32 %v2341_v26, %v2340_v50  ;;  %v2102_v50 = vmul.f32 %v8752_v18, %v8752_v18  ;;  %v2349_v26 = vsel %vm1586_vm0, %v2100_v52, 0.0 }
 0x3d1   : > { %v2344_v10 = vadd.f32 %v2343_v38, %v2342_v44  ;;  %v2103_v44 = vmul.f32 %v8753_v54, %v8753_v54  ;;  %v2351_v38 = vsel %vm1586_vm0, %v2101_v39, 0.0 }
 0x3d3   : > { %v2346_v34 = vadd.f32 %v2345_v28, %v2344_v10  ;;  %v2104_v10 = vmul.f32 %v8754_v58, %v8754_v58  ;;  %v2353_v28 = vsel %vm1586_vm0, %v2102_v50, 0.0 }
 0x3d5   : > { %v2348_v42 = vadd.f32 %v2347_v62, %v2346_v34  ;;  %v2105_v34 = vmul.f32 %v8755_v1, %v8755_v1  ;;  %v2355_v62 = vsel %vm1586_vm0, %v2103_v44, 0.0  ;;  %v8756_v1 = vld [vmem:[#allocation83_spill] sm:$0xff]  ;;  %v8757_v44 = vld [vmem:[#allocation2_spill] sm:$0xff] }
 0x3d7   : > { %v2350_v14 = vadd.f32 %v2349_v26, %v2348_v42  ;;  %v2357_v42 = vsel %vm1586_vm0, %v2104_v10, 0.0  ;;  %v2359_v26 = vsel %vm1586_vm0, %v2105_v34, 0.0  ;;  %v8758_v10 = vld [vmem:[#allocation3_spill] sm:$0xff]  ;;  %v8759_v34 = vld [vmem:[#allocation4_spill] sm:$0xff] }
 0x3d9   : > { %v2352_v8 = vadd.f32 %v2351_v38, %v2350_v14 }
 0x3db   : > { %v2354_v63 = vadd.f32 %v2353_v28, %v2352_v8 }
 0x3dd   : > { %v2356_v18 = vadd.f32 %v2355_v62, %v2354_v63  ;;  %v8761_v62 = vld [vmem:[#allocation6_spill] sm:$0xff] }
 0x3df   : > { %v2358_v52 = vadd.f32 %v2357_v42, %v2356_v18  ;;  %v8762_v42 = vld [vmem:[#allocation7_spill] sm:$0xff] }
 0x3e1   : > { %v2360_v54 = vadd.f32 %v2359_v26, %v2358_v52  ;;  %v8763_v26 = vld [vmem:[#allocation8_spill] sm:$0xff] }
 0x3e3   : > { %v2361_v39 = vrot.slane %v2360_v54, 4 }
 0x3e5   : > { %v2362_v14 = vadd.f32 %v2361_v39, %v2360_v54 }
 0x3e7   : > { %v2363_v38 = vrot.slane %v2362_v14, 2 }
 0x3e9   : > { %v2364_v23 = vadd.f32 %v2363_v38, %v2362_v14  ;;  %v8764_v14 = vld [vmem:[#allocation9_spill] sm:$0xff] }
 0x3eb   : > { %v2365_v58 = vrot.slane %v2364_v23, 1 }
 0x3ed   : > { %v2366_v20 = vadd.f32 %v2365_v58, %v2364_v23 }
 0x3ef   : > { %v2367_v50 = vmul.f32 0.0009765625, %v2366_v20  ;;  %v8760_v20 = vld [vmem:[#allocation5_spill] sm:$0xff] }
 0x3f1   : > { %v2368_v8 = vadd.f32 1e-05, %v2367_v50  ;;  %v8766_v50 = vld [vmem:[#allocation10_spill] sm:$0xff] }
 0x3f3   : > { %4112 = vrsqrt.f32 %v2368_v8 }
 0x3fd   : > { %v5772_v28 = vpop.eup %4112 }
 0x3fe   : > { %v5776_v63 = vmul.f32 %v5772_v28, %v8756_v1  ;;  %v5780_v18 = vmul.f32 %v5772_v28, %v8757_v44  ;;  %v5784_v54 = vmul.f32 %v5772_v28, %v8758_v10  ;;  %v5788_v23 = vmul.f32 %v5772_v28, %v8759_v34  ;;  %v8768_v44 = vld [vmem:[#allocation11_spill] sm:$0xff]  ;;  %v8770_v34 = vld [vmem:[#allocation12_spill] sm:$0xff] }
 0x3ff   : > { %v5792_v58 = vmul.f32 %v5772_v28, %v8760_v20  ;;  %v5796_v1 = vmul.f32 %v5772_v28, %v8761_v62  ;;  %v5800_v52 = vmul.f32 %v5772_v28, %v8762_v42  ;;  %v5804_v39 = vmul.f32 %v5772_v28, %v8763_v26  ;;  %v8772_v62 = vld [vmem:[#allocation13_spill] sm:$0xff]  ;;  %v8774_v26 = vld [vmem:[#allocation14_spill] sm:$0xff] }
 0x400   : > { %v5808_v38 = vmul.f32 %v5772_v28, %v8764_v14  ;;  %v5812_v8 = vmul.f32 %v5772_v28, %v8766_v50  ;;  %v5816_v10 = vmul.f32 %v5772_v28, %v8768_v44  ;;  %v5820_v20 = vmul.f32 %v5772_v28, %v8770_v34 }
 0x401   : > { %v5824_v42 = vmul.f32 %v5772_v28, %v8772_v62  ;;  %v5828_v14 = vmul.f32 %v5772_v28, %v8774_v26 }
 0x402   : > { %8765 = vst [vmem:[#allocation64_spill] sm:$0xff] %v5808_v38  ;;  %8767 = vst [vmem:[#allocation66_spill] sm:$0xff] %v5812_v8  ;;  %v8776_v38 = vld [vmem:[#allocation15_spill] sm:$0xff]  ;;  %v8778_v8 = vld [vmem:[#allocation16_spill] sm:$0xff] }
 0x403   : > { %8769 = vst [vmem:[#allocation68_spill] sm:$0xff] %v5816_v10  ;;  %8771 = vst [vmem:[#allocation83_spill] sm:$0xff] %v5820_v20  ;;  %v5832_v50 = vmul.f32 %v5772_v28, %v8776_v38  ;;  %v5836_v44 = vmul.f32 %v5772_v28, %v8778_v8  ;;  %v8780_v10 = vld [vmem:[#allocation17_spill] sm:$0xff]  ;;  %v8782_v20 = vld [vmem:[#allocation18_spill] sm:$0xff] }
 0x404   : > { %8773 = vst [vmem:[#allocation2_spill] sm:$0xff] %v5824_v42  ;;  %8775 = vst [vmem:[#allocation3_spill] sm:$0xff] %v5828_v14  ;;  %v5840_v34 = vmul.f32 %v5772_v28, %v8780_v10  ;;  %v5844_v62 = vmul.f32 %v5772_v28, %v8782_v20  ;;  %v8784_v42 = vld [vmem:[#allocation19_spill] sm:$0xff]  ;;  %v8786_v14 = vld [vmem:[#allocation20_spill] sm:$0xff] }
 0x405   : > { %8777 = vst [vmem:[#allocation4_spill] sm:$0xff] %v5832_v50  ;;  %8779 = vst [vmem:[#allocation5_spill] sm:$0xff] %v5836_v44  ;;  %v5848_v26 = vmul.f32 %v5772_v28, %v8784_v42  ;;  %v5852_v38 = vmul.f32 %v5772_v28, %v8786_v14  ;;  %v8788_v50 = vld [vmem:[#allocation21_spill] sm:$0xff]  ;;  %v8790_v44 = vld [vmem:[#allocation22_spill] sm:$0xff] }
 0x406   : > { %8781 = vst [vmem:[#allocation6_spill] sm:$0xff] %v5840_v34  ;;  %8783 = vst [vmem:[#allocation7_spill] sm:$0xff] %v5844_v62  ;;  %v5856_v8 = vmul.f32 %v5772_v28, %v8788_v50  ;;  %v5860_v10 = vmul.f32 %v5772_v28, %v8790_v44  ;;  %v8792_v34 = vld [vmem:[#allocation23_spill] sm:$0xff]  ;;  %v8794_v62 = vld [vmem:[#allocation24_spill] sm:$0xff] }
 0x407   : > { %8785 = vst [vmem:[#allocation8_spill] sm:$0xff] %v5848_v26  ;;  %8787 = vst [vmem:[#allocation9_spill] sm:$0xff] %v5852_v38  ;;  %v5864_v20 = vmul.f32 %v5772_v28, %v8792_v34  ;;  %v5868_v42 = vmul.f32 %v5772_v28, %v8794_v62  ;;  %v8796_v26 = vld [vmem:[#allocation25_spill] sm:$0xff]  ;;  %v8798_v38 = vld [vmem:[#allocation26_spill] sm:$0xff] }
 0x408   : > { %8789 = vst [vmem:[#allocation10_spill] sm:$0xff] %v5856_v8  ;;  %8791 = vst [vmem:[#allocation11_spill] sm:$0xff] %v5860_v10  ;;  %v5872_v14 = vmul.f32 %v5772_v28, %v8796_v26  ;;  %v5876_v50 = vmul.f32 %v5772_v28, %v8798_v38  ;;  %v8800_v8 = vld [vmem:[#allocation27_spill] sm:$0xff]  ;;  %v8802_v10 = vld [vmem:[#allocation28_spill] sm:$0xff] }
 0x409   : > { %8793 = vst [vmem:[#allocation12_spill] sm:$0xff] %v5864_v20  ;;  %8795 = vst [vmem:[#allocation13_spill] sm:$0xff] %v5868_v42  ;;  %v5880_v44 = vmul.f32 %v5772_v28, %v8800_v8  ;;  %v5884_v34 = vmul.f32 %v5772_v28, %v8802_v10  ;;  %v8804_v20 = vld [vmem:[#allocation29_spill] sm:$0xff]  ;;  %v8806_v42 = vld [vmem:[#allocation30_spill] sm:$0xff] }
 0x40a   : > { %8797 = vst [vmem:[#allocation14_spill] sm:$0xff] %v5872_v14  ;;  %8799 = vst [vmem:[#allocation15_spill] sm:$0xff] %v5876_v50  ;;  %v5888_v62 = vmul.f32 %v5772_v28, %v8804_v20  ;;  %v5892_v26 = vmul.f32 %v5772_v28, %v8806_v42  ;;  %v8808_v14 = vld [vmem:[#allocation31_spill] sm:$0xff]  ;;  %v8810_v50 = vld [vmem:[#allocation32_spill] sm:$0xff] }
 0x40b   : > { %8801 = vst [vmem:[#allocation16_spill] sm:$0xff] %v5880_v44  ;;  %8803 = vst [vmem:[#allocation17_spill] sm:$0xff] %v5884_v34  ;;  %v5896_v38 = vmul.f32 %v5772_v28, %v8808_v14  ;;  %v5900_v8 = vmul.f32 %v5772_v28, %v8810_v50  ;;  %v8812_v44 = vld [vmem:[#allocation33_spill] sm:$0xff]  ;;  %v8814_v34 = vld [vmem:[#allocation34_spill] sm:$0xff] }
 0x40c   : > { %8805 = vst [vmem:[#allocation18_spill] sm:$0xff] %v5888_v62  ;;  %8807 = vst [vmem:[#allocation19_spill] sm:$0xff] %v5892_v26  ;;  %v5904_v10 = vmul.f32 %v5772_v28, %v8812_v44  ;;  %v5908_v20 = vmul.f32 %v5772_v28, %v8814_v34  ;;  %v8816_v62 = vld [vmem:[#allocation35_spill] sm:$0xff]  ;;  %v8818_v26 = vld [vmem:[#allocation36_spill] sm:$0xff] }
 0x40d   : > { %8809 = vst [vmem:[#allocation20_spill] sm:$0xff] %v5896_v38  ;;  %8811 = vst [vmem:[#allocation21_spill] sm:$0xff] %v5900_v8  ;;  %v5912_v42 = vmul.f32 %v5772_v28, %v8816_v62  ;;  %v5916_v14 = vmul.f32 %v5772_v28, %v8818_v26  ;;  %v8820_v38 = vld [vmem:[#allocation37_spill] sm:$0xff]  ;;  %v8822_v8 = vld [vmem:[#allocation38_spill] sm:$0xff] }
 0x40e   : > { %8813 = vst [vmem:[#allocation22_spill] sm:$0xff] %v5904_v10  ;;  %8815 = vst [vmem:[#allocation23_spill] sm:$0xff] %v5908_v20  ;;  %v5920_v50 = vmul.f32 %v5772_v28, %v8820_v38  ;;  %v5924_v44 = vmul.f32 %v5772_v28, %v8822_v8  ;;  %v8824_v10 = vld [vmem:[#allocation39_spill] sm:$0xff]  ;;  %v8826_v20 = vld [vmem:[#allocation40_spill] sm:$0xff] }
 0x40f   : > { %8817 = vst [vmem:[#allocation24_spill] sm:$0xff] %v5912_v42  ;;  %8819 = vst [vmem:[#allocation25_spill] sm:$0xff] %v5916_v14  ;;  %v5928_v34 = vmul.f32 %v5772_v28, %v8824_v10  ;;  %v5932_v62 = vmul.f32 %v5772_v28, %v8826_v20  ;;  %v8828_v42 = vld [vmem:[#allocation41_spill] sm:$0xff]  ;;  %v8830_v14 = vld [vmem:[#allocation42_spill] sm:$0xff] }
 0x410   : > { %8821 = vst [vmem:[#allocation26_spill] sm:$0xff] %v5920_v50  ;;  %8823 = vst [vmem:[#allocation27_spill] sm:$0xff] %v5924_v44  ;;  %v5936_v26 = vmul.f32 %v5772_v28, %v8828_v42  ;;  %v5940_v38 = vmul.f32 %v5772_v28, %v8830_v14  ;;  %v8832_v50 = vld [vmem:[#allocation43_spill] sm:$0xff]  ;;  %v8834_v44 = vld [vmem:[#allocation44_spill] sm:$0xff] }
 0x411   : > { %8825 = vst [vmem:[#allocation28_spill] sm:$0xff] %v5928_v34  ;;  %8827 = vst [vmem:[#allocation29_spill] sm:$0xff] %v5932_v62  ;;  %v5944_v8 = vmul.f32 %v5772_v28, %v8832_v50  ;;  %v5948_v10 = vmul.f32 %v5772_v28, %v8834_v44  ;;  %v8836_v34 = vld [vmem:[#allocation45_spill] sm:$0xff]  ;;  %v8838_v62 = vld [vmem:[#allocation46_spill] sm:$0xff] }
 0x412   : > { %8829 = vst [vmem:[#allocation30_spill] sm:$0xff] %v5936_v26  ;;  %8831 = vst [vmem:[#allocation31_spill] sm:$0xff] %v5940_v38  ;;  %v5952_v20 = vmul.f32 %v5772_v28, %v8836_v34  ;;  %v5956_v42 = vmul.f32 %v5772_v28, %v8838_v62  ;;  %v8840_v26 = vld [vmem:[#allocation48_spill] sm:$0xff]  ;;  %v8842_v38 = vld [vmem:[#allocation50_spill] sm:$0xff] }
 0x413   : > { %8833 = vst [vmem:[#allocation32_spill] sm:$0xff] %v5944_v8  ;;  %8835 = vst [vmem:[#allocation33_spill] sm:$0xff] %v5948_v10  ;;  %v5960_v14 = vmul.f32 %v5772_v28, %v8840_v26  ;;  %v5964_v50 = vmul.f32 %v5772_v28, %v8842_v38  ;;  %v8844_v8 = vld [vmem:[#allocation52_spill] sm:$0xff]  ;;  %v8845_v10 = vld [vmem:[#allocation54_spill] sm:$0xff] }
 0x414   : > { %8837 = vst [vmem:[#allocation34_spill] sm:$0xff] %v5952_v20  ;;  %8839 = vst [vmem:[#allocation35_spill] sm:$0xff] %v5956_v42  ;;  %v5968_v44 = vmul.f32 %v5772_v28, %v8844_v8  ;;  %v5972_v34 = vmul.f32 %v5772_v28, %v8845_v10  ;;  %v8846_v20 = vld [vmem:[#allocation56_spill] sm:$0xff]  ;;  %v8848_v42 = vld [vmem:[#allocation58_spill] sm:$0xff]  ;;  %v5992_v10 = vmul.f32 %v5772_v28, %v8728_v46 }
 0x415   : > { %8841 = vst [vmem:[#allocation36_spill] sm:$0xff] %v5960_v14  ;;  %8843 = vst [vmem:[#allocation37_spill] sm:$0xff] %v5964_v50  ;;  %v5976_v62 = vmul.f32 %v5772_v28, %v8846_v20  ;;  %v5980_v26 = vmul.f32 %v5772_v28, %v8848_v42  ;;  %v8849_v14 = vld [vmem:[#allocation60_spill] sm:$0xff]  ;;  %v8850_v50 = vld [vmem:[#allocation62_spill] sm:$0xff]  ;;  %v5996_v20 = vmul.f32 %v5772_v28, %v8729_v15 }
 0x416   : > { %v5984_v38 = vmul.f32 %v5772_v28, %v8849_v14  ;;  %v5988_v8 = vmul.f32 %v5772_v28, %v8850_v50  ;;  %v6000_v42 = vmul.f32 %v5772_v28, %v8730_v4  ;;  %v6004_v14 = vmul.f32 %v5772_v28, %v5106_v22 }
 0x417   : > { %8847 = vst [vmem:[#allocation38_spill] sm:$0xff] %v5976_v62  ;;  %v6008_v50 = vmul.f32 %v5772_v28, %v5110_v31  ;;  %v6012_v46 = vmul.f32 %v5772_v28, %v5114_v47  ;;  %v6016_v15 = vmul.f32 %v5772_v28, %v5118_v49  ;;  %v6020_v4 = vmul.f32 %v5772_v28, %v5122_v60 }
 0x418   : > { %8851 = vst [vmem:[#allocation39_spill] sm:$0xff] %v5988_v8  ;;  %8852 = vst [vmem:[#allocation40_spill] sm:$0xff] %v6000_v42  ;;  %v6024_v22 = vmul.f32 %v5772_v28, %v5126_v12  ;;  %v6028_v31 = vmul.f32 %v5772_v28, %v5130_v25  ;;  %v6032_v47 = vmul.f32 %v5772_v28, %v5134_v5 }
 0x419   : > { %8853 = vst [vmem:[#allocation41_spill] sm:$0xff] %v6012_v46  ;;  %v6036_v49 = vmul.f32 %v5772_v28, %v5138_v33  ;;  %v6040_v60 = vmul.f32 %v5772_v28, %v5142_v61  ;;  %v6044_v12 = vmul.f32 %v5772_v28, %v5146_v30  ;;  %v6048_v25 = vmul.f32 %v5772_v28, %v5150_v9 }
 0x41a   : > { %8854 = vst [vmem:[#allocation42_spill] sm:$0xff] %v6024_v22  ;;  %8855 = vst [vmem:[#allocation43_spill] sm:$0xff] %v6028_v31  ;;  %v6052_v5 = vmul.f32 %v5772_v28, %v5154_v0  ;;  %v6056_v33 = vmul.f32 %v5772_v28, %v5158_v7  ;;  %v6060_v61 = vmul.f32 %v5772_v28, %v5162_v16 }
 0x41b   : > { %8856 = vst [vmem:[#allocation44_spill] sm:$0xff] %v6032_v47  ;;  %8857 = vst [vmem:[#allocation45_spill] sm:$0xff] %v6036_v49  ;;  %v6064_v30 = vmul.f32 %v5772_v28, %v5166_v24  ;;  %v6068_v9 = vmul.f32 %v5772_v28, %v5170_v32  ;;  %v6072_v0 = vmul.f32 %v5772_v28, %v5174_v40 }
 0x41c   : > { %8858 = vst [vmem:[#allocation46_spill] sm:$0xff] %v6044_v12  ;;  %8859 = vst [vmem:[#allocation48_spill] sm:$0xff] %v6048_v25  ;;  %v6076_v7 = vmul.f32 %v5772_v28, %v5178_v48  ;;  %v6080_v16 = vmul.f32 %v5772_v28, %v5182_v56  ;;  %v6084_v24 = vmul.f32 %v5772_v28, %v5186_v2 }
 0x41d   : > { %8860 = vst [vmem:[#allocation50_spill] sm:$0xff] %v6052_v5  ;;  %8861 = vst [vmem:[#allocation52_spill] sm:$0xff] %v6056_v33  ;;  %v6088_v32 = vmul.f32 %v5772_v28, %v5190_v11  ;;  %v6092_v40 = vmul.f32 %v5772_v28, %v5194_v19  ;;  %v6096_v48 = vmul.f32 %v5772_v28, %v5198_v27  ;;  %v8971_v5 = vld [vmem:[#allocation13_spill] sm:$0xff] }
 0x41e   : > { %8862 = vst [vmem:[#allocation54_spill] sm:$0xff] %v6060_v61  ;;  %8863 = vst [vmem:[#allocation56_spill] sm:$0xff] %v6064_v30  ;;  %v6100_v56 = vmul.f32 %v5772_v28, %v5202_v35  ;;  %v6104_v2 = vmul.f32 %v5772_v28, %v5206_v43  ;;  %v6108_v11 = vmul.f32 %v5772_v28, %v5210_v51  ;;  %v6331_v25 = vmul.f32 0.1, %v8971_v5  ;;  %v8981_v5 = vld [vmem:[#allocation18_spill] sm:$0xff] }
 0x41f   : > { %8864 = vst [vmem:[#allocation58_spill] sm:$0xff] %v6068_v9  ;;  %8865 = vst [vmem:[#allocation60_spill] sm:$0xff] %v6072_v0  ;;  %v6112_v19 = vmul.f32 %v5772_v28, %v5214_v59  ;;  %v6116_v27 = vmul.f32 %v5772_v28, %v5218_v6  ;;  %v6120_v35 = vmul.f32 %v5772_v28, %v5222_v17  ;;  %v8965_v9 = vld [vmem:[#allocation10_spill] sm:$0xff] }
 0x420   : > { %8866 = vst [vmem:[#allocation62_spill] sm:$0xff] %v6076_v7  ;;  %8867 = vst [vmem:[#allocation89_spill] sm:$0xff] %v6080_v16  ;;  %v6124_v43 = vmul.f32 %v5772_v28, %v5226_v29  ;;  %v6128_v51 = vmul.f32 %v5772_v28, %v5230_v41  ;;  %v6132_v59 = vmul.f32 %v5772_v28, %v5234_v53  ;;  %v6319_v30 = vmul.f32 0.1, %v8965_v9  ;;  %v8975_v9 = vld [vmem:[#allocation15_spill] sm:$0xff] }
 0x421   : > { %8868 = vst [vmem:[#allocation90_spill] sm:$0xff] %v6084_v24  ;;  %8869 = vst [vmem:[#allocation91_spill] sm:$0xff] %v6088_v32  ;;  %v6136_v6 = vmul.f32 %v5772_v28, %v5238_v3  ;;  %v6140_v17 = vmul.f32 %v5772_v28, %v5242_v21  ;;  %v6144_v29 = vmul.f32 %v5772_v28, %v5246_v37  ;;  %v8961_v24 = vld [vmem:[#allocation7_spill] sm:$0xff] }
 0x422   : > { %8870 = vst [vmem:[#allocation92_spill] sm:$0xff] %v6092_v40  ;;  %8871 = vst [vmem:[#allocation93_spill] sm:$0xff] %v6096_v48  ;;  %v6148_v41 = vmul.f32 %v5772_v28, %v5250_v57  ;;  %v6152_v53 = vmul.f32 %v5772_v28, %v5254_v13  ;;  %v6156_v3 = vmul.f32 %v5772_v28, %v5258_v45  ;;  %v2515_v16 = vmul.f32 0.1, %v8961_v24 }
 0x423   : > { %8872 = vst [vmem:[#allocation94_spill] sm:$0xff] %v6100_v56  ;;  %8873 = vst [vmem:[#allocation95_spill] sm:$0xff] %v6104_v2  ;;  %v6160_v21 = vmul.f32 %v5772_v28, %v5262_v55  ;;  %v6164_v37 = vmul.f32 %v5772_v28, %v5266_v36  ;;  %v8957_v56 = vld [vmem:[#allocation4_spill] sm:$0xff] }
 0x424   : > { %8874 = vst [vmem:[#allocation96_spill] sm:$0xff] %v6108_v11  ;;  %8875 = vst [vmem:[#allocation97_spill] sm:$0xff] %v6112_v19  ;;  %v8956_v11 = vld [vmem:[#allocation3_spill] sm:$0xff]  ;;  %v2512_v48 = vmul.f32 0.1, %v8957_v56 }
 0x425   : > { %8876 = vst [vmem:[#allocation98_spill] sm:$0xff] %v6116_v27  ;;  %8877 = vst [vmem:[#allocation99_spill] sm:$0xff] %v6120_v35  ;;  %v8955_v27 = vld [vmem:[#allocation2_spill] sm:$0xff]  ;;  %v2511_v2 = vmul.f32 0.1, %v8956_v11 }
 0x426   : > { %8878 = vst [vmem:[#allocation100_spill] sm:$0xff] %v6124_v43  ;;  %8879 = vst [vmem:[#allocation101_spill] sm:$0xff] %v6128_v51  ;;  %v8952_v43 = vld [vmem:[#allocation68_spill] sm:$0xff]  ;;  %v2510_v19 = vmul.f32 0.1, %v8955_v27 }
 0x427   : > { %8880 = vst [vmem:[#allocation102_spill] sm:$0xff] %v6132_v59  ;;  %8881 = vst [vmem:[#allocation103_spill] sm:$0xff] %v6136_v6  ;;  %v8951_v59 = vld [vmem:[#allocation66_spill] sm:$0xff] }
 0x428   : > { %8882 = vst [vmem:[#allocation104_spill] sm:$0xff] %v6140_v17  ;;  %8883 = vst [vmem:[#allocation105_spill] sm:$0xff] %v6144_v29  ;;  %v8889_v29 = vld [vmem:[#allocation70_spill] sm:$0xff]  ;;  %v2507_v51 = vmul.f32 0.1, %v8951_v59 }
 0x429   : > { %8884 = vst [vmem:[#allocation106_spill] sm:$0xff] %v6148_v41  ;;  %8885 = vst [vmem:[#allocation107_spill] sm:$0xff] %v6152_v53  ;;  %v6168_v57 = vmul.f32 %v5772_v28, %v8889_v29  ;;  %v8891_v41 = vld [vmem:[#allocation72_spill] sm:$0xff]  ;;  %v8893_v53 = vld [vmem:[#allocation74_spill] sm:$0xff] }
 0x42a   : > { %8886 = vst [vmem:[#allocation108_spill] sm:$0xff] %v6156_v3  ;;  %8887 = vst [vmem:[#allocation109_spill] sm:$0xff] %v6160_v21  ;;  %v6172_v13 = vmul.f32 %v5772_v28, %v8891_v41  ;;  %v6176_v45 = vmul.f32 %v5772_v28, %v8893_v53  ;;  %v8895_v3 = vld [vmem:[#allocation76_spill] sm:$0xff]  ;;  %v8897_v21 = vld [vmem:[#allocation78_spill] sm:$0xff] }
 0x42b   : > { %8888 = vst [vmem:[#allocation110_spill] sm:$0xff] %v6164_v37  ;;  %8890 = vst [vmem:[#allocation70_spill] sm:$0xff] %v6168_v57  ;;  %v6180_v55 = vmul.f32 %v5772_v28, %v8895_v3  ;;  %v6184_v36 = vmul.f32 %v5772_v28, %v8897_v21  ;;  %v8899_v37 = vld [vmem:[#allocation80_spill] sm:$0xff]  ;;  %v8901_v57 = vld [vmem:[#allocation81_spill] sm:$0xff] }
 0x42c   : > { %8892 = vst [vmem:[#allocation72_spill] sm:$0xff] %v6172_v13  ;;  %8894 = vst [vmem:[#allocation74_spill] sm:$0xff] %v6176_v45  ;;  %v6188_v29 = vmul.f32 %v5772_v28, %v8899_v37  ;;  %v6192_v41 = vmul.f32 %v5772_v28, %v8901_v57  ;;  %v8903_v13 = vld [vmem:[#allocation84_spill] sm:$0xff]  ;;  %v8905_v45 = vld [vmem:[#allocation85_spill] sm:$0xff] }
 0x42d   : > { %8896 = vst [vmem:[#allocation76_spill] sm:$0xff] %v6180_v55  ;;  %8898 = vst [vmem:[#allocation78_spill] sm:$0xff] %v6184_v36  ;;  %v6196_v53 = vmul.f32 %v5772_v28, %v8903_v13  ;;  %v6200_v3 = vmul.f32 %v5772_v28, %v8905_v45  ;;  %v8907_v55 = vld [vmem:[#allocation86_spill] sm:$0xff]  ;;  %v8909_v36 = vld [vmem:[#allocation47_spill] sm:$0xff] }
 0x42e   : > { %8900 = vst [vmem:[#allocation80_spill] sm:$0xff] %v6188_v29  ;;  %8902 = vst [vmem:[#allocation81_spill] sm:$0xff] %v6192_v41  ;;  %v6204_v21 = vmul.f32 %v5772_v28, %v8907_v55  ;;  %v6208_v37 = vmul.f32 %v5772_v28, %v8909_v36  ;;  %v8911_v29 = vld [vmem:[#allocation53_spill] sm:$0xff]  ;;  %v8913_v41 = vld [vmem:[#allocation55_spill] sm:$0xff] }
 0x42f   : > { %8904 = vst [vmem:[#allocation84_spill] sm:$0xff] %v6196_v53  ;;  %8906 = vst [vmem:[#allocation85_spill] sm:$0xff] %v6200_v3  ;;  %v6212_v57 = vmul.f32 %v5772_v28, %v8911_v29  ;;  %v6216_v13 = vmul.f32 %v5772_v28, %v8913_v41  ;;  %v8915_v53 = vld [vmem:[#allocation57_spill] sm:$0xff]  ;;  %v8917_v3 = vld [vmem:[#allocation59_spill] sm:$0xff] }
 0x430   : > { %8908 = vst [vmem:[#allocation86_spill] sm:$0xff] %v6204_v21  ;;  %8910 = vst [vmem:[#allocation47_spill] sm:$0xff] %v6208_v37  ;;  %v6220_v45 = vmul.f32 %v5772_v28, %v8915_v53  ;;  %v6224_v55 = vmul.f32 %v5772_v28, %v8917_v3  ;;  %v8919_v21 = vld [vmem:[#allocation61_spill] sm:$0xff]  ;;  %v8921_v37 = vld [vmem:[#allocation63_spill] sm:$0xff] }
 0x431   : > { %8912 = vst [vmem:[#allocation53_spill] sm:$0xff] %v6212_v57  ;;  %8914 = vst [vmem:[#allocation55_spill] sm:$0xff] %v6216_v13  ;;  %v6228_v36 = vmul.f32 %v5772_v28, %v8919_v21  ;;  %v6232_v29 = vmul.f32 %v5772_v28, %v8921_v37  ;;  %v8923_v57 = vld [vmem:[#allocation65_spill] sm:$0xff]  ;;  %v8925_v13 = vld [vmem:[#allocation67_spill] sm:$0xff] }
 0x432   : > { %8916 = vst [vmem:[#allocation57_spill] sm:$0xff] %v6220_v45  ;;  %8918 = vst [vmem:[#allocation59_spill] sm:$0xff] %v6224_v55  ;;  %v6236_v41 = vmul.f32 %v5772_v28, %v8923_v57  ;;  %v6240_v53 = vmul.f32 %v5772_v28, %v8925_v13  ;;  %v8927_v45 = vld [vmem:[#allocation69_spill] sm:$0xff]  ;;  %v8929_v55 = vld [vmem:[#allocation71_spill] sm:$0xff] }
 0x433   : > { %8920 = vst [vmem:[#allocation61_spill] sm:$0xff] %v6228_v36  ;;  %8922 = vst [vmem:[#allocation63_spill] sm:$0xff] %v6232_v29  ;;  %v6244_v3 = vmul.f32 %v5772_v28, %v8927_v45  ;;  %v6248_v21 = vmul.f32 %v5772_v28, %v8929_v55  ;;  %v8931_v36 = vld [vmem:[#allocation73_spill] sm:$0xff]  ;;  %v8933_v29 = vld [vmem:[#allocation75_spill] sm:$0xff] }
 0x434   : > { %8924 = vst [vmem:[#allocation65_spill] sm:$0xff] %v6236_v41  ;;  %8926 = vst [vmem:[#allocation67_spill] sm:$0xff] %v6240_v53  ;;  %v6252_v37 = vmul.f32 %v5772_v28, %v8931_v36  ;;  %v6256_v57 = vmul.f32 %v5772_v28, %v8933_v29  ;;  %v8935_v41 = vld [vmem:[#allocation77_spill] sm:$0xff]  ;;  %v8937_v53 = vld [vmem:[#allocation79_spill] sm:$0xff] }
 0x435   : > { %8928 = vst [vmem:[#allocation69_spill] sm:$0xff] %v6244_v3  ;;  %8930 = vst [vmem:[#allocation71_spill] sm:$0xff] %v6248_v21  ;;  %v6260_v13 = vmul.f32 %v5772_v28, %v8935_v41  ;;  %v6264_v45 = vmul.f32 %v5772_v28, %v8937_v53  ;;  %v8939_v3 = vld [vmem:[#allocation87_spill] sm:$0xff]  ;;  %v8941_v21 = vld [vmem:[#allocation82_spill] sm:$0xff]  ;;  %v2499_v53 = vmul.f32 0.1, %v5780_v18 }
 0x436   : > { %8932 = vst [vmem:[#allocation73_spill] sm:$0xff] %v6252_v37  ;;  %8934 = vst [vmem:[#allocation75_spill] sm:$0xff] %v6256_v57  ;;  %v6268_v55 = vmul.f32 %v5772_v28, %v8939_v3  ;;  %v6272_v36 = vmul.f32 %v5772_v28, %v8941_v21  ;;  %v8943_v37 = vld [vmem:[#allocation88_spill] sm:$0xff]  ;;  %v8945_v57 = vld [vmem:[#allocation49_spill] sm:$0xff]  ;;  %v2501_v21 = vmul.f32 0.1, %v5788_v23 }
 0x437   : > { %8936 = vst [vmem:[#allocation77_spill] sm:$0xff] %v6260_v13  ;;  %8938 = vst [vmem:[#allocation79_spill] sm:$0xff] %v6264_v45  ;;  %v6276_v29 = vmul.f32 %v5772_v28, %v8943_v37  ;;  %v6280_v41 = vmul.f32 %v5772_v28, %v8945_v57  ;;  %v2498_v13 = vmul.f32 0.1, %v5776_v63  ;;  %v2500_v45 = vmul.f32 0.1, %v5784_v54 }
 0x438   : > { %8940 = vst [vmem:[#allocation87_spill] sm:$0xff] %v6268_v55  ;;  %8942 = vst [vmem:[#allocation82_spill] sm:$0xff] %v6272_v36  ;;  %v8947_v3 = vld [vmem:[#allocation51_spill] sm:$0xff]  ;;  %v2502_v36 = vmul.f32 0.1, %v5792_v58  ;;  %v6302_v35 = vmax.f32 %v5780_v18, %v2499_v53  ;;  %v6314_v7 = vmax.f32 %v5788_v23, %v2501_v21  ;;  %v8963_v18 = vld [vmem:[#allocation8_spill] sm:$0xff] }
 0x439   : > { %8944 = vst [vmem:[#allocation88_spill] sm:$0xff] %v6276_v29  ;;  %8946 = vst [vmem:[#allocation49_spill] sm:$0xff] %v6280_v41  ;;  %v6287_v55 = vmul.f32 %v5772_v28, %v8947_v3  ;;  %v2503_v37 = vmul.f32 0.1, %v5796_v1  ;;  %v2504_v29 = vmul.f32 0.1, %v5800_v52  ;;  %v6296_v6 = vmax.f32 %v5776_v63, %v2498_v13 }
 0x43a   : > { %v2505_v57 = vmul.f32 0.1, %v5804_v39  ;;  %v8949_v41 = vld [vmem:[#allocation64_spill] sm:$0xff]  ;;  %v2508_v28 = vmul.f32 0.1, %v8952_v43  ;;  %v8953_v3 = vld [vmem:[#allocation83_spill] sm:$0xff]  ;;  %v6308_v40 = vmax.f32 %v5784_v54, %v2500_v45  ;;  %v6322_v61 = vmax.f32 %v5792_v58, %v2502_v36 }
 0x43b   : > { %8948 = vst [vmem:[#allocation51_spill] sm:$0xff] %v6287_v55  ;;  %v2506_v17 = vmul.f32 0.1, %v8949_v41  ;;  %8950 = vst [vmem:[#allocation64_spill] sm:$0xff] %v6296_v6  ;;  %v2509_v55 = vmul.f32 0.1, %v8953_v3  ;;  %v6334_v23 = vmax.f32 %v5796_v1, %v2503_v37 }
 0x43c   : > { %8954 = vst [vmem:[#allocation66_spill] sm:$0xff] %v6302_v35  ;;  %8958 = vst [vmem:[#allocation68_spill] sm:$0xff] %v6308_v40  ;;  %v8959_v63 = vld [vmem:[#allocation5_spill] sm:$0xff]  ;;  %v8960_v6 = vld [vmem:[#allocation6_spill] sm:$0xff]  ;;  %v2516_v53 = vmul.f32 0.1, %v8963_v18 }
 0x43d   : > { %v2513_v13 = vmul.f32 0.1, %v8959_v63  ;;  %v2514_v32 = vmul.f32 0.1, %v8960_v6  ;;  %8962 = vst [vmem:[#allocation83_spill] sm:$0xff] %v6314_v7  ;;  %v8964_v35 = vld [vmem:[#allocation9_spill] sm:$0xff] }
 0x43e   : > { %v2517_v0 = vmul.f32 0.1, %v8964_v35  ;;  %8966 = vst [vmem:[#allocation2_spill] sm:$0xff] %v6319_v30  ;;  %8967 = vst [vmem:[#allocation3_spill] sm:$0xff] %v6322_v61  ;;  %v8968_v54 = vld [vmem:[#allocation11_spill] sm:$0xff]  ;;  %v8969_v40 = vld [vmem:[#allocation12_spill] sm:$0xff]  ;;  %v6346_v61 = vmax.f32 %v5800_v52, %v2504_v29 }
 0x43f   : > { %v6325_v45 = vmul.f32 0.1, %v8968_v54  ;;  %v6328_v33 = vmul.f32 0.1, %v8969_v40  ;;  %8972 = vst [vmem:[#allocation5_spill] sm:$0xff] %v6331_v25  ;;  %8973 = vst [vmem:[#allocation6_spill] sm:$0xff] %v6334_v23  ;;  %v6358_v23 = vmax.f32 %v5804_v39, %v2505_v57 }
 0x440   : > { %v8974_v21 = vld [vmem:[#allocation14_spill] sm:$0xff]  ;;  %v6340_v30 = vmul.f32 0.1, %v8975_v9  ;;  %v8977_v58 = vld [vmem:[#allocation16_spill] sm:$0xff]  ;;  %8979 = vst [vmem:[#allocation9_spill] sm:$0xff] %v6346_v61  ;;  %v8980_v40 = vld [vmem:[#allocation17_spill] sm:$0xff]  ;;  %v6370_v61 = vmax.f32 %v8949_v41, %v2506_v17 }
 0x441   : > { %8970 = vst [vmem:[#allocation4_spill] sm:$0xff] %v6328_v33  ;;  %v6337_v7 = vmul.f32 0.1, %v8974_v21  ;;  %v6343_v36 = vmul.f32 0.1, %v8977_v58  ;;  %v8983_v1 = vld [vmem:[#allocation19_spill] sm:$0xff] }
 0x442   : > { %8976 = vst [vmem:[#allocation7_spill] sm:$0xff] %v6340_v30  ;;  %v6349_v33 = vmul.f32 0.1, %v8980_v40  ;;  %v6352_v25 = vmul.f32 0.1, %v8981_v5  ;;  %8985 = vst [vmem:[#allocation17_spill] sm:$0xff] %v6358_v23  ;;  %v6382_v23 = vmax.f32 %v8951_v59, %v2507_v51 }
 0x443   : > { %8978 = vst [vmem:[#allocation8_spill] sm:$0xff] %v6343_v36  ;;  %v6355_v37 = vmul.f32 0.1, %v8983_v1  ;;  %v8986_v9 = vld [vmem:[#allocation20_spill] sm:$0xff]  ;;  %v8987_v58 = vld [vmem:[#allocation21_spill] sm:$0xff]  ;;  %v8989_v52 = vld [vmem:[#allocation22_spill] sm:$0xff] }
 0x444   : > { %8982 = vst [vmem:[#allocation11_spill] sm:$0xff] %v6352_v25  ;;  %v6361_v30 = vmul.f32 0.1, %v8986_v9  ;;  %v6364_v36 = vmul.f32 0.1, %v8987_v58  ;;  %8991 = vst [vmem:[#allocation112_spill] sm:$0xff] %v6370_v61  ;;  %v6394_v61 = vmax.f32 %v8952_v43, %v2508_v28 }
 0x445   : > { %8984 = vst [vmem:[#allocation14_spill] sm:$0xff] %v6355_v37  ;;  %v6367_v29 = vmul.f32 0.1, %v8989_v52  ;;  %v8992_v5 = vld [vmem:[#allocation23_spill] sm:$0xff]  ;;  %v8993_v1 = vld [vmem:[#allocation24_spill] sm:$0xff]  ;;  %v8995_v39 = vld [vmem:[#allocation25_spill] sm:$0xff] }
 0x446   : > { %8988 = vst [vmem:[#allocation20_spill] sm:$0xff] %v6364_v36  ;;  %v6373_v25 = vmul.f32 0.1, %v8992_v5  ;;  %v6376_v37 = vmul.f32 0.1, %v8993_v1  ;;  %8997 = vst [vmem:[#allocation114_spill] sm:$0xff] %v6382_v23  ;;  %v6406_v23 = vmax.f32 %v8953_v3, %v2509_v55 }
 0x447   : > { %8990 = vst [vmem:[#allocation111_spill] sm:$0xff] %v6367_v29  ;;  %v6379_v57 = vmul.f32 0.1, %v8995_v39  ;;  %v8998_v58 = vld [vmem:[#allocation26_spill] sm:$0xff]  ;;  %v8999_v52 = vld [vmem:[#allocation27_spill] sm:$0xff]  ;;  %v9001_v17 = vld [vmem:[#allocation28_spill] sm:$0xff] }
 0x448   : > { %8994 = vst [vmem:[#allocation23_spill] sm:$0xff] %v6376_v37  ;;  %v6385_v36 = vmul.f32 0.1, %v8998_v58  ;;  %v6388_v29 = vmul.f32 0.1, %v8999_v52  ;;  %9003 = vst [vmem:[#allocation116_spill] sm:$0xff] %v6394_v61  ;;  %v6418_v61 = vmax.f32 %v8955_v27, %v2510_v19  ;;  %v6442_v27 = vmax.f32 %v8957_v56, %v2512_v48 }
 0x449   : > { %8996 = vst [vmem:[#allocation113_spill] sm:$0xff] %v6379_v57  ;;  %v6391_v41 = vmul.f32 0.1, %v9001_v17  ;;  %v9004_v1 = vld [vmem:[#allocation29_spill] sm:$0xff]  ;;  %v9005_v39 = vld [vmem:[#allocation30_spill] sm:$0xff]  ;;  %v9007_v51 = vld [vmem:[#allocation31_spill] sm:$0xff]  ;;  %v6466_v56 = vmax.f32 %v8960_v6, %v2514_v32  ;;  %v6490_v6 = vmax.f32 %v8963_v18, %v2516_v53 }
 0x44a   : > { %9000 = vst [vmem:[#allocation26_spill] sm:$0xff] %v6388_v29  ;;  %v6397_v37 = vmul.f32 0.1, %v9004_v1  ;;  %v6400_v57 = vmul.f32 0.1, %v9005_v39  ;;  %9009 = vst [vmem:[#allocation118_spill] sm:$0xff] %v6406_v23  ;;  %v6430_v23 = vmax.f32 %v8956_v11, %v2511_v2  ;;  %v6454_v11 = vmax.f32 %v8959_v63, %v2513_v13 }
 0x44b   : > { %9002 = vst [vmem:[#allocation115_spill] sm:$0xff] %v6391_v41  ;;  %v6403_v59 = vmul.f32 0.1, %v9007_v51  ;;  %v9010_v52 = vld [vmem:[#allocation32_spill] sm:$0xff]  ;;  %v9011_v17 = vld [vmem:[#allocation33_spill] sm:$0xff]  ;;  %v9012_v43 = vld [vmem:[#allocation34_spill] sm:$0xff]  ;;  %v6478_v13 = vmax.f32 %v8961_v24, %v2515_v16  ;;  %v6502_v24 = vmax.f32 %v8964_v35, %v2517_v0 }
 0x44c   : > { %9006 = vst [vmem:[#allocation29_spill] sm:$0xff] %v6400_v57  ;;  %v6409_v29 = vmul.f32 0.1, %v9010_v52  ;;  %v6412_v41 = vmul.f32 0.1, %v9011_v17  ;;  %9013 = vst [vmem:[#allocation32_spill] sm:$0xff] %v6418_v61 }
 0x44d   : > { %9008 = vst [vmem:[#allocation117_spill] sm:$0xff] %v6403_v59  ;;  %v6415_v28 = vmul.f32 0.1, %v9012_v43  ;;  %v9014_v39 = vld [vmem:[#allocation35_spill] sm:$0xff]  ;;  %v9015_v51 = vld [vmem:[#allocation36_spill] sm:$0xff]  ;;  %v9016_v55 = vld [vmem:[#allocation37_spill] sm:$0xff] }
 0x44e   : > { %v6421_v57 = vmul.f32 0.1, %v9014_v39  ;;  %v6424_v59 = vmul.f32 0.1, %v9015_v51  ;;  %v6427_v3 = vmul.f32 0.1, %v9016_v55 }
 0x44f   : > { %9017 = vst [vmem:[#allocation35_spill] sm:$0xff] %v6430_v23  ;;  %v6433_v17 = vmul.f32 0.1, %v5968_v44  ;;  %v6436_v43 = vmul.f32 0.1, %v5972_v34  ;;  %9018 = vst [vmem:[#allocation36_spill] sm:$0xff] %v6442_v27 }
 0x450   : > { %v6439_v19 = vmul.f32 0.1, %v5976_v62  ;;  %v6445_v61 = vmul.f32 0.1, %v5980_v26  ;;  %v6448_v55 = vmul.f32 0.1, %v5984_v38 }
 0x451   : > { %v6451_v2 = vmul.f32 0.1, %v5988_v8  ;;  %9019 = vst [vmem:[#allocation119_spill] sm:$0xff] %v6454_v11  ;;  %v6457_v23 = vmul.f32 0.1, %v5992_v10  ;;  %9020 = vst [vmem:[#allocation120_spill] sm:$0xff] %v6466_v56 }
 0x452   : > { %v6460_v62 = vmul.f32 0.1, %v5996_v20  ;;  %v6463_v48 = vmul.f32 0.1, %v6000_v42  ;;  %v6469_v27 = vmul.f32 0.1, %v6004_v14 }
 0x453   : > { %v6472_v8 = vmul.f32 0.1, %v6008_v50  ;;  %v6475_v63 = vmul.f32 0.1, %v6012_v46  ;;  %9021 = vst [vmem:[#allocation121_spill] sm:$0xff] %v6478_v13  ;;  %9022 = vst [vmem:[#allocation122_spill] sm:$0xff] %v6490_v6 }
 0x454   : > { %v6481_v11 = vmul.f32 0.1, %v6016_v15  ;;  %v6484_v42 = vmul.f32 0.1, %v6020_v4  ;;  %v6487_v32 = vmul.f32 0.1, %v6024_v22 }
 0x455   : > { %v6493_v56 = vmul.f32 0.1, %v6028_v31  ;;  %v6496_v46 = vmul.f32 0.1, %v6032_v47  ;;  %v6499_v16 = vmul.f32 0.1, %v6036_v49 }
 0x456   : > { %9026 = vst [vmem:[#allocation126_spill] sm:$0xff] %v6502_v24  ;;  %v6505_v13 = vmul.f32 0.1, %v6040_v60  ;;  %v6508_v22 = vmul.f32 0.1, %v6044_v12  ;;  %v9028_v18 = vld [vmem:[#allocation48_spill] sm:$0xff]  ;;  %v6528_v24 = vmax.f32 %v8968_v54, %v6325_v45 }
 0x457   : > { %9023 = vst [vmem:[#allocation123_spill] sm:$0xff] %v6493_v56  ;;  %9024 = vst [vmem:[#allocation124_spill] sm:$0xff] %v6496_v46  ;;  %v6511_v53 = vmul.f32 0.1, %v9028_v18  ;;  %v9030_v6 = vld [vmem:[#allocation2_spill] sm:$0xff]  ;;  %v9035_v49 = vld [vmem:[#allocation52_spill] sm:$0xff] }
 0x458   : > { %9025 = vst [vmem:[#allocation125_spill] sm:$0xff] %v6499_v16  ;;  %9027 = vst [vmem:[#allocation127_spill] sm:$0xff] %v6508_v22  ;;  %v9031_v31 = vld [vmem:[#allocation10_spill] sm:$0xff]  ;;  %v6521_v16 = vmul.f32 0.1, %v9035_v49  ;;  %v9040_v12 = vld [vmem:[#allocation56_spill] sm:$0xff] }
 0x459   : > { %9029 = vst [vmem:[#allocation128_spill] sm:$0xff] %v6511_v53  ;;  %v6515_v56 = vmax.f32 %v9031_v31, %v9030_v6  ;;  %v9033_v47 = vld [vmem:[#allocation50_spill] sm:$0xff]  ;;  %9039 = vst [vmem:[#allocation131_spill] sm:$0xff] %v6528_v24  ;;  %v6531_v18 = vmul.f32 0.1, %v9040_v12  ;;  %v9044_v31 = vld [vmem:[#allocation60_spill] sm:$0xff] }
 0x45a   : > { %v6518_v46 = vmul.f32 0.1, %v9033_v47  ;;  %9036 = vst [vmem:[#allocation129_spill] sm:$0xff] %v6521_v16  ;;  %v9037_v0 = vld [vmem:[#allocation54_spill] sm:$0xff]  ;;  %v6537_v6 = vmul.f32 0.1, %v9044_v31 }
 0x45b   : > { %9032 = vst [vmem:[#allocation2_spill] sm:$0xff] %v6515_v56  ;;  %v6524_v35 = vmul.f32 0.1, %v9037_v0  ;;  %9041 = vst [vmem:[#allocation132_spill] sm:$0xff] %v6531_v18  ;;  %v9042_v53 = vld [vmem:[#allocation58_spill] sm:$0xff]  ;;  %v9046_v56 = vld [vmem:[#allocation4_spill] sm:$0xff] }
 0x45c   : > { %9034 = vst [vmem:[#allocation10_spill] sm:$0xff] %v6518_v46  ;;  %v6534_v22 = vmul.f32 0.1, %v9042_v53  ;;  %9045 = vst [vmem:[#allocation134_spill] sm:$0xff] %v6537_v6  ;;  %v9047_v47 = vld [vmem:[#allocation12_spill] sm:$0xff]  ;;  %v9049_v16 = vld [vmem:[#allocation62_spill] sm:$0xff] }
 0x45d   : > { %9038 = vst [vmem:[#allocation130_spill] sm:$0xff] %v6524_v35  ;;  %v6541_v49 = vmax.f32 %v9047_v47, %v9046_v56  ;;  %v6544_v0 = vmul.f32 0.1, %v9049_v16  ;;  %v9050_v35 = vld [vmem:[#allocation89_spill] sm:$0xff]  ;;  %v9052_v54 = vld [vmem:[#allocation90_spill] sm:$0xff]  ;;  %v9059_v6 = vld [vmem:[#allocation92_spill] sm:$0xff] }
 0x45e   : > { %9043 = vst [vmem:[#allocation133_spill] sm:$0xff] %v6534_v22  ;;  %v6547_v46 = vmul.f32 0.1, %v9050_v35  ;;  %v6550_v45 = vmul.f32 0.1, %v9052_v54  ;;  %v9054_v24 = vld [vmem:[#allocation5_spill] sm:$0xff] }
 0x45f   : > { %9048 = vst [vmem:[#allocation4_spill] sm:$0xff] %v6541_v49  ;;  %v9055_v12 = vld [vmem:[#allocation13_spill] sm:$0xff]  ;;  %v9057_v22 = vld [vmem:[#allocation91_spill] sm:$0xff]  ;;  %v6560_v18 = vmul.f32 0.1, %v9059_v6  ;;  %v6567_v49 = vmax.f32 %v8974_v21, %v6337_v7  ;;  %v9064_v35 = vld [vmem:[#allocation94_spill] sm:$0xff] }
 0x460   : > { %9051 = vst [vmem:[#allocation12_spill] sm:$0xff] %v6547_v46  ;;  %9053 = vst [vmem:[#allocation62_spill] sm:$0xff] %v6550_v45  ;;  %v6554_v53 = vmax.f32 %v9055_v12, %v9054_v24  ;;  %v6557_v31 = vmul.f32 0.1, %v9057_v22  ;;  %v9061_v47 = vld [vmem:[#allocation93_spill] sm:$0xff]  ;;  %v9066_v45 = vld [vmem:[#allocation95_spill] sm:$0xff] }
 0x461   : > { %9060 = vst [vmem:[#allocation135_spill] sm:$0xff] %v6560_v18  ;;  %v6563_v56 = vmul.f32 0.1, %v9061_v47  ;;  %9063 = vst [vmem:[#allocation137_spill] sm:$0xff] %v6567_v49  ;;  %v6570_v54 = vmul.f32 0.1, %v9064_v35 }
 0x462   : > { %9056 = vst [vmem:[#allocation5_spill] sm:$0xff] %v6554_v53  ;;  %9058 = vst [vmem:[#allocation13_spill] sm:$0xff] %v6557_v31  ;;  %v6573_v46 = vmul.f32 0.1, %v9066_v45  ;;  %v9068_v12 = vld [vmem:[#allocation96_spill] sm:$0xff]  ;;  %v9070_v53 = vld [vmem:[#allocation7_spill] sm:$0xff] }
 0x463   : > { %9062 = vst [vmem:[#allocation136_spill] sm:$0xff] %v6563_v56  ;;  %9065 = vst [vmem:[#allocation138_spill] sm:$0xff] %v6570_v54  ;;  %v6576_v24 = vmul.f32 0.1, %v9068_v12  ;;  %v9071_v22 = vld [vmem:[#allocation15_spill] sm:$0xff]  ;;  %v9073_v18 = vld [vmem:[#allocation97_spill] sm:$0xff] }
 0x464   : > { %9067 = vst [vmem:[#allocation139_spill] sm:$0xff] %v6573_v46  ;;  %v6580_v6 = vmax.f32 %v9071_v22, %v9070_v53  ;;  %v6583_v47 = vmul.f32 0.1, %v9073_v18  ;;  %v9074_v56 = vld [vmem:[#allocation98_spill] sm:$0xff]  ;;  %v9076_v7 = vld [vmem:[#allocation99_spill] sm:$0xff]  ;;  %v9078_v49 = vld [vmem:[#allocation8_spill] sm:$0xff] }
 0x465   : > { %9069 = vst [vmem:[#allocation140_spill] sm:$0xff] %v6576_v24  ;;  %v6586_v31 = vmul.f32 0.1, %v9074_v56  ;;  %v6589_v21 = vmul.f32 0.1, %v9076_v7  ;;  %v9079_v35 = vld [vmem:[#allocation16_spill] sm:$0xff] }
 0x466   : > { %9072 = vst [vmem:[#allocation7_spill] sm:$0xff] %v6580_v6  ;;  %v6593_v45 = vmax.f32 %v9079_v35, %v9078_v49  ;;  %v9081_v46 = vld [vmem:[#allocation100_spill] sm:$0xff]  ;;  %v9083_v24 = vld [vmem:[#allocation101_spill] sm:$0xff]  ;;  %v9085_v22 = vld [vmem:[#allocation102_spill] sm:$0xff]  ;;  %v6606_v6 = vmax.f32 %v8980_v40, %v6349_v33 }
 0x467   : > { %9075 = vst [vmem:[#allocation15_spill] sm:$0xff] %v6586_v31  ;;  %9077 = vst [vmem:[#allocation97_spill] sm:$0xff] %v6589_v21  ;;  %v6596_v12 = vmul.f32 0.1, %v9081_v46  ;;  %v6599_v54 = vmul.f32 0.1, %v9083_v24 }
 0x468   : > { %9080 = vst [vmem:[#allocation8_spill] sm:$0xff] %v6593_v45  ;;  %v6602_v53 = vmul.f32 0.1, %v9085_v22  ;;  %9087 = vst [vmem:[#allocation143_spill] sm:$0xff] %v6606_v6  ;;  %v9088_v56 = vld [vmem:[#allocation103_spill] sm:$0xff]  ;;  %v9090_v21 = vld [vmem:[#allocation104_spill] sm:$0xff] }
 0x469   : > { %9082 = vst [vmem:[#allocation16_spill] sm:$0xff] %v6596_v12  ;;  %9084 = vst [vmem:[#allocation141_spill] sm:$0xff] %v6599_v54  ;;  %v6609_v7 = vmul.f32 0.1, %v9088_v56  ;;  %v6612_v31 = vmul.f32 0.1, %v9090_v21 }
 0x46a   : > { %9086 = vst [vmem:[#allocation142_spill] sm:$0xff] %v6602_v53  ;;  %v9092_v49 = vld [vmem:[#allocation105_spill] sm:$0xff]  ;;  %v9094_v45 = vld [vmem:[#allocation11_spill] sm:$0xff]  ;;  %v9095_v46 = vld [vmem:[#allocation18_spill] sm:$0xff] }
 0x46b   : > { %9089 = vst [vmem:[#allocation144_spill] sm:$0xff] %v6609_v7  ;;  %9091 = vst [vmem:[#allocation145_spill] sm:$0xff] %v6612_v31  ;;  %v6615_v35 = vmul.f32 0.1, %v9092_v49  ;;  %v6619_v24 = vmax.f32 %v9095_v46, %v9094_v45  ;;  %v9097_v54 = vld [vmem:[#allocation106_spill] sm:$0xff]  ;;  %v9098_v53 = vld [vmem:[#allocation107_spill] sm:$0xff] }
 0x46c   : > { %v6622_v22 = vmul.f32 0.1, %v9097_v54  ;;  %v6625_v12 = vmul.f32 0.1, %v9098_v53  ;;  %v9100_v33 = vld [vmem:[#allocation108_spill] sm:$0xff]  ;;  %v9102_v6 = vld [vmem:[#allocation14_spill] sm:$0xff] }
 0x46d   : > { %9093 = vst [vmem:[#allocation146_spill] sm:$0xff] %v6615_v35  ;;  %9096 = vst [vmem:[#allocation11_spill] sm:$0xff] %v6619_v24  ;;  %v6628_v40 = vmul.f32 0.1, %v9100_v33  ;;  %v9103_v56 = vld [vmem:[#allocation19_spill] sm:$0xff]  ;;  %v9105_v31 = vld [vmem:[#allocation109_spill] sm:$0xff]  ;;  %v6645_v24 = vmax.f32 %v8986_v9, %v6361_v30 }
 0x46e   : > { %9099 = vst [vmem:[#allocation18_spill] sm:$0xff] %v6625_v12  ;;  %v6632_v21 = vmax.f32 %v9103_v56, %v9102_v6  ;;  %v6635_v49 = vmul.f32 0.1, %v9105_v31  ;;  %v9107_v35 = vld [vmem:[#allocation110_spill] sm:$0xff]  ;;  %v9112_v53 = vld [vmem:[#allocation72_spill] sm:$0xff]  ;;  %v9119_v31 = vld [vmem:[#allocation21_spill] sm:$0xff] }
 0x46f   : > { %9101 = vst [vmem:[#allocation106_spill] sm:$0xff] %v6628_v40  ;;  %v6638_v7 = vmul.f32 0.1, %v9107_v35  ;;  %v9109_v46 = vld [vmem:[#allocation70_spill] sm:$0xff]  ;;  %9111 = vst [vmem:[#allocation149_spill] sm:$0xff] %v6645_v24  ;;  %v9116_v6 = vld [vmem:[#allocation76_spill] sm:$0xff] }
 0x470   : > { %9104 = vst [vmem:[#allocation14_spill] sm:$0xff] %v6632_v21  ;;  %9106 = vst [vmem:[#allocation19_spill] sm:$0xff] %v6635_v49  ;;  %v6641_v45 = vmul.f32 0.1, %v9109_v46  ;;  %v6648_v33 = vmul.f32 0.1, %v9112_v53 }
 0x471   : > { %9108 = vst [vmem:[#allocation147_spill] sm:$0xff] %v6638_v7  ;;  %v9114_v40 = vld [vmem:[#allocation74_spill] sm:$0xff]  ;;  %v6654_v56 = vmul.f32 0.1, %v9116_v6  ;;  %v9118_v21 = vld [vmem:[#allocation20_spill] sm:$0xff]  ;;  %v9124_v30 = vld [vmem:[#allocation81_spill] sm:$0xff] }
 0x472   : > { %9110 = vst [vmem:[#allocation148_spill] sm:$0xff] %v6641_v45  ;;  %9113 = vst [vmem:[#allocation150_spill] sm:$0xff] %v6648_v33  ;;  %v6651_v12 = vmul.f32 0.1, %v9114_v40  ;;  %v6658_v35 = vmax.f32 %v9119_v31, %v9118_v21  ;;  %v9121_v7 = vld [vmem:[#allocation78_spill] sm:$0xff]  ;;  %v9122_v45 = vld [vmem:[#allocation80_spill] sm:$0xff] }
 0x473   : > { %9117 = vst [vmem:[#allocation152_spill] sm:$0xff] %v6654_v56  ;;  %v6661_v46 = vmul.f32 0.1, %v9121_v7  ;;  %v6664_v49 = vmul.f32 0.1, %v9122_v45  ;;  %v9126_v24 = vld [vmem:[#allocation111_spill] sm:$0xff] }
 0x474   : > { %9115 = vst [vmem:[#allocation151_spill] sm:$0xff] %v6651_v12  ;;  %9120 = vst [vmem:[#allocation20_spill] sm:$0xff] %v6658_v35  ;;  %v6667_v9 = vmul.f32 0.1, %v9124_v30  ;;  %v9127_v53 = vld [vmem:[#allocation22_spill] sm:$0xff]  ;;  %v9129_v12 = vld [vmem:[#allocation84_spill] sm:$0xff]  ;;  %v6684_v35 = vmax.f32 %v8992_v5, %v6373_v25 }
 0x475   : > { %9123 = vst [vmem:[#allocation21_spill] sm:$0xff] %v6664_v49  ;;  %v6671_v40 = vmax.f32 %v9127_v53, %v9126_v24  ;;  %v6674_v6 = vmul.f32 0.1, %v9129_v12  ;;  %v9131_v56 = vld [vmem:[#allocation85_spill] sm:$0xff]  ;;  %v9133_v31 = vld [vmem:[#allocation86_spill] sm:$0xff]  ;;  %v9136_v45 = vld [vmem:[#allocation47_spill] sm:$0xff] }
 0x476   : > { %9125 = vst [vmem:[#allocation78_spill] sm:$0xff] %v6667_v9  ;;  %v6677_v33 = vmul.f32 0.1, %v9131_v56  ;;  %v6680_v21 = vmul.f32 0.1, %v9133_v31  ;;  %9135 = vst [vmem:[#allocation155_spill] sm:$0xff] %v6684_v35 }
 0x477   : > { %9128 = vst [vmem:[#allocation111_spill] sm:$0xff] %v6671_v40  ;;  %9130 = vst [vmem:[#allocation22_spill] sm:$0xff] %v6674_v6  ;;  %v6687_v30 = vmul.f32 0.1, %v9136_v45  ;;  %v9138_v9 = vld [vmem:[#allocation49_spill] sm:$0xff]  ;;  %v9140_v24 = vld [vmem:[#allocation51_spill] sm:$0xff] }
 0x478   : > { %9132 = vst [vmem:[#allocation153_spill] sm:$0xff] %v6677_v33  ;;  %9134 = vst [vmem:[#allocation154_spill] sm:$0xff] %v6680_v21  ;;  %v6690_v49 = vmul.f32 0.1, %v9138_v9  ;;  %v6693_v53 = vmul.f32 0.1, %v9140_v24 }
 0x479   : > { %9137 = vst [vmem:[#allocation156_spill] sm:$0xff] %v6687_v30  ;;  %v9142_v40 = vld [vmem:[#allocation23_spill] sm:$0xff]  ;;  %v9143_v12 = vld [vmem:[#allocation24_spill] sm:$0xff]  ;;  %v9145_v33 = vld [vmem:[#allocation53_spill] sm:$0xff] }
 0x47a   : > { %9139 = vst [vmem:[#allocation157_spill] sm:$0xff] %v6690_v49  ;;  %9141 = vst [vmem:[#allocation158_spill] sm:$0xff] %v6693_v53  ;;  %v6697_v56 = vmax.f32 %v9143_v12, %v9142_v40  ;;  %v6700_v31 = vmul.f32 0.1, %v9145_v33  ;;  %v9146_v21 = vld [vmem:[#allocation55_spill] sm:$0xff]  ;;  %v9148_v25 = vld [vmem:[#allocation57_spill] sm:$0xff] }
 0x47b   : > { %v6703_v6 = vmul.f32 0.1, %v9146_v21  ;;  %v6706_v5 = vmul.f32 0.1, %v9148_v25  ;;  %v9150_v35 = vld [vmem:[#allocation113_spill] sm:$0xff]  ;;  %v9153_v49 = vld [vmem:[#allocation59_spill] sm:$0xff] }
 0x47c   : > { %9144 = vst [vmem:[#allocation23_spill] sm:$0xff] %v6697_v56  ;;  %v9151_v45 = vld [vmem:[#allocation25_spill] sm:$0xff]  ;;  %v6713_v24 = vmul.f32 0.1, %v9153_v49  ;;  %v9157_v12 = vld [vmem:[#allocation63_spill] sm:$0xff]  ;;  %v6723_v56 = vmax.f32 %v8998_v58, %v6385_v36 }
 0x47d   : > { %9147 = vst [vmem:[#allocation24_spill] sm:$0xff] %v6703_v6  ;;  %9149 = vst [vmem:[#allocation53_spill] sm:$0xff] %v6706_v5  ;;  %v6710_v9 = vmax.f32 %v9151_v45, %v9150_v35  ;;  %v9155_v53 = vld [vmem:[#allocation61_spill] sm:$0xff]  ;;  %v6719_v40 = vmul.f32 0.1, %v9157_v12  ;;  %v9162_v5 = vld [vmem:[#allocation67_spill] sm:$0xff] }
 0x47e   : > { %9154 = vst [vmem:[#allocation25_spill] sm:$0xff] %v6713_v24  ;;  %v6716_v30 = vmul.f32 0.1, %v9155_v53  ;;  %9159 = vst [vmem:[#allocation161_spill] sm:$0xff] %v6723_v56  ;;  %v9160_v21 = vld [vmem:[#allocation65_spill] sm:$0xff]  ;;  %v9167_v49 = vld [vmem:[#allocation27_spill] sm:$0xff] }
 0x47f   : > { %9152 = vst [vmem:[#allocation113_spill] sm:$0xff] %v6710_v9  ;;  %9158 = vst [vmem:[#allocation160_spill] sm:$0xff] %v6719_v40  ;;  %v6726_v25 = vmul.f32 0.1, %v9160_v21  ;;  %v6729_v6 = vmul.f32 0.1, %v9162_v5 }
 0x480   : > { %9156 = vst [vmem:[#allocation159_spill] sm:$0xff] %v6716_v30  ;;  %v9164_v35 = vld [vmem:[#allocation69_spill] sm:$0xff]  ;;  %v9166_v9 = vld [vmem:[#allocation26_spill] sm:$0xff]  ;;  %v9169_v30 = vld [vmem:[#allocation71_spill] sm:$0xff] }
 0x481   : > { %9161 = vst [vmem:[#allocation162_spill] sm:$0xff] %v6726_v25  ;;  %9163 = vst [vmem:[#allocation163_spill] sm:$0xff] %v6729_v6  ;;  %v6732_v45 = vmul.f32 0.1, %v9164_v35  ;;  %v6736_v53 = vmax.f32 %v9167_v49, %v9166_v9  ;;  %v6739_v12 = vmul.f32 0.1, %v9169_v30 }
 0x482   : > { %v9170_v40 = vld [vmem:[#allocation73_spill] sm:$0xff]  ;;  %v9172_v58 = vld [vmem:[#allocation75_spill] sm:$0xff]  ;;  %v9175_v21 = vld [vmem:[#allocation28_spill] sm:$0xff] }
 0x483   : > { %9165 = vst [vmem:[#allocation164_spill] sm:$0xff] %v6732_v45  ;;  %9168 = vst [vmem:[#allocation26_spill] sm:$0xff] %v6736_v53  ;;  %v6742_v24 = vmul.f32 0.1, %v9170_v40  ;;  %v6745_v36 = vmul.f32 0.1, %v9172_v58  ;;  %v6762_v53 = vmax.f32 %v9004_v1, %v6397_v37 }
 0x484   : > { %v9174_v56 = vld [vmem:[#allocation115_spill] sm:$0xff]  ;;  %v9177_v6 = vld [vmem:[#allocation77_spill] sm:$0xff]  ;;  %v9182_v40 = vld [vmem:[#allocation82_spill] sm:$0xff] }
 0x485   : > { %9171 = vst [vmem:[#allocation27_spill] sm:$0xff] %v6742_v24  ;;  %9173 = vst [vmem:[#allocation71_spill] sm:$0xff] %v6745_v36  ;;  %v6749_v5 = vmax.f32 %v9175_v21, %v9174_v56  ;;  %v6752_v35 = vmul.f32 0.1, %v9177_v6  ;;  %v9178_v45 = vld [vmem:[#allocation79_spill] sm:$0xff]  ;;  %v9183_v36 = vld [vmem:[#allocation88_spill] sm:$0xff] }
 0x486   : > { %v6755_v25 = vmul.f32 0.1, %v9178_v45  ;;  %v9180_v49 = vld [vmem:[#allocation87_spill] sm:$0xff]  ;;  %9181 = vst [vmem:[#allocation165_spill] sm:$0xff] %v6762_v53  ;;  %v6765_v58 = vmul.f32 0.1, %v9182_v40 }
 0x487   : > { %9176 = vst [vmem:[#allocation115_spill] sm:$0xff] %v6749_v5  ;;  %v6758_v9 = vmul.f32 0.1, %v9180_v49  ;;  %v6768_v24 = vmul.f32 0.1, %v9183_v36  ;;  %v9184_v56 = vld [vmem:[#allocation29_spill] sm:$0xff]  ;;  %v6780_v49 = vmax.f32 %v9010_v52, %v6409_v29  ;;  %v6804_v29 = vmax.f32 %v5968_v44, %v6433_v17 }
 0x488   : > { %9179 = vst [vmem:[#allocation28_spill] sm:$0xff] %v6755_v25  ;;  %v9185_v21 = vld [vmem:[#allocation30_spill] sm:$0xff]  ;;  %v9186_v6 = vld [vmem:[#allocation117_spill] sm:$0xff]  ;;  %v9187_v45 = vld [vmem:[#allocation31_spill] sm:$0xff]  ;;  %v6832_v17 = vmax.f32 %v5996_v20, %v6460_v62  ;;  %v6852_v62 = vmax.f32 %v6016_v15, %v6481_v11  ;;  %v6856_v20 = vmax.f32 %v6020_v4, %v6484_v42  ;;  %v6876_v42 = vmax.f32 %v6040_v60, %v6505_v13 }
 0x489   : > { %v6772_v5 = vmax.f32 %v9185_v21, %v9184_v56  ;;  %v6776_v25 = vmax.f32 %v9187_v45, %v9186_v6  ;;  %v9188_v1 = vld [vmem:[#allocation33_spill] sm:$0xff]  ;;  %v9189_v53 = vld [vmem:[#allocation34_spill] sm:$0xff]  ;;  %v6792_v56 = vmax.f32 %v9014_v39, %v6421_v57  ;;  %v6796_v6 = vmax.f32 %v9015_v51, %v6424_v59  ;;  %v9192_v59 = vld [vmem:[#allocation39_spill] sm:$0xff] }
 0x48a   : > { %v6784_v37 = vmax.f32 %v9188_v1, %v6412_v41  ;;  %v6788_v36 = vmax.f32 %v9189_v53, %v6415_v28  ;;  %v9190_v45 = vld [vmem:[#allocation37_spill] sm:$0xff]  ;;  %v6808_v41 = vmax.f32 %v5972_v34, %v6436_v43  ;;  %v9191_v28 = vld [vmem:[#allocation38_spill] sm:$0xff]  ;;  %v6816_v57 = vmax.f32 %v5980_v26, %v6445_v61  ;;  %v9193_v43 = vld [vmem:[#allocation40_spill] sm:$0xff]  ;;  %9204 = vst [vmem:[#allocation30_spill] sm:$0xff] %v6876_v42 }
 0x48b   : > { %v6800_v52 = vmax.f32 %v9190_v45, %v6427_v3  ;;  %v6812_v39 = vmax.f32 %v9191_v28, %v6439_v19  ;;  %v6820_v51 = vmax.f32 %v5984_v38, %v6448_v55  ;;  %v6824_v44 = vmax.f32 %v9192_v59, %v6451_v2  ;;  %v9194_v55 = vld [vmem:[#allocation41_spill] sm:$0xff]  ;;  %v9196_v3 = vld [vmem:[#allocation123_spill] sm:$0xff]  ;;  %v9206_v11 = vld [vmem:[#allocation46_spill] sm:$0xff] }
 0x48c   : > { %v6828_v34 = vmax.f32 %v5992_v10, %v6457_v23  ;;  %v6836_v26 = vmax.f32 %v9193_v43, %v6463_v48  ;;  %v6840_v38 = vmax.f32 %v6004_v14, %v6469_v27  ;;  %v6844_v61 = vmax.f32 %v6008_v50, %v6472_v8  ;;  %v9195_v23 = vld [vmem:[#allocation42_spill] sm:$0xff]  ;;  %v9197_v19 = vld [vmem:[#allocation43_spill] sm:$0xff]  ;;  %v9198_v50 = vld [vmem:[#allocation124_spill] sm:$0xff] }
 0x48d   : > { %v6848_v10 = vmax.f32 %v9194_v55, %v6475_v63  ;;  %v6860_v14 = vmax.f32 %v9195_v23, %v6487_v32  ;;  %v6864_v8 = vmax.f32 %v9197_v19, %v9196_v3  ;;  %v9199_v27 = vld [vmem:[#allocation44_spill] sm:$0xff]  ;;  %v9201_v48 = vld [vmem:[#allocation125_spill] sm:$0xff]  ;;  %v9205_v4 = vld [vmem:[#allocation127_spill] sm:$0xff] }
 0x48e   : > { %v6868_v2 = vmax.f32 %v9199_v27, %v9198_v50  ;;  %v9202_v63 = vld [vmem:[#allocation45_spill] sm:$0xff]  ;;  %v6880_v32 = vmax.f32 %v9206_v11, %v9205_v4  ;;  %v9208_v53 = vld [vmem:[#allocation128_spill] sm:$0xff]  ;;  %v9211_v45 = vld [vmem:[#allocation10_spill] sm:$0xff] }
 0x48f   : > { %v6872_v15 = vmax.f32 %v9202_v63, %v9201_v48  ;;  %v9209_v21 = vld [vmem:[#allocation48_spill] sm:$0xff]  ;;  %v9212_v28 = vld [vmem:[#allocation50_spill] sm:$0xff]  ;;  %v9214_v43 = vld [vmem:[#allocation129_spill] sm:$0xff] }
 0x490   : > { %9200 = vst [vmem:[#allocation82_spill] sm:$0xff] %v6868_v2  ;;  %9207 = vst [vmem:[#allocation117_spill] sm:$0xff] %v6880_v32  ;;  %v6884_v1 = vmax.f32 %v9209_v21, %v9208_v53  ;;  %v6888_v59 = vmax.f32 %v9212_v28, %v9211_v45  ;;  %v9215_v55 = vld [vmem:[#allocation52_spill] sm:$0xff]  ;;  %v9216_v3 = vld [vmem:[#allocation130_spill] sm:$0xff]  ;;  %v6912_v45 = vmax.f32 %v9049_v16, %v6544_v0 }
 0x491   : > { %9203 = vst [vmem:[#allocation29_spill] sm:$0xff] %v6872_v15  ;;  %v6892_v23 = vmax.f32 %v9215_v55, %v9214_v43  ;;  %v9217_v19 = vld [vmem:[#allocation54_spill] sm:$0xff]  ;;  %v9218_v13 = vld [vmem:[#allocation132_spill] sm:$0xff]  ;;  %v9221_v48 = vld [vmem:[#allocation133_spill] sm:$0xff] }
 0x492   : > { %9210 = vst [vmem:[#allocation31_spill] sm:$0xff] %v6884_v1  ;;  %9213 = vst [vmem:[#allocation33_spill] sm:$0xff] %v6888_v59  ;;  %v6896_v60 = vmax.f32 %v9217_v19, %v9216_v3  ;;  %v9219_v50 = vld [vmem:[#allocation56_spill] sm:$0xff]  ;;  %v9222_v63 = vld [vmem:[#allocation58_spill] sm:$0xff] }
 0x493   : > { %v6900_v27 = vmax.f32 %v9219_v50, %v9218_v13  ;;  %v6904_v4 = vmax.f32 %v9222_v63, %v9221_v48  ;;  %v9224_v11 = vld [vmem:[#allocation134_spill] sm:$0xff]  ;;  %v9225_v53 = vld [vmem:[#allocation60_spill] sm:$0xff]  ;;  %9227 = vst [vmem:[#allocation39_spill] sm:$0xff] %v6912_v45  ;;  %v9229_v43 = vld [vmem:[#allocation89_spill] sm:$0xff] }
 0x494   : > { %v6908_v21 = vmax.f32 %v9225_v53, %v9224_v11  ;;  %v9228_v28 = vld [vmem:[#allocation12_spill] sm:$0xff]  ;;  %v9231_v3 = vld [vmem:[#allocation62_spill] sm:$0xff]  ;;  %v9234_v50 = vld [vmem:[#allocation13_spill] sm:$0xff] }
 0x495   : > { %9220 = vst [vmem:[#allocation34_spill] sm:$0xff] %v6900_v27  ;;  %9223 = vst [vmem:[#allocation37_spill] sm:$0xff] %v6904_v4  ;;  %v6916_v55 = vmax.f32 %v9229_v43, %v9228_v28  ;;  %v9232_v19 = vld [vmem:[#allocation90_spill] sm:$0xff]  ;;  %v9235_v27 = vld [vmem:[#allocation91_spill] sm:$0xff] }
 0x496   : > { %9226 = vst [vmem:[#allocation38_spill] sm:$0xff] %v6908_v21  ;;  %v6920_v13 = vmax.f32 %v9232_v19, %v9231_v3  ;;  %v6924_v48 = vmax.f32 %v9235_v27, %v9234_v50  ;;  %v9237_v63 = vld [vmem:[#allocation135_spill] sm:$0xff]  ;;  %v9238_v4 = vld [vmem:[#allocation92_spill] sm:$0xff]  ;;  %v9240_v21 = vld [vmem:[#allocation93_spill] sm:$0xff] }
 0x497   : > { %9230 = vst [vmem:[#allocation40_spill] sm:$0xff] %v6916_v55  ;;  %v6928_v11 = vmax.f32 %v9238_v4, %v9237_v63  ;;  %v9239_v53 = vld [vmem:[#allocation136_spill] sm:$0xff]  ;;  %v9242_v0 = vld [vmem:[#allocation138_spill] sm:$0xff]  ;;  %v9245_v43 = vld [vmem:[#allocation139_spill] sm:$0xff]  ;;  %v6948_v4 = vmax.f32 %v9073_v18, %v6583_v47 }
 0x498   : > { %9233 = vst [vmem:[#allocation41_spill] sm:$0xff] %v6920_v13  ;;  %9236 = vst [vmem:[#allocation42_spill] sm:$0xff] %v6924_v48  ;;  %v6932_v16 = vmax.f32 %v9240_v21, %v9239_v53  ;;  %v9243_v45 = vld [vmem:[#allocation94_spill] sm:$0xff]  ;;  %v9246_v55 = vld [vmem:[#allocation95_spill] sm:$0xff] }
 0x499   : > { %v6936_v28 = vmax.f32 %v9243_v45, %v9242_v0  ;;  %v6940_v3 = vmax.f32 %v9246_v55, %v9245_v43  ;;  %v9248_v19 = vld [vmem:[#allocation140_spill] sm:$0xff]  ;;  %9251 = vst [vmem:[#allocation125_spill] sm:$0xff] %v6948_v4  ;;  %v9252_v50 = vld [vmem:[#allocation15_spill] sm:$0xff]  ;;  %v9253_v63 = vld [vmem:[#allocation98_spill] sm:$0xff] }
 0x49a   : > { %9241 = vst [vmem:[#allocation123_spill] sm:$0xff] %v6932_v16  ;;  %v9249_v13 = vld [vmem:[#allocation96_spill] sm:$0xff]  ;;  %v6952_v21 = vmax.f32 %v9253_v63, %v9252_v50  ;;  %v9255_v53 = vld [vmem:[#allocation97_spill] sm:$0xff]  ;;  %v9256_v16 = vld [vmem:[#allocation99_spill] sm:$0xff] }
 0x49b   : > { %9244 = vst [vmem:[#allocation43_spill] sm:$0xff] %v6936_v28  ;;  %9247 = vst [vmem:[#allocation124_spill] sm:$0xff] %v6940_v3  ;;  %v6944_v27 = vmax.f32 %v9249_v13, %v9248_v19  ;;  %v6956_v45 = vmax.f32 %v9256_v16, %v9255_v53  ;;  %v9258_v0 = vld [vmem:[#allocation16_spill] sm:$0xff]  ;;  %v9261_v43 = vld [vmem:[#allocation141_spill] sm:$0xff] }
 0x49c   : > { %9254 = vst [vmem:[#allocation45_spill] sm:$0xff] %v6952_v21  ;;  %v9259_v28 = vld [vmem:[#allocation100_spill] sm:$0xff]  ;;  %v9262_v3 = vld [vmem:[#allocation101_spill] sm:$0xff]  ;;  %v9264_v19 = vld [vmem:[#allocation142_spill] sm:$0xff] }
 0x49d   : > { %9250 = vst [vmem:[#allocation44_spill] sm:$0xff] %v6944_v27  ;;  %9257 = vst [vmem:[#allocation127_spill] sm:$0xff] %v6956_v45  ;;  %v6960_v55 = vmax.f32 %v9259_v28, %v9258_v0  ;;  %v6964_v13 = vmax.f32 %v9262_v3, %v9261_v43  ;;  %v9265_v27 = vld [vmem:[#allocation102_spill] sm:$0xff]  ;;  %v9267_v47 = vld [vmem:[#allocation144_spill] sm:$0xff]  ;;  %v6984_v3 = vmax.f32 %v9097_v54, %v6622_v22 }
 0x49e   : > { %v6968_v18 = vmax.f32 %v9265_v27, %v9264_v19  ;;  %v9268_v4 = vld [vmem:[#allocation103_spill] sm:$0xff]  ;;  %v9270_v63 = vld [vmem:[#allocation145_spill] sm:$0xff]  ;;  %v9271_v21 = vld [vmem:[#allocation104_spill] sm:$0xff] }
 0x49f   : > { %9260 = vst [vmem:[#allocation46_spill] sm:$0xff] %v6960_v55  ;;  %9263 = vst [vmem:[#allocation128_spill] sm:$0xff] %v6964_v13  ;;  %v6972_v50 = vmax.f32 %v9268_v4, %v9267_v47  ;;  %v6976_v16 = vmax.f32 %v9271_v21, %v9270_v63  ;;  %v9273_v53 = vld [vmem:[#allocation146_spill] sm:$0xff]  ;;  %v9274_v45 = vld [vmem:[#allocation105_spill] sm:$0xff] }
 0x4a0   : > { %9266 = vst [vmem:[#allocation48_spill] sm:$0xff] %v6968_v18  ;;  %v6980_v28 = vmax.f32 %v9274_v45, %v9273_v53  ;;  %9276 = vst [vmem:[#allocation52_spill] sm:$0xff] %v6984_v3  ;;  %v9277_v0 = vld [vmem:[#allocation18_spill] sm:$0xff]  ;;  %v9278_v43 = vld [vmem:[#allocation107_spill] sm:$0xff] }
 0x4a1   : > { %9269 = vst [vmem:[#allocation10_spill] sm:$0xff] %v6972_v50  ;;  %9272 = vst [vmem:[#allocation50_spill] sm:$0xff] %v6976_v16  ;;  %v6988_v27 = vmax.f32 %v9278_v43, %v9277_v0  ;;  %v9280_v19 = vld [vmem:[#allocation106_spill] sm:$0xff]  ;;  %v9281_v18 = vld [vmem:[#allocation108_spill] sm:$0xff] }
 0x4a2   : > { %9275 = vst [vmem:[#allocation129_spill] sm:$0xff] %v6980_v28  ;;  %v6992_v4 = vmax.f32 %v9281_v18, %v9280_v19  ;;  %v9283_v47 = vld [vmem:[#allocation19_spill] sm:$0xff]  ;;  %v9284_v50 = vld [vmem:[#allocation109_spill] sm:$0xff]  ;;  %v9287_v16 = vld [vmem:[#allocation110_spill] sm:$0xff] }
 0x4a3   : > { %9279 = vst [vmem:[#allocation130_spill] sm:$0xff] %v6988_v27  ;;  %v6996_v21 = vmax.f32 %v9284_v50, %v9283_v47  ;;  %v9286_v63 = vld [vmem:[#allocation147_spill] sm:$0xff]  ;;  %v9288_v53 = vld [vmem:[#allocation148_spill] sm:$0xff]  ;;  %v9289_v28 = vld [vmem:[#allocation70_spill] sm:$0xff] }
 0x4a4   : > { %9282 = vst [vmem:[#allocation54_spill] sm:$0xff] %v6992_v4  ;;  %v7000_v45 = vmax.f32 %v9287_v16, %v9286_v63  ;;  %v7004_v54 = vmax.f32 %v9289_v28, %v9288_v53  ;;  %v9291_v22 = vld [vmem:[#allocation150_spill] sm:$0xff]  ;;  %v9292_v3 = vld [vmem:[#allocation72_spill] sm:$0xff]  ;;  %v9294_v43 = vld [vmem:[#allocation151_spill] sm:$0xff]  ;;  %v7020_v16 = vmax.f32 %v9121_v7, %v6661_v46 }
 0x4a5   : > { %9285 = vst [vmem:[#allocation132_spill] sm:$0xff] %v6996_v21  ;;  %v7008_v0 = vmax.f32 %v9292_v3, %v9291_v22  ;;  %v9295_v27 = vld [vmem:[#allocation74_spill] sm:$0xff]  ;;  %v9297_v19 = vld [vmem:[#allocation152_spill] sm:$0xff]  ;;  %v9301_v47 = vld [vmem:[#allocation21_spill] sm:$0xff] }
 0x4a6   : > { %9290 = vst [vmem:[#allocation56_spill] sm:$0xff] %v7004_v54  ;;  %v7012_v18 = vmax.f32 %v9295_v27, %v9294_v43  ;;  %v9298_v4 = vld [vmem:[#allocation76_spill] sm:$0xff]  ;;  %9300 = vst [vmem:[#allocation60_spill] sm:$0xff] %v7020_v16  ;;  %v9304_v53 = vld [vmem:[#allocation78_spill] sm:$0xff] }
 0x4a7   : > { %9293 = vst [vmem:[#allocation133_spill] sm:$0xff] %v7008_v0  ;;  %v7016_v50 = vmax.f32 %v9298_v4, %v9297_v19  ;;  %v9302_v63 = vld [vmem:[#allocation80_spill] sm:$0xff]  ;;  %v9305_v54 = vld [vmem:[#allocation81_spill] sm:$0xff]  ;;  %v9307_v22 = vld [vmem:[#allocation22_spill] sm:$0xff] }
 0x4a8   : > { %9296 = vst [vmem:[#allocation58_spill] sm:$0xff] %v7012_v18  ;;  %v7024_v28 = vmax.f32 %v9302_v63, %v9301_v47  ;;  %v7028_v3 = vmax.f32 %v9305_v54, %v9304_v53  ;;  %v9308_v0 = vld [vmem:[#allocation84_spill] sm:$0xff]  ;;  %v9310_v43 = vld [vmem:[#allocation153_spill] sm:$0xff]  ;;  %v9312_v19 = vld [vmem:[#allocation154_spill] sm:$0xff] }
 0x4a9   : > { %9299 = vst [vmem:[#allocation134_spill] sm:$0xff] %v7016_v50  ;;  %v7032_v27 = vmax.f32 %v9308_v0, %v9307_v22  ;;  %v9311_v18 = vld [vmem:[#allocation85_spill] sm:$0xff]  ;;  %v9313_v50 = vld [vmem:[#allocation86_spill] sm:$0xff]  ;;  %v9315_v46 = vld [vmem:[#allocation156_spill] sm:$0xff] }
 0x4aa   : > { %9303 = vst [vmem:[#allocation12_spill] sm:$0xff] %v7024_v28  ;;  %9306 = vst [vmem:[#allocation89_spill] sm:$0xff] %v7028_v3  ;;  %v7036_v4 = vmax.f32 %v9311_v18, %v9310_v43  ;;  %v7040_v7 = vmax.f32 %v9313_v50, %v9312_v19  ;;  %v9316_v16 = vld [vmem:[#allocation47_spill] sm:$0xff]  ;;  %v9318_v63 = vld [vmem:[#allocation157_spill] sm:$0xff]  ;;  %v7056_v18 = vmax.f32 %v9145_v33, %v6700_v31 }
 0x4ab   : > { %9309 = vst [vmem:[#allocation62_spill] sm:$0xff] %v7032_v27  ;;  %v7044_v47 = vmax.f32 %v9316_v16, %v9315_v46  ;;  %v9319_v28 = vld [vmem:[#allocation49_spill] sm:$0xff]  ;;  %v9321_v53 = vld [vmem:[#allocation158_spill] sm:$0xff]  ;;  %v9322_v3 = vld [vmem:[#allocation51_spill] sm:$0xff] }
 0x4ac   : > { %9314 = vst [vmem:[#allocation90_spill] sm:$0xff] %v7040_v7  ;;  %v7048_v54 = vmax.f32 %v9319_v28, %v9318_v63  ;;  %v7052_v0 = vmax.f32 %v9322_v3, %v9321_v53  ;;  %9324 = vst [vmem:[#allocation92_spill] sm:$0xff] %v7056_v18  ;;  %v9325_v22 = vld [vmem:[#allocation24_spill] sm:$0xff]  ;;  %v9326_v43 = vld [vmem:[#allocation55_spill] sm:$0xff] }
 0x4ad   : > { %9317 = vst [vmem:[#allocation13_spill] sm:$0xff] %v7044_v47  ;;  %v7060_v50 = vmax.f32 %v9326_v43, %v9325_v22  ;;  %v9328_v19 = vld [vmem:[#allocation53_spill] sm:$0xff]  ;;  %v9332_v47 = vld [vmem:[#allocation59_spill] sm:$0xff]  ;;  %v9335_v53 = vld [vmem:[#allocation160_spill] sm:$0xff] }
 0x4ae   : > { %9320 = vst [vmem:[#allocation91_spill] sm:$0xff] %v7048_v54  ;;  %9323 = vst [vmem:[#allocation135_spill] sm:$0xff] %v7052_v0  ;;  %v9329_v7 = vld [vmem:[#allocation57_spill] sm:$0xff]  ;;  %v9333_v63 = vld [vmem:[#allocation159_spill] sm:$0xff] }
 0x4af   : > { %9327 = vst [vmem:[#allocation136_spill] sm:$0xff] %v7060_v50  ;;  %v7064_v16 = vmax.f32 %v9329_v7, %v9328_v19  ;;  %v9331_v46 = vld [vmem:[#allocation25_spill] sm:$0xff]  ;;  %v9336_v0 = vld [vmem:[#allocation63_spill] sm:$0xff]  ;;  %v9338_v31 = vld [vmem:[#allocation162_spill] sm:$0xff] }
 0x4b0   : > { %v7068_v28 = vmax.f32 %v9332_v47, %v9331_v46  ;;  %v9334_v54 = vld [vmem:[#allocation61_spill] sm:$0xff]  ;;  %v7076_v33 = vmax.f32 %v9336_v0, %v9335_v53  ;;  %v9340_v43 = vld [vmem:[#allocation163_spill] sm:$0xff]  ;;  %v9343_v19 = vld [vmem:[#allocation164_spill] sm:$0xff] }
 0x4b1   : > { %9330 = vst [vmem:[#allocation93_spill] sm:$0xff] %v7064_v16  ;;  %v7072_v3 = vmax.f32 %v9334_v54, %v9333_v63  ;;  %v9339_v18 = vld [vmem:[#allocation65_spill] sm:$0xff]  ;;  %v9341_v50 = vld [vmem:[#allocation67_spill] sm:$0xff]  ;;  %v7092_v54 = vmax.f32 %v9169_v30, %v6739_v12  ;;  %v7116_v12 = vmax.f32 %v9182_v40, %v6765_v58  ;;  %v9397_v58 = vld [vmem:[#allocation26_spill] sm:$0xff] }
 0x4b2   : > { %9337 = vst [vmem:[#allocation138_spill] sm:$0xff] %v7076_v33  ;;  %v7080_v22 = vmax.f32 %v9339_v18, %v9338_v31  ;;  %v7084_v7 = vmax.f32 %v9341_v50, %v9340_v43  ;;  %v9344_v16 = vld [vmem:[#allocation69_spill] sm:$0xff]  ;;  %v9346_v46 = vld [vmem:[#allocation27_spill] sm:$0xff]  ;;  %v9353_v43 = vld [vmem:[#allocation28_spill] sm:$0xff] }
 0x4b3   : > { %v7088_v47 = vmax.f32 %v9344_v16, %v9343_v19  ;;  %9345 = vst [vmem:[#allocation139_spill] sm:$0xff] %v7092_v54  ;;  %v9347_v63 = vld [vmem:[#allocation73_spill] sm:$0xff]  ;;  %v9349_v53 = vld [vmem:[#allocation71_spill] sm:$0xff]  ;;  %9357 = vst [vmem:[#allocation15_spill] sm:$0xff] %v7116_v12 }
 0x4b4   : > { %9342 = vst [vmem:[#allocation94_spill] sm:$0xff] %v7084_v7  ;;  %v7096_v0 = vmax.f32 %v9347_v63, %v9346_v46  ;;  %v9350_v33 = vld [vmem:[#allocation75_spill] sm:$0xff]  ;;  %v9352_v31 = vld [vmem:[#allocation77_spill] sm:$0xff]  ;;  %v9358_v46 = vld [vmem:[#allocation88_spill] sm:$0xff] }
 0x4b5   : > { %v7100_v18 = vmax.f32 %v9350_v33, %v9349_v53  ;;  %v7104_v50 = vmax.f32 %v9352_v31, %v6752_v35  ;;  %v9354_v7 = vld [vmem:[#allocation79_spill] sm:$0xff]  ;;  %v7120_v33 = vmax.f32 %v9358_v46, %v6768_v24  ;;  %v9410_v1 = vld [vmem:[#allocation125_spill] sm:$0xff]  ;;  %v9413_v15 = vld [vmem:[#allocation48_spill] sm:$0xff] }
 0x4b6   : > { %9348 = vst [vmem:[#allocation95_spill] sm:$0xff] %v7096_v0  ;;  %v7108_v16 = vmax.f32 %v9354_v7, %v9353_v43  ;;  %v9356_v19 = vld [vmem:[#allocation87_spill] sm:$0xff]  ;;  %v9420_v42 = vld [vmem:[#allocation56_spill] sm:$0xff]  ;;  %v9427_v48 = vld [vmem:[#allocation90_spill] sm:$0xff] }
 0x4b7   : > { %9351 = vst [vmem:[#allocation140_spill] sm:$0xff] %v7100_v18  ;;  %v7112_v30 = vmax.f32 %v9356_v19, %v6758_v9  ;;  %9359 = vst [vmem:[#allocation98_spill] sm:$0xff] %v7120_v33  ;;  %v9392_v63 = vld [vmem:[#allocation111_spill] sm:$0xff]  ;;  %v9396_v19 = vld [vmem:[#allocation161_spill] sm:$0xff] }
 0x4b8   : > { %9355 = vst [vmem:[#allocation96_spill] sm:$0xff] %v7108_v16  ;;  %v9393_v53 = vld [vmem:[#allocation155_spill] sm:$0xff]  ;;  %v9395_v16 = vld [vmem:[#allocation113_spill] sm:$0xff]  ;;  %v9431_v46 = vld [vmem:[#allocation92_spill] sm:$0xff] }
 0x4b9   : > { %v9394_v7 = vld [vmem:[#allocation23_spill] sm:$0xff]  ;;  %v9399_v33 = vld [vmem:[#allocation165_spill] sm:$0xff]  ;;  %v9432_v35 = vld [vmem:[#allocation136_spill] sm:$0xff] }
 0x4ba   : > { %v9398_v24 = vld [vmem:[#allocation115_spill] sm:$0xff]  ;;  %v9433_v32 = vld [vmem:[#allocation93_spill] sm:$0xff]  ;;  %v9434_v55 = vld [vmem:[#allocation138_spill] sm:$0xff] }
 0x4bb   : > { %v9406_v2 = vld [vmem:[#allocation123_spill] sm:$0xff]  ;;  %v9435_v27 = vld [vmem:[#allocation94_spill] sm:$0xff]  ;;  %v9439_v18 = vld [vmem:[#allocation64_spill] sm:$0xff] }
 0x4bc   : > { %v9429_v13 = vld [vmem:[#allocation91_spill] sm:$0xff]  ;;  %v9440_v31 = vpack.c.bf16 %v9439_v18, %v9439_v18  ;;  %v9441_v9 = vld [vmem:[#allocation66_spill] sm:$0xff]  ;;  %v9443_v40 = vld [vmem:[#allocation68_spill] sm:$0xff] }
 0x4bd   : > { %v9430_v12 = vld [vmem:[#allocation135_spill] sm:$0xff]  ;;  %v9442_v21 = vpack.c.bf16 %v9441_v9, %v9441_v9  ;;  %v9444_v43 = vpack.c.bf16 %v9443_v40, %v9443_v40  ;;  %v9449_v9 = vld [vmem:[#allocation6_spill] sm:$0xff]  ;;  %v9451_v40 = vld [vmem:[#allocation9_spill] sm:$0xff] }
 0x4be   : > { %v9437_v54 = vld [vmem:[#allocation15_spill] sm:$0xff]  ;;  %3267 = vst.msk [vmem:[%s7362_s23] sm:$0xf] %vm3266_vm1, %v9440_v31 }
 0x4bf   : > { %3268 = vst.msk [vmem:[%s7362_s23 + $0x4] sm:$0xf] %vm3266_vm1, %v9442_v21  ;;  %3269 = vst.msk [vmem:[%s7362_s23 + $0x8] sm:$0xf] %vm3266_vm1, %v9444_v43  ;;  %v9445_v59 = vld [vmem:[#allocation83_spill] sm:$0xff]  ;;  %v9450_v21 = vpack.c.bf16 %v9449_v9, %v9449_v9  ;;  %v9452_v43 = vpack.c.bf16 %v9451_v40, %v9451_v40  ;;  %v9457_v9 = vld [vmem:[#allocation114_spill] sm:$0xff] }
 0x4c0   : > { %v9446_v0 = vpack.c.bf16 %v9445_v59, %v9445_v59  ;;  %v9447_v18 = vld [vmem:[#allocation3_spill] sm:$0xff]  ;;  %v9453_v59 = vld [vmem:[#allocation17_spill] sm:$0xff]  ;;  %v9459_v40 = vld [vmem:[#allocation116_spill] sm:$0xff] }
 0x4c1   : > { %v9448_v31 = vpack.c.bf16 %v9447_v18, %v9447_v18  ;;  %3272 = vst.msk [vmem:[%s7362_s23 + $0x14] sm:$0xf] %vm3266_vm1, %v9450_v21  ;;  %3273 = vst.msk [vmem:[%s7362_s23 + $0x18] sm:$0xf] %vm3266_vm1, %v9452_v43  ;;  %v9455_v18 = vld [vmem:[#allocation112_spill] sm:$0xff]  ;;  %v9458_v21 = vpack.c.bf16 %v9457_v9, %v9457_v9  ;;  %v9460_v43 = vpack.c.bf16 %v9459_v40, %v9459_v40  ;;  %v9465_v9 = vld [vmem:[#allocation35_spill] sm:$0xff] }
 0x4c2   : > { %3270 = vst.msk [vmem:[%s7362_s23 + $0xc] sm:$0xf] %vm3266_vm1, %v9446_v0  ;;  %v9454_v0 = vpack.c.bf16 %v9453_v59, %v9453_v59  ;;  %v9461_v59 = vld [vmem:[#allocation118_spill] sm:$0xff]  ;;  %v9467_v40 = vld [vmem:[#allocation36_spill] sm:$0xff] }
 0x4c3   : > { %3271 = vst.msk [vmem:[%s7362_s23 + $0x10] sm:$0xf] %vm3266_vm1, %v9448_v31  ;;  %v9456_v31 = vpack.c.bf16 %v9455_v18, %v9455_v18  ;;  %3276 = vst.msk [vmem:[%s7362_s23 + $0x24] sm:$0xf] %vm3266_vm1, %v9458_v21  ;;  %v9463_v18 = vld [vmem:[#allocation32_spill] sm:$0xff]  ;;  %v9466_v21 = vpack.c.bf16 %v9465_v9, %v9465_v9  ;;  %v9473_v9 = vld [vmem:[#allocation121_spill] sm:$0xff] }
 0x4c4   : > { %3274 = vst.msk [vmem:[%s7362_s23 + $0x1c] sm:$0xf] %vm3266_vm1, %v9454_v0  ;;  %3277 = vst.msk [vmem:[%s7362_s23 + $0x28] sm:$0xf] %vm3266_vm1, %v9460_v43  ;;  %v9462_v0 = vpack.c.bf16 %v9461_v59, %v9461_v59  ;;  %v9468_v43 = vpack.c.bf16 %v9467_v40, %v9467_v40  ;;  %v9469_v59 = vld [vmem:[#allocation119_spill] sm:$0xff]  ;;  %v9475_v40 = vld [vmem:[#allocation122_spill] sm:$0xff] }
 0x4c5   : > { %3275 = vst.msk [vmem:[%s7362_s23 + $0x20] sm:$0xf] %vm3266_vm1, %v9456_v31  ;;  %v9464_v31 = vpack.c.bf16 %v9463_v18, %v9463_v18  ;;  %3280 = vst.msk [vmem:[%s7362_s23 + $0x34] sm:$0xf] %vm3266_vm1, %v9466_v21  ;;  %v9471_v18 = vld [vmem:[#allocation120_spill] sm:$0xff]  ;;  %v9474_v21 = vpack.c.bf16 %v9473_v9, %v9473_v9  ;;  %v9481_v9 = vld [vmem:[#allocation131_spill] sm:$0xff] }
 0x4c6   : > { %3278 = vst.msk [vmem:[%s7362_s23 + $0x2c] sm:$0xf] %vm3266_vm1, %v9462_v0  ;;  %3281 = vst.msk [vmem:[%s7362_s23 + $0x38] sm:$0xf] %vm3266_vm1, %v9468_v43  ;;  %v9470_v0 = vpack.c.bf16 %v9469_v59, %v9469_v59  ;;  %v9476_v43 = vpack.c.bf16 %v9475_v40, %v9475_v40  ;;  %v9477_v59 = vld [vmem:[#allocation126_spill] sm:$0xff]  ;;  %v9483_v40 = vld [vmem:[#allocation4_spill] sm:$0xff] }
 0x4c7   : > { %3279 = vst.msk [vmem:[%s7362_s23 + $0x30] sm:$0xf] %vm3266_vm1, %v9464_v31  ;;  %v9472_v31 = vpack.c.bf16 %v9471_v18, %v9471_v18  ;;  %3284 = vst.msk [vmem:[%s7362_s23 + $0x44] sm:$0xf] %vm3266_vm1, %v9474_v21  ;;  %v9479_v18 = vld [vmem:[#allocation2_spill] sm:$0xff]  ;;  %v9482_v21 = vpack.c.bf16 %v9481_v9, %v9481_v9  ;;  %v9489_v9 = vld [vmem:[#allocation7_spill] sm:$0xff] }
 0x4c8   : > { %3282 = vst.msk [vmem:[%s7362_s23 + $0x3c] sm:$0xf] %vm3266_vm1, %v9470_v0  ;;  %3285 = vst.msk [vmem:[%s7362_s23 + $0x48] sm:$0xf] %vm3266_vm1, %v9476_v43  ;;  %v9478_v0 = vpack.c.bf16 %v9477_v59, %v9477_v59  ;;  %v9484_v43 = vpack.c.bf16 %v9483_v40, %v9483_v40  ;;  %v9485_v59 = vld [vmem:[#allocation5_spill] sm:$0xff]  ;;  %v9491_v40 = vld [vmem:[#allocation8_spill] sm:$0xff] }
 0x4c9   : > { %3283 = vst.msk [vmem:[%s7362_s23 + $0x40] sm:$0xf] %vm3266_vm1, %v9472_v31  ;;  %v9480_v31 = vpack.c.bf16 %v9479_v18, %v9479_v18  ;;  %3288 = vst.msk [vmem:[%s7362_s23 + $0x54] sm:$0xf] %vm3266_vm1, %v9482_v21  ;;  %v9487_v18 = vld [vmem:[#allocation137_spill] sm:$0xff]  ;;  %v9490_v21 = vpack.c.bf16 %v9489_v9, %v9489_v9  ;;  %v9497_v9 = vld [vmem:[#allocation14_spill] sm:$0xff] }
 0x4ca   : > { %3286 = vst.msk [vmem:[%s7362_s23 + $0x4c] sm:$0xf] %vm3266_vm1, %v9478_v0  ;;  %3289 = vst.msk [vmem:[%s7362_s23 + $0x58] sm:$0xf] %vm3266_vm1, %v9484_v43  ;;  %v9486_v0 = vpack.c.bf16 %v9485_v59, %v9485_v59  ;;  %v9492_v43 = vpack.c.bf16 %v9491_v40, %v9491_v40  ;;  %v9493_v59 = vld [vmem:[#allocation143_spill] sm:$0xff]  ;;  %v9499_v40 = vld [vmem:[#allocation149_spill] sm:$0xff] }
 0x4cb   : > { %3287 = vst.msk [vmem:[%s7362_s23 + $0x50] sm:$0xf] %vm3266_vm1, %v9480_v31  ;;  %v9488_v31 = vpack.c.bf16 %v9487_v18, %v9487_v18  ;;  %3292 = vst.msk [vmem:[%s7362_s23 + $0x64] sm:$0xf] %vm3266_vm1, %v9490_v21  ;;  %v9495_v18 = vld [vmem:[#allocation11_spill] sm:$0xff]  ;;  %v9498_v21 = vpack.c.bf16 %v9497_v9, %v9497_v9  ;;  %v9505_v9 = vpack.c.bf16 %v9394_v7, %v9394_v7 }
 0x4cc   : > { %3290 = vst.msk [vmem:[%s7362_s23 + $0x5c] sm:$0xf] %vm3266_vm1, %v9486_v0  ;;  %3293 = vst.msk [vmem:[%s7362_s23 + $0x68] sm:$0xf] %vm3266_vm1, %v9492_v43  ;;  %v9494_v0 = vpack.c.bf16 %v9493_v59, %v9493_v59  ;;  %v9500_v43 = vpack.c.bf16 %v9499_v40, %v9499_v40  ;;  %v9501_v59 = vld [vmem:[#allocation20_spill] sm:$0xff]  ;;  %v9509_v7 = vpack.c.bf16 %v9398_v24, %v9398_v24 }
 0x4cd   : > { %3291 = vst.msk [vmem:[%s7362_s23 + $0x60] sm:$0xf] %vm3266_vm1, %v9488_v31  ;;  %v9496_v31 = vpack.c.bf16 %v9495_v18, %v9495_v18  ;;  %3296 = vst.msk [vmem:[%s7362_s23 + $0x74] sm:$0xf] %vm3266_vm1, %v9498_v21  ;;  %v9503_v18 = vpack.c.bf16 %v9392_v63, %v9392_v63  ;;  %v9506_v21 = vpack.c.bf16 %v9395_v16, %v9395_v16 }
 0x4ce   : > { %3294 = vst.msk [vmem:[%s7362_s23 + $0x6c] sm:$0xf] %vm3266_vm1, %v9494_v0  ;;  %3297 = vst.msk [vmem:[%s7362_s23 + $0x78] sm:$0xf] %vm3266_vm1, %v9500_v43  ;;  %v9502_v0 = vpack.c.bf16 %v9501_v59, %v9501_v59  ;;  %v9507_v63 = vpack.c.bf16 %v9396_v19, %v9396_v19  ;;  %v9510_v16 = vpack.c.bf16 %v9399_v33, %v9399_v33 }
 0x4cf   : > { %3295 = vst.msk [vmem:[%s7362_s23 + $0x70] sm:$0xf] %vm3266_vm1, %v9496_v31  ;;  %3299 = vst.msk [vmem:[%s7362_s23 + $0x80] sm:$0xf] %vm3266_vm1, %v9503_v18  ;;  %v9504_v31 = vpack.c.bf16 %v9393_v53, %v9393_v53  ;;  %v9508_v53 = vpack.c.bf16 %v9397_v58, %v9397_v58  ;;  %v9511_v19 = vpack.c.bf16 %v6772_v5, %v6772_v5  ;;  %v9543_v18 = vld [vmem:[#allocation31_spill] sm:$0xff] }
 0x4d0   : > { %3298 = vst.msk [vmem:[%s7362_s23 + $0x7c] sm:$0xf] %vm3266_vm1, %v9502_v0  ;;  %3301 = vst.msk [vmem:[%s7362_s23 + $0x88] sm:$0xf] %vm3266_vm1, %v9505_v9  ;;  %v9512_v58 = vpack.c.bf16 %v6776_v25, %v6776_v25  ;;  %v9513_v24 = vpack.c.bf16 %v6780_v49, %v6780_v49  ;;  %v9514_v33 = vpack.c.bf16 %v6784_v37, %v6784_v37  ;;  %v9545_v9 = vld [vmem:[#allocation33_spill] sm:$0xff] }
 0x4d1   : > { %3300 = vst.msk [vmem:[%s7362_s23 + $0x84] sm:$0xf] %vm3266_vm1, %v9504_v31  ;;  %3302 = vst.msk [vmem:[%s7362_s23 + $0x8c] sm:$0xf] %vm3266_vm1, %v9506_v21  ;;  %v9515_v5 = vpack.c.bf16 %v6788_v36, %v6788_v36  ;;  %v9516_v25 = vpack.c.bf16 %v6792_v56, %v6792_v56  ;;  %v9517_v49 = vpack.c.bf16 %v6796_v6, %v6796_v6 }
 0x4d2   : > { %3303 = vst.msk [vmem:[%s7362_s23 + $0x90] sm:$0xf] %vm3266_vm1, %v9507_v63  ;;  %3304 = vst.msk [vmem:[%s7362_s23 + $0x94] sm:$0xf] %vm3266_vm1, %v9508_v53  ;;  %v9518_v37 = vpack.c.bf16 %v6800_v52, %v6800_v52  ;;  %v9519_v36 = vpack.c.bf16 %v6804_v29, %v6804_v29  ;;  %v9520_v56 = vpack.c.bf16 %v6808_v41, %v6808_v41 }
 0x4d3   : > { %3305 = vst.msk [vmem:[%s7362_s23 + $0x98] sm:$0xf] %vm3266_vm1, %v9509_v7  ;;  %3306 = vst.msk [vmem:[%s7362_s23 + $0x9c] sm:$0xf] %vm3266_vm1, %v9510_v16  ;;  %v9521_v6 = vpack.c.bf16 %v6812_v39, %v6812_v39  ;;  %v9522_v52 = vpack.c.bf16 %v6816_v57, %v6816_v57  ;;  %v9523_v29 = vpack.c.bf16 %v6820_v51, %v6820_v51  ;;  %v9549_v7 = vld [vmem:[#allocation34_spill] sm:$0xff] }
 0x4d4   : > { %3307 = vst.msk [vmem:[%s7362_s23 + $0xa0] sm:$0xf] %vm3266_vm1, %v9511_v19  ;;  %3308 = vst.msk [vmem:[%s7362_s23 + $0xa4] sm:$0xf] %vm3266_vm1, %v9512_v58  ;;  %v9524_v41 = vpack.c.bf16 %v6824_v44, %v6824_v44  ;;  %v9525_v39 = vpack.c.bf16 %v6828_v34, %v6828_v34  ;;  %v9526_v57 = vpack.c.bf16 %v6832_v17, %v6832_v17  ;;  %v9551_v19 = vld [vmem:[#allocation37_spill] sm:$0xff] }
 0x4d5   : > { %3309 = vst.msk [vmem:[%s7362_s23 + $0xa8] sm:$0xf] %vm3266_vm1, %v9513_v24  ;;  %3310 = vst.msk [vmem:[%s7362_s23 + $0xac] sm:$0xf] %vm3266_vm1, %v9514_v33  ;;  %v9527_v51 = vpack.c.bf16 %v6836_v26, %v6836_v26  ;;  %v9528_v44 = vpack.c.bf16 %v6840_v38, %v6840_v38  ;;  %v9529_v34 = vpack.c.bf16 %v6844_v61, %v6844_v61 }
 0x4d6   : > { %3311 = vst.msk [vmem:[%s7362_s23 + $0xb0] sm:$0xf] %vm3266_vm1, %v9515_v5  ;;  %3312 = vst.msk [vmem:[%s7362_s23 + $0xb4] sm:$0xf] %vm3266_vm1, %v9516_v25  ;;  %v9530_v17 = vpack.c.bf16 %v6848_v10, %v6848_v10  ;;  %v9531_v26 = vpack.c.bf16 %v6852_v62, %v6852_v62  ;;  %v9532_v38 = vpack.c.bf16 %v6856_v20, %v6856_v20  ;;  %v9535_v62 = vld [vmem:[#allocation82_spill] sm:$0xff]  ;;  %v9537_v20 = vld [vmem:[#allocation29_spill] sm:$0xff] }
 0x4d7   : > { %3313 = vst.msk [vmem:[%s7362_s23 + $0xb8] sm:$0xf] %vm3266_vm1, %v9517_v49  ;;  %3314 = vst.msk [vmem:[%s7362_s23 + $0xbc] sm:$0xf] %vm3266_vm1, %v9518_v37  ;;  %v9533_v61 = vpack.c.bf16 %v6860_v14, %v6860_v14  ;;  %v9534_v10 = vpack.c.bf16 %v6864_v8, %v6864_v8  ;;  %v9536_v40 = vpack.c.bf16 %v9535_v62, %v9535_v62  ;;  %v9539_v14 = vld [vmem:[#allocation30_spill] sm:$0xff]  ;;  %v9541_v8 = vld [vmem:[#allocation117_spill] sm:$0xff] }
 0x4d8   : > { %3315 = vst.msk [vmem:[%s7362_s23 + $0xc0] sm:$0xf] %vm3266_vm1, %v9519_v36  ;;  %3316 = vst.msk [vmem:[%s7362_s23 + $0xc4] sm:$0xf] %vm3266_vm1, %v9520_v56  ;;  %v9538_v43 = vpack.c.bf16 %v9537_v20, %v9537_v20  ;;  %v9540_v59 = vpack.c.bf16 %v9539_v14, %v9539_v14  ;;  %v9542_v0 = vpack.c.bf16 %v9541_v8, %v9541_v8  ;;  %v9557_v5 = vld [vmem:[#allocation40_spill] sm:$0xff]  ;;  %v9559_v49 = vld [vmem:[#allocation41_spill] sm:$0xff] }
 0x4d9   : > { %3317 = vst.msk [vmem:[%s7362_s23 + $0xc8] sm:$0xf] %vm3266_vm1, %v9521_v6  ;;  %3318 = vst.msk [vmem:[%s7362_s23 + $0xcc] sm:$0xf] %vm3266_vm1, %v9522_v52  ;;  %v9544_v31 = vpack.c.bf16 %v9543_v18, %v9543_v18  ;;  %v9546_v21 = vpack.c.bf16 %v9545_v9, %v9545_v9  ;;  %v9547_v63 = vpack.c.bf16 %v6892_v23, %v6892_v23  ;;  %v9553_v23 = vld [vmem:[#allocation38_spill] sm:$0xff] }
 0x4da   : > { %3319 = vst.msk [vmem:[%s7362_s23 + $0xd0] sm:$0xf] %vm3266_vm1, %v9523_v29  ;;  %3320 = vst.msk [vmem:[%s7362_s23 + $0xd4] sm:$0xf] %vm3266_vm1, %v9524_v41  ;;  %v9548_v53 = vpack.c.bf16 %v6896_v60, %v6896_v60  ;;  %v9550_v16 = vpack.c.bf16 %v9549_v7, %v9549_v7  ;;  %v9552_v58 = vpack.c.bf16 %v9551_v19, %v9551_v19  ;;  %v9555_v60 = vld [vmem:[#allocation39_spill] sm:$0xff]  ;;  %v9561_v36 = vld [vmem:[#allocation42_spill] sm:$0xff] }
 0x4db   : > { %3321 = vst.msk [vmem:[%s7362_s23 + $0xd8] sm:$0xf] %vm3266_vm1, %v9525_v39  ;;  %3322 = vst.msk [vmem:[%s7362_s23 + $0xdc] sm:$0xf] %vm3266_vm1, %v9526_v57  ;;  %v9554_v24 = vpack.c.bf16 %v9553_v23, %v9553_v23  ;;  %v9556_v33 = vpack.c.bf16 %v9555_v60, %v9555_v60  ;;  %v9558_v25 = vpack.c.bf16 %v9557_v5, %v9557_v5  ;;  %v9565_v29 = vld [vmem:[#allocation43_spill] sm:$0xff]  ;;  %v9567_v39 = vld [vmem:[#allocation124_spill] sm:$0xff] }
 0x4dc   : > { %3323 = vst.msk [vmem:[%s7362_s23 + $0xe0] sm:$0xf] %vm3266_vm1, %v9527_v51  ;;  %3324 = vst.msk [vmem:[%s7362_s23 + $0xe4] sm:$0xf] %vm3266_vm1, %v9528_v44  ;;  %v9560_v37 = vpack.c.bf16 %v9559_v49, %v9559_v49  ;;  %v9562_v56 = vpack.c.bf16 %v9561_v36, %v9561_v36  ;;  %v9563_v6 = vpack.c.bf16 %v6928_v11, %v6928_v11  ;;  %v9569_v11 = vld [vmem:[#allocation44_spill] sm:$0xff]  ;;  %v9572_v44 = vld [vmem:[#allocation45_spill] sm:$0xff] }
 0x4dd   : > { %3325 = vst.msk [vmem:[%s7362_s23 + $0xe8] sm:$0xf] %vm3266_vm1, %v9529_v34  ;;  %3326 = vst.msk [vmem:[%s7362_s23 + $0xec] sm:$0xf] %vm3266_vm1, %v9530_v17  ;;  %v9564_v52 = vpack.c.bf16 %v9406_v2, %v9406_v2  ;;  %v9566_v41 = vpack.c.bf16 %v9565_v29, %v9565_v29  ;;  %v9568_v57 = vpack.c.bf16 %v9567_v39, %v9567_v39  ;;  %v9574_v17 = vld [vmem:[#allocation127_spill] sm:$0xff]  ;;  %v9589_v18 = vld [vmem:[#allocation130_spill] sm:$0xff] }
 0x4de   : > { %3327 = vst.msk [vmem:[%s7362_s23 + $0xf0] sm:$0xf] %vm3266_vm1, %v9531_v26  ;;  %3328 = vst.msk [vmem:[%s7362_s23 + $0xf4] sm:$0xf] %vm3266_vm1, %v9532_v38  ;;  %v9570_v51 = vpack.c.bf16 %v9569_v11, %v9569_v11  ;;  %v9571_v2 = vpack.c.bf16 %v9410_v1, %v9410_v1  ;;  %v9573_v34 = vpack.c.bf16 %v9572_v44, %v9572_v44  ;;  %v9576_v38 = vld [vmem:[#allocation46_spill] sm:$0xff]  ;;  %v9578_v1 = vld [vmem:[#allocation128_spill] sm:$0xff] }
 0x4df   : > { %3329 = vst.msk [vmem:[%s7362_s23 + $0xf8] sm:$0xf] %vm3266_vm1, %v9533_v61  ;;  %3330 = vst.msk [vmem:[%s7362_s23 + $0xfc] sm:$0xf] %vm3266_vm1, %v9534_v10  ;;  %v9575_v26 = vpack.c.bf16 %v9574_v17, %v9574_v17  ;;  %v9577_v61 = vpack.c.bf16 %v9576_v38, %v9576_v38  ;;  %v9579_v10 = vpack.c.bf16 %v9578_v1, %v9578_v1  ;;  %v9591_v9 = vld [vmem:[#allocation54_spill] sm:$0xff]  ;;  %v9597_v19 = vld [vmem:[#allocation133_spill] sm:$0xff] }
 0x4e0   : > { %3331 = vst.msk [vmem:[%s7362_s23 + $0x100] sm:$0xf] %vm3266_vm1, %v9536_v40  ;;  %3332 = vst.msk [vmem:[%s7362_s23 + $0x104] sm:$0xf] %vm3266_vm1, %v9538_v43  ;;  %v9580_v62 = vpack.c.bf16 %v9413_v15, %v9413_v15  ;;  %v9581_v40 = vld [vmem:[#allocation10_spill] sm:$0xff]  ;;  %v9587_v15 = vld [vmem:[#allocation52_spill] sm:$0xff]  ;;  %v9595_v7 = vpack.c.bf16 %v7000_v45, %v7000_v45  ;;  %v9615_v39 = vpack.c.bf16 %v9429_v13, %v9429_v13 }
 0x4e1   : > { %3333 = vst.msk [vmem:[%s7362_s23 + $0x108] sm:$0xf] %vm3266_vm1, %v9540_v59  ;;  %3334 = vst.msk [vmem:[%s7362_s23 + $0x10c] sm:$0xf] %vm3266_vm1, %v9542_v0  ;;  %v9582_v20 = vpack.c.bf16 %v9581_v40, %v9581_v40  ;;  %v9583_v43 = vld [vmem:[#allocation50_spill] sm:$0xff]  ;;  %v9585_v59 = vld [vmem:[#allocation129_spill] sm:$0xff]  ;;  %v9588_v0 = vpack.c.bf16 %v9587_v15, %v9587_v15  ;;  %v9619_v13 = vpack.c.bf16 %v9433_v32, %v9433_v32 }
 0x4e2   : > { %3335 = vst.msk [vmem:[%s7362_s23 + $0x110] sm:$0xf] %vm3266_vm1, %v9544_v31  ;;  %3336 = vst.msk [vmem:[%s7362_s23 + $0x114] sm:$0xf] %vm3266_vm1, %v9546_v21  ;;  %v9584_v14 = vpack.c.bf16 %v9583_v43, %v9583_v43  ;;  %v9586_v8 = vpack.c.bf16 %v9585_v59, %v9585_v59  ;;  %v9590_v31 = vpack.c.bf16 %v9589_v18, %v9589_v18  ;;  %v9599_v23 = vld [vmem:[#allocation58_spill] sm:$0xff]  ;;  %v9605_v5 = vld [vmem:[#allocation12_spill] sm:$0xff] }
 0x4e3   : > { %3337 = vst.msk [vmem:[%s7362_s23 + $0x118] sm:$0xf] %vm3266_vm1, %v9547_v63  ;;  %3338 = vst.msk [vmem:[%s7362_s23 + $0x11c] sm:$0xf] %vm3266_vm1, %v9548_v53  ;;  %v9592_v21 = vpack.c.bf16 %v9591_v9, %v9591_v9  ;;  %v9593_v63 = vld [vmem:[#allocation132_spill] sm:$0xff]  ;;  %v9601_v45 = vld [vmem:[#allocation134_spill] sm:$0xff]  ;;  %v9623_v32 = vpack.c.bf16 %v7080_v22, %v7080_v22  ;;  %v9635_v17 = vpack.c.bf16 %v7112_v30, %v7112_v30 }
 0x4e4   : > { %3339 = vst.msk [vmem:[%s7362_s23 + $0x120] sm:$0xf] %vm3266_vm1, %v9550_v16  ;;  %3340 = vst.msk [vmem:[%s7362_s23 + $0x124] sm:$0xf] %vm3266_vm1, %v9552_v58  ;;  %v9594_v53 = vpack.c.bf16 %v9593_v63, %v9593_v63  ;;  %v9596_v16 = vpack.c.bf16 %v9420_v42, %v9420_v42  ;;  %v9598_v58 = vpack.c.bf16 %v9597_v19, %v9597_v19  ;;  %v9603_v42 = vld [vmem:[#allocation60_spill] sm:$0xff]  ;;  %v9607_v49 = vld [vmem:[#allocation89_spill] sm:$0xff] }
 0x4e5   : > { %3341 = vst.msk [vmem:[%s7362_s23 + $0x128] sm:$0xf] %vm3266_vm1, %v9554_v24  ;;  %3342 = vst.msk [vmem:[%s7362_s23 + $0x12c] sm:$0xf] %vm3266_vm1, %v9556_v33  ;;  %v9600_v24 = vpack.c.bf16 %v9599_v23, %v9599_v23  ;;  %v9602_v60 = vpack.c.bf16 %v9601_v45, %v9601_v45  ;;  %v9604_v33 = vpack.c.bf16 %v9603_v42, %v9603_v42  ;;  %v9609_v36 = vld [vmem:[#allocation62_spill] sm:$0xff]  ;;  %v9613_v29 = vld [vmem:[#allocation13_spill] sm:$0xff] }
 0x4e6   : > { %3343 = vst.msk [vmem:[%s7362_s23 + $0x130] sm:$0xf] %vm3266_vm1, %v9558_v25  ;;  %3344 = vst.msk [vmem:[%s7362_s23 + $0x134] sm:$0xf] %vm3266_vm1, %v9560_v37  ;;  %v9606_v25 = vpack.c.bf16 %v9605_v5, %v9605_v5  ;;  %v9608_v37 = vpack.c.bf16 %v9607_v49, %v9607_v49  ;;  %v9626_v11 = vld [vmem:[#allocation139_spill] sm:$0xff]  ;;  %v9633_v44 = vld [vmem:[#allocation96_spill] sm:$0xff] }
 0x4e7   : > { %3345 = vst.msk [vmem:[%s7362_s23 + $0x138] sm:$0xf] %vm3266_vm1, %v9562_v56  ;;  %3346 = vst.msk [vmem:[%s7362_s23 + $0x13c] sm:$0xf] %vm3266_vm1, %v9563_v6  ;;  %v9610_v56 = vpack.c.bf16 %v9609_v36, %v9609_v36  ;;  %v9611_v6 = vpack.c.bf16 %v7036_v4, %v7036_v4  ;;  %v9616_v4 = vpack.c.bf16 %v9430_v12, %v9430_v12  ;;  %v9637_v38 = vld [vmem:[#allocation98_spill] sm:$0xff] }
 0x4e8   : > { %3347 = vst.msk [vmem:[%s7362_s23 + $0x140] sm:$0xf] %vm3266_vm1, %v9564_v52  ;;  %3348 = vst.msk [vmem:[%s7362_s23 + $0x144] sm:$0xf] %vm3266_vm1, %v9566_v41  ;;  %v9612_v52 = vpack.c.bf16 %v9427_v48, %v9427_v48  ;;  %v9614_v41 = vpack.c.bf16 %v9613_v29, %v9613_v29  ;;  %v9617_v48 = vpack.c.bf16 %v9431_v46, %v9431_v46 }
 0x4e9   : > { %3349 = vst.msk [vmem:[%s7362_s23 + $0x148] sm:$0xf] %vm3266_vm1, %v9568_v57  ;;  %3350 = vst.msk [vmem:[%s7362_s23 + $0x14c] sm:$0xf] %vm3266_vm1, %v9570_v51  ;;  %v9618_v57 = vpack.c.bf16 %v9432_v35, %v9432_v35  ;;  %v9620_v12 = vpack.c.bf16 %v7068_v28, %v7068_v28  ;;  %v9621_v46 = vpack.c.bf16 %v7072_v3, %v7072_v3  ;;  %v9628_v51 = vld [vmem:[#allocation95_spill] sm:$0xff] }
 0x4ea   : > { %3351 = vst.msk [vmem:[%s7362_s23 + $0x150] sm:$0xf] %vm3266_vm1, %v9571_v2  ;;  %3352 = vst.msk [vmem:[%s7362_s23 + $0x154] sm:$0xf] %vm3266_vm1, %v9573_v34  ;;  %v9622_v35 = vpack.c.bf16 %v9434_v55, %v9434_v55  ;;  %v9624_v28 = vpack.c.bf16 %v9435_v27, %v9435_v27  ;;  %v9625_v3 = vpack.c.bf16 %v7088_v47, %v7088_v47  ;;  %v9630_v2 = vld [vmem:[#allocation140_spill] sm:$0xff] }
 0x4eb   : > { %3353 = vst.msk [vmem:[%s7362_s23 + $0x158] sm:$0xf] %vm3266_vm1, %v9575_v26  ;;  %3354 = vst.msk [vmem:[%s7362_s23 + $0x15c] sm:$0xf] %vm3266_vm1, %v9577_v61  ;;  %v9627_v55 = vpack.c.bf16 %v9626_v11, %v9626_v11  ;;  %v9629_v22 = vpack.c.bf16 %v9628_v51, %v9628_v51  ;;  %v9631_v27 = vpack.c.bf16 %v9630_v2, %v9630_v2 }
 0x4ec   : > { %3355 = vst.msk [vmem:[%s7362_s23 + $0x160] sm:$0xf] %vm3266_vm1, %v9579_v10  ;;  %3356 = vst.msk [vmem:[%s7362_s23 + $0x164] sm:$0xf] %vm3266_vm1, %v9580_v62  ;;  %v9632_v47 = vpack.c.bf16 %v7104_v50, %v7104_v50  ;;  %v9634_v34 = vpack.c.bf16 %v9633_v44, %v9633_v44  ;;  %v9636_v26 = vpack.c.bf16 %v9437_v54, %v9437_v54 }
 0x4ed   : > { %3357 = vst.msk [vmem:[%s7362_s23 + $0x168] sm:$0xf] %vm3266_vm1, %v9582_v20  ;;  %3358 = vst.msk [vmem:[%s7362_s23 + $0x16c] sm:$0xf] %vm3266_vm1, %v9584_v14  ;;  %v9638_v50 = vpack.c.bf16 %v9637_v38, %v9637_v38 }
 0x4ee   : > { %3359 = vst.msk [vmem:[%s7362_s23 + $0x170] sm:$0xf] %vm3266_vm1, %v9586_v8  ;;  %3360 = vst.msk [vmem:[%s7362_s23 + $0x174] sm:$0xf] %vm3266_vm1, %v9588_v0 }
 0x4ef   : > { %3361 = vst.msk [vmem:[%s7362_s23 + $0x178] sm:$0xf] %vm3266_vm1, %v9590_v31  ;;  %3362 = vst.msk [vmem:[%s7362_s23 + $0x17c] sm:$0xf] %vm3266_vm1, %v9592_v21 }
 0x4f0   : > { %3363 = vst.msk [vmem:[%s7362_s23 + $0x180] sm:$0xf] %vm3266_vm1, %v9594_v53  ;;  %3364 = vst.msk [vmem:[%s7362_s23 + $0x184] sm:$0xf] %vm3266_vm1, %v9595_v7 }
 0x4f1   : > { %3365 = vst.msk [vmem:[%s7362_s23 + $0x188] sm:$0xf] %vm3266_vm1, %v9596_v16  ;;  %3366 = vst.msk [vmem:[%s7362_s23 + $0x18c] sm:$0xf] %vm3266_vm1, %v9598_v58 }
 0x4f2   : > { %3367 = vst.msk [vmem:[%s7362_s23 + $0x190] sm:$0xf] %vm3266_vm1, %v9600_v24  ;;  %3368 = vst.msk [vmem:[%s7362_s23 + $0x194] sm:$0xf] %vm3266_vm1, %v9602_v60 }
 0x4f3   : > { %3369 = vst.msk [vmem:[%s7362_s23 + $0x198] sm:$0xf] %vm3266_vm1, %v9604_v33  ;;  %3370 = vst.msk [vmem:[%s7362_s23 + $0x19c] sm:$0xf] %vm3266_vm1, %v9606_v25 }
 0x4f4   : > { %3371 = vst.msk [vmem:[%s7362_s23 + $0x1a0] sm:$0xf] %vm3266_vm1, %v9608_v37  ;;  %3372 = vst.msk [vmem:[%s7362_s23 + $0x1a4] sm:$0xf] %vm3266_vm1, %v9610_v56 }
 0x4f5   : > { %3373 = vst.msk [vmem:[%s7362_s23 + $0x1a8] sm:$0xf] %vm3266_vm1, %v9611_v6  ;;  %3374 = vst.msk [vmem:[%s7362_s23 + $0x1ac] sm:$0xf] %vm3266_vm1, %v9612_v52 }
 0x4f6   : > { %3375 = vst.msk [vmem:[%s7362_s23 + $0x1b0] sm:$0xf] %vm3266_vm1, %v9614_v41  ;;  %3376 = vst.msk [vmem:[%s7362_s23 + $0x1b4] sm:$0xf] %vm3266_vm1, %v9615_v39 }
 0x4f7   : > { %3377 = vst.msk [vmem:[%s7362_s23 + $0x1b8] sm:$0xf] %vm3266_vm1, %v9616_v4  ;;  %3378 = vst.msk [vmem:[%s7362_s23 + $0x1bc] sm:$0xf] %vm3266_vm1, %v9617_v48 }
 0x4f8   : > { %3379 = vst.msk [vmem:[%s7362_s23 + $0x1c0] sm:$0xf] %vm3266_vm1, %v9618_v57  ;;  %3380 = vst.msk [vmem:[%s7362_s23 + $0x1c4] sm:$0xf] %vm3266_vm1, %v9619_v13 }
 0x4f9   : > { %3381 = vst.msk [vmem:[%s7362_s23 + $0x1c8] sm:$0xf] %vm3266_vm1, %v9620_v12  ;;  %3382 = vst.msk [vmem:[%s7362_s23 + $0x1cc] sm:$0xf] %vm3266_vm1, %v9621_v46 }
 0x4fa   : > { %3383 = vst.msk [vmem:[%s7362_s23 + $0x1d0] sm:$0xf] %vm3266_vm1, %v9622_v35  ;;  %3384 = vst.msk [vmem:[%s7362_s23 + $0x1d4] sm:$0xf] %vm3266_vm1, %v9623_v32 }
 0x4fb   : > { %3385 = vst.msk [vmem:[%s7362_s23 + $0x1d8] sm:$0xf] %vm3266_vm1, %v9624_v28  ;;  %3386 = vst.msk [vmem:[%s7362_s23 + $0x1dc] sm:$0xf] %vm3266_vm1, %v9625_v3 }
 0x4fc   : > { %3387 = vst.msk [vmem:[%s7362_s23 + $0x1e0] sm:$0xf] %vm3266_vm1, %v9627_v55  ;;  %3388 = vst.msk [vmem:[%s7362_s23 + $0x1e4] sm:$0xf] %vm3266_vm1, %v9629_v22 }
 0x4fd   : > { %3389 = vst.msk [vmem:[%s7362_s23 + $0x1e8] sm:$0xf] %vm3266_vm1, %v9631_v27  ;;  %3390 = vst.msk [vmem:[%s7362_s23 + $0x1ec] sm:$0xf] %vm3266_vm1, %v9632_v47 }
 0x4fe   : > { %3391 = vst.msk [vmem:[%s7362_s23 + $0x1f0] sm:$0xf] %vm3266_vm1, %v9634_v34  ;;  %3392 = vst.msk [vmem:[%s7362_s23 + $0x1f4] sm:$0xf] %vm3266_vm1, %v9635_v17 }
 0x4ff   : > { %3393 = vst.msk [vmem:[%s7362_s23 + $0x1f8] sm:$0xf] %vm3266_vm1, %v9636_v26  ;;  %3394 = vst.msk [vmem:[%s7362_s23 + $0x1fc] sm:$0xf] %vm3266_vm1, %v9638_v50 }
 0x500 PF: > { %s12_s9 = sadd.s32 1, %s4120_s9  }
 0x501   : > { %p9_p4 = scmp.ge.s32.totalorder %s12_s9, 4  }
 0x503   :  { %11 = sbr.rel (!%p9_p4) target bundleno = 1 (0x1), region = 58 }

// kernel: downsampling_backbone_forward.4
= control target key start
LH: loop header
LB: loop body
LE: loop exit
PB: predicated region body
PF: predicated region fallthrough
CT: control target
= control target key end

     0   :  { %s1264_s9 = smov 0   ;;  %s1908_s0 = inlined_call_operand.vmem [shape: bf16[2,16,16,128], index: 0, kind: input, shape index: {}]   ;;  %s1909_s1 = inlined_call_operand.vmem [shape: bf16[128,16], index: 1, kind: input, shape index: {}]   ;;  %s1910_s2 = inlined_call_operand.vmem [shape: bf16[2,16,16,16], index: 2, kind: output, shape index: {}]  }
   0x1 LB: > { %s1018_s10 = sadd.s32 4294967295, %s1247_s9   ;;  %p1022_p0 = scmp.ge.s32.totalorder %s1247_s9, 1  ;;  %s1247_s9 = sphi %s1264_s9, %s12_s9  }
   0x2   : > { %p112_p1 = scmp.lt.s32.totalorder %s1247_s9, 3 }
   0x4   : > { %p113_p2 = pnand %p1022_p0, %p112_p1 }
   0x6   : > { %116 = sbr.rel (%p113_p2) target bundleno = 480 (0x1e0), region = 28 }
   0xd   : > { %v1215_v0 = vld [vmem:[%s1909_s1] sm:$0xff]   ;;  %p134_p3 = scmp.lt.s32.totalorder %s1018_s10, 1  ;;  %v1216_v1 = vld [vmem:[%s1909_s1 + $0x8] sm:$0xff]   ;;  %v1217_v2 = vld [vmem:[%s1909_s1 + $0x10] sm:$0xff]   ;;  %vm498_vm0 = vcmask 130048   ;;  %vm930_vm1 = vcmask 125952  }
   0xe   : > { %1143 = vmatprep.subr.bf16.mxu0 %v1215_v0  ;;  %1191 = vmatprep.subr.bf16.mxu1 %v1215_v0  ;;  %v1218_v3 = vld [vmem:[%s1909_s1 + $0x18] sm:$0xff]   ;;  %v1219_v5 = vld [vmem:[%s1909_s1 + $0x20] sm:$0xff]   ;;  %v1220_v6 = vld [vmem:[%s1909_s1 + $0x28] sm:$0xff]  }
   0xf   : > { %s1918_s10 = smov (!%p134_p3, %s1018_s10), 1  ;;  %1144 = vmatpush3.bf16.msra.mxu0 %v1215_v0  ;;  %1199 = vmatpush3.bf16.msra.mxu1 %v1215_v0  ;;  %v1221_v8 = vld [vmem:[%s1909_s1 + $0x30] sm:$0xff]   ;;  %v1222_v9 = vld [vmem:[%s1909_s1 + $0x38] sm:$0xff]  }
  0x10   : > { %1145 = vmatprep.subr.bf16.mxu0 %v1216_v1  ;;  %s1085_s17 = sshll.u32 %s1918_s10, 7  ;;  %1192 = vmatprep.subr.bf16.mxu1 %v1216_v1 }
  0x11   : > { %s1289_s20 = scalar_lea.vmem %s1908_s0, %s1085_s17  ;;  %s1785_s5 = scalar_lea.vmem %s1910_s2, %s1085_s17 }
  0x12   : > { %v1223_v4 = vld [vmem:[%s1289_s20] sm:$0xff]   ;;  %v1224_v10 = vld [vmem:[%s1289_s20 + $0x8] sm:$0xff]   ;;  %v1225_v12 = vld [vmem:[%s1289_s20 + $0x10] sm:$0xff]  }
  0x13   : > { %1146 = vmatpush3.bf16.msra.mxu0 %v1216_v1  ;;  %1200 = vmatpush3.bf16.msra.mxu1 %v1216_v1  ;;  %v1231_v7 = vld [vmem:[%s1289_s20 + $0x40] sm:$0xff]   ;;  %v1232_v11 = vld [vmem:[%s1289_s20 + $0x48] sm:$0xff]   ;;  %v1233_v13 = vld [vmem:[%s1289_s20 + $0x50] sm:$0xff]  }
  0x14   : > { %1147 = vmatprep.subr.bf16.mxu0 %v1217_v2  ;;  %1193 = vmatprep.subr.bf16.mxu1 %v1217_v2  ;;  %v1226_v14 = vld [vmem:[%s1289_s20 + $0x18] sm:$0xff]   ;;  %v1227_v16 = vld [vmem:[%s1289_s20 + $0x20] sm:$0xff]   ;;  %v1228_v18 = vld [vmem:[%s1289_s20 + $0x28] sm:$0xff]  }
  0x15   : > { %1159 = vmatprep.mubr.bf16.mxu0 %v1223_v4  ;;  %1175 = vmatprep.mubr.bf16.mxu1 %v1231_v7  ;;  %v1234_v15 = vld [vmem:[%s1289_s20 + $0x58] sm:$0xff]   ;;  %v1235_v17 = vld [vmem:[%s1289_s20 + $0x60] sm:$0xff]   ;;  %v1236_v19 = vld [vmem:[%s1289_s20 + $0x68] sm:$0xff]  }
  0x16   : > { %v1229_v20 = vld [vmem:[%s1289_s20 + $0x30] sm:$0xff]   ;;  %v1230_v22 = vld [vmem:[%s1289_s20 + $0x38] sm:$0xff]  }
  0x17   : > { %1148 = vmatpush3.bf16.msra.mxu0 %v1217_v2  ;;  %1201 = vmatpush3.bf16.msra.mxu1 %v1217_v2  ;;  %v1237_v21 = vld [vmem:[%s1289_s20 + $0x70] sm:$0xff]   ;;  %v1238_v23 = vld [vmem:[%s1289_s20 + $0x78] sm:$0xff]  }
  0x18   : > { %1149 = vmatprep.subr.bf16.mxu0 %v1218_v3  ;;  %1194 = vmatprep.subr.bf16.mxu1 %v1218_v3 }
  0x1b   : > { %1150 = vmatpush3.bf16.msra.mxu0 %v1218_v3  ;;  %1202 = vmatpush3.bf16.msra.mxu1 %v1218_v3 }
  0x1c   : > { %1151 = vmatprep.subr.bf16.mxu0 %v1219_v5  ;;  %1195 = vmatprep.subr.bf16.mxu1 %v1219_v5 }
  0x1f   : > { %1152 = vmatpush3.bf16.msra.mxu0 %v1219_v5  ;;  %1203 = vmatpush3.bf16.msra.mxu1 %v1219_v5 }
  0x20   : > { %1153 = vmatprep.subr.bf16.mxu0 %v1220_v6  ;;  %1196 = vmatprep.subr.bf16.mxu1 %v1220_v6 }
  0x23   : > { %1154 = vmatpush3.bf16.msra.mxu0 %v1220_v6  ;;  %1204 = vmatpush3.bf16.msra.mxu1 %v1220_v6 }
  0x24   : > { %1155 = vmatprep.subr.bf16.mxu0 %v1221_v8  ;;  %1197 = vmatprep.subr.bf16.mxu1 %v1221_v8 }
  0x27   : > { %1156 = vmatpush3.bf16.msra.mxu0 %v1221_v8  ;;  %1205 = vmatpush3.bf16.msra.mxu1 %v1221_v8 }
  0x28   : > { %1157 = vmatprep.subr.bf16.mxu0 %v1222_v9  ;;  %1198 = vmatprep.subr.bf16.mxu1 %v1222_v9 }
  0x2b   : > { %1158 = vmatpush3.bf16.msra.mxu0 %v1222_v9  ;;  %1206 = vmatpush3.bf16.msra.mxu1 %v1222_v9 }
  0x2e   : > { %1160 = vmatmul.mubr.bf16.vlgmr.msra.gmra.mrb[0].mxu0 %v1224_v10  ;;  %1176 = vmatmul.mubr.bf16.vlgmr.msra.gmra.mrb[0].mxu1 %v1232_v11 }
  0x2f   : > { %1163 = vmatprep.mubr.bf16.mxu0 %v1225_v12  ;;  %1179 = vmatprep.mubr.bf16.mxu1 %v1233_v13 }
  0x36   : > { %1164 = vmatmul.mubr.bf16.gmra.mrb[4].mxu0 %v1226_v14  ;;  %1180 = vmatmul.mubr.bf16.gmra.mrb[4].mxu1 %v1234_v15 }
  0x37   : > { %1167 = vmatprep.mubr.bf16.mxu0 %v1227_v16  ;;  %1183 = vmatprep.mubr.bf16.mxu1 %v1235_v17 }
  0x3e   : > { %1168 = vmatmul.mubr.bf16.gmra.mrb[8].mxu0 %v1228_v18  ;;  %1184 = vmatmul.mubr.bf16.gmra.mrb[8].mxu1 %v1236_v19 }
  0x3f   : > { %1171 = vmatprep.mubr.bf16.mxu0 %v1229_v20  ;;  %1187 = vmatprep.mubr.bf16.mxu1 %v1237_v21 }
  0x46   : > { %1172 = vmatmul.mubr.bf16.gmra.mrb[12].mxu0 %v1230_v22  ;;  %1188 = vmatmul.mubr.bf16.gmra.mrb[12].mxu1 %v1238_v23 }
 0x101   : > { %v1322_v24 = vpop.f32.mrb[0].mxu0  ;;  %v1324_v25 = vpop.f32.mrb[0].mxu1 }
 0x102   : > { %v1326_v26 = vpop.f32.mrb[1].mxu0  ;;  %v1328_v27 = vpop.f32.mrb[1].mxu1  ;;  %v502_v35 = vsel %vm498_vm0, %v1322_v24, 0.0 }
 0x103   : > { %v1330_v28 = vpop.f32.mrb[2].mxu0  ;;  %v1332_v29 = vpop.f32.mrb[2].mxu1  ;;  %v499_v32 = vsel %vm498_vm0, %v1326_v26, 0.0  ;;  %v530_v22 = vsel %vm498_vm0, %v1328_v27, 0.0 }
 0x104   : > { %v1334_v30 = vpop.f32.mrb[3].mxu0  ;;  %v1336_v31 = vpop.f32.mrb[3].mxu1  ;;  %v504_v37 = vsel %vm498_vm0, %v1330_v28, 0.0 }
 0x105   : > { %v500_v33 = vsel %vm498_vm0, %v1334_v30, 0.0 }
 0x106   : > { %v501_v34 = vadd.f32 %v500_v33, %v499_v32  ;;  %v532_v33 = vsel %vm498_vm0, %v1336_v31, 0.0 }
 0x108   : > { %v503_v36 = vadd.f32 %v502_v35, %v501_v34  ;;  %v534_v35 = vsel %vm498_vm0, %v1324_v25, 0.0 }
 0x109   : > { %v1346_v38 = vpop.f32.mrb[4].mxu0  ;;  %v1348_v39 = vpop.f32.mrb[4].mxu1 }
 0x10a   : > { %v1350_v40 = vpop.f32.mrb[5].mxu0  ;;  %v505_v41 = vadd.f32 %v504_v37, %v503_v36  ;;  %v1352_v42 = vpop.f32.mrb[5].mxu1  ;;  %v510_v51 = vsel %vm498_vm0, %v1346_v38, 0.0  ;;  %v536_v37 = vsel %vm498_vm0, %v1332_v29, 0.0 }
 0x10b   : > { %v506_v43 = vsel %vm498_vm0, %v1350_v40, 0.0  ;;  %v1356_v44 = vpop.f32.mrb[6].mxu0  ;;  %v1358_v45 = vpop.f32.mrb[6].mxu1 }
 0x10c   : > { %v507_v46 = vadd.f32 %v506_v43, %v505_v41  ;;  %v1360_v47 = vpop.f32.mrb[7].mxu0  ;;  %v1362_v48 = vpop.f32.mrb[7].mxu1  ;;  %v512_v53 = vsel %vm498_vm0, %v1356_v44, 0.0  ;;  %v538_v41 = vsel %vm498_vm0, %v1352_v42, 0.0 }
 0x10d   : > { %v508_v49 = vsel %vm498_vm0, %v1360_v47, 0.0 }
 0x10e   : > { %v509_v50 = vadd.f32 %v508_v49, %v507_v46  ;;  %v540_v49 = vsel %vm498_vm0, %v1362_v48, 0.0 }
 0x110   : > { %v511_v52 = vadd.f32 %v510_v51, %v509_v50  ;;  %v542_v51 = vsel %vm498_vm0, %v1348_v39, 0.0 }
 0x111   : > { %v1370_v54 = vpop.f32.mrb[8].mxu0  ;;  %v1372_v55 = vpop.f32.mrb[8].mxu1 }
 0x112   : > { %v1374_v56 = vpop.f32.mrb[9].mxu0  ;;  %v513_v57 = vadd.f32 %v512_v53, %v511_v52  ;;  %v1376_v58 = vpop.f32.mrb[9].mxu1  ;;  %v518_v3 = vsel %vm498_vm0, %v1370_v54, 0.0  ;;  %v544_v53 = vsel %vm498_vm0, %v1358_v45, 0.0 }
 0x113   : > { %v514_v59 = vsel %vm498_vm0, %v1374_v56, 0.0  ;;  %v1380_v60 = vpop.f32.mrb[10].mxu0  ;;  %v1382_v61 = vpop.f32.mrb[10].mxu1 }
 0x114   : > { %v515_v62 = vadd.f32 %v514_v59, %v513_v57  ;;  %v1384_v63 = vpop.f32.mrb[11].mxu0  ;;  %v1386_v0 = vpop.f32.mrb[11].mxu1  ;;  %v520_v5 = vsel %vm498_vm0, %v1380_v60, 0.0  ;;  %v546_v57 = vsel %vm498_vm0, %v1376_v58, 0.0 }
 0x115   : > { %v516_v1 = vsel %vm498_vm0, %v1384_v63, 0.0 }
 0x116   : > { %v517_v2 = vadd.f32 %v516_v1, %v515_v62  ;;  %v548_v1 = vsel %vm498_vm0, %v1386_v0, 0.0 }
 0x118   : > { %v519_v4 = vadd.f32 %v518_v3, %v517_v2  ;;  %v550_v3 = vsel %vm498_vm0, %v1372_v55, 0.0 }
 0x119   : > { %v1394_v6 = vpop.f32.mrb[12].mxu0  ;;  %v1396_v7 = vpop.f32.mrb[12].mxu1 }
 0x11a   : > { %v1398_v8 = vpop.f32.mrb[13].mxu0  ;;  %v521_v9 = vadd.f32 %v520_v5, %v519_v4  ;;  %v1400_v10 = vpop.f32.mrb[13].mxu1  ;;  %v526_v19 = vsel %vm498_vm0, %v1394_v6, 0.0  ;;  %v552_v5 = vsel %vm498_vm0, %v1382_v61, 0.0 }
 0x11b   : > { %v522_v11 = vsel %vm498_vm0, %v1398_v8, 0.0  ;;  %v1404_v12 = vpop.f32.mrb[14].mxu0  ;;  %v1406_v13 = vpop.f32.mrb[14].mxu1 }
 0x11c   : > { %v523_v14 = vadd.f32 %v522_v11, %v521_v9  ;;  %v422_v15 = vpop.f32.mrb[15].mxu0  ;;  %v1408_v16 = vpop.f32.mrb[15].mxu1  ;;  %v528_v21 = vsel %vm498_vm0, %v1404_v12, 0.0  ;;  %v554_v9 = vsel %vm498_vm0, %v1400_v10, 0.0 }
 0x11d   : > { %v524_v17 = vsel %vm498_vm0, %v422_v15, 0.0 }
 0x11e   : > { %v525_v18 = vadd.f32 %v524_v17, %v523_v14  ;;  %v556_v17 = vsel %vm498_vm0, %v1408_v16, 0.0 }
 0x120   : > { %v527_v20 = vadd.f32 %v526_v19, %v525_v18  ;;  %v558_v19 = vsel %vm498_vm0, %v1396_v7, 0.0 }
 0x122   : > { %v529_v23 = vadd.f32 %v528_v21, %v527_v20  ;;  %v560_v21 = vsel %vm498_vm0, %v1406_v13, 0.0 }
 0x124   : > { %v531_v32 = vadd.f32 %v530_v22, %v529_v23 }
 0x126   : > { %v533_v34 = vadd.f32 %v532_v33, %v531_v32 }
 0x128   : > { %v535_v36 = vadd.f32 %v534_v35, %v533_v34 }
 0x12a   : > { %v537_v43 = vadd.f32 %v536_v37, %v535_v36 }
 0x12c   : > { %v539_v46 = vadd.f32 %v538_v41, %v537_v43 }
 0x12e   : > { %v541_v50 = vadd.f32 %v540_v49, %v539_v46 }
 0x130   : > { %v543_v52 = vadd.f32 %v542_v51, %v541_v50 }
 0x132   : > { %v545_v59 = vadd.f32 %v544_v53, %v543_v52 }
 0x134   : > { %v547_v62 = vadd.f32 %v546_v57, %v545_v59 }
 0x136   : > { %v549_v2 = vadd.f32 %v548_v1, %v547_v62 }
 0x138   : > { %v551_v4 = vadd.f32 %v550_v3, %v549_v2 }
 0x13a   : > { %v553_v11 = vadd.f32 %v552_v5, %v551_v4 }
 0x13c   : > { %v555_v14 = vadd.f32 %v554_v9, %v553_v11 }
 0x13e   : > { %v557_v18 = vadd.f32 %v556_v17, %v555_v14 }
 0x140   : > { %v559_v20 = vadd.f32 %v558_v19, %v557_v18 }
 0x142   : > { %v561_v22 = vadd.f32 %v560_v21, %v559_v20 }
 0x144   : > { %v562_v23 = vrot.slane %v561_v22, 4 }
 0x146   : > { %v563_v32 = vadd.f32 %v562_v23, %v561_v22 }
 0x148   : > { %v564_v33 = vrot.slane %v563_v32, 2 }
 0x14a   : > { %v565_v34 = vadd.f32 %v564_v33, %v563_v32 }
 0x14c   : > { %v566_v35 = vrot.slane %v565_v34, 1 }
 0x14e   : > { %v567_v36 = vadd.f32 %v566_v35, %v565_v34 }
 0x150   : > { %v569_v37 = vmul.f32 0.00390625, %v567_v36 }
 0x152   : > { %v1448_v41 = vsub.f32 %v1326_v26, %v569_v37  ;;  %v1451_v43 = vsub.f32 %v1334_v30, %v569_v37  ;;  %v1454_v46 = vsub.f32 %v1322_v24, %v569_v37  ;;  %v1457_v49 = vsub.f32 %v1330_v28, %v569_v37 }
 0x153   : > { %v1460_v50 = vsub.f32 %v1350_v40, %v569_v37  ;;  %v1463_v51 = vsub.f32 %v1360_v47, %v569_v37  ;;  %v1466_v52 = vsub.f32 %v1346_v38, %v569_v37  ;;  %v1469_v26 = vsub.f32 %v1356_v44, %v569_v37 }
 0x154   : > { %v1472_v30 = vsub.f32 %v1374_v56, %v569_v37  ;;  %v1475_v24 = vsub.f32 %v1384_v63, %v569_v37  ;;  %v1478_v28 = vsub.f32 %v1370_v54, %v569_v37  ;;  %v1481_v40 = vsub.f32 %v1380_v60, %v569_v37 }
 0x155   : > { %v1484_v47 = vsub.f32 %v1398_v8, %v569_v37  ;;  %v1486_v38 = vsub.f32 %v422_v15, %v569_v37  ;;  %v1489_v44 = vsub.f32 %v1394_v6, %v569_v37  ;;  %v1492_v56 = vsub.f32 %v1404_v12, %v569_v37 }
 0x156   : > { %v1495_v63 = vsub.f32 %v1328_v27, %v569_v37  ;;  %v1498_v54 = vsub.f32 %v1336_v31, %v569_v37  ;;  %v1501_v60 = vsub.f32 %v1324_v25, %v569_v37  ;;  %v1504_v8 = vsub.f32 %v1332_v29, %v569_v37 }
 0x157   : > { %v1507_v15 = vsub.f32 %v1352_v42, %v569_v37  ;;  %v1510_v6 = vsub.f32 %v1362_v48, %v569_v37  ;;  %v1513_v12 = vsub.f32 %v1348_v39, %v569_v37  ;;  %v1516_v27 = vsub.f32 %v1358_v45, %v569_v37 }
 0x158   : > { %v1519_v31 = vsub.f32 %v1376_v58, %v569_v37  ;;  %v1522_v25 = vsub.f32 %v1386_v0, %v569_v37  ;;  %v1525_v29 = vsub.f32 %v1372_v55, %v569_v37  ;;  %v1528_v42 = vsub.f32 %v1382_v61, %v569_v37 }
 0x159   : > { %v1531_v48 = vsub.f32 %v1400_v10, %v569_v37  ;;  %v1534_v39 = vsub.f32 %v1408_v16, %v569_v37  ;;  %v1537_v45 = vsub.f32 %v1396_v7, %v569_v37  ;;  %v1540_v58 = vsub.f32 %v1406_v13, %v569_v37 }
 0x15a   : > { %v602_v0 = vmul.f32 %v1448_v41, %v1448_v41  ;;  %v603_v55 = vmul.f32 %v1451_v43, %v1451_v43  ;;  %v604_v61 = vmul.f32 %v1454_v46, %v1454_v46  ;;  %v605_v10 = vmul.f32 %v1457_v49, %v1457_v49 }
 0x15b   : > { %v606_v13 = vmul.f32 %v1460_v50, %v1460_v50  ;;  %v607_v62 = vmul.f32 %v1463_v51, %v1463_v51  ;;  %v608_v3 = vmul.f32 %v1466_v52, %v1466_v52  ;;  %v609_v9 = vmul.f32 %v1469_v26, %v1469_v26 }
 0x15c   : > { %v634_v16 = vsel %vm498_vm0, %v602_v0, 0.0  ;;  %v635_v7 = vsel %vm498_vm0, %v603_v55, 0.0  ;;  %v637_v57 = vsel %vm498_vm0, %v604_v61, 0.0  ;;  %v639_v1 = vsel %vm498_vm0, %v605_v10, 0.0 }
 0x15d   : > { %v636_v53 = vadd.f32 %v635_v7, %v634_v16  ;;  %v641_v4 = vsel %vm498_vm0, %v606_v13, 0.0  ;;  %v643_v11 = vsel %vm498_vm0, %v607_v62, 0.0  ;;  %v610_v17 = vmul.f32 %v1472_v30, %v1472_v30 }
 0x15e   : > { %v645_v18 = vsel %vm498_vm0, %v608_v3, 0.0  ;;  %v611_v20 = vmul.f32 %v1475_v24, %v1475_v24  ;;  %v647_v21 = vsel %vm498_vm0, %v609_v9, 0.0  ;;  %v612_v23 = vmul.f32 %v1478_v28, %v1478_v28 }
 0x15f   : > { %v638_v59 = vadd.f32 %v637_v57, %v636_v53  ;;  %v649_v32 = vsel %vm498_vm0, %v610_v17, 0.0  ;;  %v613_v34 = vmul.f32 %v1481_v40, %v1481_v40  ;;  %v614_v37 = vmul.f32 %v1484_v47, %v1484_v47 }
 0x160   : > { %v651_v35 = vsel %vm498_vm0, %v611_v20, 0.0  ;;  %v653_v0 = vsel %vm498_vm0, %v612_v23, 0.0  ;;  %v615_v61 = vmul.f32 %v1486_v38, %v1486_v38  ;;  %v616_v7 = vmul.f32 %v1489_v44, %v1489_v44 }
 0x161   : > { %v640_v2 = vadd.f32 %v639_v1, %v638_v59  ;;  %v655_v10 = vsel %vm498_vm0, %v613_v34, 0.0  ;;  %v657_v53 = vsel %vm498_vm0, %v614_v37, 0.0  ;;  %v617_v57 = vmul.f32 %v1492_v56, %v1492_v56 }
 0x162   : > { %v659_v59 = vsel %vm498_vm0, %v615_v61, 0.0  ;;  %v618_v1 = vmul.f32 %v1495_v63, %v1495_v63 }
 0x163   : > { %v642_v5 = vadd.f32 %v641_v4, %v640_v2  ;;  %v661_v2 = vsel %vm498_vm0, %v616_v7, 0.0  ;;  %v619_v4 = vmul.f32 %v1498_v54, %v1498_v54 }
 0x165   : > { %v644_v14 = vadd.f32 %v643_v11, %v642_v5  ;;  %v663_v5 = vsel %vm498_vm0, %v617_v57, 0.0  ;;  %v620_v11 = vmul.f32 %v1501_v60, %v1501_v60 }
 0x167   : > { %v646_v19 = vadd.f32 %v645_v18, %v644_v14  ;;  %v665_v14 = vsel %vm498_vm0, %v618_v1, 0.0  ;;  %v621_v18 = vmul.f32 %v1504_v8, %v1504_v8 }
 0x169   : > { %v648_v22 = vadd.f32 %v647_v21, %v646_v19  ;;  %v667_v19 = vsel %vm498_vm0, %v619_v4, 0.0  ;;  %v622_v21 = vmul.f32 %v1507_v15, %v1507_v15 }
 0x16b   : > { %v650_v33 = vadd.f32 %v649_v32, %v648_v22  ;;  %v669_v22 = vsel %vm498_vm0, %v620_v11, 0.0  ;;  %v623_v32 = vmul.f32 %v1510_v6, %v1510_v6 }
 0x16d   : > { %v652_v36 = vadd.f32 %v651_v35, %v650_v33  ;;  %v671_v33 = vsel %vm498_vm0, %v621_v18, 0.0  ;;  %v624_v35 = vmul.f32 %v1513_v12, %v1513_v12 }
 0x16f   : > { %v654_v55 = vadd.f32 %v653_v0, %v652_v36  ;;  %v673_v36 = vsel %vm498_vm0, %v622_v21, 0.0  ;;  %v625_v0 = vmul.f32 %v1516_v27, %v1516_v27 }
 0x171   : > { %v656_v16 = vadd.f32 %v655_v10, %v654_v55  ;;  %v675_v55 = vsel %vm498_vm0, %v623_v32, 0.0  ;;  %v626_v10 = vmul.f32 %v1519_v31, %v1519_v31 }
 0x173   : > { %v658_v13 = vadd.f32 %v657_v53, %v656_v16  ;;  %v677_v16 = vsel %vm498_vm0, %v624_v35, 0.0  ;;  %v627_v53 = vmul.f32 %v1522_v25, %v1522_v25 }
 0x175   : > { %v660_v62 = vadd.f32 %v659_v59, %v658_v13  ;;  %v679_v13 = vsel %vm498_vm0, %v625_v0, 0.0  ;;  %v628_v59 = vmul.f32 %v1525_v29, %v1525_v29 }
 0x177   : > { %v662_v3 = vadd.f32 %v661_v2, %v660_v62  ;;  %v681_v62 = vsel %vm498_vm0, %v626_v10, 0.0  ;;  %v629_v2 = vmul.f32 %v1528_v42, %v1528_v42 }
 0x179   : > { %v664_v9 = vadd.f32 %v663_v5, %v662_v3  ;;  %v683_v3 = vsel %vm498_vm0, %v627_v53, 0.0  ;;  %v630_v5 = vmul.f32 %v1531_v48, %v1531_v48 }
 0x17b   : > { %v666_v17 = vadd.f32 %v665_v14, %v664_v9  ;;  %v685_v9 = vsel %vm498_vm0, %v628_v59, 0.0  ;;  %v631_v14 = vmul.f32 %v1534_v39, %v1534_v39 }
 0x17d   : > { %v668_v20 = vadd.f32 %v667_v19, %v666_v17  ;;  %v687_v17 = vsel %vm498_vm0, %v629_v2, 0.0  ;;  %v632_v19 = vmul.f32 %v1537_v45, %v1537_v45 }
 0x17f   : > { %v670_v23 = vadd.f32 %v669_v22, %v668_v20  ;;  %v689_v20 = vsel %vm498_vm0, %v630_v5, 0.0  ;;  %v633_v22 = vmul.f32 %v1540_v58, %v1540_v58 }
 0x181   : > { %v672_v34 = vadd.f32 %v671_v33, %v670_v23  ;;  %v691_v23 = vsel %vm498_vm0, %v631_v14, 0.0  ;;  %v693_v33 = vsel %vm498_vm0, %v632_v19, 0.0  ;;  %v695_v35 = vsel %vm498_vm0, %v633_v22, 0.0 }
 0x183   : > { %v674_v37 = vadd.f32 %v673_v36, %v672_v34 }
 0x185   : > { %v676_v61 = vadd.f32 %v675_v55, %v674_v37 }
 0x187   : > { %v678_v7 = vadd.f32 %v677_v16, %v676_v61 }
 0x189   : > { %v680_v57 = vadd.f32 %v679_v13, %v678_v7 }
 0x18b   : > { %v682_v1 = vadd.f32 %v681_v62, %v680_v57 }
 0x18d   : > { %v684_v4 = vadd.f32 %v683_v3, %v682_v1 }
 0x18f   : > { %v686_v11 = vadd.f32 %v685_v9, %v684_v4 }
 0x191   : > { %v688_v18 = vadd.f32 %v687_v17, %v686_v11 }
 0x193   : > { %v690_v21 = vadd.f32 %v689_v20, %v688_v18 }
 0x195   : > { %v692_v32 = vadd.f32 %v691_v23, %v690_v21 }
 0x197   : > { %v694_v34 = vadd.f32 %v693_v33, %v692_v32 }
 0x199   : > { %v696_v36 = vadd.f32 %v695_v35, %v694_v34 }
 0x19b   : > { %v697_v37 = vrot.slane %v696_v36, 4 }
 0x19d   : > { %v698_v0 = vadd.f32 %v697_v37, %v696_v36 }
 0x19f   : > { %v699_v55 = vrot.slane %v698_v0, 2 }
 0x1a1   : > { %v700_v61 = vadd.f32 %v699_v55, %v698_v0 }
 0x1a3   : > { %v701_v10 = vrot.slane %v700_v61, 1 }
 0x1a5   : > { %v702_v16 = vadd.f32 %v701_v10, %v700_v61 }
 0x1a7   : > { %v703_v7 = vmul.f32 0.00390625, %v702_v16 }
 0x1a9   : > { %v704_v53 = vadd.f32 1e-05, %v703_v7 }
 0x1ab   : > { %1239 = vrsqrt.f32 %v704_v53 }
 0x1b5   : > { %v1240_v13 = vpop.eup %1239 }
 0x1b6   : > { %v706_v57 = vmul.f32 %v1240_v13, %v1448_v41  ;;  %v707_v59 = vmul.f32 %v1240_v13, %v1451_v43  ;;  %v708_v62 = vmul.f32 %v1240_v13, %v1454_v46  ;;  %v709_v1 = vmul.f32 %v1240_v13, %v1457_v49 }
 0x1b7   : > { %v710_v2 = vmul.f32 %v1240_v13, %v1460_v50  ;;  %v711_v3 = vmul.f32 %v1240_v13, %v1463_v51  ;;  %v712_v4 = vmul.f32 %v1240_v13, %v1466_v52  ;;  %v1646_v5 = vmul.f32 %v1240_v13, %v1469_v26 }
 0x1b8   : > { %v1649_v9 = vmul.f32 %v1240_v13, %v1472_v30  ;;  %v1652_v41 = vmul.f32 %v1240_v13, %v1475_v24  ;;  %v1655_v43 = vmul.f32 %v1240_v13, %v1478_v28  ;;  %v1658_v46 = vmul.f32 %v1240_v13, %v1481_v40 }
 0x1b9   : > { %v1661_v49 = vmul.f32 %v1240_v13, %v1484_v47  ;;  %v1664_v50 = vmul.f32 %v1240_v13, %v1486_v38  ;;  %v1667_v51 = vmul.f32 %v1240_v13, %v1489_v44  ;;  %v1670_v52 = vmul.f32 %v1240_v13, %v1498_v54 }
 0x1ba   : > { %v1673_v26 = vmul.f32 %v1240_v13, %v1501_v60  ;;  %v1676_v30 = vmul.f32 %v1240_v13, %v1504_v8  ;;  %v1679_v24 = vmul.f32 %v1240_v13, %v1507_v15  ;;  %v1682_v28 = vmul.f32 %v1240_v13, %v1510_v6 }
 0x1bb   : > { %v1685_v40 = vmul.f32 %v1240_v13, %v1513_v12  ;;  %v1688_v47 = vmul.f32 %v1240_v13, %v1516_v27  ;;  %v1691_v38 = vmul.f32 %v1240_v13, %v1519_v31  ;;  %v1694_v44 = vmul.f32 %v1240_v13, %v1522_v25 }
 0x1bc   : > { %v1697_v54 = vmul.f32 %v1240_v13, %v1525_v29  ;;  %v1700_v60 = vmul.f32 %v1240_v13, %v1528_v42  ;;  %v1703_v8 = vmul.f32 %v1240_v13, %v1531_v48  ;;  %v1706_v15 = vmul.f32 %v1240_v13, %v1534_v39 }
 0x1bd   : > { %v1709_v6 = vmul.f32 %v1240_v13, %v1537_v45  ;;  %v1712_v12 = vmul.f32 %v1240_v13, %v1540_v58  ;;  %v721_v27 = vmul.f32 %v1240_v13, %v1492_v56  ;;  %v738_v31 = vmul.f32 0.1, %v706_v57 }
 0x1be   : > { %v739_v25 = vmul.f32 0.1, %v707_v59  ;;  %v740_v29 = vmul.f32 0.1, %v708_v62  ;;  %v722_v42 = vmul.f32 %v1240_v13, %v1495_v63  ;;  %v741_v11 = vmul.f32 0.1, %v709_v1 }
 0x1bf   : > { %v742_v14 = vmul.f32 0.1, %v710_v2  ;;  %v743_v48 = vmul.f32 0.1, %v711_v3  ;;  %v744_v17 = vmul.f32 0.1, %v712_v4  ;;  %v1718_v45 = vmax.f32 %v706_v57, %v738_v31 }
 0x1c0   : > { %v745_v39 = vmul.f32 0.1, %v1646_v5  ;;  %v746_v18 = vmul.f32 0.1, %v1649_v9  ;;  %v747_v58 = vmul.f32 0.1, %v1652_v41  ;;  %v1723_v20 = vmax.f32 %v707_v59, %v739_v25 }
 0x1c1   : > { %v748_v19 = vmul.f32 0.1, %v1655_v43  ;;  %v749_v56 = vmul.f32 0.1, %v1658_v46  ;;  %v750_v63 = vmul.f32 0.1, %v1661_v49  ;;  %v1728_v23 = vmax.f32 %v708_v62, %v740_v29 }
 0x1c2   : > { %1911 = vst [vmem:[#allocation2_spill] sm:$0xff] %v1723_v20  ;;  %v751_v21 = vmul.f32 0.1, %v1664_v50  ;;  %v752_v22 = vmul.f32 0.1, %v1667_v51  ;;  %v1731_v35 = vmax.f32 %v709_v1, %v741_v11  ;;  %v774_v55 = vmax.f32 %v710_v2, %v742_v14 }
 0x1c3   : > { %1912 = vst [vmem:[#allocation3_spill] sm:$0xff] %v1728_v23  ;;  %v753_v32 = vmul.f32 0.1, %v721_v27  ;;  %v754_v33 = vmul.f32 0.1, %v722_v42  ;;  %v775_v7 = vmax.f32 %v711_v3, %v743_v48  ;;  %v776_v59 = vmax.f32 %v712_v4, %v744_v17 }
 0x1c4   : > { %v755_v34 = vmul.f32 0.1, %v1670_v52  ;;  %1913 = vst [vmem:[#allocation4_spill] sm:$0xff] %v1731_v35  ;;  %v756_v36 = vmul.f32 0.1, %v1673_v26  ;;  %v777_v31 = vmax.f32 %v1646_v5, %v745_v39  ;;  %v778_v29 = vmax.f32 %v1649_v9, %v746_v18 }
 0x1c5   : > { %v757_v37 = vmul.f32 0.1, %v1676_v30  ;;  %v758_v0 = vmul.f32 0.1, %v1679_v24  ;;  %v759_v61 = vmul.f32 0.1, %v1682_v28  ;;  %v779_v11 = vmax.f32 %v1652_v41, %v747_v58 }
 0x1c6   : > { %v760_v10 = vmul.f32 0.1, %v1685_v40  ;;  %v761_v16 = vmul.f32 0.1, %v1688_v47  ;;  %v762_v53 = vmul.f32 0.1, %v1691_v38  ;;  %v780_v14 = vmax.f32 %v1655_v43, %v748_v19 }
 0x1c7   : > { %v763_v13 = vmul.f32 0.1, %v1694_v44  ;;  %v764_v57 = vmul.f32 0.1, %v1697_v54  ;;  %v765_v62 = vmul.f32 0.1, %v1700_v60  ;;  %v781_v4 = vmax.f32 %v1658_v46, %v749_v56 }
 0x1c8   : > { %v766_v1 = vmul.f32 0.1, %v1703_v8  ;;  %v767_v2 = vmul.f32 0.1, %v1706_v15  ;;  %v768_v25 = vmul.f32 0.1, %v1709_v6  ;;  %v782_v48 = vmax.f32 %v1661_v49, %v750_v63 }
 0x1c9   : > { %v769_v3 = vmul.f32 0.1, %v1712_v12  ;;  %v783_v17 = vmax.f32 %v1664_v50, %v751_v21  ;;  %v784_v35 = vmax.f32 %v1667_v51, %v752_v22  ;;  %v785_v5 = vmax.f32 %v721_v27, %v753_v32 }
 0x1ca   : > { %v786_v39 = vmax.f32 %v722_v42, %v754_v33  ;;  %v787_v23 = vmax.f32 %v1670_v52, %v755_v34  ;;  %v1757_v20 = vmax.f32 %v1673_v26, %v756_v36  ;;  %v1760_v9 = vmax.f32 %v1676_v30, %v757_v37 }
 0x1cb   : > { %v1763_v41 = vmax.f32 %v1679_v24, %v758_v0  ;;  %v1766_v43 = vmax.f32 %v1682_v28, %v759_v61  ;;  %v1769_v46 = vmax.f32 %v1685_v40, %v760_v10  ;;  %v1772_v49 = vmax.f32 %v1688_v47, %v761_v16 }
 0x1cc   : > { %v1775_v50 = vmax.f32 %v1691_v38, %v762_v53  ;;  %v1778_v51 = vmax.f32 %v1694_v44, %v763_v13  ;;  %v1788_v52 = vmax.f32 %v1697_v54, %v764_v57  ;;  %v1791_v26 = vmax.f32 %v1700_v60, %v765_v62  ;;  %v1914_v38 = vld [vmem:[#allocation2_spill] sm:$0xff]  ;;  %v1915_v54 = vld [vmem:[#allocation3_spill] sm:$0xff] }
 0x1cd   : > { %v1794_v30 = vmax.f32 %v1703_v8, %v766_v1  ;;  %v1797_v24 = vmax.f32 %v1706_v15, %v767_v2  ;;  %v1800_v28 = vmax.f32 %v1709_v6, %v768_v25  ;;  %v1803_v40 = vmax.f32 %v1712_v12, %v769_v3  ;;  %v1916_v8 = vld [vmem:[#allocation4_spill] sm:$0xff] }
 0x1ce   : > { %v1087_v47 = vpack.c.bf16 %v1718_v45, %v1718_v45  ;;  %v1088_v44 = vpack.c.bf16 %v1914_v38, %v1914_v38  ;;  %v1089_v60 = vpack.c.bf16 %v1915_v54, %v1915_v54  ;;  %v1090_v15 = vpack.c.bf16 %v1916_v8, %v1916_v8 }
 0x1cf   : > { %v1091_v6 = vpack.c.bf16 %v774_v55, %v774_v55  ;;  %v1092_v27 = vpack.c.bf16 %v775_v7, %v775_v7  ;;  %v1093_v12 = vpack.c.bf16 %v776_v59, %v776_v59  ;;  %v1094_v42 = vpack.c.bf16 %v777_v31, %v777_v31 }
 0x1d0   : > { %v1095_v18 = vpack.c.bf16 %v778_v29, %v778_v29  ;;  %v1096_v45 = vpack.c.bf16 %v779_v11, %v779_v11  ;;  %931 = vst.msk [vmem:[%s1785_s5] sm:$0xf] %vm930_vm1, %v1087_v47  ;;  %932 = vst.msk [vmem:[%s1785_s5 + $0x4] sm:$0xf] %vm930_vm1, %v1088_v44  ;;  %v1097_v58 = vpack.c.bf16 %v780_v14, %v780_v14 }
 0x1d1   : > { %v1098_v19 = vpack.c.bf16 %v781_v4, %v781_v4  ;;  %v1099_v56 = vpack.c.bf16 %v782_v48, %v782_v48  ;;  %v1100_v63 = vpack.c.bf16 %v783_v17, %v783_v17  ;;  %933 = vst.msk [vmem:[%s1785_s5 + $0x8] sm:$0xf] %vm930_vm1, %v1089_v60  ;;  %934 = vst.msk [vmem:[%s1785_s5 + $0xc] sm:$0xf] %vm930_vm1, %v1090_v15 }
 0x1d2   : > { %935 = vst.msk [vmem:[%s1785_s5 + $0x10] sm:$0xf] %vm930_vm1, %v1091_v6  ;;  %936 = vst.msk [vmem:[%s1785_s5 + $0x14] sm:$0xf] %vm930_vm1, %v1092_v27  ;;  %v1101_v21 = vpack.c.bf16 %v784_v35, %v784_v35  ;;  %v1102_v22 = vpack.c.bf16 %v785_v5, %v785_v5  ;;  %v1103_v32 = vpack.c.bf16 %v786_v39, %v786_v39 }
 0x1d3   : > { %v1104_v33 = vpack.c.bf16 %v787_v23, %v787_v23  ;;  %937 = vst.msk [vmem:[%s1785_s5 + $0x18] sm:$0xf] %vm930_vm1, %v1093_v12  ;;  %938 = vst.msk [vmem:[%s1785_s5 + $0x1c] sm:$0xf] %vm930_vm1, %v1094_v42  ;;  %v1105_v34 = vpack.c.bf16 %v1757_v20, %v1757_v20  ;;  %v1106_v35 = vpack.c.bf16 %v1760_v9, %v1760_v9 }
 0x1d4   : > { %939 = vst.msk [vmem:[%s1785_s5 + $0x20] sm:$0xf] %vm930_vm1, %v1095_v18  ;;  %940 = vst.msk [vmem:[%s1785_s5 + $0x24] sm:$0xf] %vm930_vm1, %v1096_v45  ;;  %v1107_v23 = vpack.c.bf16 %v1763_v41, %v1763_v41  ;;  %v1108_v36 = vpack.c.bf16 %v1766_v43, %v1766_v43  ;;  %v1109_v20 = vpack.c.bf16 %v1769_v46, %v1769_v46 }
 0x1d5   : > { %941 = vst.msk [vmem:[%s1785_s5 + $0x28] sm:$0xf] %vm930_vm1, %v1097_v58  ;;  %942 = vst.msk [vmem:[%s1785_s5 + $0x2c] sm:$0xf] %vm930_vm1, %v1098_v19  ;;  %v1110_v37 = vpack.c.bf16 %v1772_v49, %v1772_v49  ;;  %v1111_v0 = vpack.c.bf16 %v1775_v50, %v1775_v50  ;;  %v1112_v55 = vpack.c.bf16 %v1778_v51, %v1778_v51 }
 0x1d6   : > { %943 = vst.msk [vmem:[%s1785_s5 + $0x30] sm:$0xf] %vm930_vm1, %v1099_v56  ;;  %944 = vst.msk [vmem:[%s1785_s5 + $0x34] sm:$0xf] %vm930_vm1, %v1100_v63  ;;  %v1113_v61 = vpack.c.bf16 %v1788_v52, %v1788_v52  ;;  %v1114_v10 = vpack.c.bf16 %v1791_v26, %v1791_v26  ;;  %v1115_v16 = vpack.c.bf16 %v1794_v30, %v1794_v30 }
 0x1d7   : > { %945 = vst.msk [vmem:[%s1785_s5 + $0x38] sm:$0xf] %vm930_vm1, %v1101_v21  ;;  %946 = vst.msk [vmem:[%s1785_s5 + $0x3c] sm:$0xf] %vm930_vm1, %v1102_v22  ;;  %v1116_v7 = vpack.c.bf16 %v1797_v24, %v1797_v24  ;;  %v1117_v53 = vpack.c.bf16 %v1800_v28, %v1800_v28  ;;  %v1118_v13 = vpack.c.bf16 %v1803_v40, %v1803_v40 }
 0x1d8   : > { %947 = vst.msk [vmem:[%s1785_s5 + $0x40] sm:$0xf] %vm930_vm1, %v1103_v32  ;;  %948 = vst.msk [vmem:[%s1785_s5 + $0x44] sm:$0xf] %vm930_vm1, %v1104_v33 }
 0x1d9   : > { %949 = vst.msk [vmem:[%s1785_s5 + $0x48] sm:$0xf] %vm930_vm1, %v1105_v34  ;;  %950 = vst.msk [vmem:[%s1785_s5 + $0x4c] sm:$0xf] %vm930_vm1, %v1106_v35 }
 0x1da   : > { %951 = vst.msk [vmem:[%s1785_s5 + $0x50] sm:$0xf] %vm930_vm1, %v1107_v23  ;;  %952 = vst.msk [vmem:[%s1785_s5 + $0x54] sm:$0xf] %vm930_vm1, %v1108_v36 }
 0x1db   : > { %953 = vst.msk [vmem:[%s1785_s5 + $0x58] sm:$0xf] %vm930_vm1, %v1109_v20  ;;  %954 = vst.msk [vmem:[%s1785_s5 + $0x5c] sm:$0xf] %vm930_vm1, %v1110_v37 }
 0x1dc   : > { %955 = vst.msk [vmem:[%s1785_s5 + $0x60] sm:$0xf] %vm930_vm1, %v1111_v0  ;;  %956 = vst.msk [vmem:[%s1785_s5 + $0x64] sm:$0xf] %vm930_vm1, %v1112_v55 }
 0x1dd   : > { %957 = vst.msk [vmem:[%s1785_s5 + $0x68] sm:$0xf] %vm930_vm1, %v1113_v61  ;;  %958 = vst.msk [vmem:[%s1785_s5 + $0x6c] sm:$0xf] %vm930_vm1, %v1114_v10 }
 0x1de   : > { %959 = vst.msk [vmem:[%s1785_s5 + $0x70] sm:$0xf] %vm930_vm1, %v1115_v16  ;;  %960 = vst.msk [vmem:[%s1785_s5 + $0x74] sm:$0xf] %vm930_vm1, %v1116_v7 }
 0x1df   : > { %961 = vst.msk [vmem:[%s1785_s5 + $0x78] sm:$0xf] %vm930_vm1, %v1117_v53  ;;  %962 = vst.msk [vmem:[%s1785_s5 + $0x7c] sm:$0xf] %vm930_vm1, %v1118_v13 }
 0x1e0 PF: > { %s12_s9 = sadd.s32 1, %s1247_s9  }
 0x1e1   : > { %p9_p4 = scmp.ge.s32.totalorder %s12_s9, 4  }
 0x1e3   :  { %11 = sbr.rel (!%p9_p4) target bundleno = 1 (0x1), region = 58 }

// kernel: downsampling_backbone_forward.5
= control target key start
LH: loop header
LB: loop body
LE: loop exit
PB: predicated region body
PF: predicated region fallthrough
CT: control target
= control target key end

     0   :  { %13 = vsyncpa [#allocation4], 0  ;;  %s7636_s0 = inlined_call_operand.vmem [shape: bf16[2,8,8,256], index: 0, kind: input, shape index: {}]   ;;  %s7637_s1 = inlined_call_operand.vmem [shape: bf16[256,32], index: 1, kind: input, shape index: {}]   ;;  %s7638_s2 = inlined_call_operand.vmem [shape: bf16[32,32], index: 2, kind: input, shape index: {}]   ;;  %s7639_s3 = inlined_call_operand.vmem [shape: bf16[3,3,32,32], index: 3, kind: input, shape index: {}]   ;;  %s7640_s4 = inlined_call_operand.vmem [shape: bf16[32,32], index: 4, kind: input, shape index: {}]   ;;  %s7641_s5 = inlined_call_operand.vmem [shape: bf16[32,32], index: 5, kind: input, shape index: {}]   ;;  %s7642_s6 = inlined_call_operand.vmem [shape: bf16[3,3,32,32], index: 6, kind: input, shape index: {}]   ;;  %s7643_s7 = inlined_call_operand.vmem [shape: bf16[32,32], index: 7, kind: input, shape index: {}]   ;;  %s7644_s8 = inlined_call_operand.hbm [shape: f32[2,1,32], index: 8, kind: output, shape index: {}]  }
   0x1   :  { %15 = vsyncpa [#allocation4 + $0x1], 0  ;;  %s6442_s27 = smov 0   ;;  %s6444_s28 = smov 0  }
   0x2   :  { %s6446_s29 = smov 0   ;;  %s6448_s30 = smov 0  }
   0x3 LB: > { %s6463_s9 = sadd.s32 4294967295, %s6393_s30   ;;  %s5219_s10 = sadd.s32 4294967294, %s6393_s30   ;;  %s6393_s30 = sphi %s6448_s30, %s7660_s30   ;;  %s6389_s29 = sphi %s6446_s29, %s7659_s29   ;;  %s6385_s28 = sphi %s6444_s28, %s7658_s28   ;;  %s6381_s27 = sphi %s6442_s27, %s7657_s27  }
   0x4   : > { %s6467_s11 = sadd.s32 1, %s6393_s30   ;;  %s201_s12 = sadd.s32 1, %s6389_s29 }
   0x5   : > { %s198_s13 = ssub.s32 %s6393_s30, %s6467_s11  ;;  %p211_p0 = scmp.ne.s32.totalorder %s6389_s29, %s6385_s28 }
   0x6   : > { %p199_p1 = scmp.eq.s32.totalorder %s198_s13, 0  ;;  %p212_p2 = scmp.eq.s32.totalorder %s6463_s9, 1 }
   0x7   : > { %p217_p3 = scmp.ne.s32.totalorder %s6385_s28, %s6381_s27  ;;  %p218_p4 = scmp.eq.s32.totalorder %s5219_s10, 1 }
   0x8   : > { %s6478_s14 = scalar_select %p199_p1, %s6389_s29, %s201_s12  }
   0x9   : > { %p6480_p5 = por %p212_p2, %p211_p0  ;;  %p6484_p6 = por %p218_p4, %p217_p3 }
   0xa   : > { %p5222_p7 = scmp.ge.s32.totalorder %s6393_s30, 1  ;;  %p265_p8 = scmp.lt.s32.totalorder %s6393_s30, 3 }
   0xc   : > { %p266_p9 = pnand %p5222_p7, %p265_p8 }
   0xd   : > { %v6221_v0 = vld [vmem:[%s7637_s1 + $0x40] sm:$0xff] (!%p266_p9)   ;;  %v6223_v2 = vld [vmem:[%s7637_s1 + $0x48] sm:$0xff] (!%p266_p9)   ;;  %p298_p10 = scmp.lt.s32.totalorder (!%p266_p9), %s6463_s9, 1  ;;  %v6225_v4 = vld [vmem:[%s7637_s1 + $0x50] sm:$0xff] (!%p266_p9)   ;;  %vm545_vm0 = vcmask (!%p266_p9), 261120   ;;  %vm635_vm1 = vcmask (!%p266_p9), 253952  }
   0xe   : > { %269 = sbr.rel (%p266_p9) target bundleno = 2514 (0x9d2), region = 52  ;;  %v6222_v1 = vld [vmem:[%s7637_s1] sm:$0xff] (!%p266_p9)   ;;  %5601 = vmatprep.subr.bf16.mxu0 (!%p266_p9), %v6221_v0  ;;  %6037 = vmatprep.subr.bf16.mxu1 (!%p266_p9), %v6221_v0  ;;  %v6224_v3 = vld [vmem:[%s7637_s1 + $0x8] sm:$0xff] (!%p266_p9)   ;;  %v6226_v5 = vld [vmem:[%s7637_s1 + $0x10] sm:$0xff] (!%p266_p9)   ;;  %vm642_vm2 = vsmask.f32 (!%p266_p9), 256 }
   0xf   : > { %5602 = vmatpush3.bf16.msra.mxu0 (!%p266_p9), %v6222_v1  ;;  %6045 = vmatpush3.bf16.msra.mxu1 (!%p266_p9), %v6222_v1  ;;  %v6227_v6 = vld [vmem:[%s7637_s1 + $0x58] sm:$0xff] (!%p266_p9)   ;;  %v6229_v8 = vld [vmem:[%s7637_s1 + $0x60] sm:$0xff] (!%p266_p9)   ;;  %v6231_v10 = vld [vmem:[%s7637_s1 + $0x68] sm:$0xff] (!%p266_p9)   ;;  %vm668_vm4 = vsmask.f32 (!%p266_p9), 7938  ;;  %vm633_vm6 = vcmask (!%p266_p9), 257024  }
  0x10   : > { %5603 = vmatprep.subr.bf16.mxu0 (!%p266_p9), %v6223_v2  ;;  %6038 = vmatprep.subr.bf16.mxu1 (!%p266_p9), %v6223_v2  ;;  %v6228_v7 = vld [vmem:[%s7637_s1 + $0x18] sm:$0xff] (!%p266_p9)   ;;  %v6230_v9 = vld [vmem:[%s7637_s1 + $0x20] sm:$0xff] (!%p266_p9)   ;;  %v6232_v13 = vld [vmem:[%s7637_s1 + $0x28] sm:$0xff] (!%p266_p9)   ;;  %vm1051_vm8 = vsmask.f32 (!%p266_p9), 3328  ;;  %vm1405_vm11 = vcmask (!%p266_p9), 1042432  }
  0x11   : > { %v6233_v14 = vld [vmem:[%s7637_s1 + $0x70] sm:$0xff] (!%p266_p9)   ;;  %v6235_v16 = vld [vmem:[%s7637_s1 + $0x78] sm:$0xff] (!%p266_p9)   ;;  %v6249_v24 = vld [vmem:[%s7638_s2] sm:$0xff] (!%p266_p9)   ;;  %vm1052_vm9 = vsmask.f32 (!%p266_p9), 7440  ;;  %vm1406_vm12 = vcmask (!%p266_p9), 1046532  }
  0x12   : > { %v6234_v15 = vld [vmem:[%s7637_s1 + $0x30] sm:$0xff] (!%p266_p9)   ;;  %v6236_v17 = vld [vmem:[%s7637_s1 + $0x38] sm:$0xff] (!%p266_p9)   ;;  %v6250_v25 = vld [vmem:[%s7638_s2 + $0x8] sm:$0xff] (!%p266_p9)   ;;  %s296_s25 = sand.u32 (!%p266_p9), 1, %s6385_s28   ;;  %s5581_s10 = sshll.u32 (!%p266_p9), %s6463_s9, 4 }
  0x13   : > { %5604 = vmatpush3.bf16.msra.mxu0 (!%p266_p9), %v6224_v3  ;;  %6046 = vmatpush3.bf16.msra.mxu1 (!%p266_p9), %v6224_v3  ;;  %vm6604_vm3 = vmand (!%p266_p9), %vm635_vm1, %vm642_vm2  ;;  %s297_s12 = scalar_lea.vmem (!%p266_p9), [#allocation3], %s296_s25  ;;  %s7593_s19 = scalar_lea.hbm (!%p266_p9), %s7644_s8, %s5581_s10 }
  0x14   : > { %5605 = vmatprep.subr.bf16.mxu0 (!%p266_p9), %v6225_v4  ;;  %6039 = vmatprep.subr.bf16.mxu1 (!%p266_p9), %v6225_v4  ;;  %vm6618_vm5 = vmand (!%p266_p9), %vm635_vm1, %vm668_vm4 }
  0x15   : > { %s299_s13 = scalar_select %p298_p10, %s6463_s9, 1  ;;  %vm6697_vm7 = vmand %vm633_vm6, %vm668_vm4 }
  0x16   : > { %vm6751_vm10 = vmor %vm1051_vm8, %vm1052_vm9  ;;  %s6396_s9 = smov [#allocation3]  }
  0x17   : > { %5606 = vmatpush3.bf16.msra.mxu0 %v6226_v5  ;;  %6047 = vmatpush3.bf16.msra.mxu1 %v6226_v5  ;;  %s5584_s21 = sshll.u32 %s299_s13, 6  ;;  %vm6836_vm13 = vmor %vm1405_vm11, %vm1406_vm12  ;;  %s5164_s13 = sshll.u32 %s297_s12, 4  ;;  %s7595_s13 = int_to_ptr.vmem [resolvable:$true] %s5164_s13 }
  0x18   : > { %5607 = vmatprep.subr.bf16.mxu0 %v6227_v6  ;;  %6040 = vmatprep.subr.bf16.mxu1 %v6227_v6  ;;  %s6522_s26 = scalar_lea.vmem %s7636_s0, %s5584_s21  ;;  %s6331_s20 = scalar_lea.vmem %s7595_s13, 16 }
  0x19   : > { %v6239_v11 = vld [vmem:[%s6522_s26 + $0x4] ss:$8 sps:$4 sm:$0xff]   ;;  %v6237_v18 = vld [vmem:[%s6522_s26] ss:$8 sps:$4 sm:$0xff]   ;;  %v6243_v20 = vld [vmem:[%s6522_s26 + $0x14] ss:$8 sps:$4 sm:$0xff]   ;;  %p6332_p11 = scmp.ne.s32.totalorder %s7595_s13, %s6331_s20 }
  0x1a   : > { %v6242_v12 = vld [vmem:[%s6522_s26 + $0x24] ss:$8 sps:$4 sm:$0xff]   ;;  %512 = vmatprep.mubr.bf16.mxu0 %v6239_v11  ;;  %v6240_v19 = vld [vmem:[%s6522_s26 + $0x20] ss:$8 sps:$4 sm:$0xff]   ;;  %v6246_v21 = vld [vmem:[%s6522_s26 + $0x34] ss:$8 sps:$4 sm:$0xff]  }
  0x1b   : > { %5608 = vmatpush3.bf16.msra.mxu0 %v6228_v7  ;;  %6048 = vmatpush3.bf16.msra.mxu1 %v6228_v7  ;;  %v6245_v22 = vld [vmem:[%s6522_s26 + $0x10] ss:$8 sps:$4 sm:$0xff]   ;;  %p6333_p12 = pnand %p6332_p11, %p6480_p5  ;;  %s6335_s21 = sshll.u32 %s6396_s9, 4  ;;  %s6336_s21 = int_to_ptr.vmem [resolvable:$false] %s6335_s21 }
  0x1c   : > { %5609 = vmatprep.subr.bf16.mxu0 %v6229_v8  ;;  %6041 = vmatprep.subr.bf16.mxu1 %v6229_v8  ;;  %v6248_v23 = vld [vmem:[%s6522_s26 + $0x30] ss:$8 sps:$4 sm:$0xff]   ;;  %s5152_s26 = scalar_lea.sflag [#allocation4], %s296_s25  ;;  %s6337_s22 = scalar_lea.vmem %s6336_s21, 32 }
  0x1d   : > { %528 = vmatprep.mubr.bf16.mxu1 %v6242_v12  ;;  %p6334_p13 = pneg %p6333_p12  ;;  %p6338_p0 = scmp.lt.s32.totalorder %s7595_s13, %s6336_s21 }
  0x1e   : > { %p6339_p1 = scmp.lt.s32.totalorder %s6337_s22, %s6331_s20 }
  0x1f   : > { %5610 = vmatpush3.bf16.msra.mxu0 %v6230_v9  ;;  %6049 = vmatpush3.bf16.msra.mxu1 %v6230_v9 }
  0x20   : > { %5611 = vmatprep.subr.bf16.mxu0 %v6231_v10  ;;  %6042 = vmatprep.subr.bf16.mxu1 %v6231_v10  ;;  %p6340_p2 = por %p6339_p1, %p6338_p0 }
  0x22   : > { %p6341_p3 = pnand %p6340_p2, %p6334_p13 }
  0x23   : > { %5612 = vmatpush3.bf16.msra.mxu0 %v6232_v13  ;;  %6050 = vmatpush3.bf16.msra.mxu1 %v6232_v13 }
  0x24   : > { %5613 = vmatprep.subr.bf16.mxu0 %v6233_v14  ;;  %6043 = vmatprep.subr.bf16.mxu1 %v6233_v14 }
  0x27   : > { %5614 = vmatpush3.bf16.msra.mxu0 %v6234_v15  ;;  %6051 = vmatpush3.bf16.msra.mxu1 %v6234_v15 }
  0x28   : > { %5615 = vmatprep.subr.bf16.mxu0 %v6235_v16  ;;  %6044 = vmatprep.subr.bf16.mxu1 %v6235_v16 }
  0x2b   : > { %5616 = vmatpush3.bf16.msra.mxu0 %v6236_v17  ;;  %6052 = vmatpush3.bf16.msra.mxu1 %v6236_v17 }
  0x2c   : > { %5773 = vmatprep.subr.bf16.mxu1 %v6249_v24 }
  0x2e   : > { %513 = vmatmul.mubr.bf16.vlgmr.msra.gmra.mrb[0].mxu0 %v6237_v18  ;;  %529 = vmatmul.mubr.bf16.vlgmr.msra.gmra.mrb[0].mxu1 %v6240_v19 }
  0x2f   : > { %520 = vmatprep.mubr.bf16.mxu0 %v6243_v20  ;;  %536 = vmatprep.mubr.bf16.mxu1 %v6246_v21 }
  0x30   : > { %5774 = vmatpush3.bf16.msra.mxu1 %v6249_v24 }
  0x31   : > { %5775 = vmatprep.subr.bf16.mxu1 %v6250_v25 }
  0x34   : > { %5776 = vmatpush3.bf16.msra.mxu1 %v6250_v25 }
  0x36   : > { %521 = vmatmul.mubr.bf16.gmra.mrb[4].mxu0 %v6245_v22  ;;  %537 = vmatmul.mubr.bf16.gmra.mrb[4].mxu1 %v6248_v23 }
 0x101   : > { %v5617_v26 = vpop.f32.mrb[0].mxu0  ;;  %v5629_v27 = vpop.f32.mrb[0].mxu1 }
 0x102   : > { %v5618_v28 = vpop.f32.mrb[1].mxu0  ;;  %v5630_v29 = vpop.f32.mrb[1].mxu1 }
 0x103   : > { %v5619_v30 = vadd.f32 %v5618_v28, %v5617_v26  ;;  %v5620_v31 = vpop.f32.mrb[2].mxu0  ;;  %v5631_v32 = vadd.f32 %v5630_v29, %v5629_v27  ;;  %v5632_v33 = vpop.f32.mrb[2].mxu1 }
 0x104   : > { %v5621_v34 = vpop.f32.mrb[3].mxu0  ;;  %v5633_v35 = vpop.f32.mrb[3].mxu1 }
 0x105   : > { %v5622_v36 = vadd.f32 %v5621_v34, %v5620_v31  ;;  %v5634_v37 = vadd.f32 %v5633_v35, %v5632_v33  ;;  %v546_v38 = vsel %vm545_vm0, %v5619_v30, 0.0  ;;  %v553_v57 = vsel %vm545_vm0, %v5631_v32, 0.0 }
 0x107   : > { %v547_v39 = vsel %vm545_vm0, %v5622_v36, 0.0  ;;  %v555_v59 = vsel %vm545_vm0, %v5634_v37, 0.0 }
 0x108   : > { %v548_v40 = vadd.f32 %v547_v39, %v546_v38 }
 0x109   : > { %v5623_v41 = vpop.f32.mrb[4].mxu0  ;;  %v5635_v42 = vpop.f32.mrb[4].mxu1 }
 0x10a   : > { %v5624_v43 = vpop.f32.mrb[5].mxu0  ;;  %v5636_v44 = vpop.f32.mrb[5].mxu1 }
 0x10b   : > { %v5625_v45 = vadd.f32 %v5624_v43, %v5623_v41  ;;  %v5626_v46 = vpop.f32.mrb[6].mxu0  ;;  %v5637_v47 = vadd.f32 %v5636_v44, %v5635_v42  ;;  %v5638_v48 = vpop.f32.mrb[6].mxu1 }
 0x10c   : > { %v5627_v49 = vpop.f32.mrb[7].mxu0  ;;  %v5639_v50 = vpop.f32.mrb[7].mxu1 }
 0x10d   : > { %v549_v51 = vsel %vm545_vm0, %v5625_v45, 0.0  ;;  %v5628_v52 = vadd.f32 %v5627_v49, %v5626_v46  ;;  %v5640_v53 = vadd.f32 %v5639_v50, %v5638_v48  ;;  %v557_v60 = vsel %vm545_vm0, %v5637_v47, 0.0 }
 0x10e   : > { %v550_v54 = vadd.f32 %v549_v51, %v548_v40 }
 0x10f   : > { %v551_v55 = vsel %vm545_vm0, %v5628_v52, 0.0  ;;  %v559_v63 = vsel %vm545_vm0, %v5640_v53, 0.0 }
 0x110   : > { %v552_v56 = vadd.f32 %v551_v55, %v550_v54 }
 0x112   : > { %v554_v58 = vadd.f32 %v553_v57, %v552_v56 }
 0x114   : > { %v556_v61 = vadd.f32 %v555_v59, %v554_v58 }
 0x116   : > { %v558_v62 = vadd.f32 %v557_v60, %v556_v61 }
 0x118   : > { %v560_v0 = vadd.f32 %v559_v63, %v558_v62 }
 0x11a   : > { %v561_v1 = vrot.slane %v560_v0, 4 }
 0x11c   : > { %v562_v2 = vadd.f32 %v561_v1, %v560_v0 }
 0x11e   : > { %v563_v3 = vrot.slane %v562_v2, 2 }
 0x120   : > { %v564_v4 = vadd.f32 %v563_v3, %v562_v2 }
 0x122   : > { %v565_v5 = vrot.slane %v564_v4, 1 }
 0x124   : > { %v566_v6 = vadd.f32 %v565_v5, %v564_v4 }
 0x126   : > { %v568_v7 = vmul.f32 0.015625, %v566_v6 }
 0x128   : > { %v569_v8 = vsub.f32 %v5619_v30, %v568_v7  ;;  %v570_v9 = vsub.f32 %v5622_v36, %v568_v7  ;;  %v571_v10 = vsub.f32 %v5625_v45, %v568_v7  ;;  %v572_v11 = vsub.f32 %v5628_v52, %v568_v7 }
 0x129   : > { %v573_v12 = vsub.f32 %v5631_v32, %v568_v7  ;;  %v574_v13 = vsub.f32 %v5634_v37, %v568_v7  ;;  %v575_v14 = vsub.f32 %v5637_v47, %v568_v7  ;;  %v576_v15 = vsub.f32 %v5640_v53, %v568_v7 }
 0x12a   : > { %v577_v16 = vmul.f32 %v569_v8, %v569_v8  ;;  %v578_v17 = vmul.f32 %v570_v9, %v570_v9  ;;  %v579_v18 = vmul.f32 %v571_v10, %v571_v10  ;;  %v580_v19 = vmul.f32 %v572_v11, %v572_v11 }
 0x12b   : > { %v581_v23 = vmul.f32 %v573_v12, %v573_v12  ;;  %v582_v26 = vmul.f32 %v574_v13, %v574_v13  ;;  %v583_v29 = vmul.f32 %v575_v14, %v575_v14  ;;  %v584_v32 = vmul.f32 %v576_v15, %v576_v15 }
 0x12c   : > { %v585_v20 = vsel %vm545_vm0, %v577_v16, 0.0  ;;  %v586_v21 = vsel %vm545_vm0, %v578_v17, 0.0  ;;  %v588_v24 = vsel %vm545_vm0, %v579_v18, 0.0  ;;  %v590_v27 = vsel %vm545_vm0, %v580_v19, 0.0  ;;  %v653_v19 = vld [vmem:[#allocation2 + $0x20] sm:$0x1] }
 0x12d   : > { %v587_v22 = vadd.f32 %v586_v21, %v585_v20  ;;  %v592_v30 = vsel %vm545_vm0, %v581_v23, 0.0  ;;  %v594_v33 = vsel %vm545_vm0, %v582_v26, 0.0  ;;  %v596_v35 = vsel %vm545_vm0, %v583_v29, 0.0  ;;  %v656_v21 = vld [vmem:[#allocation2 + $0x28] sm:$0x1] }
 0x12e   : > { %v598_v37 = vsel %vm545_vm0, %v584_v32, 0.0  ;;  %v654_v20 = vsel %vm6604_vm3, 0, %v653_v19  ;;  %v662_v26 = vld [vmem:[#allocation2 + $0x38] sm:$0x1] }
 0x12f   : > { %v589_v25 = vadd.f32 %v588_v24, %v587_v22  ;;  %v659_v22 = vld [vmem:[#allocation2 + $0x30] sm:$0x1]  ;;  %655 = vst [vmem:[#allocation2 + $0x20] sm:$0x1] %v654_v20  ;;  %v657_v24 = vsel %vm6604_vm3, 0, %v656_v21 }
 0x130   : > { %658 = vst [vmem:[#allocation2 + $0x28] sm:$0x1] %v657_v24 }
 0x131   : > { %v591_v28 = vadd.f32 %v590_v27, %v589_v25  ;;  %v660_v25 = vsel %vm6604_vm3, 0, %v659_v22  ;;  %v665_v27 = vld [vmem:[#allocation2 + $0x40] sm:$0x1] }
 0x132   : > { %661 = vst [vmem:[#allocation2 + $0x30] sm:$0x1] %v660_v25  ;;  %v666_v29 = vsel %vm6604_vm3, 0, %v665_v27 }
 0x133   : > { %v593_v31 = vadd.f32 %v592_v30, %v591_v28  ;;  %v663_v28 = vsel %vm6604_vm3, 0, %v662_v26  ;;  %v670_v30 = vld [vmem:[#allocation2 + $0xc] sm:$0x1]  ;;  %667 = vst [vmem:[#allocation2 + $0x40] sm:$0x1] %v666_v29 }
 0x134   : > { %664 = vst [vmem:[#allocation2 + $0x38] sm:$0x1] %v663_v28  ;;  %v671_v32 = vsel %vm6618_vm5, 0, %v670_v30 }
 0x135   : > { %v595_v34 = vadd.f32 %v594_v33, %v593_v31  ;;  %v673_v31 = vld [vmem:[#allocation2 + $0x14] sm:$0x1]  ;;  %672 = vst [vmem:[#allocation2 + $0xc] sm:$0x1] %v671_v32 }
 0x136   : > { %v674_v33 = vsel %vm6618_vm5, 0, %v673_v31 }
 0x137   : > { %v597_v36 = vadd.f32 %v596_v35, %v595_v34  ;;  %v676_v34 = vld [vmem:[#allocation2 + $0x1c] sm:$0x1]  ;;  %v679_v35 = vld [vmem:[#allocation2 + $0x24] sm:$0x1]  ;;  %675 = vst [vmem:[#allocation2 + $0x14] sm:$0x1] %v674_v33 }
 0x139   : > { %v599_v38 = vadd.f32 %v598_v37, %v597_v36  ;;  %v677_v36 = vsel %vm6618_vm5, 0, %v676_v34  ;;  %v680_v37 = vsel %vm6618_vm5, 0, %v679_v35 }
 0x13a   : > { %678 = vst [vmem:[#allocation2 + $0x1c] sm:$0x1] %v677_v36  ;;  %681 = vst [vmem:[#allocation2 + $0x24] sm:$0x1] %v680_v37 }
 0x13b   : > { %v600_v39 = vrot.slane %v599_v38, 4 }
 0x13d   : > { %v601_v40 = vadd.f32 %v600_v39, %v599_v38  ;;  %v682_v38 = vld [vmem:[#allocation2 + $0x2c] sm:$0x1]  ;;  %v685_v39 = vld [vmem:[#allocation2 + $0x34] sm:$0x1] }
 0x13f   : > { %v602_v41 = vrot.slane %v601_v40, 2 }
 0x141   : > { %v603_v42 = vadd.f32 %v602_v41, %v601_v40  ;;  %v683_v40 = vsel %vm6618_vm5, 0, %v682_v38  ;;  %v686_v41 = vsel %vm6618_vm5, 0, %v685_v39 }
 0x142   : > { %684 = vst [vmem:[#allocation2 + $0x2c] sm:$0x1] %v683_v40  ;;  %687 = vst [vmem:[#allocation2 + $0x34] sm:$0x1] %v686_v41 }
 0x143   : > { %v604_v43 = vrot.slane %v603_v42, 1 }
 0x145   : > { %v605_v44 = vadd.f32 %v604_v43, %v603_v42  ;;  %v688_v42 = vld [vmem:[#allocation2 + $0x3c] sm:$0x1]  ;;  %v691_v43 = vld [vmem:[#allocation2 + $0x44] sm:$0x1] }
 0x147   : > { %v606_v45 = vmul.f32 0.015625, %v605_v44  ;;  %v689_v44 = vsel %vm6618_vm5, 0, %v688_v42 }
 0x148   : > { %690 = vst [vmem:[#allocation2 + $0x3c] sm:$0x1] %v689_v44 }
 0x149   : > { %v607_v46 = vadd.f32 1e-05, %v606_v45  ;;  %v692_v45 = vsel %vm6618_vm5, 0, %v691_v43 }
 0x14a   : > { %693 = vst [vmem:[#allocation2 + $0x44] sm:$0x1] %v692_v45 }
 0x14b   : > { %6316 = vrsqrt.f32 %v607_v46  ;;  %v6251_v46 = vld [vmem:[%s7639_s3 + $0x10] sm:$0xff]  }
 0x14c   : > { %5785 = vmatprep.subr.bf16.mxu1 %v6251_v46 }
 0x155   : > { %v6317_v47 = vpop.eup %6316 }
 0x156   : > { %v616_v48 = vmul.f32 %v6317_v47, %v576_v15  ;;  %v609_v49 = vmul.f32 %v6317_v47, %v569_v8  ;;  %v610_v50 = vmul.f32 %v6317_v47, %v570_v9  ;;  %v611_v51 = vmul.f32 %v6317_v47, %v571_v10  ;;  %v650_v15 = vld [vmem:[#allocation2 + $0x18] sm:$0x1] }
 0x157   : > { %v612_v52 = vmul.f32 %v6317_v47, %v572_v11  ;;  %v613_v53 = vmul.f32 %v6317_v47, %v573_v12  ;;  %v614_v54 = vmul.f32 %v6317_v47, %v574_v13  ;;  %v615_v55 = vmul.f32 %v6317_v47, %v575_v14  ;;  %v644_v12 = vld [vmem:[#allocation2 + $0x8] sm:$0x1]  ;;  %v647_v14 = vld [vmem:[#allocation2 + $0x10] sm:$0x1]  ;;  %v6252_v47 = vld [vmem:[%s7639_s3 + $0x18] sm:$0xff]  }
 0x158   : > { %v617_v56 = vmul.f32 0.1, %v609_v49  ;;  %v618_v57 = vmul.f32 0.1, %v610_v50  ;;  %v619_v58 = vmul.f32 0.1, %v611_v51 }
 0x159   : > { %v620_v59 = vmul.f32 0.1, %v612_v52  ;;  %v621_v60 = vmul.f32 0.1, %v613_v53  ;;  %v622_v63 = vmul.f32 0.1, %v614_v54 }
 0x15a   : > { %v6575_v61 = vmax.f32 %v609_v49, %v617_v56  ;;  %v6577_v62 = vmax.f32 %v610_v50, %v618_v57  ;;  %v6579_v0 = vmax.f32 %v611_v51, %v619_v58  ;;  %v624_v5 = vmul.f32 0.1, %v616_v48  ;;  %v6659_v49 = vld [vmem:[%s7639_s3] sm:$0xff]  }
 0x15b   : > { %v6581_v1 = vmax.f32 %v612_v52, %v620_v59  ;;  %v6583_v2 = vmax.f32 %v613_v53, %v621_v60  ;;  %v6587_v4 = vmax.f32 %v614_v54, %v622_v63  ;;  %v623_v7 = vmul.f32 0.1, %v615_v55 }
 0x15c   : > { %v694_v3 = vpack.c.bf16 %v6577_v62, %v6575_v61  ;;  %v6596_v9 = vmax.f32 %v616_v48, %v624_v5  ;;  %v645_v16 = vsel %vm6604_vm3, 0, %v644_v12  ;;  %v648_v17 = vsel %vm6604_vm3, 0, %v647_v14 }
 0x15d   : > { %v695_v6 = vpack.c.bf16 %v6581_v1, %v6579_v0  ;;  %v696_v8 = vpack.c.bf16 %v6587_v4, %v6583_v2  ;;  %v6598_v10 = vmax.f32 %v615_v55, %v623_v7  ;;  %v651_v18 = vsel %vm6604_vm3, 0, %v650_v15  ;;  %646 = vst [vmem:[#allocation2 + $0x8] sm:$0x1] %v645_v16  ;;  %649 = vst [vmem:[#allocation2 + $0x10] sm:$0x1] %v648_v17 }
 0x15e   : > { %5777 = vmatprep.mubr.msk.bf16.mxu1 %vm545_vm0, %v694_v3  ;;  %652 = vst [vmem:[#allocation2 + $0x18] sm:$0x1] %v651_v18  ;;  %v6395_v48 = vmov 0  }
 0x15f   : > { %5778 = vmatmul.mubr.msk.bf16.vlgmr.msra.gmra.mrb[8].mxu1 %vm545_vm0, %v695_v6  ;;  %v697_v11 = vpack.c.bf16 %v6596_v9, %v6598_v10  ;;  %634 = vst.msk [vmem:[#allocation2] sm:$0xf] %vm633_vm6, %v6395_v48  ;;  %638 = vst.msk [vmem:[#allocation2 + $0x48] sm:$0xf] %vm633_vm6, %v6395_v48 }
 0x160   : > { %5781 = vmatprep.mubr.msk.bf16.mxu1 %vm545_vm0, %v696_v8  ;;  %636 = vst.msk [vmem:[#allocation2 + $0x4] sm:$0x1] %vm635_vm1, %v6395_v48  ;;  %639 = vst.msk [vmem:[#allocation2 + $0x4c] sm:$0x1] %vm635_vm1, %v6395_v48  ;;  %5786 = vmatpush3.bf16.msra.mxu1 %v6251_v46 }
 0x161   : > { %5787 = vmatprep.subr.bf16.mxu1 %v6252_v47 }
 0x164   : > { %5788 = vmatpush3.bf16.msra.mxu1 %v6252_v47 }
 0x165   : > { %5797 = vmatprep.subr.bf16.mxu1 %v6659_v49 }
 0x167   : > { %5782 = vmatmul.mubr.msk.bf16.gmra.mrb[12].mxu1 %vm545_vm0, %v697_v11 }
 0x232   : > { %v5779_v50 = vpop.f32.mrb[8].mxu1 }
 0x233   : > { %v760_v51 = vpop.f32.mrb[9].mxu1  ;;  %v794_v57 = vsel %vm545_vm0, %v5779_v50, 0.0 }
 0x234   : > { %v5780_v52 = vpop.f32.mrb[10].mxu1  ;;  %v791_v54 = vsel %vm545_vm0, %v760_v51, 0.0 }
 0x235   : > { %v763_v53 = vpop.f32.mrb[11].mxu1  ;;  %v796_v59 = vsel %vm545_vm0, %v5780_v52, 0.0 }
 0x236   : > { %v792_v55 = vsel %vm545_vm0, %v763_v53, 0.0 }
 0x237   : > { %v793_v56 = vadd.f32 %v792_v55, %v791_v54 }
 0x239   : > { %v795_v58 = vadd.f32 %v794_v57, %v793_v56 }
 0x23a   : > { %v5783_v60 = vpop.f32.mrb[12].mxu1 }
 0x23b   : > { %v776_v63 = vpop.f32.mrb[13].mxu1  ;;  %v797_v3 = vadd.f32 %v796_v59, %v795_v58  ;;  %v802_v14 = vsel %vm545_vm0, %v5783_v60, 0.0 }
 0x23c   : > { %v798_v5 = vsel %vm545_vm0, %v776_v63, 0.0  ;;  %v5784_v6 = vpop.f32.mrb[14].mxu1 }
 0x23d   : > { %v799_v7 = vadd.f32 %v798_v5, %v797_v3  ;;  %v779_v8 = vpop.f32.mrb[15].mxu1  ;;  %v804_v16 = vsel %vm545_vm0, %v5784_v6, 0.0 }
 0x23e   : > { %v800_v11 = vsel %vm545_vm0, %v779_v8, 0.0 }
 0x23f   : > { %v801_v12 = vadd.f32 %v800_v11, %v799_v7  ;;  %v6678_v7 = vld [vmem:[#allocation2] sm:$0xf] }
 0x240   : > { %v1058_v11 = vshll.u32 %v6678_v7, 16 }
 0x241   : > { %v803_v15 = vadd.f32 %v802_v14, %v801_v12  ;;  %v6682_v12 = vld [vmem:[#allocation2 + $0x4] sm:$0x1] }
 0x243   : > { %v805_v17 = vadd.f32 %v804_v16, %v803_v15  ;;  %v6686_v16 = vrot.slane %v1058_v11, 5  ;;  %v983_v11 = vld [vmem:[#allocation2 + $0x8] sm:$0xf] }
 0x245   : > { %v806_v18 = vrot.slane %v805_v17, 4 }
 0x247   : > { %v807_v19 = vadd.f32 %v806_v18, %v805_v17  ;;  %v1064_v17 = vshll.u32 %v6682_v12, 16 }
 0x249   : > { %v808_v20 = vrot.slane %v807_v19, 2 }
 0x24b   : > { %v809_v21 = vadd.f32 %v808_v20, %v807_v19 }
 0x24d   : > { %v810_v22 = vrot.slane %v809_v21, 1 }
 0x24f   : > { %v811_v23 = vadd.f32 %v810_v22, %v809_v21 }
 0x251   : > { %v812_v24 = vmul.f32 0.015625, %v811_v23 }
 0x253   : > { %v813_v25 = vsub.f32 %v760_v51, %v812_v24  ;;  %v814_v26 = vsub.f32 %v763_v53, %v812_v24  ;;  %v815_v27 = vsub.f32 %v5779_v50, %v812_v24  ;;  %v816_v28 = vsub.f32 %v5780_v52, %v812_v24 }
 0x254   : > { %v817_v29 = vsub.f32 %v776_v63, %v812_v24  ;;  %v818_v30 = vsub.f32 %v779_v8, %v812_v24  ;;  %v819_v31 = vsub.f32 %v5783_v60, %v812_v24  ;;  %v820_v32 = vsub.f32 %v5784_v6, %v812_v24 }
 0x255   : > { %v821_v33 = vmul.f32 %v813_v25, %v813_v25  ;;  %v822_v34 = vmul.f32 %v814_v26, %v814_v26  ;;  %v823_v35 = vmul.f32 %v815_v27, %v815_v27  ;;  %v824_v36 = vmul.f32 %v816_v28, %v816_v28 }
 0x256   : > { %v825_v40 = vmul.f32 %v817_v29, %v817_v29  ;;  %v826_v43 = vmul.f32 %v818_v30, %v818_v30  ;;  %v827_v46 = vmul.f32 %v819_v31, %v819_v31  ;;  %v828_v50 = vmul.f32 %v820_v32, %v820_v32 }
 0x257   : > { %v829_v37 = vsel %vm545_vm0, %v821_v33, 0.0  ;;  %v830_v38 = vsel %vm545_vm0, %v822_v34, 0.0  ;;  %v832_v41 = vsel %vm545_vm0, %v823_v35, 0.0  ;;  %v834_v44 = vsel %vm545_vm0, %v824_v36, 0.0 }
 0x258   : > { %v831_v39 = vadd.f32 %v830_v38, %v829_v37  ;;  %v836_v47 = vsel %vm545_vm0, %v825_v40, 0.0  ;;  %v838_v51 = vsel %vm545_vm0, %v826_v43, 0.0  ;;  %v840_v53 = vsel %vm545_vm0, %v827_v46, 0.0 }
 0x259   : > { %v842_v55 = vsel %vm545_vm0, %v828_v50, 0.0  ;;  %v1055_v8 = vshrl.u32 %v6678_v7, 16 }
 0x25a   : > { %v833_v42 = vadd.f32 %v832_v41, %v831_v39 }
 0x25b   : > { %v6684_v15 = vrot.slane %v1055_v8, 4 }
 0x25c   : > { %v835_v45 = vadd.f32 %v834_v44, %v833_v42 }
 0x25d   : > { %v1061_v40 = vor.u32 %v6686_v16, %v6684_v15 }
 0x25e   : > { %v837_v48 = vadd.f32 %v836_v47, %v835_v45 }
 0x260   : > { %v839_v52 = vadd.f32 %v838_v51, %v837_v48 }
 0x262   : > { %v841_v54 = vadd.f32 %v840_v53, %v839_v52 }
 0x264   : > { %v843_v56 = vadd.f32 %v842_v55, %v841_v54 }
 0x266   : > { %v844_v57 = vrot.slane %v843_v56, 4 }
 0x268   : > { %v845_v58 = vadd.f32 %v844_v57, %v843_v56 }
 0x26a   : > { %v846_v59 = vrot.slane %v845_v58, 2 }
 0x26c   : > { %v847_v60 = vadd.f32 %v846_v59, %v845_v58 }
 0x26e   : > { %v848_v63 = vrot.slane %v847_v60, 1 }
 0x270   : > { %v849_v3 = vadd.f32 %v848_v63, %v847_v60 }
 0x272   : > { %v850_v5 = vmul.f32 0.015625, %v849_v3 }
 0x274   : > { %v851_v6 = vadd.f32 1e-05, %v850_v5 }
 0x276   : > { %6318 = vrsqrt.f32 %v851_v6 }
 0x280   : > { %v6319_v14 = vpop.eup %6318 }
 0x281   : > { %v853_v18 = vmul.f32 %v6319_v14, %v813_v25  ;;  %v854_v19 = vmul.f32 %v6319_v14, %v814_v26  ;;  %v855_v20 = vmul.f32 %v6319_v14, %v815_v27  ;;  %v856_v21 = vmul.f32 %v6319_v14, %v816_v28 }
 0x282   : > { %v857_v22 = vmul.f32 %v6319_v14, %v817_v29  ;;  %v858_v23 = vmul.f32 %v6319_v14, %v818_v30  ;;  %v859_v24 = vmul.f32 %v6319_v14, %v819_v31  ;;  %v860_v33 = vmul.f32 %v6319_v14, %v820_v32  ;;  %v986_v14 = vld [vmem:[#allocation2 + $0xc] sm:$0x1] }
 0x283   : > { %v861_v34 = vmul.f32 0.1, %v853_v18  ;;  %v862_v35 = vmul.f32 0.1, %v854_v19  ;;  %v863_v36 = vmul.f32 0.1, %v855_v20 }
 0x284   : > { %v864_v37 = vmul.f32 0.1, %v856_v21  ;;  %v865_v38 = vmul.f32 0.1, %v857_v22  ;;  %v866_v39 = vmul.f32 0.1, %v858_v23 }
 0x285   : > { %v867_v41 = vmul.f32 0.1, %v859_v24  ;;  %v868_v42 = vmul.f32 0.1, %v860_v33  ;;  %v869_v43 = vmax.f32 %v853_v18, %v861_v34  ;;  %v870_v25 = vmax.f32 %v854_v19, %v862_v35 }
 0x286   : > { %v871_v26 = vmax.f32 %v855_v20, %v863_v36  ;;  %v872_v27 = vmax.f32 %v856_v21, %v864_v37  ;;  %v873_v28 = vmax.f32 %v857_v22, %v865_v38  ;;  %v874_v29 = vmax.f32 %v858_v23, %v866_v39  ;;  %v989_v22 = vld [vmem:[#allocation2 + $0x10] sm:$0xf]  ;;  %v992_v36 = vld [vmem:[#allocation2 + $0x14] sm:$0x1]  ;;  %v995_v37 = vld [vmem:[#allocation2 + $0x18] sm:$0xf] }
 0x287   : > { %v875_v30 = vmax.f32 %v859_v24, %v867_v41  ;;  %v876_v31 = vmax.f32 %v860_v33, %v868_v42  ;;  %v5585_v32 = vpack.c.bf16 %v869_v43, %v869_v43  ;;  %v5586_v44 = vpack.c.bf16 %v870_v25, %v870_v25  ;;  %v998_v43 = vld [vmem:[#allocation2 + $0x1c] sm:$0x1]  ;;  %v1001_v25 = vld [vmem:[#allocation2 + $0x20] sm:$0xf] }
 0x288   : > { %v5587_v45 = vpack.c.bf16 %v871_v26, %v871_v26  ;;  %v5588_v46 = vpack.c.bf16 %v872_v27, %v872_v27  ;;  %v5589_v47 = vpack.c.bf16 %v873_v28, %v873_v28  ;;  %v5590_v48 = vpack.c.bf16 %v874_v29, %v874_v29 }
 0x289   : > { %v6691_v50 = vpack.c.bf16 %v875_v30, %v875_v30  ;;  %v6693_v51 = vpack.c.bf16 %v876_v31, %v876_v31  ;;  %v902_v52 = vshrl.u32 %v5585_v32, 16  ;;  %v905_v53 = vshll.u32 %v5585_v32, 16  ;;  %v1004_v30 = vld [vmem:[#allocation2 + $0x24] sm:$0x1] }
 0x28a   : > { %v910_v54 = vshrl.u32 %v5586_v44, 16  ;;  %v913_v55 = vshll.u32 %v5586_v44, 16  ;;  %v918_v56 = vshrl.u32 %v5587_v45, 16  ;;  %v921_v57 = vshll.u32 %v5587_v45, 16 }
 0x28b   : > { %v904_v58 = vrot.slane %v902_v52, 7  ;;  %v926_v59 = vshrl.u32 %v5588_v46, 16  ;;  %v929_v60 = vshll.u32 %v5588_v46, 16  ;;  %v934_v63 = vshrl.u32 %v5589_v47, 16  ;;  %v1007_v46 = vld [vmem:[#allocation2 + $0x28] sm:$0xf] }
 0x28c   : > { %v912_v3 = vrot.slane %v910_v54, 7  ;;  %v920_v5 = vrot.slane %v918_v56, 7  ;;  %v937_v6 = vshll.u32 %v5589_v47, 16  ;;  %v942_v8 = vshrl.u32 %v5590_v48, 16  ;;  %v1010_v47 = vld [vmem:[#allocation2 + $0x2c] sm:$0x1] }
 0x28d   : > { %v907_v18 = vor.u32 %v905_v53, %v904_v58  ;;  %v908_v19 = vrot.slane %v904_v58, 4  ;;  %v928_v20 = vrot.slane %v926_v59, 7  ;;  %v936_v21 = vrot.slane %v934_v63, 7  ;;  %v1013_v54 = vld [vmem:[#allocation2 + $0x30] sm:$0xf] }
 0x28e   : > { %v915_v23 = vor.u32 %v913_v55, %v912_v3  ;;  %v916_v24 = vrot.slane %v912_v3, 4  ;;  %v923_v33 = vor.u32 %v921_v57, %v920_v5  ;;  %v924_v34 = vrot.slane %v920_v5, 4  ;;  %v1016_v55 = vld [vmem:[#allocation2 + $0x34] sm:$0x1]  ;;  %v1019_v59 = vld [vmem:[#allocation2 + $0x38] sm:$0xf] }
 0x28f   : > { %v931_v38 = vor.u32 %v929_v60, %v928_v20  ;;  %v932_v39 = vrot.slane %v928_v20, 4  ;;  %v939_v41 = vor.u32 %v937_v6, %v936_v21  ;;  %v940_v42 = vrot.slane %v936_v21, 4  ;;  %v1022_v60 = vld [vmem:[#allocation2 + $0x3c] sm:$0x1] }
 0x290   : > { %v944_v26 = vrot.slane %v942_v8, 7  ;;  %v945_v27 = vshll.u32 %v5590_v48, 16  ;;  %v950_v28 = vshrl.u32 %v6691_v50, 16  ;;  %v953_v29 = vshll.u32 %v6691_v50, 16  ;;  %v1025_v8 = vld [vmem:[#allocation2 + $0x40] sm:$0xf] }
 0x291   : > { %v958_v31 = vshrl.u32 %v6693_v51, 16  ;;  %v961_v32 = vshll.u32 %v6693_v51, 16  ;;  %v984_v44 = vsel %vm6697_vm7, %v907_v18, %v983_v11  ;;  %v987_v45 = vsel %vm6604_vm3, %v908_v19, %v986_v14  ;;  %v1028_v11 = vld [vmem:[#allocation2 + $0x44] sm:$0x1] }
 0x292   : > { %v947_v52 = vor.u32 %v945_v27, %v944_v26  ;;  %v948_v53 = vrot.slane %v944_v26, 4  ;;  %v952_v48 = vrot.slane %v950_v28, 7  ;;  %985 = vst [vmem:[#allocation2 + $0x8] sm:$0xf] %v984_v44  ;;  %988 = vst [vmem:[#allocation2 + $0xc] sm:$0x1] %v987_v45  ;;  %v990_v50 = vsel %vm6697_vm7, %v915_v23, %v989_v22 }
 0x293   : > { %v960_v56 = vrot.slane %v958_v31, 7  ;;  %991 = vst [vmem:[#allocation2 + $0x10] sm:$0xf] %v990_v50  ;;  %v993_v51 = vsel %vm6604_vm3, %v916_v24, %v992_v36  ;;  %v996_v57 = vsel %vm6697_vm7, %v923_v33, %v995_v37  ;;  %v999_v58 = vsel %vm6604_vm3, %v924_v34, %v998_v43 }
 0x294   : > { %v955_v63 = vor.u32 %v953_v29, %v952_v48  ;;  %v956_v3 = vrot.slane %v952_v48, 4  ;;  %994 = vst [vmem:[#allocation2 + $0x14] sm:$0x1] %v993_v51  ;;  %997 = vst [vmem:[#allocation2 + $0x18] sm:$0xf] %v996_v57  ;;  %v1002_v5 = vsel %vm6697_vm7, %v931_v38, %v1001_v25  ;;  %v1005_v6 = vsel %vm6604_vm3, %v932_v39, %v1004_v30 }
 0x295   : > { %1000 = vst [vmem:[#allocation2 + $0x1c] sm:$0x1] %v999_v58  ;;  %v963_v14 = vor.u32 %v961_v32, %v960_v56  ;;  %v964_v18 = vrot.slane %v960_v56, 4  ;;  %1003 = vst [vmem:[#allocation2 + $0x20] sm:$0xf] %v1002_v5  ;;  %v1008_v19 = vsel %vm6697_vm7, %v939_v41, %v1007_v46  ;;  %v1011_v20 = vsel %vm6604_vm3, %v940_v42, %v1010_v47 }
 0x296   : > { %1006 = vst [vmem:[#allocation2 + $0x24] sm:$0x1] %v1005_v6  ;;  %1009 = vst [vmem:[#allocation2 + $0x28] sm:$0xf] %v1008_v19  ;;  %v1014_v21 = vsel %vm6697_vm7, %v947_v52, %v1013_v54  ;;  %v1017_v22 = vsel %vm6604_vm3, %v948_v53, %v1016_v55  ;;  %v1020_v23 = vsel %vm6697_vm7, %v955_v63, %v1019_v59  ;;  %v1066_v38 = vrot.slane %v1064_v17, 5 }
 0x297   : > { %1012 = vst [vmem:[#allocation2 + $0x2c] sm:$0x1] %v1011_v20  ;;  %v1023_v24 = vsel %vm6604_vm3, %v956_v3, %v1022_v60  ;;  %1015 = vst [vmem:[#allocation2 + $0x30] sm:$0xf] %v1014_v21  ;;  %v1026_v33 = vsel %vm6697_vm7, %v963_v14, %v1025_v8  ;;  %v1029_v34 = vsel %vm6604_vm3, %v964_v18, %v1028_v11  ;;  %v1062_v39 = vrot.slane %v1061_v40, 4 }
 0x298   : > { %1018 = vst [vmem:[#allocation2 + $0x34] sm:$0x1] %v1017_v22  ;;  %1021 = vst [vmem:[#allocation2 + $0x38] sm:$0xf] %v1020_v23 }
 0x299   : > { %1024 = vst [vmem:[#allocation2 + $0x3c] sm:$0x1] %v1023_v24  ;;  %1027 = vst [vmem:[#allocation2 + $0x40] sm:$0xf] %v1026_v33  ;;  %v6737_v36 = vld [vmem:[#allocation2 + $0x8] sm:$0xf]  ;;  %v1067_v45 = vsel %vm6751_vm10, %v1062_v39, %v1066_v38 }
 0x29a   : > { %1030 = vst [vmem:[#allocation2 + $0x44] sm:$0x1] %v1029_v34  ;;  %v6739_v37 = vld [vmem:[#allocation2 + $0xc] sm:$0x1]  ;;  %v1069_v41 = vshrl.u32 %v6737_v36, 16  ;;  %v1072_v42 = vshll.u32 %v6737_v36, 16 }
 0x29b   : > { %v1078_v43 = vshll.u32 %v6739_v37, 16  ;;  %v6749_v25 = vld [vmem:[#allocation2 + $0x10] sm:$0xf]  ;;  %v6755_v27 = vld [vmem:[#allocation2 + $0x18] sm:$0xf] }
 0x29c   : > { %v6757_v28 = vld [vmem:[#allocation2 + $0x14] sm:$0x1]  ;;  %v1071_v17 = vrot.slane %v1069_v41, 4  ;;  %v1074_v29 = vrot.slane %v1072_v42, 5  ;;  %v6759_v15 = vld [vmem:[#allocation2 + $0x1c] sm:$0x1] }
 0x29d   : > { %v1083_v16 = vshrl.u32 %v6749_v25, 16  ;;  %v1086_v40 = vshll.u32 %v6749_v25, 16  ;;  %v1092_v30 = vshll.u32 %v6757_v28, 16  ;;  %v1097_v31 = vshrl.u32 %v6755_v27, 16  ;;  %v6766_v44 = vld [vmem:[#allocation2 + $0x20] sm:$0xf] }
 0x29e   : > { %v1100_v32 = vshll.u32 %v6755_v27, 16  ;;  %v1075_v46 = vor.u32 %v1074_v29, %v1071_v17  ;;  %v1080_v47 = vrot.slane %v1078_v43, 5  ;;  %v6770_v53 = vld [vmem:[#allocation2 + $0x28] sm:$0xf]  ;;  %v6772_v48 = vld [vmem:[#allocation2 + $0x24] sm:$0x1] }
 0x29f   : > { %v1085_v52 = vrot.slane %v1083_v16, 4  ;;  %v1088_v50 = vrot.slane %v1086_v40, 5  ;;  %v1099_v54 = vrot.slane %v1097_v31, 4  ;;  %v1106_v56 = vshll.u32 %v6759_v15, 16  ;;  %v6777_v3 = vld [vmem:[#allocation2 + $0x2c] sm:$0x1] }
 0x2a0   : > { %v1102_v55 = vrot.slane %v1100_v32, 5  ;;  %v1076_v51 = vrot.slane %v1075_v46, 4  ;;  %v1094_v57 = vrot.slane %v1092_v30, 5  ;;  %v1111_v58 = vshrl.u32 %v6766_v44, 16  ;;  %v6784_v19 = vld [vmem:[#allocation2 + $0x30] sm:$0xf] }
 0x2a1   : > { %v1114_v59 = vshll.u32 %v6766_v44, 16  ;;  %v1089_v60 = vor.u32 %v1088_v50, %v1085_v52  ;;  %v1120_v5 = vshll.u32 %v6772_v48, 16  ;;  %v1125_v6 = vshrl.u32 %v6770_v53, 16  ;;  %v6787_v39 = vld [vmem:[#allocation2 + $0x38] sm:$0xf]  ;;  %v6254_v43 = vld [vmem:[%s7639_s3 + $0x8] sm:$0xff]  }
 0x2a2   : > { %v1103_v63 = vor.u32 %v1102_v55, %v1099_v54  ;;  %v1081_v8 = vsel %vm6751_vm10, %v1076_v51, %v1080_v47  ;;  %v1113_v11 = vrot.slane %v1111_v58, 4  ;;  %v1128_v18 = vshll.u32 %v6770_v53, 16  ;;  %v6797_v17 = vld [vmem:[#allocation2 + $0x34] sm:$0x1] }
 0x2a3   : > { %v1116_v14 = vrot.slane %v1114_v59, 5  ;;  %v5267_v20 = vcombine.low %v1067_v45, %v1081_v8  ;;  %v1090_v21 = vrot.slane %v1089_v60, 4  ;;  %v1108_v23 = vrot.slane %v1106_v56, 5  ;;  %v6801_v45 = vld [vmem:[#allocation2 + $0x3c] sm:$0x1] }
 0x2a4   : > { %v1104_v22 = vrot.slane %v1103_v63, 4  ;;  %v1127_v33 = vrot.slane %v1125_v6, 4  ;;  %v1130_v34 = vrot.slane %v1128_v18, 5  ;;  %v1134_v38 = vshll.u32 %v6777_v3, 16 }
 0x2a5   : > { %v1117_v24 = vor.u32 %v1116_v14, %v1113_v11  ;;  %5789 = vmatprep.mubr.msk.bf16.mxu1 %vm545_vm0, %v5267_v20  ;;  %v1095_v41 = vsel %vm6751_vm10, %v1090_v21, %v1094_v57  ;;  %v1139_v29 = vshrl.u32 %v6784_v19, 16  ;;  %v1142_v16 = vshll.u32 %v6784_v19, 16 }
 0x2a6   : > { %v1109_v42 = vsel %vm6751_vm10, %v1104_v22, %v1108_v23  ;;  %v1122_v31 = vrot.slane %v1120_v5, 5  ;;  %v1131_v32 = vor.u32 %v1130_v34, %v1127_v33  ;;  %v1136_v46 = vrot.slane %v1134_v38, 5  ;;  %v6255_v5 = vld [vmem:[%s7639_s3 + $0x20] sm:$0xff]   ;;  %v1382_v33 = vld [vmem:[#allocation2 + $0x8] sm:$0xe] }
 0x2a7   : > { %v5268_v40 = vcombine.low %v1095_v41, %v1109_v42  ;;  %v1118_v30 = vrot.slane %v1117_v24, 4  ;;  %v1141_v47 = vrot.slane %v1139_v29, 4  ;;  %v1144_v52 = vrot.slane %v1142_v16, 5  ;;  %v1381_v24 = vld [vmem:[#allocation2] sm:$0xe]  ;;  %v6258_v38 = vld [vmem:[%s7639_s3 + $0x28] sm:$0xff]  }
 0x2a8   : > { %v1153_v50 = vshrl.u32 %v6787_v39, 16  ;;  %v1132_v55 = vrot.slane %v1131_v32, 4  ;;  %v1148_v56 = vshll.u32 %v6797_v17, 16  ;;  %v1156_v51 = vshll.u32 %v6787_v39, 16  ;;  %v1385_v29 = vld [vmem:[#allocation2 + $0x20] sm:$0xe] }
 0x2a9   : > { %5790 = vmatmul.mubr.msk.bf16.vlgmr.msra.gmra.mrb[16].mxu1 %vm545_vm0, %v5268_v40  ;;  %v1123_v54 = vsel %vm6751_vm10, %v1118_v30, %v1122_v31  ;;  %v1145_v57 = vor.u32 %v1144_v52, %v1141_v47  ;;  %v1162_v63 = vshll.u32 %v6801_v45, 16  ;;  %v5277_v23 = vcombine.low %v6678_v7, %v6737_v36  ;;  %v1386_v16 = vld [vmem:[#allocation2 + $0x28] sm:$0xe] }
 0x2aa   : > { %5798 = vmatpush3.bf16.msra.mxu1 %v6659_v49  ;;  %v1155_v58 = vrot.slane %v1153_v50, 4  ;;  %v1137_v59 = vsel %vm6751_vm10, %v1132_v55, %v1136_v46  ;;  %v1158_v60 = vrot.slane %v1156_v51, 5  ;;  %v1150_v11 = vrot.slane %v1148_v56, 5  ;;  %v1388_v51 = vld [vmem:[#allocation2 + $0x38] sm:$0xe] }
 0x2ab   : > { %5799 = vmatprep.subr.bf16.mxu1 %v6254_v43  ;;  %v5269_v6 = vcombine.low %v1123_v54, %v1137_v59  ;;  %v1146_v8 = vrot.slane %v1145_v57, 4  ;;  %v1164_v20 = vrot.slane %v1162_v63, 5  ;;  %v5278_v34 = vcombine.low %v6749_v25, %v6755_v27  ;;  %v6260_v27 = vld [vmem:[%s7639_s3 + $0x30] sm:$0xff]  }
 0x2ac   : > { %v1159_v14 = vor.u32 %v1158_v60, %v1155_v58  ;;  %v5279_v41 = vcombine.low %v6766_v44, %v6770_v53  ;;  %v5287_v7 = vrot.slane %v1381_v24, 9  ;;  %v1410_v36 = vrot.slane %v6682_v12, 5  ;;  %v1383_v44 = vld [vmem:[#allocation2 + $0x10] sm:$0xe]  ;;  %v1684_v58 = vld [vmem:[#allocation2 + $0x8] sm:$0xf] }
 0x2ad   : > { %5793 = vmatprep.mubr.msk.bf16.mxu1 %vm545_vm0, %v5269_v6  ;;  %v1151_v49 = vsel %vm6751_vm10, %v1146_v8, %v1150_v11  ;;  %v5288_v42 = vrot.slane %v1382_v33, 9  ;;  %v5280_v40 = vcombine.low %v6784_v19, %v6787_v39  ;;  %v5289_v30 = vrot.slane %v1383_v44, 9  ;;  %v1686_v6 = vld [vmem:[#allocation2 + $0x10] sm:$0xf]  ;;  %v1688_v33 = vld [vmem:[#allocation2 + $0x18] sm:$0xf] }
 0x2ae   : > { %5800 = vmatpush3.bf16.msra.mxu1 %v6254_v43  ;;  %v1160_v18 = vrot.slane %v1159_v14, 4  ;;  %v1414_v43 = vrot.slane %v6739_v37, 5  ;;  %v1411_v53 = vsel %vm6836_vm13, %v5287_v7, %v1410_v36  ;;  %v1384_v37 = vld [vmem:[#allocation2 + $0x18] sm:$0xe]  ;;  %v1418_v32 = vrot.slane %v6757_v28, 5  ;;  %v6263_v14 = vld [vmem:[%s7639_s3 + $0x40] sm:$0xff]  }
 0x2af   : > { %5809 = vmatprep.subr.bf16.mxu1 %v6255_v5  ;;  %v5290_v46 = vrot.slane %v1384_v37, 9  ;;  %v1422_v47 = vrot.slane %v6759_v15, 5  ;;  %v5291_v52 = vrot.slane %v1385_v29, 9  ;;  %v1426_v50 = vrot.slane %v6772_v48, 5  ;;  %v1387_v28 = vld [vmem:[#allocation2 + $0x30] sm:$0xe] }
 0x2b0   : > { %v1165_v21 = vsel %vm6751_vm10, %v1160_v18, %v1164_v20  ;;  %v1415_v12 = vsel %vm6836_vm13, %v5288_v42, %v1414_v43  ;;  %v5292_v54 = vrot.slane %v1386_v16, 9  ;;  %v1430_v55 = vrot.slane %v6777_v3, 5  ;;  %v6261_v3 = vld [vmem:[%s7639_s3 + $0x38] sm:$0xff]   ;;  %v6880_v7 = vld [vmem:[#allocation2 + $0x14] sm:$0x1] }
 0x2b1   : > { %v5270_v22 = vcombine.low %v1151_v49, %v1165_v21  ;;  %v5299_v31 = vcombine.low %v1411_v53, %v1415_v12  ;;  %v1419_v19 = vsel %vm6836_vm13, %v5289_v30, %v1418_v32  ;;  %v1423_v39 = vsel %vm6836_vm13, %v5290_v46, %v1422_v47  ;;  %v1692_v43 = vld [vmem:[#allocation2 + $0x28] sm:$0xf] }
 0x2b2   : > { %v1427_v15 = vsel %vm6836_vm13, %v5291_v52, %v1426_v50  ;;  %v1431_v56 = vsel %vm6836_vm13, %v5292_v54, %v1430_v55  ;;  %v5300_v48 = vcombine.low %v1419_v19, %v1423_v39  ;;  %v5293_v57 = vrot.slane %v1387_v28, 9  ;;  %v6266_v46 = vld [vmem:[%s7639_s3 + $0x48] sm:$0xff]   ;;  %v6264_v50 = vld [vmem:[#allocation2 + $0x18] ss:$8 sps:$4 sm:$0xff]  }
 0x2b3   : > { %5794 = vmatmul.mubr.msk.bf16.gmra.mrb[20].mxu1 %vm545_vm0, %v5270_v22  ;;  %v5301_v59 = vcombine.low %v1427_v15, %v1431_v56  ;;  %v1434_v60 = vrot.slane %v6797_v17, 5  ;;  %v5294_v63 = vrot.slane %v1388_v51, 9  ;;  %v1701_v8 = vshrl.u32 %v1684_v58, 16  ;;  %v6265_v28 = vld [vmem:[#allocation2 + $0x28] ss:$8 sps:$4 sm:$0xff]  }
 0x2b4   : > { %5801 = vmatprep.mubr.msk.bf16.mxu1 %vm545_vm0, %v5277_v23  ;;  %v1704_v11 = vshll.u32 %v1684_v58, 16  ;;  %v1715_v49 = vshrl.u32 %v1686_v6, 16  ;;  %v1718_v18 = vshll.u32 %v1686_v6, 16  ;;  %v1729_v42 = vshrl.u32 %v1688_v33, 16  ;;  %v1696_v51 = vld [vmem:[#allocation2 + $0x38] sm:$0xf] }
 0x2b5   : > { %v1435_v17 = vsel %vm6836_vm13, %v5293_v57, %v1434_v60  ;;  %v1703_v20 = vrot.slane %v1701_v8, 4  ;;  %v1732_v53 = vshll.u32 %v1688_v33, 16  ;;  %v1724_v16 = vshll.u32 %v6880_v7, 16  ;;  %v6268_v60 = vld [vmem:[%s7639_s3 + $0x50] sm:$0xff]   ;;  %v6897_v6 = vld [vmem:[#allocation2 + $0x1c] sm:$0x1] }
 0x2b6   : > { %v1706_v21 = vrot.slane %v1704_v11, 5  ;;  %v1717_v23 = vrot.slane %v1715_v49, 4  ;;  %v1720_v24 = vrot.slane %v1718_v18, 5  ;;  %v1760_v30 = vshll.u32 %v1692_v43, 16  ;;  %v6899_v8 = vld [vmem:[#allocation2 + $0x24] sm:$0x1] }
 0x2b7   : > { %v1731_v52 = vrot.slane %v1729_v42, 4  ;;  %v1734_v55 = vrot.slane %v1732_v53, 5  ;;  %v1726_v56 = vrot.slane %v1724_v16, 5  ;;  %v6903_v18 = vld [vmem:[#allocation2 + $0x34] sm:$0x1]  ;;  %v1752_v33 = vshll.u32 %v6899_v8, 16 }
 0x2b8   : > { %v1707_v36 = vor.u32 %v1706_v21, %v1703_v20  ;;  %v1721_v44 = vor.u32 %v1720_v24, %v1717_v23  ;;  %v1738_v24 = vshll.u32 %v6897_v6, 16 }
 0x2b9   : > { %v1735_v11 = vor.u32 %v1734_v55, %v1731_v52 }
 0x2ba   : > { %v1708_v47 = vrot.slane %v1707_v36, 4  ;;  %v1722_v54 = vrot.slane %v1721_v44, 4 }
 0x2bb   : > { %5802 = vmatmul.mubr.msk.bf16.vlgmr.msra.gmra.mrb[16].mxu1 %vm545_vm0, %v5278_v34  ;;  %v6262_v34 = vld [vmem:[#allocation2 + $0x8] ss:$8 sps:$4 sm:$0xff]   ;;  %v1736_v42 = vrot.slane %v1735_v11, 4 }
 0x2bc   : > { %5810 = vmatpush3.bf16.msra.mxu1 %v6255_v5  ;;  %5805 = vmatprep.mubr.msk.bf16.mxu1 %vm545_vm0, %v5279_v41  ;;  %v1438_v5 = vrot.slane %v6801_v45, 5  ;;  %v6878_v41 = vld [vmem:[#allocation2 + $0xc] sm:$0x1] }
 0x2bd   : > { %5811 = vmatprep.subr.bf16.mxu1 %v6258_v38  ;;  %v1710_v29 = vshll.u32 %v6878_v41, 16 }
 0x2be   : > { %v1439_v45 = vsel %vm6836_vm13, %v5294_v63, %v1438_v5  ;;  %v1727_v5 = vsel %vm6751_vm10, %v1722_v54, %v1726_v56  ;;  %v1926_v56 = vld [vmem:[#allocation2 + $0x8] sm:$0xe] }
 0x2bf   : > { %v5302_v22 = vcombine.low %v1435_v17, %v1439_v45  ;;  %v1712_v15 = vrot.slane %v1710_v29, 5  ;;  %v1785_v17 = vshrl.u32 %v1696_v51, 16  ;;  %v1788_v45 = vshll.u32 %v1696_v51, 16  ;;  %v1927_v51 = vld [vmem:[#allocation2 + $0x10] sm:$0xe] }
 0x2c0   : > { %5812 = vmatpush3.bf16.msra.mxu1 %v6258_v38  ;;  %v1690_v38 = vld [vmem:[#allocation2 + $0x20] sm:$0xf]  ;;  %v5338_v11 = vrot.slane %v1927_v51, 9 }
 0x2c1   : > { %5821 = vmatprep.subr.bf16.mxu1 %v6260_v27  ;;  %v1743_v12 = vshrl.u32 %v1690_v38, 16  ;;  %v1746_v37 = vshll.u32 %v1690_v38, 16  ;;  %v1713_v63 = vsel %vm6751_vm10, %v1708_v47, %v1712_v15  ;;  %v6267_v38 = vld [vmem:[#allocation2 + $0x38] ss:$8 sps:$4 sm:$0xff]   ;;  %v1787_v44 = vrot.slane %v1785_v17, 4 }
 0x2c2   : > { %v5327_v36 = vcombine.low %v1713_v63, %v1727_v5  ;;  %v1790_v53 = vrot.slane %v1788_v45, 5  ;;  %v6913_v47 = vld [vmem:[#allocation2 + $0x44] sm:$0x1]  ;;  %v5337_v63 = vrot.slane %v1926_v56, 9  ;;  %v1952_v5 = vrot.slane %v6878_v41, 5 }
 0x2c3   : > { %5806 = vmatmul.mubr.msk.bf16.gmra.mrb[20].mxu1 %vm545_vm0, %v5280_v40  ;;  %v1757_v40 = vshrl.u32 %v1692_v43, 16  ;;  %v1745_v19 = vrot.slane %v1743_v12, 4  ;;  %v1748_v39 = vrot.slane %v1746_v37, 5  ;;  %v1808_v15 = vshll.u32 %v6913_v47, 16  ;;  %v1928_v41 = vld [vmem:[#allocation2 + $0x18] sm:$0xe] }
 0x2c4   : > { %5813 = vmatprep.mubr.msk.bf16.mxu1 %vm545_vm0, %v5299_v31  ;;  %v1791_v54 = vor.u32 %v1790_v53, %v1787_v44 }
 0x2c5   : > { %v1749_v49 = vor.u32 %v1748_v39, %v1745_v19  ;;  %v1810_v45 = vrot.slane %v1808_v15, 5 }
 0x2c7   : > { %v1750_v43 = vrot.slane %v1749_v49, 4  ;;  %v1956_v49 = vrot.slane %v6880_v7, 5  ;;  %v1953_v7 = vsel %vm6836_vm13, %v5337_v63, %v1952_v5  ;;  %v2231_v5 = vld [vmem:[#allocation2 + $0x20] sm:$0xf] }
 0x2cb   : > { %5814 = vmatmul.mubr.msk.bf16.vlgmr.msra.gmra.mrb[16].mxu1 %vm545_vm0, %v5300_v48  ;;  %v1759_v48 = vrot.slane %v1757_v40, 4  ;;  %v1740_v40 = vrot.slane %v1738_v24, 5  ;;  %v1930_v24 = vld [vmem:[#allocation2 + $0x28] sm:$0xe] }
 0x2cc   : > { %5822 = vmatpush3.bf16.msra.mxu1 %v6260_v27  ;;  %5817 = vmatprep.mubr.msk.bf16.mxu1 %vm545_vm0, %v5301_v59  ;;  %v1694_v27 = vld [vmem:[#allocation2 + $0x30] sm:$0xf]  ;;  %v1698_v59 = vld [vmem:[#allocation2 + $0x40] sm:$0xf]  ;;  %v5341_v44 = vrot.slane %v1930_v24, 9 }
 0x2cd   : > { %5823 = vmatprep.subr.bf16.mxu1 %v6261_v3  ;;  %v1771_v31 = vshrl.u32 %v1694_v27, 16  ;;  %v1774_v32 = vshll.u32 %v1694_v27, 16  ;;  %v1799_v20 = vshrl.u32 %v1698_v59, 16  ;;  %v1802_v21 = vshll.u32 %v1698_v59, 16 }
 0x2ce   : > { %v1780_v27 = vshll.u32 %v6903_v18, 16  ;;  %v1741_v52 = vsel %vm6751_vm10, %v1736_v42, %v1740_v40  ;;  %v1960_v42 = vrot.slane %v6897_v6, 5  ;;  %v1932_v6 = vld [vmem:[#allocation2 + $0x38] sm:$0xe] }
 0x2cf   : > { %v1773_v57 = vrot.slane %v1771_v31, 4  ;;  %v1776_v58 = vrot.slane %v1774_v32, 5  ;;  %v1801_v12 = vrot.slane %v1799_v20, 4  ;;  %v1804_v37 = vrot.slane %v1802_v21, 5  ;;  %v6270_v20 = vld [vmem:[%s7639_s3 + $0x60] sm:$0xff]  }
 0x2d0   : > { %5824 = vmatpush3.bf16.msra.mxu1 %v6261_v3  ;;  %v1762_v3 = vrot.slane %v1760_v30, 5  ;;  %v1754_v30 = vrot.slane %v1752_v33, 5  ;;  %v1782_v32 = vrot.slane %v1780_v27, 5  ;;  %v1931_v33 = vld [vmem:[#allocation2 + $0x30] sm:$0xe]  ;;  %v1964_v27 = vrot.slane %v6899_v8, 5 }
 0x2d1   : > { %5833 = vmatprep.subr.bf16.mxu1 %v6263_v14  ;;  %v1777_v23 = vor.u32 %v1776_v58, %v1773_v57  ;;  %v1805_v55 = vor.u32 %v1804_v37, %v1801_v12  ;;  %v1792_v58 = vrot.slane %v1791_v54, 4  ;;  %v5342_v12 = vrot.slane %v1931_v33, 9 }
 0x2d2   : > { %v1972_v37 = vrot.slane %v6903_v18, 5  ;;  %v6271_v18 = vld [vmem:[%s7639_s3 + $0x68] sm:$0xff]   ;;  %v1980_v54 = vrot.slane %v6913_v47, 5 }
 0x2d3   : > { %5818 = vmatmul.mubr.msk.bf16.gmra.mrb[20].mxu1 %vm545_vm0, %v5302_v22  ;;  %v1763_v22 = vor.u32 %v1762_v3, %v1759_v48  ;;  %v1778_v16 = vrot.slane %v1777_v23, 4  ;;  %v6269_v3 = vld [vmem:[%s7639_s3 + $0x58] sm:$0xff]   ;;  %v1806_v59 = vrot.slane %v1805_v55, 4  ;;  %v1929_v23 = vld [vmem:[#allocation2 + $0x20] sm:$0xe] }
 0x2d4   : > { %5825 = vmatprep.mubr.msk.bf16.mxu1 %vm545_vm0, %v6262_v34  ;;  %v1973_v40 = vsel %vm6836_vm13, %v5342_v12, %v1972_v37  ;;  %v2227_v55 = vld [vmem:[#allocation2 + $0x10] sm:$0xf] }
 0x2d5   : > { %v1764_v29 = vrot.slane %v1763_v22, 4  ;;  %v1783_v39 = vsel %vm6751_vm10, %v1778_v16, %v1782_v32  ;;  %v1811_v22 = vsel %vm6751_vm10, %v1806_v59, %v1810_v45  ;;  %v2247_v15 = vshll.u32 %v2227_v55, 16  ;;  %v2237_v45 = vld [vmem:[#allocation2 + $0x38] sm:$0xf] }
 0x2db   : > { %5826 = vmatmul.mubr.msk.bf16.vlgmr.msra.gmra.mrb[16].mxu1 %vm545_vm0, %v6264_v50  ;;  %v1755_v50 = vsel %vm6751_vm10, %v1750_v43, %v1754_v30  ;;  %v5340_v43 = vrot.slane %v1929_v23, 9  ;;  %v1933_v30 = vld [vmem:[#allocation2 + $0x40] sm:$0xe] }
 0x2dc   : > { %5834 = vmatpush3.bf16.msra.mxu1 %v6263_v14  ;;  %5829 = vmatprep.mubr.msk.bf16.mxu1 %vm545_vm0, %v6265_v28  ;;  %v6901_v14 = vld [vmem:[#allocation2 + $0x2c] sm:$0x1]  ;;  %v5328_v48 = vcombine.low %v1741_v52, %v1755_v50  ;;  %v5344_v50 = vrot.slane %v1933_v30, 9 }
 0x2dd   : > { %5835 = vmatprep.subr.bf16.mxu1 %v6266_v46  ;;  %v1766_v34 = vshll.u32 %v6901_v14, 16  ;;  %v1968_v53 = vrot.slane %v6901_v14, 5  ;;  %v1965_v16 = vsel %vm6836_vm13, %v5340_v43, %v1964_v27  ;;  %v2241_v43 = vld [vmem:[#allocation2 + $0x48] sm:$0xf] }
 0x2de   : > { %v1981_v47 = vsel %vm6836_vm13, %v5344_v50, %v1980_v54  ;;  %v6274_v27 = vld [vmem:[#allocation2 + $0x20] ss:$8 sps:$4 sm:$0xff]   ;;  %v2342_v50 = vshrl.u32 %v2241_v43, 16 }
 0x2df   : > { %v1768_v31 = vrot.slane %v1766_v34, 5  ;;  %v1969_v8 = vsel %vm6836_vm13, %v5341_v44, %v1968_v53  ;;  %v6276_v44 = vld [vmem:[%s7639_s3 + $0x78] sm:$0xff]  }
 0x2e0   : > { %5836 = vmatpush3.bf16.msra.mxu1 %v6266_v46  ;;  %v6911_v46 = vld [vmem:[#allocation2 + $0x3c] sm:$0x1]  ;;  %v5351_v32 = vcombine.low %v1969_v8, %v1973_v40 }
 0x2e1   : > { %5845 = vmatprep.subr.bf16.mxu1 %v6268_v60  ;;  %v1769_v19 = vsel %vm6751_vm10, %v1764_v29, %v1768_v31  ;;  %v1794_v28 = vshll.u32 %v6911_v46, 16  ;;  %v5343_v31 = vrot.slane %v1932_v6, 9  ;;  %v1976_v52 = vrot.slane %v6911_v46, 5 }
 0x2e2   : > { %v5329_v57 = vcombine.low %v1769_v19, %v1783_v39  ;;  %v2229_v19 = vld [vmem:[#allocation2 + $0x18] sm:$0xf]  ;;  %v6273_v39 = vld [vmem:[%s7639_s3 + $0x70] sm:$0xff]  }
 0x2e3   : > { %5830 = vmatmul.mubr.msk.bf16.gmra.mrb[20].mxu1 %vm545_vm0, %v6267_v38  ;;  %v1796_v17 = vrot.slane %v1794_v28, 5  ;;  %v5339_v38 = vrot.slane %v1928_v41, 9  ;;  %v2244_v28 = vshrl.u32 %v2227_v55, 16  ;;  %v1977_v46 = vsel %vm6836_vm13, %v5343_v31, %v1976_v52  ;;  %v6278_v55 = vld [vmem:[%s7639_s3 + $0x80] sm:$0xff]  }
 0x2e4   : > { %5837 = vmatprep.mubr.msk.bf16.mxu1 %vm545_vm0, %v5327_v36  ;;  %v2258_v56 = vshrl.u32 %v2229_v19, 16  ;;  %v2261_v51 = vshll.u32 %v2229_v19, 16  ;;  %v2275_v41 = vshll.u32 %v2231_v5, 16  ;;  %v6989_v19 = vld [vmem:[#allocation2 + $0x24] sm:$0x1] }
 0x2e5   : > { %v1797_v21 = vsel %vm6751_vm10, %v1792_v58, %v1796_v17  ;;  %v1961_v29 = vsel %vm6836_vm13, %v5339_v38, %v1960_v42  ;;  %v6272_v58 = vld [vmem:[#allocation2 + $0x10] ss:$8 sps:$4 sm:$0xff]   ;;  %v2314_v38 = vshrl.u32 %v2237_v45, 16 }
 0x2e6   : > { %v5330_v34 = vcombine.low %v1797_v21, %v1811_v22  ;;  %v5350_v14 = vcombine.low %v1961_v29, %v1965_v16  ;;  %v2260_v59 = vrot.slane %v2258_v56, 4  ;;  %v2263_v63 = vrot.slane %v2261_v51, 5  ;;  %v2235_v17 = vld [vmem:[#allocation2 + $0x30] sm:$0xf]  ;;  %v6995_v56 = vld [vmem:[#allocation2 + $0x34] sm:$0x1] }
 0x2e7   : > { %v2272_v22 = vshrl.u32 %v2231_v5, 16  ;;  %v2300_v33 = vshrl.u32 %v2235_v17, 16  ;;  %v2277_v37 = vrot.slane %v2275_v41, 5  ;;  %v6275_v29 = vld [vmem:[#allocation2 + $0x30] ss:$8 sps:$4 sm:$0xff]   ;;  %v2344_v5 = vrot.slane %v2342_v50, 4 }
 0x2e8   : > { %v6997_v51 = vld [vmem:[#allocation2 + $0x3c] sm:$0x1] }
 0x2e9   : > { %v2274_v12 = vrot.slane %v2272_v22, 4  ;;  %v2302_v30 = vrot.slane %v2300_v33, 4 }
 0x2eb   : > { %5838 = vmatmul.mubr.msk.bf16.vlgmr.msra.gmra.mrb[16].mxu1 %vm545_vm0, %v5328_v48  ;;  %v5352_v48 = vcombine.low %v1977_v46, %v1981_v47  ;;  %v2345_v46 = vshll.u32 %v2241_v43, 16  ;;  %v7005_v43 = vld [vmem:[#allocation2 + $0x44] sm:$0x1] }
 0x2ec   : > { %5846 = vmatpush3.bf16.msra.mxu1 %v6268_v60  ;;  %5841 = vmatprep.mubr.msk.bf16.mxu1 %vm545_vm0, %v5329_v57  ;;  %v1957_v60 = vsel %vm6836_vm13, %v5338_v11, %v1956_v49  ;;  %v2249_v57 = vrot.slane %v2247_v15, 5  ;;  %v6972_v11 = vld [vmem:[#allocation2 + $0x14] sm:$0x1]  ;;  %v2233_v49 = vld [vmem:[#allocation2 + $0x28] sm:$0xf]  ;;  %v2278_v15 = vor.u32 %v2277_v37, %v2274_v12 }
 0x2ed   : > { %5847 = vmatprep.subr.bf16.mxu1 %v6269_v3  ;;  %v5349_v36 = vcombine.low %v1953_v7, %v1957_v60  ;;  %v2253_v7 = vshll.u32 %v6972_v11, 16  ;;  %v2264_v60 = vor.u32 %v2263_v63, %v2260_v59  ;;  %v2286_v23 = vshrl.u32 %v2233_v49, 16 }
 0x2ee   : > { %v2289_v24 = vshll.u32 %v2233_v49, 16  ;;  %v2281_v59 = vshll.u32 %v6989_v19, 16  ;;  %v6277_v49 = vld [vmem:[#allocation2 + $0x40] ss:$8 sps:$4 sm:$0xff]   ;;  %v2347_v22 = vrot.slane %v2345_v46, 5  ;;  %v2279_v41 = vrot.slane %v2278_v15, 4 }
 0x2ef   : > { %v2255_v16 = vrot.slane %v2253_v7, 5  ;;  %v2265_v6 = vrot.slane %v2264_v60, 4  ;;  %v2288_v8 = vrot.slane %v2286_v23, 4  ;;  %v2495_v15 = vrot.slane %v6972_v11, 5 }
 0x2f0   : > { %5848 = vmatpush3.bf16.msra.mxu1 %v6269_v3  ;;  %v2246_v3 = vrot.slane %v2244_v28, 4  ;;  %v2291_v40 = vrot.slane %v2289_v24, 5  ;;  %v6991_v28 = vld [vmem:[#allocation2 + $0x2c] sm:$0x1] }
 0x2f1   : > { %5857 = vmatprep.subr.bf16.mxu1 %v6270_v20  ;;  %v2295_v63 = vshll.u32 %v6991_v28, 16 }
 0x2f2   : > { %v2250_v21 = vor.u32 %v2249_v57, %v2246_v3  ;;  %v2292_v47 = vor.u32 %v2291_v40, %v2288_v8  ;;  %v2337_v8 = vshll.u32 %v7005_v43, 16  ;;  %v2469_v40 = vld [vmem:[#allocation2 + $0x10] sm:$0xe] }
 0x2f3   : > { %5842 = vmatmul.mubr.msk.bf16.gmra.mrb[20].mxu1 %vm545_vm0, %v5330_v34  ;;  %v2303_v34 = vshll.u32 %v2235_v17, 16 }
 0x2f4   : > { %5849 = vmatprep.mubr.msk.bf16.mxu1 %vm545_vm0, %v5349_v36  ;;  %v2317_v36 = vshll.u32 %v2237_v45, 16  ;;  %v2251_v53 = vrot.slane %v2250_v21, 4  ;;  %v2309_v45 = vshll.u32 %v6995_v56, 16  ;;  %v2323_v21 = vshll.u32 %v6997_v51, 16 }
 0x2f5   : > { %v2293_v7 = vrot.slane %v2292_v47, 4  ;;  %v2339_v47 = vrot.slane %v2337_v8, 5 }
 0x2f6   : > { %v2319_v31 = vrot.slane %v2317_v36, 5  ;;  %v2256_v54 = vsel %vm6751_vm10, %v2251_v53, %v2255_v16  ;;  %v2311_v36 = vrot.slane %v2309_v45, 5 }
 0x2fb   : > { %5850 = vmatmul.mubr.msk.bf16.vlgmr.msra.gmra.mrb[16].mxu1 %vm545_vm0, %v5350_v14  ;;  %v2305_v14 = vrot.slane %v2303_v34, 5  ;;  %v2283_v34 = vrot.slane %v2281_v59, 5  ;;  %v2472_v59 = vld [vmem:[#allocation2 + $0x28] sm:$0xe] }
 0x2fc   : > { %5858 = vmatpush3.bf16.msra.mxu1 %v6270_v20  ;;  %5853 = vmatprep.mubr.msk.bf16.mxu1 %vm545_vm0, %v5351_v32  ;;  %v6975_v20 = vld [vmem:[#allocation2 + $0x1c] sm:$0x1]  ;;  %v2239_v32 = vld [vmem:[#allocation2 + $0x40] sm:$0xf]  ;;  %v5390_v45 = vrot.slane %v2472_v59, 9 }
 0x2fd   : > { %5859 = vmatprep.subr.bf16.mxu1 %v6271_v18  ;;  %v2267_v42 = vshll.u32 %v6975_v20, 16  ;;  %v2331_v3 = vshll.u32 %v2239_v32, 16  ;;  %v2306_v57 = vor.u32 %v2305_v14, %v2302_v30  ;;  %v2284_v53 = vsel %vm6751_vm10, %v2279_v41, %v2283_v34  ;;  %v2470_v30 = vld [vmem:[#allocation2 + $0x18] sm:$0xe]  ;;  %v2475_v34 = vld [vmem:[#allocation2 + $0x40] sm:$0xe] }
 0x2fe   : > { %v5388_v46 = vrot.slane %v2470_v30, 9  ;;  %v2511_v41 = vrot.slane %v6995_v56, 5 }
 0x2ff   : > { %v2269_v52 = vrot.slane %v2267_v42, 5  ;;  %v2333_v23 = vrot.slane %v2331_v3, 5  ;;  %v2307_v24 = vrot.slane %v2306_v57, 4  ;;  %v2325_v42 = vrot.slane %v2323_v21, 5  ;;  %v2471_v57 = vld [vmem:[#allocation2 + $0x20] sm:$0xe] }
 0x300   : > { %5860 = vmatpush3.bf16.msra.mxu1 %v6271_v18  ;;  %v2316_v18 = vrot.slane %v2314_v38, 4  ;;  %v2297_v38 = vrot.slane %v2295_v63, 5  ;;  %v2507_v21 = vrot.slane %v6991_v28, 5 }
 0x301   : > { %5869 = vmatprep.subr.bf16.mxu1 %v6273_v39  ;;  %v2312_v16 = vsel %vm6751_vm10, %v2307_v24, %v2311_v36 }
 0x302   : > { %v2298_v12 = vsel %vm6751_vm10, %v2293_v7, %v2297_v38  ;;  %v2508_v24 = vsel %vm6836_vm13, %v5390_v45, %v2507_v21 }
 0x303   : > { %5854 = vmatmul.mubr.msk.bf16.gmra.mrb[20].mxu1 %vm545_vm0, %v5352_v48  ;;  %v2328_v48 = vshrl.u32 %v2239_v32, 16  ;;  %v5378_v14 = vcombine.low %v2284_v53, %v2298_v12 }
 0x304   : > { %5861 = vmatprep.mubr.msk.bf16.mxu1 %vm545_vm0, %v6272_v58  ;;  %v2320_v58 = vor.u32 %v2319_v31, %v2316_v18  ;;  %v6279_v18 = vld [vmem:[%s7639_s3 + $0x88] sm:$0xff]  }
 0x305   : > { %v2330_v60 = vrot.slane %v2328_v48, 4 }
 0x306   : > { %v2321_v33 = vrot.slane %v2320_v58, 4 }
 0x307   : > { %v2334_v37 = vor.u32 %v2333_v23, %v2330_v60  ;;  %v2515_v60 = vrot.slane %v6997_v51, 5  ;;  %v5393_v51 = vrot.slane %v2475_v34, 9 }
 0x309   : > { %v2335_v32 = vrot.slane %v2334_v37, 4 }
 0x30b   : > { %5862 = vmatmul.mubr.msk.bf16.vlgmr.msra.gmra.mrb[16].mxu1 %vm545_vm0, %v6274_v27  ;;  %v7007_v27 = vld [vmem:[#allocation2 + $0x4c] sm:$0x1]  ;;  %v2340_v48 = vsel %vm6751_vm10, %v2335_v32, %v2339_v47 }
 0x30c   : > { %5870 = vmatpush3.bf16.msra.mxu1 %v6273_v39  ;;  %5865 = vmatprep.mubr.msk.bf16.mxu1 %vm545_vm0, %v6275_v29  ;;  %v2270_v39 = vsel %vm6751_vm10, %v2265_v6, %v2269_v52  ;;  %v2351_v29 = vshll.u32 %v7007_v27, 16  ;;  %v2326_v6 = vsel %vm6751_vm10, %v2321_v33, %v2325_v42  ;;  %v2519_v42 = vrot.slane %v7005_v43, 5  ;;  %v6281_v43 = vld [vmem:[%s7640_s4 + $0x8] sm:$0xff]  }
 0x30d   : > { %5871 = vmatprep.subr.bf16.mxu1 %v6276_v44  ;;  %v5377_v17 = vcombine.low %v2256_v54, %v2270_v39  ;;  %v5379_v31 = vcombine.low %v2312_v16, %v2326_v6  ;;  %v5387_v54 = vrot.slane %v2469_v40, 9  ;;  %v2499_v39 = vrot.slane %v6975_v20, 5  ;;  %v2473_v20 = vld [vmem:[#allocation2 + $0x30] sm:$0xe] }
 0x30e   : > { %v2353_v50 = vrot.slane %v2351_v29, 5  ;;  %v2520_v53 = vsel %vm6836_vm13, %v5393_v51, %v2519_v42  ;;  %v6280_v29 = vld [vmem:[%s7640_s4] sm:$0xff]  }
 0x30f   : > { %v2496_v58 = vsel %vm6836_vm13, %v5387_v54, %v2495_v15  ;;  %v2500_v11 = vsel %vm6836_vm13, %v5388_v46, %v2499_v39  ;;  %5893 = vmatprep.subr.bf16.mxu0 %v6280_v29 }
 0x310   : > { %5872 = vmatpush3.bf16.msra.mxu1 %v6276_v44  ;;  %v2348_v44 = vor.u32 %v2347_v22, %v2344_v5  ;;  %v5389_v5 = vrot.slane %v2471_v57, 9  ;;  %v5391_v22 = vrot.slane %v2473_v20, 9  ;;  %5894 = vmatpush3.bf16.msra.mxu0 %v6280_v29 }
 0x311   : > { %5881 = vmatprep.subr.bf16.mxu1 %v6278_v55  ;;  %5895 = vmatprep.subr.bf16.mxu0 %v6281_v43 }
 0x312   : > { %v2349_v52 = vrot.slane %v2348_v44, 4  ;;  %v2512_v28 = vsel %vm6836_vm13, %v5391_v22, %v2511_v41  ;;  %v2523_v44 = vrot.slane %v7007_v27, 5 }
 0x313   : > { %5866 = vmatmul.mubr.msk.bf16.gmra.mrb[20].mxu1 %vm545_vm0, %v6277_v49  ;;  %v5399_v49 = vcombine.low %v2496_v58, %v2500_v11 }
 0x314   : > { %5873 = vmatprep.mubr.msk.bf16.mxu1 %vm545_vm0, %v5377_v17  ;;  %v2354_v3 = vsel %vm6751_vm10, %v2349_v52, %v2353_v50  ;;  %v2503_v17 = vrot.slane %v6989_v19, 5  ;;  %v2476_v19 = vld [vmem:[#allocation2 + $0x48] sm:$0xe]  ;;  %5896 = vmatpush3.bf16.msra.mxu0 %v6281_v43 }
 0x315   : > { %v5380_v63 = vcombine.low %v2340_v48, %v2354_v3  ;;  %v5394_v38 = vrot.slane %v2476_v19, 9 }
 0x316   : > { %v2504_v23 = vsel %vm6836_vm13, %v5389_v5, %v2503_v17 }
 0x317   : > { %v5400_v56 = vcombine.low %v2504_v23, %v2508_v24  ;;  %v2524_v12 = vsel %vm6836_vm13, %v5394_v38, %v2523_v44 }
 0x318   : > { %v5402_v37 = vcombine.low %v2520_v53, %v2524_v12 }
 0x31b   : > { %5874 = vmatmul.mubr.msk.bf16.vlgmr.msra.gmra.mrb[16].mxu1 %vm545_vm0, %v5378_v14 }
 0x31c   : > { %5882 = vmatpush3.bf16.msra.mxu1 %v6278_v55  ;;  %5877 = vmatprep.mubr.msk.bf16.mxu1 %vm545_vm0, %v5379_v31  ;;  %v2474_v55 = vld [vmem:[#allocation2 + $0x38] sm:$0xe] }
 0x31d   : > { %5883 = vmatprep.subr.bf16.mxu1 %v6279_v18  ;;  %v5392_v7 = vrot.slane %v2474_v55, 9 }
 0x31f   : > { %v2516_v33 = vsel %vm6836_vm13, %v5392_v7, %v2515_v60 }
 0x320   : > { %5884 = vmatpush3.bf16.msra.mxu1 %v6279_v18  ;;  %v5401_v36 = vcombine.low %v2512_v28, %v2516_v33 }
 0x323   : > { %5878 = vmatmul.mubr.msk.bf16.gmra.mrb[20].mxu1 %vm545_vm0, %v5380_v63 }
 0x324   : > { %5885 = vmatprep.mubr.msk.bf16.mxu1 %vm545_vm0, %v5399_v49 }
 0x32b   : > { %5886 = vmatmul.mubr.msk.bf16.vlgmr.msra.gmra.mrb[16].mxu1 %vm545_vm0, %v5400_v56 }
 0x32c   : > { %5889 = vmatprep.mubr.msk.bf16.mxu1 %vm545_vm0, %v5401_v36 }
 0x333   : > { %5890 = vmatmul.mubr.msk.bf16.gmra.mrb[20].mxu1 %vm545_vm0, %v5402_v37 }
 0x3fe   : > { %v5887_v27 = vpop.f32.mrb[16].mxu1 }
 0x3ff   : > { %v2600_v16 = vpop.f32.mrb[17].mxu1  ;;  %v2642_v18 = vsel %vm545_vm0, %v5887_v27, 0.0 }
 0x400   : > { %v5888_v6 = vpop.f32.mrb[18].mxu1  ;;  %v2639_v40 = vsel %vm545_vm0, %v2600_v16, 0.0 }
 0x401   : > { %v2603_v8 = vpop.f32.mrb[19].mxu1  ;;  %v2644_v32 = vsel %vm545_vm0, %v5888_v6, 0.0 }
 0x402   : > { %v2640_v30 = vsel %vm545_vm0, %v2603_v8, 0.0 }
 0x403   : > { %v2641_v14 = vadd.f32 %v2640_v30, %v2639_v40 }
 0x405   : > { %v2643_v31 = vadd.f32 %v2642_v18, %v2641_v14 }
 0x406   : > { %v5891_v52 = vpop.f32.mrb[20].mxu1 }
 0x407   : > { %v2616_v50 = vpop.f32.mrb[21].mxu1  ;;  %v2645_v54 = vadd.f32 %v2644_v32, %v2643_v31  ;;  %v2650_v57 = vsel %vm545_vm0, %v5891_v52, 0.0 }
 0x408   : > { %v2646_v15 = vsel %vm545_vm0, %v2616_v50, 0.0  ;;  %v5892_v46 = vpop.f32.mrb[22].mxu1 }
 0x409   : > { %v2647_v39 = vadd.f32 %v2646_v15, %v2645_v54  ;;  %v2619_v47 = vpop.f32.mrb[23].mxu1  ;;  %v2652_v11 = vsel %vm545_vm0, %v5892_v46, 0.0 }
 0x40a   : > { %v2648_v48 = vsel %vm545_vm0, %v2619_v47, 0.0 }
 0x40b   : > { %v2649_v3 = vadd.f32 %v2648_v48, %v2647_v39 }
 0x40d   : > { %v2651_v58 = vadd.f32 %v2650_v57, %v2649_v3 }
 0x40f   : > { %v2653_v59 = vadd.f32 %v2652_v11, %v2651_v58 }
 0x411   : > { %v2654_v20 = vrot.slane %v2653_v59, 4 }
 0x413   : > { %v2655_v55 = vadd.f32 %v2654_v20, %v2653_v59 }
 0x415   : > { %v2656_v63 = vrot.slane %v2655_v55, 2 }
 0x417   : > { %v2657_v5 = vadd.f32 %v2656_v63, %v2655_v55 }
 0x419   : > { %v2658_v49 = vrot.slane %v2657_v5, 1 }
 0x41b   : > { %v2659_v17 = vadd.f32 %v2658_v49, %v2657_v5 }
 0x41d   : > { %v2660_v45 = vmul.f32 0.015625, %v2659_v17 }
 0x41f   : > { %v2661_v21 = vsub.f32 %v2600_v16, %v2660_v45  ;;  %v2662_v22 = vsub.f32 %v2603_v8, %v2660_v45  ;;  %v2663_v41 = vsub.f32 %v5887_v27, %v2660_v45  ;;  %v2664_v7 = vsub.f32 %v5888_v6, %v2660_v45 }
 0x420   : > { %v2665_v60 = vsub.f32 %v2616_v50, %v2660_v45  ;;  %v2666_v23 = vsub.f32 %v2619_v47, %v2660_v45  ;;  %v2667_v24 = vsub.f32 %v5891_v52, %v2660_v45  ;;  %v2668_v19 = vsub.f32 %v5892_v46, %v2660_v45 }
 0x421   : > { %v2669_v28 = vmul.f32 %v2661_v21, %v2661_v21  ;;  %v2670_v33 = vmul.f32 %v2662_v22, %v2662_v22  ;;  %v2671_v34 = vmul.f32 %v2663_v41, %v2663_v41  ;;  %v2672_v56 = vmul.f32 %v2664_v7, %v2664_v7 }
 0x422   : > { %v2673_v42 = vmul.f32 %v2665_v60, %v2665_v60  ;;  %v2674_v12 = vmul.f32 %v2666_v23, %v2666_v23  ;;  %v2675_v43 = vmul.f32 %v2667_v24, %v2667_v24  ;;  %v2676_v6 = vmul.f32 %v2668_v19, %v2668_v19 }
 0x423   : > { %v2677_v38 = vsel %vm545_vm0, %v2669_v28, 0.0  ;;  %v2678_v36 = vsel %vm545_vm0, %v2670_v33, 0.0  ;;  %v2680_v44 = vsel %vm545_vm0, %v2671_v34, 0.0  ;;  %v2682_v37 = vsel %vm545_vm0, %v2672_v56, 0.0 }
 0x424   : > { %v2679_v51 = vadd.f32 %v2678_v36, %v2677_v38  ;;  %v2684_v27 = vsel %vm545_vm0, %v2673_v42, 0.0  ;;  %v2686_v8 = vsel %vm545_vm0, %v2674_v12, 0.0  ;;  %v2688_v30 = vsel %vm545_vm0, %v2675_v43, 0.0 }
 0x425   : > { %v2690_v18 = vsel %vm545_vm0, %v2676_v6, 0.0 }
 0x426   : > { %v2681_v53 = vadd.f32 %v2680_v44, %v2679_v51  ;;  %v6282_v44 = vld [vmem:[%s7641_s5] sm:$0xff]  }
 0x427   : > { %5905 = vmatprep.subr.bf16.mxu0 %v6282_v44 }
 0x428   : > { %v2683_v29 = vadd.f32 %v2682_v37, %v2681_v53  ;;  %v6283_v53 = vld [vmem:[%s7641_s5 + $0x8] sm:$0xff]  }
 0x42a   : > { %v2685_v16 = vadd.f32 %v2684_v27, %v2683_v29 }
 0x42c   : > { %v2687_v40 = vadd.f32 %v2686_v8, %v2685_v16 }
 0x42e   : > { %v2689_v14 = vadd.f32 %v2688_v30, %v2687_v40 }
 0x430   : > { %v2691_v31 = vadd.f32 %v2690_v18, %v2689_v14 }
 0x432   : > { %v2692_v32 = vrot.slane %v2691_v31, 4 }
 0x434   : > { %v2693_v52 = vadd.f32 %v2692_v32, %v2691_v31 }
 0x436   : > { %v2694_v50 = vrot.slane %v2693_v52, 2 }
 0x438   : > { %v2695_v54 = vadd.f32 %v2694_v50, %v2693_v52 }
 0x43a   : > { %v2696_v15 = vrot.slane %v2695_v54, 1 }
 0x43c   : > { %v2697_v46 = vadd.f32 %v2696_v15, %v2695_v54 }
 0x43e   : > { %v2698_v39 = vmul.f32 0.015625, %v2697_v46 }
 0x440   : > { %v2699_v47 = vadd.f32 1e-05, %v2698_v39 }
 0x442   : > { %6320 = vrsqrt.f32 %v2699_v47 }
 0x44c   : > { %v6321_v48 = vpop.eup %6320 }
 0x44d   : > { %v2703_v3 = vmul.f32 %v6321_v48, %v2663_v41  ;;  %v2704_v57 = vmul.f32 %v6321_v48, %v2664_v7  ;;  %v2706_v58 = vmul.f32 %v6321_v48, %v2666_v23  ;;  %v2701_v11 = vmul.f32 %v6321_v48, %v2661_v21 }
 0x44e   : > { %v2702_v59 = vmul.f32 %v6321_v48, %v2662_v22  ;;  %v2705_v20 = vmul.f32 %v6321_v48, %v2665_v60  ;;  %v2707_v55 = vmul.f32 %v6321_v48, %v2667_v24  ;;  %v2708_v63 = vmul.f32 %v6321_v48, %v2668_v19 }
 0x44f   : > { %v2712_v5 = vmul.f32 0.1, %v2704_v57  ;;  %v2714_v49 = vmul.f32 0.1, %v2706_v58  ;;  %v2709_v17 = vmul.f32 0.1, %v2701_v11 }
 0x450   : > { %v2710_v45 = vmul.f32 0.1, %v2702_v59  ;;  %v2711_v28 = vmul.f32 0.1, %v2703_v3  ;;  %v2713_v33 = vmul.f32 0.1, %v2705_v20 }
 0x451   : > { %v2722_v34 = vmax.f32 %v2706_v58, %v2714_v49  ;;  %v2717_v56 = vmax.f32 %v2701_v11, %v2709_v17  ;;  %v2720_v38 = vmax.f32 %v2704_v57, %v2712_v5  ;;  %v2715_v36 = vmul.f32 0.1, %v2707_v55 }
 0x452   : > { %v2718_v51 = vmax.f32 %v2702_v59, %v2710_v45  ;;  %v2719_v42 = vmax.f32 %v2703_v3, %v2711_v28  ;;  %v2721_v41 = vmax.f32 %v2705_v20, %v2713_v33  ;;  %v2716_v7 = vmul.f32 0.1, %v2708_v63 }
 0x453   : > { %v2723_v23 = vmax.f32 %v2707_v55, %v2715_v36 }
 0x454   : > { %v2725_v21 = vpack.c.bf16 %v2718_v51, %v2717_v56  ;;  %v2726_v22 = vpack.c.bf16 %v2720_v38, %v2719_v42  ;;  %v2727_v60 = vpack.c.bf16 %v2722_v34, %v2721_v41  ;;  %v2724_v24 = vmax.f32 %v2708_v63, %v2716_v7 }
 0x456   : > { %5897 = vmatprep.mubr.msk.bf16.mxu0 %vm545_vm0, %v2725_v21  ;;  %v2728_v19 = vpack.c.bf16 %v2724_v24, %v2723_v23 }
 0x457   : > { %5898 = vmatmul.mubr.msk.bf16.vlgmr.msra.gmra.mrb[8].mxu0 %vm545_vm0, %v2726_v22 }
 0x458   : > { %5901 = vmatprep.mubr.msk.bf16.mxu0 %vm545_vm0, %v2727_v60  ;;  %5906 = vmatpush3.bf16.msra.mxu0 %v6282_v44 }
 0x459   : > { %5907 = vmatprep.subr.bf16.mxu0 %v6283_v53 }
 0x45c   : > { %5908 = vmatpush3.bf16.msra.mxu0 %v6283_v53 }
 0x45f   : > { %5902 = vmatmul.mubr.msk.bf16.gmra.mrb[12].mxu0 %vm545_vm0, %v2728_v19 }
 0x52a   : > { %v5899_v12 = vpop.f32.mrb[8].mxu0 }
 0x52b   : > { %v2791_v37 = vpop.f32.mrb[9].mxu0  ;;  %v2825_v8 = vsel %vm545_vm0, %v5899_v12, 0.0 }
 0x52c   : > { %v5900_v29 = vpop.f32.mrb[10].mxu0  ;;  %v2822_v27 = vsel %vm545_vm0, %v2791_v37, 0.0 }
 0x52d   : > { %v2794_v43 = vpop.f32.mrb[11].mxu0  ;;  %v2827_v30 = vsel %vm545_vm0, %v5900_v29, 0.0 }
 0x52e   : > { %v2823_v16 = vsel %vm545_vm0, %v2794_v43, 0.0 }
 0x52f   : > { %v2824_v6 = vadd.f32 %v2823_v16, %v2822_v27 }
 0x531   : > { %v2826_v40 = vadd.f32 %v2825_v8, %v2824_v6 }
 0x532   : > { %v5903_v14 = vpop.f32.mrb[12].mxu0 }
 0x533   : > { %v2807_v18 = vpop.f32.mrb[13].mxu0  ;;  %v2828_v31 = vadd.f32 %v2827_v30, %v2826_v40  ;;  %v2833_v39 = vsel %vm545_vm0, %v5903_v14, 0.0 }
 0x534   : > { %v2829_v32 = vsel %vm545_vm0, %v2807_v18, 0.0  ;;  %v5904_v52 = vpop.f32.mrb[14].mxu0 }
 0x535   : > { %v2830_v50 = vadd.f32 %v2829_v32, %v2828_v31  ;;  %v2810_v54 = vpop.f32.mrb[15].mxu0  ;;  %v2835_v48 = vsel %vm545_vm0, %v5904_v52, 0.0 }
 0x536   : > { %v2831_v15 = vsel %vm545_vm0, %v2810_v54, 0.0 }
 0x537   : > { %v2832_v46 = vadd.f32 %v2831_v15, %v2830_v50 }
 0x539   : > { %v2834_v47 = vadd.f32 %v2833_v39, %v2832_v46 }
 0x53b   : > { %v2836_v3 = vadd.f32 %v2835_v48, %v2834_v47 }
 0x53d   : > { %v2837_v57 = vrot.slane %v2836_v3, 4 }
 0x53f   : > { %v2838_v58 = vadd.f32 %v2837_v57, %v2836_v3 }
 0x541   : > { %v2839_v11 = vrot.slane %v2838_v58, 2 }
 0x543   : > { %v2840_v59 = vadd.f32 %v2839_v11, %v2838_v58 }
 0x545   : > { %v2841_v20 = vrot.slane %v2840_v59, 1 }
 0x547   : > { %v2842_v55 = vadd.f32 %v2841_v20, %v2840_v59 }
 0x549   : > { %v2843_v63 = vmul.f32 0.015625, %v2842_v55 }
 0x54b   : > { %v2844_v5 = vsub.f32 %v2791_v37, %v2843_v63  ;;  %v2845_v49 = vsub.f32 %v2794_v43, %v2843_v63  ;;  %v2846_v17 = vsub.f32 %v5899_v12, %v2843_v63  ;;  %v2847_v45 = vsub.f32 %v5900_v29, %v2843_v63 }
 0x54c   : > { %v2848_v28 = vsub.f32 %v2807_v18, %v2843_v63  ;;  %v2849_v33 = vsub.f32 %v2810_v54, %v2843_v63  ;;  %v2850_v34 = vsub.f32 %v5903_v14, %v2843_v63  ;;  %v2851_v56 = vsub.f32 %v5904_v52, %v2843_v63 }
 0x54d   : > { %v2852_v38 = vmul.f32 %v2844_v5, %v2844_v5  ;;  %v2853_v36 = vmul.f32 %v2845_v49, %v2845_v49  ;;  %v2854_v51 = vmul.f32 %v2846_v17, %v2846_v17  ;;  %v2855_v42 = vmul.f32 %v2847_v45, %v2847_v45 }
 0x54e   : > { %v2856_v21 = vmul.f32 %v2848_v28, %v2848_v28  ;;  %v2857_v24 = vmul.f32 %v2849_v33, %v2849_v33  ;;  %v2858_v53 = vmul.f32 %v2850_v34, %v2850_v34  ;;  %v2859_v29 = vmul.f32 %v2851_v56, %v2851_v56 }
 0x54f   : > { %v2860_v41 = vsel %vm545_vm0, %v2852_v38, 0.0  ;;  %v2861_v7 = vsel %vm545_vm0, %v2853_v36, 0.0  ;;  %v2863_v22 = vsel %vm545_vm0, %v2854_v51, 0.0  ;;  %v2865_v19 = vsel %vm545_vm0, %v2855_v42, 0.0 }
 0x550   : > { %v2862_v23 = vadd.f32 %v2861_v7, %v2860_v41  ;;  %v2867_v12 = vsel %vm545_vm0, %v2856_v21, 0.0  ;;  %v2869_v43 = vsel %vm545_vm0, %v2857_v24, 0.0  ;;  %v2871_v16 = vsel %vm545_vm0, %v2858_v53, 0.0  ;;  %v6284_v24 = vld [vmem:[%s7642_s6 + $0x10] sm:$0xff]  }
 0x551   : > { %v2873_v8 = vsel %vm545_vm0, %v2859_v29, 0.0  ;;  %5917 = vmatprep.subr.bf16.mxu0 %v6284_v24 }
 0x552   : > { %v2864_v60 = vadd.f32 %v2863_v22, %v2862_v23 }
 0x554   : > { %v2866_v44 = vadd.f32 %v2865_v19, %v2864_v60  ;;  %v6285_v19 = vld [vmem:[%s7642_s6 + $0x18] sm:$0xff]  }
 0x556   : > { %v2868_v37 = vadd.f32 %v2867_v12, %v2866_v44 }
 0x558   : > { %v2870_v27 = vadd.f32 %v2869_v43, %v2868_v37 }
 0x55a   : > { %v2872_v6 = vadd.f32 %v2871_v16, %v2870_v27 }
 0x55c   : > { %v2874_v40 = vadd.f32 %v2873_v8, %v2872_v6 }
 0x55e   : > { %v2875_v30 = vrot.slane %v2874_v40, 4 }
 0x560   : > { %v2876_v14 = vadd.f32 %v2875_v30, %v2874_v40 }
 0x562   : > { %v2877_v18 = vrot.slane %v2876_v14, 2 }
 0x564   : > { %v2878_v31 = vadd.f32 %v2877_v18, %v2876_v14 }
 0x566   : > { %v2879_v32 = vrot.slane %v2878_v31, 1 }
 0x568   : > { %v2880_v52 = vadd.f32 %v2879_v32, %v2878_v31 }
 0x56a   : > { %v2881_v50 = vmul.f32 0.015625, %v2880_v52 }
 0x56c   : > { %v2882_v54 = vadd.f32 1e-05, %v2881_v50 }
 0x56e   : > { %6322 = vrsqrt.f32 %v2882_v54 }
 0x578   : > { %v6323_v15 = vpop.eup %6322 }
 0x579   : > { %v2886_v46 = vmul.f32 %v6323_v15, %v2846_v17  ;;  %v2887_v39 = vmul.f32 %v6323_v15, %v2847_v45  ;;  %v2889_v47 = vmul.f32 %v6323_v15, %v2849_v33  ;;  %v2884_v48 = vmul.f32 %v6323_v15, %v2844_v5 }
 0x57a   : > { %v2885_v3 = vmul.f32 %v6323_v15, %v2845_v49  ;;  %v2888_v57 = vmul.f32 %v6323_v15, %v2848_v28  ;;  %v2890_v58 = vmul.f32 %v6323_v15, %v2850_v34  ;;  %v2891_v11 = vmul.f32 %v6323_v15, %v2851_v56 }
 0x57b   : > { %v2894_v59 = vmul.f32 0.1, %v2886_v46  ;;  %v2895_v20 = vmul.f32 0.1, %v2887_v39  ;;  %v2897_v55 = vmul.f32 0.1, %v2889_v47 }
 0x57c   : > { %v2892_v63 = vmul.f32 0.1, %v2884_v48  ;;  %v2893_v38 = vmul.f32 0.1, %v2885_v3  ;;  %v2896_v36 = vmul.f32 0.1, %v2888_v57 }
 0x57d   : > { %v2903_v51 = vmax.f32 %v2887_v39, %v2895_v20  ;;  %v2905_v42 = vmax.f32 %v2889_v47, %v2897_v55  ;;  %v2902_v41 = vmax.f32 %v2886_v46, %v2894_v59  ;;  %v2898_v49 = vmul.f32 0.1, %v2890_v58 }
 0x57e   : > { %v2900_v7 = vmax.f32 %v2884_v48, %v2892_v63  ;;  %v2901_v23 = vmax.f32 %v2885_v3, %v2893_v38  ;;  %v2904_v21 = vmax.f32 %v2888_v57, %v2896_v36  ;;  %v2899_v45 = vmul.f32 0.1, %v2891_v11 }
 0x57f   : > { %v7106_v17 = vadd.f32 %v2902_v41, %v6579_v0  ;;  %v7109_v5 = vadd.f32 %v2903_v51, %v6581_v1  ;;  %v7112_v28 = vadd.f32 %v2905_v42, %v6587_v4  ;;  %v2906_v22 = vmax.f32 %v2890_v58, %v2898_v49 }
 0x580   : > { %v7115_v33 = vadd.f32 %v2900_v7, %v6575_v61  ;;  %v7118_v34 = vadd.f32 %v2901_v23, %v6577_v62  ;;  %v7121_v56 = vadd.f32 %v2904_v21, %v6583_v2  ;;  %v2907_v60 = vmax.f32 %v2891_v11, %v2899_v45 }
 0x581   : > { %v2917_v0 = vpack.c.bf16 %v7109_v5, %v7106_v17  ;;  %v7133_v62 = vadd.f32 %v2906_v22, %v6598_v10 }
 0x582   : > { %v2916_v1 = vpack.c.bf16 %v7118_v34, %v7115_v33  ;;  %v2918_v61 = vpack.c.bf16 %v7112_v28, %v7121_v56  ;;  %v7136_v2 = vadd.f32 %v2907_v60, %v6596_v9  ;;  %v7150_v9 = vld [vmem:[%s7642_s6] sm:$0xff]  }
 0x584   : > { %5909 = vmatprep.mubr.msk.bf16.mxu0 %vm545_vm0, %v2916_v1  ;;  %v2919_v4 = vpack.c.bf16 %v7136_v2, %v7133_v62 }
 0x585   : > { %5910 = vmatmul.mubr.msk.bf16.vlgmr.msra.gmra.mrb[16].mxu0 %vm545_vm0, %v2917_v0 }
 0x586   : > { %5913 = vmatprep.mubr.msk.bf16.mxu0 %vm545_vm0, %v2918_v61  ;;  %5918 = vmatpush3.bf16.msra.mxu0 %v6284_v24 }
 0x587   : > { %5919 = vmatprep.subr.bf16.mxu0 %v6285_v19 }
 0x58a   : > { %5920 = vmatpush3.bf16.msra.mxu0 %v6285_v19 }
 0x58b   : > { %5929 = vmatprep.subr.bf16.mxu0 %v7150_v9 }
 0x58d   : > { %5914 = vmatmul.mubr.msk.bf16.gmra.mrb[20].mxu0 %vm545_vm0, %v2919_v4 }
 0x658   : > { %v5911_v10 = vpop.f32.mrb[16].mxu0 }
 0x659   : > { %v2982_v44 = vpop.f32.mrb[17].mxu0  ;;  %v3016_v27 = vsel %vm545_vm0, %v5911_v10, 0.0 }
 0x65a   : > { %v5912_v53 = vpop.f32.mrb[18].mxu0  ;;  %v3013_v37 = vsel %vm545_vm0, %v2982_v44, 0.0 }
 0x65b   : > { %v2985_v12 = vpop.f32.mrb[19].mxu0  ;;  %v3018_v6 = vsel %vm545_vm0, %v5912_v53, 0.0 }
 0x65c   : > { %v3014_v29 = vsel %vm545_vm0, %v2985_v12, 0.0 }
 0x65d   : > { %v3015_v43 = vadd.f32 %v3014_v29, %v3013_v37 }
 0x65f   : > { %v3017_v16 = vadd.f32 %v3016_v27, %v3015_v43 }
 0x660   : > { %v5915_v8 = vpop.f32.mrb[20].mxu0 }
 0x661   : > { %v2998_v40 = vpop.f32.mrb[21].mxu0  ;;  %v3019_v30 = vadd.f32 %v3018_v6, %v3017_v16  ;;  %v3024_v54 = vsel %vm545_vm0, %v5915_v8, 0.0 }
 0x662   : > { %v3020_v14 = vsel %vm545_vm0, %v2998_v40, 0.0  ;;  %v5916_v18 = vpop.f32.mrb[22].mxu0 }
 0x663   : > { %v3021_v31 = vadd.f32 %v3020_v14, %v3019_v30  ;;  %v3001_v32 = vpop.f32.mrb[23].mxu0  ;;  %v3026_v46 = vsel %vm545_vm0, %v5916_v18, 0.0 }
 0x664   : > { %v3022_v52 = vsel %vm545_vm0, %v3001_v32, 0.0 }
 0x665   : > { %v3023_v50 = vadd.f32 %v3022_v52, %v3021_v31 }
 0x667   : > { %v3025_v15 = vadd.f32 %v3024_v54, %v3023_v50  ;;  %v7169_v50 = vld [vmem:[#allocation2] sm:$0xf] }
 0x668   : > { %v3271_v54 = vshrl.u32 %v7169_v50, 16 }
 0x669   : > { %v3027_v39 = vadd.f32 %v3026_v46, %v3025_v15  ;;  %v3274_v15 = vshll.u32 %v7169_v50, 16  ;;  %v7173_v46 = vld [vmem:[#allocation2 + $0x4] sm:$0x1] }
 0x66b   : > { %v3028_v47 = vrot.slane %v3027_v39, 4 }
 0x66d   : > { %v3029_v48 = vadd.f32 %v3028_v47, %v3027_v39  ;;  %v7175_v47 = vrot.slane %v3271_v54, 4 }
 0x66f   : > { %v3030_v3 = vrot.slane %v3029_v48, 2 }
 0x671   : > { %v3031_v57 = vadd.f32 %v3030_v3, %v3029_v48  ;;  %v7177_v48 = vrot.slane %v3274_v15, 5  ;;  %v3280_v3 = vshll.u32 %v7173_v46, 16 }
 0x673   : > { %v3032_v58 = vrot.slane %v3031_v57, 1 }
 0x675   : > { %v3033_v11 = vadd.f32 %v3032_v58, %v3031_v57 }
 0x677   : > { %v3034_v59 = vmul.f32 0.015625, %v3033_v11 }
 0x679   : > { %v3035_v20 = vsub.f32 %v2982_v44, %v3034_v59  ;;  %v3036_v55 = vsub.f32 %v2985_v12, %v3034_v59  ;;  %v3037_v63 = vsub.f32 %v5911_v10, %v3034_v59  ;;  %v3038_v38 = vsub.f32 %v5912_v53, %v3034_v59 }
 0x67a   : > { %v3039_v36 = vsub.f32 %v2998_v40, %v3034_v59  ;;  %v3040_v51 = vsub.f32 %v3001_v32, %v3034_v59  ;;  %v3041_v42 = vsub.f32 %v5915_v8, %v3034_v59  ;;  %v3042_v41 = vsub.f32 %v5916_v18, %v3034_v59 }
 0x67b   : > { %v3043_v7 = vmul.f32 %v3035_v20, %v3035_v20  ;;  %v3044_v23 = vmul.f32 %v3036_v55, %v3036_v55  ;;  %v3045_v21 = vmul.f32 %v3037_v63, %v3037_v63  ;;  %v3046_v49 = vmul.f32 %v3038_v38, %v3038_v38 }
 0x67c   : > { %v3047_v22 = vmul.f32 %v3039_v36, %v3039_v36  ;;  %v3048_v4 = vmul.f32 %v3040_v51, %v3040_v51  ;;  %v3049_v10 = vmul.f32 %v3041_v42, %v3041_v42  ;;  %v3050_v12 = vmul.f32 %v3042_v41, %v3042_v41 }
 0x67d   : > { %v3051_v45 = vsel %vm545_vm0, %v3043_v7, 0.0  ;;  %v3052_v0 = vsel %vm545_vm0, %v3044_v23, 0.0  ;;  %v3054_v60 = vsel %vm545_vm0, %v3045_v21, 0.0  ;;  %v3056_v24 = vsel %vm545_vm0, %v3046_v49, 0.0 }
 0x67e   : > { %v3053_v1 = vadd.f32 %v3052_v0, %v3051_v45  ;;  %v3058_v44 = vsel %vm545_vm0, %v3047_v22, 0.0  ;;  %v3060_v37 = vsel %vm545_vm0, %v3048_v4, 0.0  ;;  %v3062_v43 = vsel %vm545_vm0, %v3049_v10, 0.0 }
 0x67f   : > { %v3064_v16 = vsel %vm545_vm0, %v3050_v12, 0.0  ;;  %v3277_v4 = vor.u32 %v7177_v48, %v7175_v47 }
 0x680   : > { %v3055_v61 = vadd.f32 %v3054_v60, %v3053_v1 }
 0x682   : > { %v3057_v19 = vadd.f32 %v3056_v24, %v3055_v61 }
 0x684   : > { %v3059_v53 = vadd.f32 %v3058_v44, %v3057_v19 }
 0x686   : > { %v3061_v29 = vadd.f32 %v3060_v37, %v3059_v53 }
 0x688   : > { %v3063_v27 = vadd.f32 %v3062_v43, %v3061_v29 }
 0x68a   : > { %v3065_v6 = vadd.f32 %v3064_v16, %v3063_v27 }
 0x68c   : > { %v3066_v8 = vrot.slane %v3065_v6, 4 }
 0x68e   : > { %v3067_v40 = vadd.f32 %v3066_v8, %v3065_v6 }
 0x690   : > { %v3068_v30 = vrot.slane %v3067_v40, 2 }
 0x692   : > { %v3069_v14 = vadd.f32 %v3068_v30, %v3067_v40 }
 0x694   : > { %v3070_v18 = vrot.slane %v3069_v14, 1 }
 0x696   : > { %v3071_v31 = vadd.f32 %v3070_v18, %v3069_v14 }
 0x698   : > { %v3072_v32 = vmul.f32 0.015625, %v3071_v31 }
 0x69a   : > { %v3073_v52 = vadd.f32 1e-05, %v3072_v32 }
 0x69c   : > { %6324 = vrsqrt.f32 %v3073_v52 }
 0x6a6   : > { %v6325_v39 = vpop.eup %6324 }
 0x6a7   : > { %v3075_v57 = vmul.f32 %v6325_v39, %v3035_v20  ;;  %v3076_v58 = vmul.f32 %v6325_v39, %v3036_v55  ;;  %v3077_v11 = vmul.f32 %v6325_v39, %v3037_v63  ;;  %v3078_v59 = vmul.f32 %v6325_v39, %v3038_v38 }
 0x6a8   : > { %v3079_v7 = vmul.f32 %v6325_v39, %v3039_v36  ;;  %v3080_v23 = vmul.f32 %v6325_v39, %v3040_v51  ;;  %v3081_v21 = vmul.f32 %v6325_v39, %v3041_v42  ;;  %v3082_v49 = vmul.f32 %v6325_v39, %v3042_v41 }
 0x6a9   : > { %v3083_v45 = vmul.f32 0.1, %v3075_v57  ;;  %v3084_v0 = vmul.f32 0.1, %v3076_v58  ;;  %v3085_v1 = vmul.f32 0.1, %v3077_v11 }
 0x6aa   : > { %v3086_v22 = vmul.f32 0.1, %v3078_v59  ;;  %v3087_v60 = vmul.f32 0.1, %v3079_v7  ;;  %v3088_v61 = vmul.f32 0.1, %v3080_v23 }
 0x6ab   : > { %v3089_v24 = vmul.f32 0.1, %v3081_v21  ;;  %v3090_v19 = vmul.f32 0.1, %v3082_v49  ;;  %v3091_v10 = vmax.f32 %v3075_v57, %v3083_v45  ;;  %v3092_v20 = vmax.f32 %v3076_v58, %v3084_v0 }
 0x6ac   : > { %v3093_v55 = vmax.f32 %v3077_v11, %v3085_v1  ;;  %v3094_v63 = vmax.f32 %v3078_v59, %v3086_v22  ;;  %v3095_v38 = vmax.f32 %v3079_v7, %v3087_v60  ;;  %v3096_v36 = vmax.f32 %v3080_v23, %v3088_v61  ;;  %v3205_v61 = vld [vmem:[#allocation2 + $0xc] sm:$0x1] }
 0x6ad   : > { %v3097_v51 = vmax.f32 %v3081_v21, %v3089_v24  ;;  %v3098_v42 = vmax.f32 %v3082_v49, %v3090_v19  ;;  %v5593_v41 = vpack.c.bf16 %v3091_v10, %v3091_v10  ;;  %v5594_v44 = vpack.c.bf16 %v3092_v20, %v3092_v20  ;;  %v3208_v24 = vld [vmem:[#allocation2 + $0x10] sm:$0xf] }
 0x6ae   : > { %v5595_v53 = vpack.c.bf16 %v3093_v55, %v3093_v55  ;;  %v5596_v12 = vpack.c.bf16 %v3094_v63, %v3094_v63  ;;  %v5597_v37 = vpack.c.bf16 %v3095_v38, %v3095_v38  ;;  %v5598_v29 = vpack.c.bf16 %v3096_v36, %v3096_v36  ;;  %v3211_v63 = vld [vmem:[#allocation2 + $0x14] sm:$0x1] }
 0x6af   : > { %v5599_v43 = vpack.c.bf16 %v3097_v51, %v3097_v51  ;;  %v7182_v27 = vpack.c.bf16 %v3098_v42, %v3098_v42  ;;  %v3124_v16 = vshrl.u32 %v5593_v41, 16  ;;  %v3127_v6 = vshll.u32 %v5593_v41, 16  ;;  %v6330_v51 = vld [vmem:[#allocation2 + $0x8] sm:$0xf] }
 0x6b0   : > { %v3132_v8 = vshrl.u32 %v5594_v44, 16  ;;  %v3135_v40 = vshll.u32 %v5594_v44, 16  ;;  %v3140_v30 = vshrl.u32 %v5595_v53, 16  ;;  %v3143_v14 = vshll.u32 %v5595_v53, 16  ;;  %v3214_v44 = vld [vmem:[#allocation2 + $0x18] sm:$0xf] }
 0x6b1   : > { %v3126_v18 = vrot.slane %v3124_v16, 7  ;;  %v3148_v31 = vshrl.u32 %v5596_v12, 16  ;;  %v3151_v32 = vshll.u32 %v5596_v12, 16  ;;  %v3156_v52 = vshrl.u32 %v5597_v37, 16  ;;  %v3217_v53 = vld [vmem:[#allocation2 + $0x1c] sm:$0x1] }
 0x6b2   : > { %v3134_v54 = vrot.slane %v3132_v8, 7  ;;  %v3142_v15 = vrot.slane %v3140_v30, 7  ;;  %v3159_v39 = vshll.u32 %v5597_v37, 16  ;;  %v3164_v57 = vshrl.u32 %v5598_v29, 16 }
 0x6b3   : > { %v3129_v58 = vor.u32 %v3127_v6, %v3126_v18  ;;  %v3130_v11 = vrot.slane %v3126_v18, 4  ;;  %v3150_v59 = vrot.slane %v3148_v31, 7  ;;  %v3158_v7 = vrot.slane %v3156_v52, 7  ;;  %v3223_v6 = vld [vmem:[#allocation2 + $0x24] sm:$0x1] }
 0x6b4   : > { %v3137_v23 = vor.u32 %v3135_v40, %v3134_v54  ;;  %v3138_v21 = vrot.slane %v3134_v54, 4  ;;  %v3145_v49 = vor.u32 %v3143_v14, %v3142_v15  ;;  %v3146_v45 = vrot.slane %v3142_v15, 4  ;;  %v3226_v14 = vld [vmem:[#allocation2 + $0x28] sm:$0xf]  ;;  %v3229_v18 = vld [vmem:[#allocation2 + $0x2c] sm:$0x1] }
 0x6b5   : > { %v3153_v0 = vor.u32 %v3151_v32, %v3150_v59  ;;  %v3154_v1 = vrot.slane %v3150_v59, 4  ;;  %v3161_v22 = vor.u32 %v3159_v39, %v3158_v7  ;;  %v3162_v60 = vrot.slane %v3158_v7, 4  ;;  %v3232_v15 = vld [vmem:[#allocation2 + $0x30] sm:$0xf]  ;;  %v3235_v39 = vld [vmem:[#allocation2 + $0x34] sm:$0x1] }
 0x6b6   : > { %v3166_v19 = vrot.slane %v3164_v57, 7  ;;  %v3167_v10 = vshll.u32 %v5598_v29, 16  ;;  %v3172_v20 = vshrl.u32 %v5599_v43, 16  ;;  %v3175_v55 = vshll.u32 %v5599_v43, 16  ;;  %v3220_v43 = vld [vmem:[#allocation2 + $0x20] sm:$0xf] }
 0x6b7   : > { %v3180_v38 = vshrl.u32 %v7182_v27, 16  ;;  %v3183_v36 = vshll.u32 %v7182_v27, 16  ;;  %v3203_v42 = vsel %vm6697_vm7, %v3129_v58, %v6330_v51  ;;  %v3206_v41 = vsel %vm6604_vm3, %v3130_v11, %v3205_v61  ;;  %v3238_v7 = vld [vmem:[#allocation2 + $0x38] sm:$0xf] }
 0x6b8   : > { %v3169_v12 = vor.u32 %v3167_v10, %v3166_v19  ;;  %v3170_v37 = vrot.slane %v3166_v19, 4  ;;  %v3174_v16 = vrot.slane %v3172_v20, 7  ;;  %3207 = vst [vmem:[#allocation2 + $0xc] sm:$0x1] %v3206_v41  ;;  %v3209_v29 = vsel %vm6697_vm7, %v3137_v23, %v3208_v24  ;;  %3204 = vst [vmem:[#allocation2 + $0x8] sm:$0xf] %v3203_v42 }
 0x6b9   : > { %v3182_v27 = vrot.slane %v3180_v38, 7  ;;  %v3212_v8 = vsel %vm6604_vm3, %v3138_v21, %v3211_v63  ;;  %v3215_v40 = vsel %vm6697_vm7, %v3145_v49, %v3214_v44  ;;  %v3218_v30 = vsel %vm6604_vm3, %v3146_v45, %v3217_v53  ;;  %3210 = vst [vmem:[#allocation2 + $0x10] sm:$0xf] %v3209_v29  ;;  %v3241_v23 = vld [vmem:[#allocation2 + $0x3c] sm:$0x1] }
 0x6ba   : > { %v3177_v31 = vor.u32 %v3175_v55, %v3174_v16  ;;  %v3178_v32 = vrot.slane %v3174_v16, 4  ;;  %3213 = vst [vmem:[#allocation2 + $0x14] sm:$0x1] %v3212_v8  ;;  %3219 = vst [vmem:[#allocation2 + $0x1c] sm:$0x1] %v3218_v30  ;;  %v3221_v52 = vsel %vm6697_vm7, %v3153_v0, %v3220_v43  ;;  %v3224_v54 = vsel %vm6604_vm3, %v3154_v1, %v3223_v6 }
 0x6bb   : > { %3216 = vst [vmem:[#allocation2 + $0x18] sm:$0xf] %v3215_v40  ;;  %v3185_v57 = vor.u32 %v3183_v36, %v3182_v27  ;;  %v3186_v58 = vrot.slane %v3182_v27, 4  ;;  %3225 = vst [vmem:[#allocation2 + $0x24] sm:$0x1] %v3224_v54  ;;  %v3227_v11 = vsel %vm6697_vm7, %v3161_v22, %v3226_v14  ;;  %v3230_v59 = vsel %vm6604_vm3, %v3162_v60, %v3229_v18 }
 0x6bc   : > { %3222 = vst [vmem:[#allocation2 + $0x20] sm:$0xf] %v3221_v52  ;;  %3231 = vst [vmem:[#allocation2 + $0x2c] sm:$0x1] %v3230_v59  ;;  %v3233_v21 = vsel %vm6697_vm7, %v3169_v12, %v3232_v15  ;;  %v3236_v49 = vsel %vm6604_vm3, %v3170_v37, %v3235_v39  ;;  %v3239_v45 = vsel %vm6697_vm7, %v3177_v31, %v3238_v7  ;;  %v3244_v1 = vld [vmem:[#allocation2 + $0x40] sm:$0xf] }
 0x6bd   : > { %v3242_v0 = vsel %vm6604_vm3, %v3178_v32, %v3241_v23  ;;  %v3247_v22 = vld [vmem:[#allocation2 + $0x44] sm:$0x1]  ;;  %3228 = vst [vmem:[#allocation2 + $0x28] sm:$0xf] %v3227_v11  ;;  %3237 = vst [vmem:[#allocation2 + $0x34] sm:$0x1] %v3236_v49  ;;  %v3245_v60 = vsel %vm6697_vm7, %v3185_v57, %v3244_v1 }
 0x6be   : > { %3243 = vst [vmem:[#allocation2 + $0x3c] sm:$0x1] %v3242_v0  ;;  %v3248_v61 = vsel %vm6604_vm3, %v3186_v58, %v3247_v22  ;;  %3234 = vst [vmem:[#allocation2 + $0x30] sm:$0xf] %v3233_v21  ;;  %v3282_v10 = vrot.slane %v3280_v3, 5  ;;  %v3278_v20 = vrot.slane %v3277_v4, 4 }
 0x6bf   : > { %3240 = vst [vmem:[#allocation2 + $0x38] sm:$0xf] %v3239_v45  ;;  %3249 = vst [vmem:[#allocation2 + $0x44] sm:$0x1] %v3248_v61  ;;  %v7218_v24 = vld [vmem:[#allocation2 + $0x8] sm:$0xf] }
 0x6c0   : > { %3246 = vst [vmem:[#allocation2 + $0x40] sm:$0xf] %v3245_v60  ;;  %v7220_v19 = vld [vmem:[#allocation2 + $0xc] sm:$0x1]  ;;  %v3285_v35 = vshrl.u32 %v7218_v24, 16  ;;  %v3288_v13 = vshll.u32 %v7218_v24, 16  ;;  %v3283_v12 = vsel %vm6751_vm10, %v3278_v20, %v3282_v10 }
 0x6c1   : > { %v3294_v55 = vshll.u32 %v7220_v19, 16  ;;  %v7230_v63 = vld [vmem:[#allocation2 + $0x10] sm:$0xf]  ;;  %v7234_v36 = vld [vmem:[#allocation2 + $0x14] sm:$0x1] }
 0x6c2   : > { %v7232_v38 = vld [vmem:[#allocation2 + $0x18] sm:$0xf]  ;;  %v3287_v51 = vrot.slane %v3285_v35, 4  ;;  %v3290_v42 = vrot.slane %v3288_v13, 5  ;;  %v7236_v41 = vld [vmem:[#allocation2 + $0x1c] sm:$0x1] }
 0x6c3   : > { %v3299_v3 = vshrl.u32 %v7230_v63, 16  ;;  %v3302_v47 = vshll.u32 %v7230_v63, 16  ;;  %v3308_v48 = vshll.u32 %v7234_v36, 16  ;;  %v3313_v4 = vshrl.u32 %v7232_v38, 16  ;;  %v7243_v53 = vld [vmem:[#allocation2 + $0x20] sm:$0xf] }
 0x6c4   : > { %v3316_v44 = vshll.u32 %v7232_v38, 16  ;;  %v3291_v37 = vor.u32 %v3290_v42, %v3287_v51  ;;  %v3296_v16 = vrot.slane %v3294_v55, 5  ;;  %v7247_v43 = vld [vmem:[#allocation2 + $0x28] sm:$0xf]  ;;  %v7249_v6 = vld [vmem:[#allocation2 + $0x24] sm:$0x1] }
 0x6c5   : > { %v3301_v29 = vrot.slane %v3299_v3, 4  ;;  %v3304_v27 = vrot.slane %v3302_v47, 5  ;;  %v3315_v8 = vrot.slane %v3313_v4, 4  ;;  %v3322_v30 = vshll.u32 %v7236_v41, 16  ;;  %v7254_v15 = vld [vmem:[#allocation2 + $0x2c] sm:$0x1] }
 0x6c6   : > { %v3318_v40 = vrot.slane %v3316_v44, 5  ;;  %v3292_v14 = vrot.slane %v3291_v37, 4  ;;  %v3310_v18 = vrot.slane %v3308_v48, 5  ;;  %v3327_v31 = vshrl.u32 %v7243_v53, 16  ;;  %v7261_v23 = vld [vmem:[#allocation2 + $0x30] sm:$0xf] }
 0x6c7   : > { %v3330_v32 = vshll.u32 %v7243_v53, 16  ;;  %v3305_v52 = vor.u32 %v3304_v27, %v3301_v29  ;;  %v3336_v39 = vshll.u32 %v7249_v6, 16  ;;  %v3341_v57 = vshrl.u32 %v7247_v43, 16  ;;  %v7264_v10 = vld [vmem:[#allocation2 + $0x38] sm:$0xf]  ;;  %v6287_v13 = vld [vmem:[%s7642_s6 + $0x8] sm:$0xff]  }
 0x6c8   : > { %v3319_v54 = vor.u32 %v3318_v40, %v3315_v8  ;;  %v3297_v58 = vsel %vm6751_vm10, %v3292_v14, %v3296_v16  ;;  %v3329_v11 = vrot.slane %v3327_v31, 4  ;;  %v3344_v7 = vshll.u32 %v7247_v43, 16  ;;  %v7274_v55 = vld [vmem:[#allocation2 + $0x34] sm:$0x1]  ;;  %v7278_v44 = vld [vmem:[#allocation2 + $0x3c] sm:$0x1] }
 0x6c9   : > { %v3332_v59 = vrot.slane %v3330_v32, 5  ;;  %v5433_v21 = vcombine.low %v3283_v12, %v3297_v58  ;;  %v3306_v49 = vrot.slane %v3305_v52, 4  ;;  %v3324_v0 = vrot.slane %v3322_v30, 5 }
 0x6ca   : > { %v3320_v45 = vrot.slane %v3319_v54, 4  ;;  %v3343_v22 = vrot.slane %v3341_v57, 4  ;;  %v3346_v60 = vrot.slane %v3344_v7, 5  ;;  %v3350_v61 = vshll.u32 %v7254_v15, 16  ;;  %v6289_v54 = vld [vmem:[%s7642_s6 + $0x20] sm:$0xff]  }
 0x6cb   : > { %v3333_v1 = vor.u32 %v3332_v59, %v3329_v11  ;;  %5921 = vmatprep.mubr.msk.bf16.mxu0 %vm545_vm0, %v5433_v21  ;;  %v3311_v20 = vsel %vm6751_vm10, %v3306_v49, %v3310_v18  ;;  %v3355_v51 = vshrl.u32 %v7261_v23, 16  ;;  %v3358_v42 = vshll.u32 %v7261_v23, 16 }
 0x6cc   : > { %v3325_v35 = vsel %vm6751_vm10, %v3320_v45, %v3324_v0  ;;  %v3338_v48 = vrot.slane %v3336_v39, 5  ;;  %v3347_v4 = vor.u32 %v3346_v60, %v3343_v22  ;;  %v3352_v12 = vrot.slane %v3350_v61, 5  ;;  %v3597_v0 = vld [vmem:[#allocation2] sm:$0xe]  ;;  %v6292_v60 = vld [vmem:[%s7642_s6 + $0x28] sm:$0xff]  }
 0x6cd   : > { %v5434_v3 = vcombine.low %v3311_v20, %v3325_v35  ;;  %v3334_v47 = vrot.slane %v3333_v1, 4  ;;  %v3357_v37 = vrot.slane %v3355_v51, 4  ;;  %v3360_v16 = vrot.slane %v3358_v42, 5  ;;  %v3598_v1 = vld [vmem:[#allocation2 + $0x8] sm:$0xe] }
 0x6ce   : > { %v3369_v29 = vshrl.u32 %v7264_v10, 16  ;;  %v3348_v8 = vrot.slane %v3347_v4, 4  ;;  %v3364_v40 = vshll.u32 %v7274_v55, 16  ;;  %v3372_v30 = vshll.u32 %v7264_v10, 16  ;;  %v3602_v51 = vld [vmem:[#allocation2 + $0x28] sm:$0xe] }
 0x6cf   : > { %5922 = vmatmul.mubr.msk.bf16.vlgmr.msra.gmra.mrb[24].mxu0 %vm545_vm0, %v5434_v3  ;;  %v3339_v27 = vsel %vm6751_vm10, %v3334_v47, %v3338_v48  ;;  %v3361_v14 = vor.u32 %v3360_v16, %v3357_v37  ;;  %v3378_v52 = vshll.u32 %v7278_v44, 16  ;;  %v5443_v45 = vcombine.low %v7169_v50, %v7218_v24 }
 0x6d0   : > { %5930 = vmatpush3.bf16.msra.mxu0 %v7150_v9  ;;  %v3371_v18 = vrot.slane %v3369_v29, 4  ;;  %v3353_v31 = vsel %vm6751_vm10, %v3348_v8, %v3352_v12  ;;  %v3374_v32 = vrot.slane %v3372_v30, 5  ;;  %v3366_v58 = vrot.slane %v3364_v40, 5  ;;  %v3604_v8 = vld [vmem:[#allocation2 + $0x38] sm:$0xe] }
 0x6d1   : > { %5931 = vmatprep.subr.bf16.mxu0 %v6287_v13  ;;  %v5435_v39 = vcombine.low %v3339_v27, %v3353_v31  ;;  %v3362_v57 = vrot.slane %v3361_v14, 4  ;;  %v3380_v7 = vrot.slane %v3378_v52, 5  ;;  %v5444_v22 = vcombine.low %v7230_v63, %v7232_v38  ;;  %v6294_v63 = vld [vmem:[%s7642_s6 + $0x30] sm:$0xff]   ;;  %v3897_v30 = vld [vmem:[#allocation2 + $0x8] sm:$0xf] }
 0x6d2   : > { %v3375_v11 = vor.u32 %v3374_v32, %v3371_v18  ;;  %v5445_v61 = vcombine.low %v7243_v53, %v7247_v43  ;;  %v5453_v20 = vrot.slane %v3597_v0, 9  ;;  %v3623_v50 = vrot.slane %v7173_v46, 5  ;;  %v3599_v38 = vld [vmem:[#allocation2 + $0x10] sm:$0xe]  ;;  %v3601_v46 = vld [vmem:[#allocation2 + $0x20] sm:$0xe] }
 0x6d3   : > { %5925 = vmatprep.mubr.msk.bf16.mxu0 %vm545_vm0, %v5435_v39  ;;  %v3367_v9 = vsel %vm6751_vm10, %v3362_v57, %v3366_v58  ;;  %v5454_v24 = vrot.slane %v3598_v1, 9  ;;  %v3627_v35 = vrot.slane %v7220_v19, 5  ;;  %v5446_v19 = vcombine.low %v7261_v23, %v7264_v10  ;;  %v3899_v52 = vld [vmem:[#allocation2 + $0x10] sm:$0xf]  ;;  %v6297_v57 = vld [vmem:[%s7642_s6 + $0x40] sm:$0xff]  }
 0x6d4   : > { %5932 = vmatpush3.bf16.msra.mxu0 %v6287_v13  ;;  %v3376_v59 = vrot.slane %v3375_v11, 4  ;;  %v3624_v53 = vsel %vm6836_vm13, %v5453_v20, %v3623_v50  ;;  %v3600_v13 = vld [vmem:[#allocation2 + $0x18] sm:$0xe]  ;;  %v5455_v42 = vrot.slane %v3599_v38, 9  ;;  %v3631_v47 = vrot.slane %v7234_v36, 5 }
 0x6d5   : > { %5941 = vmatprep.subr.bf16.mxu0 %v6289_v54  ;;  %v3628_v43 = vsel %vm6836_vm13, %v5454_v24, %v3627_v35  ;;  %v5456_v48 = vrot.slane %v3600_v13, 9  ;;  %v3635_v4 = vrot.slane %v7236_v41, 5  ;;  %v5457_v12 = vrot.slane %v3601_v46, 9  ;;  %v3603_v36 = vld [vmem:[#allocation2 + $0x30] sm:$0xe] }
 0x6d6   : > { %v3381_v21 = vsel %vm6751_vm10, %v3376_v59, %v3380_v7  ;;  %v5465_v3 = vcombine.low %v3624_v53, %v3628_v43  ;;  %v3639_v37 = vrot.slane %v7249_v6, 5  ;;  %v5458_v16 = vrot.slane %v3602_v51, 9  ;;  %v6296_v0 = vld [vmem:[#allocation2 + $0x8] ss:$8 sps:$4 sm:$0xff]   ;;  %v3903_v1 = vld [vmem:[#allocation2 + $0x20] sm:$0xf] }
 0x6d7   : > { %v5436_v49 = vcombine.low %v3367_v9, %v3381_v21  ;;  %v3643_v29 = vrot.slane %v7254_v15, 5  ;;  %v3632_v23 = vsel %vm6836_vm13, %v5455_v42, %v3631_v47  ;;  %v3636_v10 = vsel %vm6836_vm13, %v5456_v48, %v3635_v4  ;;  %v6295_v15 = vld [vmem:[%s7642_s6 + $0x38] sm:$0xff]   ;;  %v3905_v50 = vld [vmem:[#allocation2 + $0x28] sm:$0xf]  ;;  %v3907_v24 = vld [vmem:[#allocation2 + $0x30] sm:$0xf] }
 0x6d8   : > { %v3640_v41 = vsel %vm6836_vm13, %v5457_v12, %v3639_v37  ;;  %v5466_v6 = vcombine.low %v3632_v23, %v3636_v10  ;;  %v5459_v40 = vrot.slane %v3603_v36, 9  ;;  %v3647_v18 = vrot.slane %v7274_v55, 5  ;;  %v6298_v4 = vld [vmem:[#allocation2 + $0x18] ss:$8 sps:$4 sm:$0xff]   ;;  %v6299_v23 = vld [vmem:[#allocation2 + $0x28] ss:$8 sps:$4 sm:$0xff]  }
 0x6d9   : > { %5926 = vmatmul.mubr.msk.bf16.gmra.mrb[28].mxu0 %vm545_vm0, %v5436_v49  ;;  %v3644_v27 = vsel %vm6836_vm13, %v5458_v16, %v3643_v29  ;;  %v5460_v31 = vrot.slane %v3604_v8, 9  ;;  %v3651_v32 = vrot.slane %v7278_v44, 5  ;;  %v3917_v39 = vshll.u32 %v3897_v30, 16 }
 0x6da   : > { %5933 = vmatprep.mubr.msk.bf16.mxu0 %vm545_vm0, %v5443_v45  ;;  %v5467_v14 = vcombine.low %v3640_v41, %v3644_v27  ;;  %v3928_v58 = vshrl.u32 %v3899_v52, 16  ;;  %v3931_v11 = vshll.u32 %v3899_v52, 16  ;;  %v3648_v55 = vsel %vm6836_vm13, %v5459_v40, %v3647_v18  ;;  %v3901_v45 = vld [vmem:[#allocation2 + $0x18] sm:$0xf]  ;;  %v3911_v40 = vld [vmem:[#allocation2 + $0x40] sm:$0xf] }
 0x6db   : > { %v3652_v44 = vsel %vm6836_vm13, %v5460_v31, %v3651_v32  ;;  %v3919_v59 = vrot.slane %v3917_v39, 5  ;;  %v3942_v20 = vshrl.u32 %v3901_v45, 16  ;;  %v3956_v38 = vshrl.u32 %v3903_v1, 16  ;;  %v3909_v41 = vld [vmem:[#allocation2 + $0x38] sm:$0xf] }
 0x6dc   : > { %v5468_v7 = vcombine.low %v3648_v55, %v3652_v44  ;;  %v3930_v21 = vrot.slane %v3928_v58, 4  ;;  %v3933_v49 = vrot.slane %v3931_v11, 5  ;;  %v3959_v53 = vshll.u32 %v3903_v1, 16  ;;  %v7370_v31 = vld [vmem:[#allocation2 + $0x1c] sm:$0x1] }
 0x6dd   : > { %v3970_v46 = vshrl.u32 %v3905_v50, 16  ;;  %v3973_v51 = vshll.u32 %v3905_v50, 16  ;;  %v3987_v42 = vshll.u32 %v3907_v24, 16  ;;  %v3944_v48 = vrot.slane %v3942_v20, 4  ;;  %v7372_v32 = vld [vmem:[#allocation2 + $0x24] sm:$0x1] }
 0x6de   : > { %v3934_v35 = vor.u32 %v3933_v49, %v3930_v21  ;;  %v3958_v16 = vrot.slane %v3956_v38, 4  ;;  %v3961_v29 = vrot.slane %v3959_v53, 5  ;;  %v7374_v39 = vld [vmem:[#allocation2 + $0x2c] sm:$0x1]  ;;  %v3998_v58 = vshrl.u32 %v3909_v41, 16 }
 0x6df   : > { %v3972_v27 = vrot.slane %v3970_v46, 4  ;;  %v3975_v8 = vrot.slane %v3973_v51, 5  ;;  %v4001_v11 = vshll.u32 %v3909_v41, 16  ;;  %v4012_v55 = vshrl.u32 %v3911_v40, 16  ;;  %v6303_v41 = vld [vmem:[%s7642_s6 + $0x58] sm:$0xff]  }
 0x6e0   : > { %v3935_v12 = vrot.slane %v3934_v35, 4  ;;  %v4015_v44 = vshll.u32 %v3911_v40, 16  ;;  %v3965_v21 = vshll.u32 %v7372_v32, 16  ;;  %v3979_v49 = vshll.u32 %v7374_v39, 16 }
 0x6e1   : > { %5934 = vmatmul.mubr.msk.bf16.vlgmr.msra.gmra.mrb[24].mxu0 %vm545_vm0, %v5444_v22  ;;  %v7351_v22 = vld [vmem:[#allocation2 + $0xc] sm:$0x1]  ;;  %v4000_v50 = vrot.slane %v3998_v58, 4  ;;  %v4014_v35 = vrot.slane %v4012_v55, 4  ;;  %v6304_v58 = vld [vmem:[%s7642_s6 + $0x60] sm:$0xff]  }
 0x6e2   : > { %5942 = vmatpush3.bf16.msra.mxu0 %v6289_v54  ;;  %5937 = vmatprep.mubr.msk.bf16.mxu0 %vm545_vm0, %v5445_v61  ;;  %v3914_v54 = vshrl.u32 %v3897_v30, 16  ;;  %v3923_v43 = vshll.u32 %v7351_v22, 16  ;;  %v6302_v30 = vld [vmem:[%s7642_s6 + $0x50] sm:$0xff]   ;;  %v3981_v46 = vrot.slane %v3979_v49, 5  ;;  %v4165_v40 = vrot.slane %v7351_v22, 5 }
 0x6e3   : > { %5943 = vmatprep.subr.bf16.mxu0 %v6292_v60  ;;  %v4141_v22 = vld [vmem:[#allocation2 + $0x18] sm:$0xe] }
 0x6e4   : > { %v3916_v9 = vrot.slane %v3914_v54, 4  ;;  %v3925_v10 = vrot.slane %v3923_v43, 5  ;;  %v3962_v54 = vor.u32 %v3961_v29, %v3958_v16 }
 0x6e6   : > { %5944 = vmatpush3.bf16.msra.mxu0 %v6292_v60  ;;  %v7353_v60 = vld [vmem:[#allocation2 + $0x14] sm:$0x1]  ;;  %v3920_v61 = vor.u32 %v3919_v59, %v3916_v9  ;;  %v3976_v9 = vor.u32 %v3975_v8, %v3972_v27 }
 0x6e7   : > { %5953 = vmatprep.subr.bf16.mxu0 %v6294_v63  ;;  %v3937_v13 = vshll.u32 %v7353_v60, 16 }
 0x6e8   : > { %v3921_v47 = vrot.slane %v3920_v61, 4  ;;  %v3963_v61 = vrot.slane %v3962_v54, 4  ;;  %v3977_v38 = vrot.slane %v3976_v9, 4  ;;  %v4143_v9 = vld [vmem:[#allocation2 + $0x28] sm:$0xe] }
 0x6e9   : > { %5938 = vmatmul.mubr.msk.bf16.gmra.mrb[28].mxu0 %vm545_vm0, %v5446_v19  ;;  %v3984_v19 = vshrl.u32 %v3907_v24, 16  ;;  %v3939_v36 = vrot.slane %v3937_v13, 5  ;;  %v4003_v24 = vrot.slane %v4001_v11, 5  ;;  %v3967_v13 = vrot.slane %v3965_v21, 5 }
 0x6ea   : > { %5945 = vmatprep.mubr.msk.bf16.mxu0 %vm545_vm0, %v5465_v3  ;;  %v6300_v3 = vld [vmem:[%s7642_s6 + $0x48] sm:$0xff]   ;;  %v5505_v21 = vrot.slane %v4141_v22, 9 }
 0x6eb   : > { %v3940_v18 = vsel %vm6751_vm10, %v3935_v12, %v3939_v36  ;;  %v3982_v12 = vsel %vm6751_vm10, %v3977_v38, %v3981_v46 }
 0x6f1   : > { %5946 = vmatmul.mubr.msk.bf16.vlgmr.msra.gmra.mrb[24].mxu0 %vm545_vm0, %v5466_v6  ;;  %v3986_v6 = vrot.slane %v3984_v19, 4  ;;  %v7384_v19 = vld [vmem:[#allocation2 + $0x3c] sm:$0x1] }
 0x6f2   : > { %5954 = vmatpush3.bf16.msra.mxu0 %v6294_v63  ;;  %5949 = vmatprep.mubr.msk.bf16.mxu0 %vm545_vm0, %v5467_v14  ;;  %v3945_v63 = vshll.u32 %v3901_v45, 16  ;;  %v3926_v14 = vsel %vm6751_vm10, %v3921_v47, %v3925_v10  ;;  %v6301_v45 = vld [vmem:[#allocation2 + $0x38] ss:$8 sps:$4 sm:$0xff]   ;;  %v3968_v47 = vsel %vm6751_vm10, %v3963_v61, %v3967_v13  ;;  %v4007_v16 = vshll.u32 %v7384_v19, 16  ;;  %v4140_v10 = vld [vmem:[#allocation2 + $0x10] sm:$0xe] }
 0x6f3   : > { %5955 = vmatprep.subr.bf16.mxu0 %v6295_v15  ;;  %v5507_v61 = vrot.slane %v4143_v9, 9  ;;  %v4189_v46 = vrot.slane %v7384_v19, 5 }
 0x6f4   : > { %v3947_v37 = vrot.slane %v3945_v63, 5  ;;  %v4017_v63 = vrot.slane %v4015_v44, 5  ;;  %v4142_v44 = vld [vmem:[#allocation2 + $0x20] sm:$0xe] }
 0x6f6   : > { %5956 = vmatpush3.bf16.msra.mxu0 %v6295_v15  ;;  %v3989_v15 = vrot.slane %v3987_v42, 5  ;;  %v3948_v52 = vor.u32 %v3947_v37, %v3944_v48  ;;  %v7386_v42 = vld [vmem:[#allocation2 + $0x44] sm:$0x1]  ;;  %v4004_v48 = vor.u32 %v4003_v24, %v4000_v50 }
 0x6f7   : > { %5965 = vmatprep.subr.bf16.mxu0 %v6297_v57  ;;  %v4021_v29 = vshll.u32 %v7386_v42, 16 }
 0x6f8   : > { %v3990_v59 = vor.u32 %v3989_v15, %v3986_v6  ;;  %v3949_v1 = vrot.slane %v3948_v52, 4  ;;  %v4005_v8 = vrot.slane %v4004_v48, 4  ;;  %v4009_v52 = vrot.slane %v4007_v16, 5  ;;  %v4441_v48 = vld [vmem:[#allocation2 + $0x18] sm:$0xf] }
 0x6f9   : > { %5950 = vmatmul.mubr.msk.bf16.gmra.mrb[28].mxu0 %vm545_vm0, %v5468_v7  ;;  %v3951_v7 = vshll.u32 %v7370_v31, 16  ;;  %v4023_v54 = vrot.slane %v4021_v29, 5  ;;  %v4470_v16 = vshrl.u32 %v4441_v48, 16  ;;  %v4473_v29 = vshll.u32 %v4441_v48, 16 }
 0x6fa   : > { %5957 = vmatprep.mubr.msk.bf16.mxu0 %vm545_vm0, %v6296_v0  ;;  %v5493_v0 = vcombine.low %v3926_v14, %v3940_v18  ;;  %v3991_v53 = vrot.slane %v3990_v59, 4  ;;  %v5504_v14 = vrot.slane %v4140_v10, 9  ;;  %v4169_v18 = vrot.slane %v7353_v60, 5  ;;  %v4144_v59 = vld [vmem:[#allocation2 + $0x30] sm:$0xe] }
 0x6fb   : > { %v3953_v43 = vrot.slane %v3951_v7, 5  ;;  %v4010_v11 = vsel %vm6751_vm10, %v4005_v8, %v4009_v52  ;;  %v5508_v50 = vrot.slane %v4144_v59, 9  ;;  %v4475_v8 = vrot.slane %v4473_v29, 5  ;;  %v7448_v52 = vld [vmem:[#allocation2 + $0x1c] sm:$0x1] }
 0x701   : > { %5958 = vmatmul.mubr.msk.bf16.vlgmr.msra.gmra.mrb[24].mxu0 %vm545_vm0, %v6298_v4  ;;  %v4018_v4 = vor.u32 %v4017_v63, %v4014_v35 }
 0x702   : > { %5966 = vmatpush3.bf16.msra.mxu0 %v6297_v57  ;;  %5961 = vmatprep.mubr.msk.bf16.mxu0 %vm545_vm0, %v6299_v23  ;;  %v7376_v57 = vld [vmem:[#allocation2 + $0x34] sm:$0x1]  ;;  %v4139_v23 = vld [vmem:[#allocation2 + $0x8] sm:$0xe] }
 0x703   : > { %5967 = vmatprep.subr.bf16.mxu0 %v6300_v3  ;;  %v3993_v20 = vshll.u32 %v7376_v57, 16  ;;  %v4019_v6 = vrot.slane %v4018_v4, 4  ;;  %v5503_v15 = vrot.slane %v4139_v23, 9  ;;  %v4185_v24 = vrot.slane %v7376_v57, 5  ;;  %v6305_v57 = vld [vmem:[%s7642_s6 + $0x68] sm:$0xff]   ;;  %v6307_v4 = vld [vmem:[%s7642_s6 + $0x70] sm:$0xff]  }
 0x705   : > { %v3995_v51 = vrot.slane %v3993_v20, 5  ;;  %v4024_v55 = vsel %vm6751_vm10, %v4019_v6, %v4023_v54  ;;  %v4166_v60 = vsel %vm6836_vm13, %v5503_v15, %v4165_v40  ;;  %v4181_v20 = vrot.slane %v7374_v39, 5  ;;  %v4443_v6 = vld [vmem:[#allocation2 + $0x20] sm:$0xf]  ;;  %v7445_v15 = vld [vmem:[#allocation2 + $0x14] sm:$0x1] }
 0x706   : > { %5968 = vmatpush3.bf16.msra.mxu0 %v6300_v3  ;;  %v3954_v3 = vsel %vm6751_vm10, %v3949_v1, %v3953_v43  ;;  %v5496_v7 = vcombine.low %v4010_v11, %v4024_v55  ;;  %v4177_v1 = vrot.slane %v7372_v32, 5  ;;  %v4186_v38 = vsel %vm6836_vm13, %v5508_v50, %v4185_v24  ;;  %v4445_v40 = vld [vmem:[#allocation2 + $0x28] sm:$0xf]  ;;  %v6309_v50 = vld [vmem:[#allocation2 + $0x30] ss:$8 sps:$4 sm:$0xff]  }
 0x707   : > { %5977 = vmatprep.subr.bf16.mxu0 %v6302_v30  ;;  %v3996_v37 = vsel %vm6751_vm10, %v3991_v53, %v3995_v51  ;;  %v5494_v36 = vcombine.low %v3954_v3, %v3968_v47  ;;  %v4182_v32 = vsel %vm6836_vm13, %v5507_v61, %v4181_v20  ;;  %v4146_v53 = vld [vmem:[#allocation2 + $0x40] sm:$0xe]  ;;  %v4193_v3 = vrot.slane %v7386_v42, 5  ;;  %v4439_v47 = vld [vmem:[#allocation2 + $0x10] sm:$0xf] }
 0x708   : > { %v5495_v27 = vcombine.low %v3982_v12, %v3996_v37  ;;  %v5517_v13 = vcombine.low %v4182_v32, %v4186_v38  ;;  %v5510_v51 = vrot.slane %v4146_v53, 9  ;;  %v4456_v12 = vshrl.u32 %v4439_v47, 16 }
 0x709   : > { %5962 = vmatmul.mubr.msk.bf16.gmra.mrb[28].mxu0 %vm545_vm0, %v6301_v45  ;;  %v4173_v45 = vrot.slane %v7370_v31, 5  ;;  %v4145_v31 = vld [vmem:[#allocation2 + $0x38] sm:$0xe]  ;;  %v4459_v37 = vshll.u32 %v4439_v47, 16  ;;  %v4487_v11 = vshll.u32 %v4443_v6, 16  ;;  %v4465_v55 = vshll.u32 %v7445_v15, 16 }
 0x70a   : > { %5969 = vmatprep.mubr.msk.bf16.mxu0 %vm545_vm0, %v5493_v0  ;;  %v5506_v0 = vrot.slane %v4142_v44, 9  ;;  %v5509_v43 = vrot.slane %v4145_v31, 9  ;;  %v4194_v42 = vsel %vm6836_vm13, %v5510_v51, %v4193_v3  ;;  %v4458_v10 = vrot.slane %v4456_v12, 4  ;;  %v6312_v51 = vld [vmem:[%s7642_s6 + $0x80] sm:$0xff]   ;;  %v7464_v47 = vld [vmem:[#allocation2 + $0x2c] sm:$0x1] }
 0x70b   : > { %v4174_v35 = vsel %vm6836_vm13, %v5505_v21, %v4173_v45  ;;  %v4479_v21 = vshll.u32 %v7448_v52, 16  ;;  %v6308_v45 = vld [vmem:[#allocation2 + $0x20] ss:$8 sps:$4 sm:$0xff]   ;;  %v4489_v20 = vrot.slane %v4487_v11, 5  ;;  %v4467_v24 = vrot.slane %v4465_v55, 5 }
 0x70c   : > { %v4178_v63 = vsel %vm6836_vm13, %v5506_v0, %v4177_v1  ;;  %v4190_v19 = vsel %vm6836_vm13, %v5509_v43, %v4189_v46  ;;  %v6310_v0 = vld [vmem:[%s7642_s6 + $0x78] sm:$0xff]   ;;  %v7462_v3 = vld [vmem:[#allocation2 + $0x24] sm:$0x1]  ;;  %v4719_v26 = vrot.slane %v7464_v47, 5 }
 0x70d   : > { %v5516_v39 = vcombine.low %v4174_v35, %v4178_v63  ;;  %v5518_v23 = vcombine.low %v4190_v19, %v4194_v42  ;;  %v4481_v43 = vrot.slane %v4479_v21, 5  ;;  %v7468_v19 = vld [vmem:[#allocation2 + $0x34] sm:$0x1]  ;;  %v7470_v42 = vld [vmem:[#allocation2 + $0x3c] sm:$0x1] }
 0x70e   : > { %v7480_v21 = vld [vmem:[#allocation2 + $0x4c] sm:$0x1] }
 0x711   : > { %5970 = vmatmul.mubr.msk.bf16.vlgmr.msra.gmra.mrb[24].mxu0 %vm545_vm0, %v5494_v36  ;;  %v4461_v36 = vrot.slane %v4459_v37, 5 }
 0x712   : > { %5978 = vmatpush3.bf16.msra.mxu0 %v6302_v30  ;;  %5973 = vmatprep.mubr.msk.bf16.mxu0 %vm545_vm0, %v5495_v27  ;;  %v4170_v30 = vsel %vm6836_vm13, %v5504_v14, %v4169_v18  ;;  %v4472_v27 = vrot.slane %v4470_v16, 4  ;;  %v4447_v14 = vld [vmem:[#allocation2 + $0x30] sm:$0xf]  ;;  %v4449_v18 = vld [vmem:[#allocation2 + $0x38] sm:$0xf] }
 0x713   : > { %5979 = vmatprep.subr.bf16.mxu0 %v6303_v41  ;;  %v5515_v49 = vcombine.low %v4166_v60, %v4170_v30  ;;  %v4462_v54 = vor.u32 %v4461_v36, %v4458_v10  ;;  %v4498_v60 = vshrl.u32 %v4445_v40, 16  ;;  %v4501_v30 = vshll.u32 %v4445_v40, 16 }
 0x714   : > { %v4476_v22 = vor.u32 %v4475_v8, %v4472_v27  ;;  %v4512_v44 = vshrl.u32 %v4447_v14, 16  ;;  %v4515_v9 = vshll.u32 %v4447_v14, 16  ;;  %v4526_v59 = vshrl.u32 %v4449_v18, 16  ;;  %v6311_v8 = vld [vmem:[#allocation2 + $0x40] ss:$8 sps:$4 sm:$0xff]  }
 0x715   : > { %v4463_v1 = vrot.slane %v4462_v54, 4  ;;  %v4500_v63 = vrot.slane %v4498_v60, 4  ;;  %v4503_v31 = vrot.slane %v4501_v30, 5  ;;  %v4493_v36 = vshll.u32 %v7462_v3, 16 }
 0x716   : > { %5980 = vmatpush3.bf16.msra.mxu0 %v6303_v41  ;;  %v6306_v41 = vld [vmem:[#allocation2 + $0x10] ss:$8 sps:$4 sm:$0xff]   ;;  %v4477_v35 = vrot.slane %v4476_v22, 4  ;;  %v4514_v32 = vrot.slane %v4512_v44, 4  ;;  %v4517_v38 = vrot.slane %v4515_v9, 5  ;;  %v4528_v53 = vrot.slane %v4526_v59, 4 }
 0x717   : > { %5989 = vmatprep.subr.bf16.mxu0 %v6304_v58  ;;  %v4468_v46 = vsel %vm6751_vm10, %v4463_v1, %v4467_v24  ;;  %v4504_v37 = vor.u32 %v4503_v31, %v4500_v63  ;;  %v4521_v40 = vshll.u32 %v7468_v19, 16  ;;  %v4535_v14 = vshll.u32 %v7470_v42, 16  ;;  %v4682_v63 = vld [vmem:[#allocation2 + $0x18] sm:$0xe] }
 0x718   : > { %v4495_v30 = vrot.slane %v4493_v36, 5 }
 0x719   : > { %5974 = vmatmul.mubr.msk.bf16.gmra.mrb[28].mxu0 %vm545_vm0, %v5496_v7  ;;  %v4529_v7 = vshll.u32 %v4449_v18, 16  ;;  %v4523_v9 = vrot.slane %v4521_v40, 5  ;;  %v4537_v59 = vrot.slane %v4535_v14, 5  ;;  %v4723_v40 = vrot.slane %v7468_v19, 5 }
 0x71a   : > { %5981 = vmatprep.mubr.msk.bf16.mxu0 %vm545_vm0, %v5515_v49  ;;  %v4453_v49 = vld [vmem:[#allocation2 + $0x48] sm:$0xf] }
 0x71b   : > { %v4557_v12 = vshll.u32 %v4453_v49, 16 }
 0x71d   : > { %v4559_v18 = vrot.slane %v4557_v12, 5 }
 0x721   : > { %5982 = vmatmul.mubr.msk.bf16.vlgmr.msra.gmra.mrb[24].mxu0 %vm545_vm0, %v5516_v39  ;;  %v4531_v39 = vrot.slane %v4529_v7, 5  ;;  %v7478_v7 = vld [vmem:[#allocation2 + $0x44] sm:$0x1] }
 0x722   : > { %5990 = vmatpush3.bf16.msra.mxu0 %v6304_v58  ;;  %5985 = vmatprep.mubr.msk.bf16.mxu0 %vm545_vm0, %v5517_v13  ;;  %v4484_v58 = vshrl.u32 %v4443_v6, 16  ;;  %v4554_v13 = vshrl.u32 %v4453_v49, 16  ;;  %v4549_v24 = vshll.u32 %v7478_v7, 16 }
 0x723   : > { %5991 = vmatprep.subr.bf16.mxu0 %v6305_v57  ;;  %v4532_v10 = vor.u32 %v4531_v39, %v4528_v53 }
 0x724   : > { %v4486_v61 = vrot.slane %v4484_v58, 4  ;;  %v4556_v27 = vrot.slane %v4554_v13, 4  ;;  %v4505_v58 = vrot.slane %v4504_v37, 4  ;;  %v4707_v13 = vrot.slane %v7445_v15, 5 }
 0x725   : > { %v4533_v60 = vrot.slane %v4532_v10, 4  ;;  %v4551_v12 = vrot.slane %v4549_v24, 5 }
 0x726   : > { %5992 = vmatpush3.bf16.msra.mxu0 %v6305_v57  ;;  %v4451_v57 = vld [vmem:[#allocation2 + $0x40] sm:$0xf]  ;;  %v4490_v48 = vor.u32 %v4489_v20, %v4486_v61  ;;  %v4560_v49 = vor.u32 %v4559_v18, %v4556_v27  ;;  %v4563_v61 = vshll.u32 %v7480_v21, 16  ;;  %v4715_v27 = vrot.slane %v7462_v3, 5  ;;  %v4688_v3 = vld [vmem:[#allocation2 + $0x48] sm:$0xe] }
 0x727   : > { %6001 = vmatprep.subr.bf16.mxu0 %v6307_v4  ;;  %v4540_v16 = vshrl.u32 %v4451_v57, 16  ;;  %v4543_v29 = vshll.u32 %v4451_v57, 16  ;;  %v4727_v18 = vrot.slane %v7470_v42, 5 }
 0x728   : > { %v4491_v54 = vrot.slane %v4490_v48, 4  ;;  %v4561_v39 = vrot.slane %v4560_v49, 4  ;;  %v4565_v57 = vrot.slane %v4563_v61, 5  ;;  %v4711_v48 = vrot.slane %v7448_v52, 5  ;;  %v4685_v52 = vld [vmem:[#allocation2 + $0x30] sm:$0xe] }
 0x729   : > { %5986 = vmatmul.mubr.msk.bf16.gmra.mrb[28].mxu0 %vm545_vm0, %v5518_v23  ;;  %v4518_v23 = vor.u32 %v4517_v38, %v4514_v32  ;;  %v4542_v11 = vrot.slane %v4540_v16, 4  ;;  %v4545_v55 = vrot.slane %v4543_v29, 5  ;;  %v6313_v32 = vld [vmem:[%s7642_s6 + $0x88] sm:$0xff]   ;;  %v4683_v16 = vld [vmem:[#allocation2 + $0x20] sm:$0xe] }
 0x72a   : > { %5993 = vmatprep.mubr.msk.bf16.mxu0 %vm545_vm0, %v6306_v41  ;;  %v4507_v41 = vshll.u32 %v7464_v47, 16  ;;  %v4566_v37 = vsel %vm6751_vm10, %v4561_v39, %v4565_v57  ;;  %v5555_v36 = vrot.slane %v4683_v16, 9 }
 0x72b   : > { %v4519_v22 = vrot.slane %v4518_v23, 4  ;;  %v4546_v1 = vor.u32 %v4545_v55, %v4542_v11  ;;  %v4684_v23 = vld [vmem:[#allocation2 + $0x28] sm:$0xe]  ;;  %v4687_v55 = vld [vmem:[#allocation2 + $0x40] sm:$0xe] }
 0x72c   : > { %v4509_v44 = vrot.slane %v4507_v41, 5  ;;  %v5559_v42 = vrot.slane %v4687_v55, 9 }
 0x72d   : > { %v4524_v20 = vsel %vm6751_vm10, %v4519_v22, %v4523_v9  ;;  %v4547_v53 = vrot.slane %v4546_v1, 4  ;;  %v5560_v22 = vrot.slane %v4688_v3, 9 }
 0x731   : > { %5994 = vmatmul.mubr.msk.bf16.vlgmr.msra.gmra.mrb[24].mxu0 %vm545_vm0, %v6308_v45  ;;  %v4496_v45 = vsel %vm6751_vm10, %v4491_v54, %v4495_v30  ;;  %v4716_v54 = vsel %vm6836_vm13, %v5555_v36, %v4715_v27  ;;  %v4731_v30 = vrot.slane %v7478_v7, 5  ;;  %v6315_v7 = vld [vmem:[%s7643_s7 + $0x8] sm:$0xff]  }
 0x732   : > { %6002 = vmatpush3.bf16.msra.mxu0 %v6307_v4  ;;  %5997 = vmatprep.mubr.msk.bf16.mxu0 %vm545_vm0, %v6309_v50  ;;  %v4482_v4 = vsel %vm6751_vm10, %v4477_v35, %v4481_v43  ;;  %v4538_v50 = vsel %vm6751_vm10, %v4533_v60, %v4537_v59  ;;  %v4681_v35 = vld [vmem:[#allocation2 + $0x10] sm:$0xe] }
 0x733   : > { %6003 = vmatprep.subr.bf16.mxu0 %v6310_v0  ;;  %v5543_v6 = vcombine.low %v4468_v46, %v4482_v4  ;;  %v5545_v38 = vcombine.low %v4524_v20, %v4538_v50  ;;  %v5553_v43 = vrot.slane %v4681_v35, 9  ;;  %v5554_v46 = vrot.slane %v4682_v63, 9 }
 0x734   : > { %v4552_v4 = vsel %vm6751_vm10, %v4547_v53, %v4551_v12  ;;  %v4732_v9 = vsel %vm6836_vm13, %v5559_v42, %v4731_v30 }
 0x735   : > { %v4708_v29 = vsel %vm6836_vm13, %v5553_v43, %v4707_v13  ;;  %v4712_v15 = vsel %vm6836_vm13, %v5554_v46, %v4711_v48  ;;  %v5546_v10 = vcombine.low %v4552_v4, %v4566_v37 }
 0x736   : > { %6004 = vmatpush3.bf16.msra.mxu0 %v6310_v0  ;;  %v4510_v0 = vsel %vm6751_vm10, %v4505_v58, %v4509_v44  ;;  %v5565_v41 = vcombine.low %v4708_v29, %v4712_v15  ;;  %v4735_v44 = vrot.slane %v7480_v21, 5 }
 0x737   : > { %6013 = vmatprep.subr.bf16.mxu0 %v6312_v51  ;;  %v5544_v31 = vcombine.low %v4496_v45, %v4510_v0  ;;  %v6314_v45 = vld [vmem:[%s7643_s7] sm:$0xff]  }
 0x738   : > { %v4736_v59 = vsel %vm6836_vm13, %v5560_v22, %v4735_v44  ;;  %6025 = vmatprep.subr.bf16.mxu1 %v6314_v45 }
 0x739   : > { %5998 = vmatmul.mubr.msk.bf16.gmra.mrb[28].mxu0 %vm545_vm0, %v6311_v8  ;;  %v5556_v8 = vrot.slane %v4684_v23, 9  ;;  %v5568_v49 = vcombine.low %v4732_v9, %v4736_v59  ;;  %6026 = vmatpush3.bf16.msra.mxu1 %v6314_v45 }
 0x73a   : > { %6005 = vmatprep.mubr.msk.bf16.mxu0 %vm545_vm0, %v5543_v6  ;;  %v5557_v6 = vrot.slane %v4685_v52, 9  ;;  %6027 = vmatprep.subr.bf16.mxu1 %v6315_v7 }
 0x73b   : > { %v4720_v58 = vsel %vm6836_vm13, %v5556_v8, %v4719_v26 }
 0x73c   : > { %v4724_v47 = vsel %vm6836_vm13, %v5557_v6, %v4723_v40  ;;  %v5566_v19 = vcombine.low %v4716_v54, %v4720_v58 }
 0x73d   : > { %6028 = vmatpush3.bf16.msra.mxu1 %v6315_v7 }
 0x741   : > { %6006 = vmatmul.mubr.msk.bf16.vlgmr.msra.gmra.mrb[24].mxu0 %vm545_vm0, %v5544_v31 }
 0x742   : > { %6014 = vmatpush3.bf16.msra.mxu0 %v6312_v51  ;;  %6009 = vmatprep.mubr.msk.bf16.mxu0 %vm545_vm0, %v5545_v38  ;;  %v4686_v51 = vld [vmem:[#allocation2 + $0x38] sm:$0xe] }
 0x743   : > { %6015 = vmatprep.subr.bf16.mxu0 %v6313_v32  ;;  %v5558_v14 = vrot.slane %v4686_v51, 9 }
 0x745   : > { %v4728_v11 = vsel %vm6836_vm13, %v5558_v14, %v4727_v18 }
 0x746   : > { %6016 = vmatpush3.bf16.msra.mxu0 %v6313_v32  ;;  %v5567_v60 = vcombine.low %v4724_v47, %v4728_v11 }
 0x749   : > { %6010 = vmatmul.mubr.msk.bf16.gmra.mrb[28].mxu0 %vm545_vm0, %v5546_v10 }
 0x74a   : > { %6017 = vmatprep.mubr.msk.bf16.mxu0 %vm545_vm0, %v5565_v41 }
 0x751   : > { %6018 = vmatmul.mubr.msk.bf16.vlgmr.msra.gmra.mrb[24].mxu0 %vm545_vm0, %v5566_v19 }
 0x752   : > { %6021 = vmatprep.mubr.msk.bf16.mxu0 %vm545_vm0, %v5567_v60 }
 0x759   : > { %6022 = vmatmul.mubr.msk.bf16.gmra.mrb[28].mxu0 %vm545_vm0, %v5568_v49 }
 0x824   : > { %v6019_v21 = vpop.f32.mrb[24].mxu0 }
 0x825   : > { %v4812_v0 = vpop.f32.mrb[25].mxu0  ;;  %v4854_v24 = vsel %vm545_vm0, %v6019_v21, 0.0 }
 0x826   : > { %v6020_v1 = vpop.f32.mrb[26].mxu0  ;;  %v4851_v61 = vsel %vm545_vm0, %v4812_v0, 0.0 }
 0x827   : > { %v4815_v25 = vpop.f32.mrb[27].mxu0  ;;  %v4856_v63 = vsel %vm545_vm0, %v6020_v1, 0.0 }
 0x828   : > { %v4852_v20 = vsel %vm545_vm0, %v4815_v25, 0.0 }
 0x829   : > { %v4853_v50 = vadd.f32 %v4852_v20, %v4851_v61 }
 0x82b   : > { %v4855_v35 = vadd.f32 %v4854_v24, %v4853_v50 }
 0x82c   : > { %v6023_v31 = vpop.f32.mrb[28].mxu0 }
 0x82d   : > { %v4828_v32 = vpop.f32.mrb[29].mxu0  ;;  %v4857_v38 = vadd.f32 %v4856_v63, %v4855_v35  ;;  %v4862_v48 = vsel %vm545_vm0, %v6023_v31, 0.0 }
 0x82e   : > { %v4858_v53 = vsel %vm545_vm0, %v4828_v32, 0.0  ;;  %v6024_v39 = vpop.f32.mrb[30].mxu0 }
 0x82f   : > { %v4859_v57 = vadd.f32 %v4858_v53, %v4857_v38  ;;  %v4831_v43 = vpop.f32.mrb[31].mxu0  ;;  %v4864_v4 = vsel %vm545_vm0, %v6024_v39, 0.0 }
 0x830   : > { %v4860_v13 = vsel %vm545_vm0, %v4831_v43, 0.0 }
 0x831   : > { %v4861_v46 = vadd.f32 %v4860_v13, %v4859_v57 }
 0x833   : > { %v4863_v12 = vadd.f32 %v4862_v48, %v4861_v46 }
 0x835   : > { %v4865_v37 = vadd.f32 %v4864_v4, %v4863_v12 }
 0x837   : > { %v4866_v16 = vrot.slane %v4865_v37, 4 }
 0x839   : > { %v4867_v29 = vadd.f32 %v4866_v16, %v4865_v37 }
 0x83b   : > { %v4868_v15 = vrot.slane %v4867_v29, 2 }
 0x83d   : > { %v4869_v23 = vadd.f32 %v4868_v15, %v4867_v29 }
 0x83f   : > { %v4870_v52 = vrot.slane %v4869_v23, 1 }
 0x841   : > { %v4871_v51 = vadd.f32 %v4870_v52, %v4869_v23 }
 0x843   : > { %v4872_v10 = vmul.f32 0.015625, %v4871_v51 }
 0x845   : > { %v4873_v36 = vsub.f32 %v4812_v0, %v4872_v10  ;;  %v4874_v41 = vsub.f32 %v4815_v25, %v4872_v10  ;;  %v4875_v27 = vsub.f32 %v6019_v21, %v4872_v10  ;;  %v4876_v8 = vsub.f32 %v6020_v1, %v4872_v10 }
 0x846   : > { %v4877_v26 = vsub.f32 %v4828_v32, %v4872_v10  ;;  %v4878_v6 = vsub.f32 %v4831_v43, %v4872_v10  ;;  %v4879_v40 = vsub.f32 %v6023_v31, %v4872_v10  ;;  %v4880_v14 = vsub.f32 %v6024_v39, %v4872_v10 }
 0x847   : > { %v4881_v18 = vmul.f32 %v4873_v36, %v4873_v36  ;;  %v4882_v54 = vmul.f32 %v4874_v41, %v4874_v41  ;;  %v4883_v58 = vmul.f32 %v4875_v27, %v4875_v27  ;;  %v4884_v3 = vmul.f32 %v4876_v8, %v4876_v8 }
 0x848   : > { %v4885_v19 = vmul.f32 %v4877_v26, %v4877_v26  ;;  %v4886_v42 = vmul.f32 %v4878_v6, %v4878_v6  ;;  %v4887_v9 = vmul.f32 %v4879_v40, %v4879_v40  ;;  %v4888_v45 = vmul.f32 %v4880_v14, %v4880_v14 }
 0x849   : > { %v4889_v47 = vsel %vm545_vm0, %v4881_v18, 0.0  ;;  %v4890_v11 = vsel %vm545_vm0, %v4882_v54, 0.0  ;;  %v4892_v22 = vsel %vm545_vm0, %v4883_v58, 0.0  ;;  %v4894_v30 = vsel %vm545_vm0, %v4884_v3, 0.0 }
 0x84a   : > { %v4891_v55 = vadd.f32 %v4890_v11, %v4889_v47  ;;  %v4896_v59 = vsel %vm545_vm0, %v4885_v19, 0.0  ;;  %v4898_v7 = vsel %vm545_vm0, %v4886_v42, 0.0  ;;  %v4900_v0 = vsel %vm545_vm0, %v4887_v9, 0.0 }
 0x84b   : > { %v4902_v25 = vsel %vm545_vm0, %v4888_v45, 0.0 }
 0x84c   : > { %v4893_v60 = vadd.f32 %v4892_v22, %v4891_v55 }
 0x84e   : > { %v4895_v44 = vadd.f32 %v4894_v30, %v4893_v60 }
 0x850   : > { %v4897_v49 = vadd.f32 %v4896_v59, %v4895_v44 }
 0x852   : > { %v4899_v21 = vadd.f32 %v4898_v7, %v4897_v49 }
 0x854   : > { %v4901_v1 = vadd.f32 %v4900_v0, %v4899_v21 }
 0x856   : > { %v4903_v61 = vadd.f32 %v4902_v25, %v4901_v1 }
 0x858   : > { %v4904_v20 = vrot.slane %v4903_v61, 4 }
 0x85a   : > { %v4905_v50 = vadd.f32 %v4904_v20, %v4903_v61 }
 0x85c   : > { %v4906_v24 = vrot.slane %v4905_v50, 2 }
 0x85e   : > { %v4907_v35 = vadd.f32 %v4906_v24, %v4905_v50 }
 0x860   : > { %v4908_v63 = vrot.slane %v4907_v35, 1 }
 0x862   : > { %v4909_v31 = vadd.f32 %v4908_v63, %v4907_v35 }
 0x864   : > { %v4910_v32 = vmul.f32 0.015625, %v4909_v31 }
 0x866   : > { %v4911_v38 = vadd.f32 1e-05, %v4910_v32 }
 0x868   : > { %6326 = vrsqrt.f32 %v4911_v38 }
 0x872   : > { %v6327_v53 = vpop.eup %6326 }
 0x873   : > { %v4915_v39 = vmul.f32 %v6327_v53, %v4875_v27  ;;  %v4916_v57 = vmul.f32 %v6327_v53, %v4876_v8  ;;  %v4917_v43 = vmul.f32 %v6327_v53, %v4877_v26  ;;  %v4918_v13 = vmul.f32 %v6327_v53, %v4878_v6 }
 0x874   : > { %v4913_v46 = vmul.f32 %v6327_v53, %v4873_v36  ;;  %v4914_v48 = vmul.f32 %v6327_v53, %v4874_v41  ;;  %v4919_v12 = vmul.f32 %v6327_v53, %v4879_v40  ;;  %v4920_v4 = vmul.f32 %v6327_v53, %v4880_v14 }
 0x875   : > { %v4923_v37 = vmul.f32 0.1, %v4915_v39  ;;  %v4924_v16 = vmul.f32 0.1, %v4916_v57  ;;  %v4925_v29 = vmul.f32 0.1, %v4917_v43 }
 0x876   : > { %v4926_v15 = vmul.f32 0.1, %v4918_v13  ;;  %v4921_v23 = vmul.f32 0.1, %v4913_v46  ;;  %v4922_v52 = vmul.f32 0.1, %v4914_v48 }
 0x877   : > { %v4932_v51 = vmax.f32 %v4916_v57, %v4924_v16  ;;  %v4933_v10 = vmax.f32 %v4917_v43, %v4925_v29  ;;  %v4931_v18 = vmax.f32 %v4915_v39, %v4923_v37  ;;  %v4927_v54 = vmul.f32 0.1, %v4919_v12 }
 0x878   : > { %v4934_v58 = vmax.f32 %v4918_v13, %v4926_v15  ;;  %v4929_v3 = vmax.f32 %v4913_v46, %v4921_v23  ;;  %v4930_v27 = vmax.f32 %v4914_v48, %v4922_v52  ;;  %v4928_v8 = vmul.f32 0.1, %v4920_v4 }
 0x879   : > { %v4938_v26 = vpack.c.bf16 %v4932_v51, %v4931_v18  ;;  %v4935_v6 = vmax.f32 %v4919_v12, %v4927_v54 }
 0x87a   : > { %v4939_v36 = vpack.c.bf16 %v4934_v58, %v4933_v10  ;;  %v4937_v41 = vpack.c.bf16 %v4930_v27, %v4929_v3  ;;  %v4936_v40 = vmax.f32 %v4920_v4, %v4928_v8 }
 0x87c   : > { %6029 = vmatprep.mubr.msk.bf16.mxu1 %vm545_vm0, %v4937_v41  ;;  %v4940_v14 = vpack.c.bf16 %v4936_v40, %v4935_v6 }
 0x87d   : > { %6030 = vmatmul.mubr.msk.bf16.vlgmr.msra.gmra.mrb[24].mxu1 %vm545_vm0, %v4938_v26 }
 0x87e   : > { %6033 = vmatprep.mubr.msk.bf16.mxu1 %vm545_vm0, %v4939_v36 }
 0x885   : > { %6034 = vmatmul.mubr.msk.bf16.gmra.mrb[28].mxu1 %vm545_vm0, %v4940_v14 }
 0x950   : > { %v6031_v47 = vpop.f32.mrb[24].mxu1 }
 0x951   : > { %v5003_v11 = vpop.f32.mrb[25].mxu1  ;;  %v5037_v30 = vsel %vm545_vm0, %v6031_v47, 0.0 }
 0x952   : > { %v6032_v55 = vpop.f32.mrb[26].mxu1  ;;  %v5034_v22 = vsel %vm545_vm0, %v5003_v11, 0.0 }
 0x953   : > { %v5006_v19 = vpop.f32.mrb[27].mxu1  ;;  %v5039_v9 = vsel %vm545_vm0, %v6032_v55, 0.0 }
 0x954   : > { %v5035_v60 = vsel %vm545_vm0, %v5006_v19, 0.0 }
 0x955   : > { %v5036_v42 = vadd.f32 %v5035_v60, %v5034_v22 }
 0x957   : > { %v5038_v44 = vadd.f32 %v5037_v30, %v5036_v42 }
 0x958   : > { %v6035_v59 = vpop.f32.mrb[28].mxu1 }
 0x959   : > { %v5019_v49 = vpop.f32.mrb[29].mxu1  ;;  %v5040_v45 = vadd.f32 %v5039_v9, %v5038_v44  ;;  %v5045_v20 = vsel %vm545_vm0, %v6035_v59, 0.0 }
 0x95a   : > { %v5041_v7 = vsel %vm545_vm0, %v5019_v49, 0.0  ;;  %v6036_v21 = vpop.f32.mrb[30].mxu1 }
 0x95b   : > { %v5042_v0 = vadd.f32 %v5041_v7, %v5040_v45  ;;  %v5022_v1 = vpop.f32.mrb[31].mxu1  ;;  %v5047_v24 = vsel %vm545_vm0, %v6036_v21, 0.0 }
 0x95c   : > { %v5043_v25 = vsel %vm545_vm0, %v5022_v1, 0.0 }
 0x95d   : > { %v5044_v61 = vadd.f32 %v5043_v25, %v5042_v0 }
 0x95f   : > { %v5046_v50 = vadd.f32 %v5045_v20, %v5044_v61 }
 0x961   : > { %v5048_v35 = vadd.f32 %v5047_v24, %v5046_v50 }
 0x963   : > { %v5049_v63 = vrot.slane %v5048_v35, 4 }
 0x965   : > { %v5050_v31 = vadd.f32 %v5049_v63, %v5048_v35 }
 0x967   : > { %v5051_v32 = vrot.slane %v5050_v31, 2 }
 0x969   : > { %v5052_v38 = vadd.f32 %v5051_v32, %v5050_v31 }
 0x96b   : > { %v5053_v53 = vrot.slane %v5052_v38, 1 }
 0x96d   : > { %v5054_v39 = vadd.f32 %v5053_v53, %v5052_v38 }
 0x96f   : > { %v5055_v57 = vmul.f32 0.015625, %v5054_v39 }
 0x971   : > { %v5056_v43 = vsub.f32 %v5003_v11, %v5055_v57  ;;  %v5057_v13 = vsub.f32 %v5006_v19, %v5055_v57  ;;  %v5058_v46 = vsub.f32 %v6031_v47, %v5055_v57  ;;  %v5059_v48 = vsub.f32 %v6032_v55, %v5055_v57 }
 0x972   : > { %v5060_v12 = vsub.f32 %v5019_v49, %v5055_v57  ;;  %v5061_v4 = vsub.f32 %v5022_v1, %v5055_v57  ;;  %v5062_v37 = vsub.f32 %v6035_v59, %v5055_v57  ;;  %v5063_v16 = vsub.f32 %v6036_v21, %v5055_v57 }
 0x973   : > { %v5064_v29 = vmul.f32 %v5056_v43, %v5056_v43  ;;  %v5065_v15 = vmul.f32 %v5057_v13, %v5057_v13  ;;  %v5066_v23 = vmul.f32 %v5058_v46, %v5058_v46  ;;  %v5067_v52 = vmul.f32 %v5059_v48, %v5059_v48 }
 0x974   : > { %v5068_v54 = vmul.f32 %v5060_v12, %v5060_v12  ;;  %v5069_v27 = vmul.f32 %v5061_v4, %v5061_v4  ;;  %v5070_v6 = vmul.f32 %v5062_v37, %v5062_v37  ;;  %v5071_v40 = vmul.f32 %v5063_v16, %v5063_v16 }
 0x975   : > { %v5072_v51 = vsel %vm545_vm0, %v5064_v29, 0.0  ;;  %v5073_v10 = vsel %vm545_vm0, %v5065_v15, 0.0  ;;  %v5075_v58 = vsel %vm545_vm0, %v5066_v23, 0.0  ;;  %v5077_v8 = vsel %vm545_vm0, %v5067_v52, 0.0 }
 0x976   : > { %v5074_v18 = vadd.f32 %v5073_v10, %v5072_v51  ;;  %v5079_v36 = vsel %vm545_vm0, %v5068_v54, 0.0  ;;  %v5081_v14 = vsel %vm545_vm0, %v5069_v27, 0.0  ;;  %v5083_v11 = vsel %vm545_vm0, %v5070_v6, 0.0 }
 0x977   : > { %v5085_v19 = vsel %vm545_vm0, %v5071_v40, 0.0 }
 0x978   : > { %v5076_v3 = vadd.f32 %v5075_v58, %v5074_v18 }
 0x97a   : > { %v5078_v26 = vadd.f32 %v5077_v8, %v5076_v3 }
 0x97c   : > { %v5080_v41 = vadd.f32 %v5079_v36, %v5078_v26 }
 0x97e   : > { %v5082_v47 = vadd.f32 %v5081_v14, %v5080_v41 }
 0x980   : > { %v5084_v55 = vadd.f32 %v5083_v11, %v5082_v47 }
 0x982   : > { %v5086_v22 = vadd.f32 %v5085_v19, %v5084_v55 }
 0x984   : > { %v5087_v60 = vrot.slane %v5086_v22, 4 }
 0x986   : > { %v5088_v42 = vadd.f32 %v5087_v60, %v5086_v22 }
 0x988   : > { %v5089_v30 = vrot.slane %v5088_v42, 2 }
 0x98a   : > { %v5090_v44 = vadd.f32 %v5089_v30, %v5088_v42 }
 0x98c   : > { %v5091_v9 = vrot.slane %v5090_v44, 1 }
 0x98e   : > { %v5092_v59 = vadd.f32 %v5091_v9, %v5090_v44 }
 0x990   : > { %v5093_v49 = vmul.f32 0.015625, %v5092_v59 }
 0x992   : > { %v5094_v45 = vadd.f32 1e-05, %v5093_v49 }
 0x994   : > { %6328 = vrsqrt.f32 %v5094_v45 }
 0x99e   : > { %v6329_v7 = vpop.eup %6328 }
 0x99f   : > { %v5096_v21 = vmul.f32 %v6329_v7, %v5056_v43  ;;  %v5097_v0 = vmul.f32 %v6329_v7, %v5057_v13  ;;  %v5098_v1 = vmul.f32 %v6329_v7, %v5058_v46  ;;  %v5099_v25 = vmul.f32 %v6329_v7, %v5059_v48 }
 0x9a0   : > { %v5100_v61 = vmul.f32 %v6329_v7, %v5060_v12  ;;  %v5101_v20 = vmul.f32 %v6329_v7, %v5061_v4  ;;  %v5102_v50 = vmul.f32 %v6329_v7, %v5062_v37  ;;  %v5103_v24 = vmul.f32 %v6329_v7, %v5063_v16 }
 0x9a1   : > { %v5104_v35 = vmul.f32 0.1, %v5096_v21  ;;  %v5105_v63 = vmul.f32 0.1, %v5097_v0  ;;  %v5106_v31 = vmul.f32 0.1, %v5098_v1 }
 0x9a2   : > { %v5107_v32 = vmul.f32 0.1, %v5099_v25  ;;  %v5108_v38 = vmul.f32 0.1, %v5100_v61  ;;  %v5109_v53 = vmul.f32 0.1, %v5101_v20 }
 0x9a3   : > { %v5112_v39 = vmax.f32 %v5096_v21, %v5104_v35  ;;  %v5113_v57 = vmax.f32 %v5097_v0, %v5105_v63  ;;  %v5114_v29 = vmax.f32 %v5098_v1, %v5106_v31  ;;  %v5110_v23 = vmul.f32 0.1, %v5102_v50 }
 0x9a4   : > { %v5115_v15 = vmax.f32 %v5099_v25, %v5107_v32  ;;  %v5116_v52 = vmax.f32 %v5100_v61, %v5108_v38  ;;  %v5111_v46 = vmul.f32 0.1, %v5103_v24  ;;  %v5117_v12 = vmax.f32 %v5101_v20, %v5109_v53 }
 0x9a5   : > { %v5120_v43 = vadd.f32 %v5112_v39, %v7115_v33  ;;  %v5121_v13 = vadd.f32 %v5113_v57, %v7118_v34  ;;  %v5122_v48 = vadd.f32 %v5114_v29, %v7106_v17  ;;  %v5118_v10 = vmax.f32 %v5102_v50, %v5110_v23 }
 0x9a6   : > { %v5123_v4 = vadd.f32 %v5115_v15, %v7109_v5  ;;  %v5124_v18 = vadd.f32 %v5116_v52, %v7121_v56  ;;  %v5119_v33 = vmax.f32 %v5103_v24, %v5111_v46  ;;  %v5125_v34 = vadd.f32 %v5117_v12, %v7112_v28 }
 0x9a7   : > { %v5128_v37 = vsel %vm545_vm0, %v5120_v43, 0.0  ;;  %v5129_v16 = vsel %vm545_vm0, %v5121_v13, 0.0  ;;  %v5131_v54 = vsel %vm545_vm0, %v5122_v48, 0.0  ;;  %v5126_v5 = vadd.f32 %v5118_v10, %v7133_v62 }
 0x9a8   : > { %v5130_v51 = vadd.f32 %v5129_v16, %v5128_v37  ;;  %v5133_v17 = vsel %vm545_vm0, %v5123_v4, 0.0  ;;  %v5135_v27 = vsel %vm545_vm0, %v5124_v18, 0.0  ;;  %v5127_v26 = vadd.f32 %v5119_v33, %v7136_v2 }
 0x9a9   : > { %v5137_v56 = vsel %vm545_vm0, %v5125_v34, 0.0  ;;  %v5139_v36 = vsel %vm545_vm0, %v5126_v5, 0.0 }
 0x9aa   : > { %v5132_v58 = vadd.f32 %v5131_v54, %v5130_v51  ;;  %v5141_v40 = vsel %vm545_vm0, %v5127_v26, 0.0 }
 0x9ac   : > { %v5134_v3 = vadd.f32 %v5133_v17, %v5132_v58 }
 0x9ae   : > { %v5136_v8 = vadd.f32 %v5135_v27, %v5134_v3 }
 0x9b0   : > { %v5138_v6 = vadd.f32 %v5137_v56, %v5136_v8 }
 0x9b2   : > { %v5140_v41 = vadd.f32 %v5139_v36, %v5138_v6 }
 0x9b4   : > { %v5142_v28 = vadd.f32 %v5141_v40, %v5140_v41 }
 0x9b6   : > { %v5143_v14 = vrot.slane %v5142_v28, 4 }
 0x9b8   : > { %v5144_v47 = vadd.f32 %v5143_v14, %v5142_v28 }
 0x9ba   : > { %v5145_v62 = vrot.slane %v5144_v47, 2 }
 0x9bc   : > { %v5146_v11 = vadd.f32 %v5145_v62, %v5144_v47 }
 0x9be   : > { %v5147_v55 = vrot.slane %v5146_v11, 1 }
 0x9c0   : > { %v5148_v2 = vadd.f32 %v5147_v55, %v5146_v11 }
 0x9c2   : > { %v5149_v19 = vmul.f32 0.015625, %v5148_v2 }
 0x9c4   : > { %5150 = vst.msk [vmem:[%s297_s12] sm:$0x1] %vm635_vm1, %v5149_v19 }
 0x9c5   : > { %6344 = shalt.err (!%p6341_p3)
}
 0x9c6   : > { %s6345_s23 = scalar_lea.hbm %s7593_s19, 16  ;;  %s6349_s10 = scalar_lea.hbm %s7644_s8, 32 }
 0x9c7   : > { %p6346_p4 = scmp.ne.s32.totalorder %s7593_s19, %s6345_s23  ;;  %p6350_p9 = scmp.lt.u32.totalorder %s7593_s19, %s7644_s8 }
 0x9c8   : > { %p6351_p10 = scmp.lt.u32.totalorder %s6349_s10, %s6345_s23  ;;  %p6353_p12 = scmp.lt.u32.totalorder %s6345_s23, %s7593_s19 }
 0x9c9   : > { %p6347_p7 = pnand %p6346_p4, %p6480_p5 }
 0x9ca   : > { %p6352_p11 = por %p6351_p10, %p6350_p9 }
 0x9cb   : > { %p6348_p8 = pneg %p6347_p7 }
 0x9cc   : > { %p6354_p13 = por %p6353_p12, %p6352_p11 }
 0x9ce   : > { %p6355_p0 = pnand %p6354_p13, %p6348_p8 }
 0x9d0   : > { %6358 = shalt.err (!%p6355_p0)
}
 0x9d1   : > { %6181 = dma.vmem_to_hbm [thread:$0]  (%p6480_p5), %s7595_s13, 16, %s7593_s19, %s5152_s26  }
 0x9d2 PF: > { %p6187_p1 = scmp.ge.s32.totalorder %s6393_s30, 2  ;;  %s5176_s18 = sand.u32 1, %s6381_s27  }
 0x9d3   : > { %s5177_s20 = scalar_lea.sflag [#allocation4], %s5176_s18 }
 0x9d4   : > { %p6184_p2 = pnand %p6187_p1, %p6484_p6 }
 0x9d6   : > { %6376 = dma.done.wait (!%p6184_p2), %s5177_s20, 16  }
 0x9d7   : > { %6378 = vsyncadd (!%p6184_p2), %s5177_s20, 4294967280  ;;  %p18_p3 = scmp.ge.s32.totalorder %s6467_s11, 4   ;;  %s7657_s27 = smov %s6385_s28 }
 0x9d8   : > { %s7658_s28 = smov %s6389_s29  ;;  %s7659_s29 = smov %s6478_s14 }
 0x9d9   : > { %s7660_s30 = smov %s6467_s11  ;;  %20 = sbr.rel (!%p18_p3) target bundleno = 3 (0x3), region = 106 }
 0x9e0   :  { %5181 = vsyncpa [#allocation4], 1 }
 0x9e1   :  { %5183 = vsyncpa [#allocation4 + $0x1], 1 }

</bundles_post_ra>
